<compile_context>
chip_gen: v7x
topology: tpu7x:2x2x1
jax: 0.10.0
libtpu: 0.0.40
codegen_flags: <defaults>
</compile_context>

<pallas_src>
import jax
import jax.numpy as jnp
from jax.experimental import pallas as pl
from jax.experimental.pallas import tpu as pltpu

_D_HID1, _D_HID2, _D_OUT = 2048, 1024, 10
_LANE = 128
_OUT_PAD = 128  # lane-dense output slab width (logits live in cols [:10])


def _round_up(n, m):
    return ((n + m - 1) // m) * m


def _mlp_kernel(x_ref, w1_ref, b1_ref, w2_ref, b2_ref, w3_ref, b3_ref, o_ref):
    # dense1 + relu (bf16 operands, f32 accumulation); bf16 down-cast fused
    # into the activation so the [tb,2048] intermediate is stored as bf16.
    h1 = jnp.dot(x_ref[...], w1_ref[...], preferred_element_type=jnp.float32)
    h1 = jnp.maximum(h1 + b1_ref[...], 0.0).astype(jnp.bfloat16)
    # dense2 + relu
    h2 = jnp.dot(h1, w2_ref[...], preferred_element_type=jnp.float32)
    h2 = jnp.maximum(h2 + b2_ref[...], 0.0).astype(jnp.bfloat16)
    # dense3 into a lane-dense 128-wide slab (padded cols are zero weight/bias)
    out = jnp.dot(h2, w3_ref[...], preferred_element_type=jnp.float32) + b3_ref[...]
    o_ref[...] = out.astype(o_ref.dtype)


def wide_ff_forward(x, params, tb=512):
    """Pallas forward for the 3-layer MLP.

    x: [B, 10*(H+1) + 3*H] float32 (or bf16)
    params (from init_params): w1 [D_pad,2048] bf16 (zero-padded rows),
        b1 [1,2048] f32, w2 [2048,1024] bf16, b2 [1,1024] f32,
        w3 [1024,128] bf16 (zero-padded cols), b3 [1,128] f32 (zero-padded).
    Returns [B, 10] float32.
    """
    B, d_in = x.shape
    w1, b1 = params["w1"], params["b1"]
    w2, b2 = params["w2"], params["b2"]
    w3, b3 = params["w3"], params["b3"]

    d_in_pad = w1.shape[0]
    n_out_pad = w3.shape[1]
    assert d_in_pad >= d_in and d_in_pad % _LANE == 0

    # Clamp the batch tile to the (8-aligned) batch so tiny demos don't pad to 512.
    tb = max(8, min(tb, _round_up(B, 8)))
    nb = pl.cdiv(B, tb)
    b_pad = nb * tb

    # Stream x as bf16; zero-pad rows to the batch-tile multiple and cols to
    # the zero-row-padded w1 contraction dim (zeros contribute nothing).
    x = x.astype(jnp.bfloat16)
    if (b_pad, d_in_pad) != (B, d_in):
        x = jnp.pad(x, ((0, b_pad - B), (0, d_in_pad - d_in)))

    const = lambda i: (0, 0)

    def const_spec(shape):
        # Constant-index blocks never revisit -> one VMEM buffer is enough.
        return pl.BlockSpec(shape, const, pipeline_mode=pl.Buffered(1))

    grid_spec = pltpu.PrefetchScalarGridSpec(
        num_scalar_prefetch=0,
        grid=(nb,),
        in_specs=[
            pl.BlockSpec((tb, d_in_pad), lambda i: (i, 0)),   # x tile (pipelined)
            const_spec(w1.shape),                              # w1 (VMEM-resident)
            const_spec(b1.shape),                              # b1
            const_spec(w2.shape),                              # w2
            const_spec(b2.shape),                              # b2
            const_spec(w3.shape),                              # w3
            const_spec(b3.shape),                              # b3
        ],
        out_specs=pl.BlockSpec((tb, n_out_pad), lambda i: (i, 0)),
    )

    # Megacore sharding (v7x) only pays once per-core compute exceeds the
    # duplicated weight DMA; require a few tiles per core before using it.
    semantics = ("parallel",) if nb >= 4 else ("arbitrary",)

    out = pl.pallas_call(
        _mlp_kernel,
        out_shape=jax.ShapeDtypeStruct((b_pad, n_out_pad), jnp.float32),
        grid_spec=grid_spec,
        compiler_params=pltpu.CompilerParams(
            dimension_semantics=semantics,
            vmem_limit_bytes=32 << 20,   # <~15 MiB actually needed at tb=512
        ),
    )(x, w1, b1, w2, b2, w3, b3)
    return out[:B, :_D_OUT]


def init_params(history_length, key):
    """nn.Linear-style init; weights stored [in, out] bf16, padded for the kernel."""
    d_in = 10 * (history_length + 1) + 3 * history_length
    d_in_pad = _round_up(d_in, _LANE)
    dims = [(d_in, _D_HID1), (_D_HID1, _D_HID2), (_D_HID2, _D_OUT)]
    keys = jax.random.split(key, 6)
    params = {}
    for i, (fan_in, fan_out) in enumerate(dims, start=1):
        bound = 1.0 / jnp.sqrt(fan_in)  # matches nn.Linear default init scale
        w = jax.random.uniform(
            keys[2 * (i - 1)], (fan_in, fan_out), jnp.float32, -bound, bound)
        b = jax.random.uniform(
            keys[2 * (i - 1) + 1], (1, fan_out), jnp.float32, -bound, bound)
        if i == 1:   # zero-pad contraction rows to a lane multiple
            w = jnp.pad(w, ((0, d_in_pad - fan_in), (0, 0)))
        if i == 3:   # zero-pad output cols to a lane-dense slab
            w = jnp.pad(w, ((0, 0), (0, _OUT_PAD - fan_out)))
            b = jnp.pad(b, ((0, 0), (0, _OUT_PAD - fan_out)))
        params[f"w{i}"] = w.astype(jnp.bfloat16)   # weights streamed as bf16
        params[f"b{i}"] = b                        # biases stay f32
    return params, d_in


def reference_forward_bf16(x, p, d_in):
    """Same math as the kernel (bf16 operands, f32 accumulation) in plain JAX."""
    w1 = p["w1"][:d_in]
    h1 = jnp.dot(x.astype(jnp.bfloat16), w1,
                 preferred_element_type=jnp.float32) + p["b1"]
    h1 = jax.nn.relu(h1).astype(jnp.bfloat16)
    h2 = jnp.dot(h1, p["w2"], preferred_element_type=jnp.float32) + p["b2"]
    h2 = jax.nn.relu(h2).astype(jnp.bfloat16)
    out = jnp.dot(h2, p["w3"], preferred_element_type=jnp.float32) + p["b3"]
    return out[:, :_D_OUT]


def reference_forward_f32(x, p, d_in):
    """Original-module semantics in full f32 (checked with loose tolerance)."""
    w1 = p["w1"][:d_in].astype(jnp.float32)
    w2 = p["w2"].astype(jnp.float32)
    w3 = p["w3"][:, :_D_OUT].astype(jnp.float32)
    h1 = jax.nn.relu(x @ w1 + p["b1"])
    h2 = jax.nn.relu(h1 @ w2 + p["b2"])
    return h2 @ w3 + p["b3"][:, :_D_OUT]


if __name__ == "__main__":
    history_length = 2          # -> input dim = 10*3 + 3*2 = 36
    batch = 32                  # small demo batch
    key = jax.random.PRNGKey(0)
    pkey, xkey = jax.random.split(key)

    params, d_in = init_params(history_length, pkey)
    x = jax.random.normal(xkey, (batch, d_in), jnp.float32)

    out = wide_ff_forward(x, params)
    out = jax.block_until_ready(out)
    assert out.shape == (batch, _D_OUT)

    # Exact-math check against a bf16-consistent JAX reference.
    ref = reference_forward_bf16(x, params, d_in)
    assert jnp.allclose(out, ref, atol=2e-3, rtol=2e-3)

    # Semantics check against the original f32 module (bf16 weight quant error).
    ref32 = reference_forward_f32(x, params, d_in)
    assert jnp.allclose(out, ref32, atol=1e-1, rtol=1e-1)

    print("KERNEL_OK")
</pallas_src>

<mosaic_0001>
module attributes {stable_mosaic.version = 11 : i64} {
  func.func @_mlp_kernel(%arg0: i32, %arg1: memref<32x128xbf16, #tpu.memory_space<vmem>>, %arg2: memref<128x2048xbf16, #tpu.memory_space<vmem>>, %arg3: memref<1x2048xf32, #tpu.memory_space<vmem>>, %arg4: memref<2048x1024xbf16, #tpu.memory_space<vmem>>, %arg5: memref<1x1024xf32, #tpu.memory_space<vmem>>, %arg6: memref<1024x128xbf16, #tpu.memory_space<vmem>>, %arg7: memref<1x128xf32, #tpu.memory_space<vmem>>, %arg8: memref<32x128xf32, #tpu.memory_space<vmem>>) attributes {dimension_semantics = [#tpu.dimension_semantics<arbitrary>], iteration_bounds = array<i64: 1>, scalar_prefetch = 0 : i64, scratch_operands = 0 : i64, tpu.core_type = #tpu.core_type<tc>, window_params = [{transform_indices = @transform_0, window_bounds = array<i64: 32, 128>}, {pipeline_mode = #tpu.pipeline_mode<synchronous>, transform_indices = @transform_1, window_bounds = array<i64: 128, 2048>}, {pipeline_mode = #tpu.pipeline_mode<synchronous>, transform_indices = @transform_2, window_bounds = array<i64: 1, 2048>}, {pipeline_mode = #tpu.pipeline_mode<synchronous>, transform_indices = @transform_3, window_bounds = array<i64: 2048, 1024>}, {pipeline_mode = #tpu.pipeline_mode<synchronous>, transform_indices = @transform_4, window_bounds = array<i64: 1, 1024>}, {pipeline_mode = #tpu.pipeline_mode<synchronous>, transform_indices = @transform_5, window_bounds = array<i64: 1024, 128>}, {pipeline_mode = #tpu.pipeline_mode<synchronous>, transform_indices = @transform_6, window_bounds = array<i64: 1, 128>}, {transform_indices = @transform_7, window_bounds = array<i64: 32, 128>}]} {
    %c0 = arith.constant 0 : index
    %c0_0 = arith.constant 0 : index
    %0 = vector.load %arg1[%c0, %c0_0] : memref<32x128xbf16, #tpu.memory_space<vmem>>, vector<32x128xbf16>
    %c0_1 = arith.constant 0 : index
    %c0_2 = arith.constant 0 : index
    %1 = vector.load %arg2[%c0_1, %c0_2] : memref<128x2048xbf16, #tpu.memory_space<vmem>>, vector<128x2048xbf16>
    %cst = arith.constant dense<0.000000e+00> : vector<32x2048xf32>
    %2 = tpu.matmul %0, %1, %cst {dimension_numbers = #tpu.dot_dimension_numbers<[1], [0], [0], [1], [0, 0, 1, 1], [], []>} : vector<32x128xbf16>, vector<128x2048xbf16>, vector<32x2048xf32> -> vector<32x2048xf32>
    %c0_3 = arith.constant 0 : index
    %c0_4 = arith.constant 0 : index
    %3 = vector.load %arg3[%c0_3, %c0_4] : memref<1x2048xf32, #tpu.memory_space<vmem>>, vector<1x2048xf32>
    %4 = vector.broadcast %3 : vector<1x2048xf32> to vector<32x2048xf32>
    %5 = arith.addf %2, %4 : vector<32x2048xf32>
    %cst_5 = arith.constant 0.000000e+00 : f32
    %6 = vector.broadcast %cst_5 : f32 to vector<32x2048xf32>
    %7 = arith.maximumf %5, %6 : vector<32x2048xf32>
    %8 = arith.truncf %7 : vector<32x2048xf32> to vector<32x2048xbf16>
    %c0_6 = arith.constant 0 : index
    %c0_7 = arith.constant 0 : index
    %9 = vector.load %arg4[%c0_6, %c0_7] : memref<2048x1024xbf16, #tpu.memory_space<vmem>>, vector<2048x1024xbf16>
    %cst_8 = arith.constant dense<0.000000e+00> : vector<32x1024xf32>
    %10 = tpu.matmul %8, %9, %cst_8 {dimension_numbers = #tpu.dot_dimension_numbers<[1], [0], [0], [1], [0, 0, 1, 1], [], []>} : vector<32x2048xbf16>, vector<2048x1024xbf16>, vector<32x1024xf32> -> vector<32x1024xf32>
    %c0_9 = arith.constant 0 : index
    %c0_10 = arith.constant 0 : index
    %11 = vector.load %arg5[%c0_9, %c0_10] : memref<1x1024xf32, #tpu.memory_space<vmem>>, vector<1x1024xf32>
    %12 = vector.broadcast %11 : vector<1x1024xf32> to vector<32x1024xf32>
    %13 = arith.addf %10, %12 : vector<32x1024xf32>
    %cst_11 = arith.constant 0.000000e+00 : f32
    %14 = vector.broadcast %cst_11 : f32 to vector<32x1024xf32>
    %15 = arith.maximumf %13, %14 : vector<32x1024xf32>
    %16 = arith.truncf %15 : vector<32x1024xf32> to vector<32x1024xbf16>
    %c0_12 = arith.constant 0 : index
    %c0_13 = arith.constant 0 : index
    %17 = vector.load %arg6[%c0_12, %c0_13] : memref<1024x128xbf16, #tpu.memory_space<vmem>>, vector<1024x128xbf16>
    %cst_14 = arith.constant dense<0.000000e+00> : vector<32x128xf32>
    %18 = tpu.matmul %16, %17, %cst_14 {dimension_numbers = #tpu.dot_dimension_numbers<[1], [0], [0], [1], [0, 0, 1, 1], [], []>} : vector<32x1024xbf16>, vector<1024x128xbf16>, vector<32x128xf32> -> vector<32x128xf32>
    %c0_15 = arith.constant 0 : index
    %c0_16 = arith.constant 0 : index
    %19 = vector.load %arg7[%c0_15, %c0_16] : memref<1x128xf32, #tpu.memory_space<vmem>>, vector<1x128xf32>
    %20 = vector.broadcast %19 : vector<1x128xf32> to vector<32x128xf32>
    %21 = arith.addf %18, %20 : vector<32x128xf32>
    %c0_17 = arith.constant 0 : index
    %c0_18 = arith.constant 0 : index
    %22 = vector.load %arg8[%c0_17, %c0_18] : memref<32x128xf32, #tpu.memory_space<vmem>>, vector<32x128xf32>
    tpu.vector_store %arg8[%c0_17, %c0_18], %21 {strides = array<i32>} : memref<32x128xf32, #tpu.memory_space<vmem>>, vector<32x128xf32>,
    return
  }
  func.func @transform_0(%arg0: i32) -> (i32, i32) {
    %c0_i32 = arith.constant 0 : i32
    %c0_i32_0 = arith.constant 0 : i32
    return %arg0, %c0_i32 : i32, i32
  }
  func.func @transform_1(%arg0: i32) -> (i32, i32) {
    %c0_i32 = arith.constant 0 : i32
    %c0_i32_0 = arith.constant 0 : i32
    %c0_i32_1 = arith.constant 0 : i32
    return %c0_i32, %c0_i32_0 : i32, i32
  }
  func.func @transform_2(%arg0: i32) -> (i32, i32) {
    %c0_i32 = arith.constant 0 : i32
    %c0_i32_0 = arith.constant 0 : i32
    %c0_i32_1 = arith.constant 0 : i32
    return %c0_i32, %c0_i32_0 : i32, i32
  }
  func.func @transform_3(%arg0: i32) -> (i32, i32) {
    %c0_i32 = arith.constant 0 : i32
    %c0_i32_0 = arith.constant 0 : i32
    %c0_i32_1 = arith.constant 0 : i32
    return %c0_i32, %c0_i32_0 : i32, i32
  }
  func.func @transform_4(%arg0: i32) -> (i32, i32) {
    %c0_i32 = arith.constant 0 : i32
    %c0_i32_0 = arith.constant 0 : i32
    %c0_i32_1 = arith.constant 0 : i32
    return %c0_i32, %c0_i32_0 : i32, i32
  }
  func.func @transform_5(%arg0: i32) -> (i32, i32) {
    %c0_i32 = arith.constant 0 : i32
    %c0_i32_0 = arith.constant 0 : i32
    %c0_i32_1 = arith.constant 0 : i32
    return %c0_i32, %c0_i32_0 : i32, i32
  }
  func.func @transform_6(%arg0: i32) -> (i32, i32) {
    %c0_i32 = arith.constant 0 : i32
    %c0_i32_0 = arith.constant 0 : i32
    %c0_i32_1 = arith.constant 0 : i32
    return %c0_i32, %c0_i32_0 : i32, i32
  }
  func.func @transform_7(%arg0: i32) -> (i32, i32) {
    %c0_i32 = arith.constant 0 : i32
    %c0_i32_0 = arith.constant 0 : i32
    return %arg0, %c0_i32 : i32, i32
  }
}

</mosaic_0001>

<bundles_post_ra>
// kernel: tpu_custom_call.1
= control target key start
LH: loop header
LB: loop body
LE: loop exit
PB: predicated region body
PF: predicated region fallthrough
CT: control target
= control target key end

     0   :  { %12 = vsyncpa [#allocation3], 0  ;;  %s12684_s0 = inlined_call_operand.hbm [shape: bf16[32,128], index: 0, kind: input, shape index: {}]   ;;  %s12685_s1 = inlined_call_operand.hbm [shape: bf16[128,2048], index: 1, kind: input, shape index: {}]   ;;  %s12686_s2 = inlined_call_operand.hbm [shape: f32[1,2048], index: 2, kind: input, shape index: {}]   ;;  %s12687_s3 = inlined_call_operand.hbm [shape: bf16[2048,1024], index: 3, kind: input, shape index: {}]   ;;  %s12688_s4 = inlined_call_operand.hbm [shape: f32[1,1024], index: 4, kind: input, shape index: {}]   ;;  %s12689_s5 = inlined_call_operand.hbm [shape: bf16[1024,128], index: 5, kind: input, shape index: {}]   ;;  %s12690_s6 = inlined_call_operand.hbm [shape: f32[1,128], index: 6, kind: input, shape index: {}]   ;;  %s12691_s7 = inlined_call_operand.hbm [shape: f32[32,128], index: 7, kind: output, shape index: {}]  }
   0x1   :  { %13 = vsyncpa [#allocation6], 0 }
   0x2   :  { %14 = vsyncpa [#allocation9], 0 }
   0x3   :  { %15 = vsyncpa [#allocation12], 0 }
   0x4   :  { %16 = vsyncpa [#allocation4], 0  ;;  %s12030_s24 = smov [#allocation5]   ;;  %s11844_s28 = scalar_lea.hbm %s12685_s1, 16384 }
   0x5   :  { %s34_s25 = sshll.u32 %s12030_s24, 4  ;;  %p11845_p0 = scmp.ne.s32.totalorder %s12685_s1, %s11844_s28  ;;  %s35_s25 = int_to_ptr.vmem [resolvable:$true] %s34_s25 }
   0x6   :  { %p11848_p1 = scmp.lt.u32.totalorder %s11844_s28, %s12685_s1 }
   0x8   :  { %p11850_p2 = pnand %p11848_p1, %p11845_p0 }
   0xa   :  { %11853 = shalt.err (!%p11850_p2)
}
   0xb   :  { %s11854_s10 = scalar_lea.vmem %s35_s25, 16384  ;;  %p11859_p4 = scmp.lt.s32.totalorder %s35_s25, %s35_s25 }
   0xc   :  { %p11855_p3 = scmp.ne.s32.totalorder %s35_s25, %s11854_s10  ;;  %p11860_p5 = scmp.lt.s32.totalorder %s11854_s10, %s11854_s10 }
   0xe   :  { %p11861_p6 = por %p11860_p5, %p11859_p4 }
  0x10   :  { %p11862_p7 = pnand %p11861_p6, %p11855_p3 }
  0x12   :  { %11865 = shalt.err (!%p11862_p7)
}
  0x13   :  { %s12031_s11 = smov 1024   ;;  %s12032_s12 = smov 64  }
  0x14   :  { %40 = dma.hbm_to_vmem [thread:$0]  %s12685_s1, 16384, %s35_s25, [#allocation6], %s12031_s11, %s12031_s11, %s12032_s12  }
  0x15   :  { %s12033_s15 = smov [#allocation8]   ;;  %s11866_s19 = scalar_lea.hbm %s12687_s3, 131072 }
  0x16   :  { %s56_s16 = sshll.u32 %s12033_s15, 4  ;;  %p11867_p8 = scmp.ne.s32.totalorder %s12687_s3, %s11866_s19  ;;  %s57_s16 = int_to_ptr.vmem [resolvable:$true] %s56_s16 }
  0x17   :  { %p11870_p9 = scmp.lt.u32.totalorder %s11866_s19, %s12687_s3 }
  0x19   :  { %p11872_p10 = pnand %p11870_p9, %p11867_p8 }
  0x1b   :  { %11875 = shalt.err (!%p11872_p10)
}
  0x1c   :  { %s11876_s24 = scalar_lea.vmem %s57_s16, 131072  ;;  %p11881_p12 = scmp.lt.s32.totalorder %s57_s16, %s57_s16 }
  0x1d   :  { %p11877_p11 = scmp.ne.s32.totalorder %s57_s16, %s11876_s24  ;;  %p11882_p13 = scmp.lt.s32.totalorder %s11876_s24, %s11876_s24 }
  0x1f   :  { %p11883_p0 = por %p11882_p13, %p11881_p12 }
  0x21   :  { %p11884_p1 = pnand %p11883_p0, %p11877_p11 }
  0x23   :  { %11887 = shalt.err (!%p11884_p1)
}
  0x24   :  { %s12034_s1 = smov 512   ;;  %s12035_s25 = smov 32  }
  0x25   :  { %62 = dma.hbm_to_vmem [thread:$0]  %s12687_s3, 131072, %s57_s16, [#allocation9], %s12034_s1, %s12034_s1, %s12035_s25  }
  0x26   :  { %s12036_s28 = smov [#allocation11]   ;;  %s12037_s30 = smov [#allocation2]  }
  0x27   :  { %s78_s29 = sshll.u32 %s12036_s28, 4  ;;  %s22_s8 = sshll.u32 %s12037_s30, 4  ;;  %s79_s29 = int_to_ptr.vmem [resolvable:$true] %s78_s29  ;;  %s23_s8 = int_to_ptr.vmem [resolvable:$true] %s22_s8 }
  0x28   :  { %s11888_s11 = scalar_lea.hbm %s12689_s5, 8192 }
  0x29   :  { %p11889_p2 = scmp.ne.s32.totalorder %s12689_s5, %s11888_s11  ;;  %p11892_p3 = scmp.lt.u32.totalorder %s11888_s11, %s12689_s5 }
  0x2b   :  { %p11894_p4 = pnand %p11892_p3, %p11889_p2 }
  0x2d   :  { %11897 = shalt.err (!%p11894_p4)
}
  0x2e   :  { %s11898_s3 = scalar_lea.vmem %s79_s29, 8192  ;;  %p11903_p6 = scmp.lt.s32.totalorder %s79_s29, %s79_s29 }
  0x2f   :  { %p11899_p5 = scmp.ne.s32.totalorder %s79_s29, %s11898_s3  ;;  %p11904_p7 = scmp.lt.s32.totalorder %s11898_s3, %s11898_s3 }
  0x31   :  { %p11905_p8 = por %p11904_p7, %p11903_p6 }
  0x33   :  { %p11906_p9 = pnand %p11905_p8, %p11899_p5 }
  0x35   :  { %11909 = shalt.err (!%p11906_p9)
}
  0x36   :  { %s12038_s16 = smov 4   ;;  %s11910_s22 = scalar_lea.hbm %s12684_s0, 256 }
  0x37   :  { %84 = dma.hbm_to_vmem [thread:$0]  %s12689_s5, 8192, %s79_s29, [#allocation12], %s12032_s12, %s12032_s12, %s12038_s16  }
  0x38   :  { %p11911_p10 = scmp.ne.s32.totalorder %s12684_s0, %s11910_s22  ;;  %p11914_p11 = scmp.lt.u32.totalorder %s11910_s22, %s12684_s0 }
  0x3a   :  { %p11916_p12 = pnand %p11914_p11, %p11911_p10 }
  0x3c   :  { %11919 = shalt.err (!%p11916_p12)
}
  0x3d   :  { %s11920_s26 = scalar_lea.vmem %s23_s8, 256  ;;  %p11925_p0 = scmp.lt.s32.totalorder %s23_s8, %s23_s8 }
  0x3e   :  { %p11921_p13 = scmp.ne.s32.totalorder %s23_s8, %s11920_s26  ;;  %p11926_p1 = scmp.lt.s32.totalorder %s11920_s26, %s11920_s26 }
  0x40   :  { %p11927_p2 = por %p11926_p1, %p11925_p0 }
  0x42   :  { %p11928_p3 = pnand %p11927_p2, %p11921_p13 }
  0x44   :  { %11931 = shalt.err (!%p11928_p3)
}
  0x45   :  { %28 = dma.hbm_to_vmem [thread:$0]  %s12684_s0, 256, %s23_s8, [#allocation3], %s12032_s12, %s12032_s12, %s12038_s16  }
  0x46   :  { %s12039_s28 = smov [#allocation7]   ;;  %s12040_s30 = smov [#allocation10]  }
  0x47   :  { %s47_s29 = sshll.u32 %s12039_s28, 4  ;;  %s69_s9 = sshll.u32 %s12040_s30, 4  ;;  %s48_s29 = int_to_ptr.vmem [resolvable:$true] %s47_s29  ;;  %s70_s9 = int_to_ptr.vmem [resolvable:$true] %s69_s9 }
  0x48   :  { %s11932_s13 = scalar_lea.hbm %s12686_s2, 256 }
  0x49   :  { %p11933_p4 = scmp.ne.s32.totalorder %s12686_s2, %s11932_s13  ;;  %p11936_p5 = scmp.lt.u32.totalorder %s11932_s13, %s12686_s2 }
  0x4b   :  { %p11938_p6 = pnand %p11936_p5, %p11933_p4 }
  0x4d   :  { %11941 = shalt.err (!%p11938_p6)
}
  0x4e   :  { %s11942_s0 = scalar_lea.vmem %s48_s29, 256  ;;  %p11947_p8 = scmp.lt.s32.totalorder %s48_s29, %s48_s29 }
  0x4f   :  { %p11943_p7 = scmp.ne.s32.totalorder %s48_s29, %s11942_s0  ;;  %p11948_p9 = scmp.lt.s32.totalorder %s11942_s0, %s11942_s0 }
  0x51   :  { %p11949_p10 = por %p11948_p9, %p11947_p8 }
  0x53   :  { %p11950_p11 = pnand %p11949_p10, %p11943_p7 }
  0x55   :  { %11953 = shalt.err (!%p11950_p11)
}
  0x56   :  { %50 = dma.hbm_to_vmem [thread:$0]  %s12686_s2, 256, %s48_s29, [#allocation6]  }
  0x57   :  { %s11954_s19 = scalar_lea.hbm %s12688_s4, 128 }
  0x58   :  { %p11955_p12 = scmp.ne.s32.totalorder %s12688_s4, %s11954_s19  ;;  %p11958_p13 = scmp.lt.u32.totalorder %s11954_s19, %s12688_s4 }
  0x5a   :  { %p11960_p0 = pnand %p11958_p13, %p11955_p12 }
  0x5c   :  { %11963 = shalt.err (!%p11960_p0)
}
  0x5d   :  { %s11964_s24 = scalar_lea.vmem %s70_s9, 128  ;;  %p11969_p2 = scmp.lt.s32.totalorder %s70_s9, %s70_s9 }
  0x5e   :  { %p11965_p1 = scmp.ne.s32.totalorder %s70_s9, %s11964_s24  ;;  %p11970_p3 = scmp.lt.s32.totalorder %s11964_s24, %s11964_s24 }
  0x60   :  { %p11971_p4 = por %p11970_p3, %p11969_p2 }
  0x62   :  { %p11972_p5 = pnand %p11971_p4, %p11965_p1 }
  0x64   :  { %11975 = shalt.err (!%p11972_p5)
}
  0x65   :  { %72 = dma.hbm_to_vmem [thread:$0]  %s12688_s4, 128, %s70_s9, [#allocation9]  }
  0x66   :  { %s12041_s25 = smov [#allocation13]   ;;  %s11976_s28 = scalar_lea.hbm %s12690_s6, 16 }
  0x67   :  { %s91_s26 = sshll.u32 %s12041_s25, 4  ;;  %p11977_p6 = scmp.ne.s32.totalorder %s12690_s6, %s11976_s28  ;;  %s92_s26 = int_to_ptr.vmem [resolvable:$true] %s91_s26 }
  0x68   :  { %p11980_p7 = scmp.lt.u32.totalorder %s11976_s28, %s12690_s6 }
  0x6a   :  { %p11982_p8 = pnand %p11980_p7, %p11977_p6 }
  0x6c   :  { %11985 = shalt.err (!%p11982_p8)
}
  0x6d   :  { %s11986_s13 = scalar_lea.vmem %s92_s26, 16  ;;  %s11990_s4 = scalar_lea.vmem %s92_s26, 32 }
  0x6e   :  { %p11987_p9 = scmp.ne.s32.totalorder %s92_s26, %s11986_s13  ;;  %p11991_p10 = scmp.lt.s32.totalorder %s92_s26, %s92_s26 }
  0x6f   :  { %p11992_p11 = scmp.lt.s32.totalorder %s11990_s4, %s11986_s13 }
  0x71   :  { %p11993_p12 = por %p11992_p11, %p11991_p10 }
  0x73   :  { %p11994_p13 = pnand %p11993_p12, %p11987_p9 }
  0x75   :  { %11997 = shalt.err (!%p11994_p13)
}
  0x76   :  { %94 = dma.hbm_to_vmem [thread:$0]  %s12690_s6, 16, %s92_s26, [#allocation12]  }
  0x77   :  { %12020 = dma.done.wait [#allocation3], 256  }
  0x78   :  { %12021 = vsyncadd [#allocation3], 4294967040 }
  0x79   :  { %12022 = dma.done.wait [#allocation6], 16640  }
  0x7a   :  { %12023 = vsyncadd [#allocation6], 4294950656 }
  0x7b   :  { %12024 = dma.done.wait [#allocation9], 131200  }
  0x7c   :  { %12025 = vsyncadd [#allocation9], 4294836096 }
  0x7d   :  { %12026 = dma.done.wait [#allocation12], 8208  }
  0x7e   :  { %12027 = vsyncadd [#allocation12], 4294959088  ;;  %v12042_v0 = vmov 0   ;;  %v121_v1 = vld [vmem:[#allocation5] sm:$0xff]  ;;  %v122_v14 = vld [vmem:[#allocation5 + $0x8] sm:$0xff]  ;;  %s12043_s6 = smov [#allocation14]  }
  0x7f   :  { %1017 = vmatprep.mubr.bf16.mxu0 %v12042_v0  ;;  %1070 = vmatprep.mubr.bf16.mxu1 %v12042_v0  ;;  %v129_v2 = vld [vmem:[#allocation5 + $0x40] sm:$0xff]  ;;  %v130_v15 = vld [vmem:[#allocation5 + $0x48] sm:$0xff]  ;;  %v123_v58 = vld [vmem:[#allocation5 + $0x10] sm:$0xff]  ;;  %s10159_s15 = sshll.u32 %s12043_s6, 4  ;;  %s10160_s15 = int_to_ptr.vmem [resolvable:$true] %s10159_s15 }
  0x80   :  { %v137_v3 = vld [vmem:[#allocation5 + $0x80] sm:$0xff]  ;;  %v10177_v4 = vcombine.high %v121_v1, %v129_v2  ;;  %v10176_v5 = vcombine.low %v121_v1, %v129_v2  ;;  %v10179_v16 = vcombine.high %v122_v14, %v130_v15  ;;  %v10178_v17 = vcombine.low %v122_v14, %v130_v15  ;;  %v138_v18 = vld [vmem:[#allocation5 + $0x88] sm:$0xff]  ;;  %v131_v59 = vld [vmem:[#allocation5 + $0x50] sm:$0xff]  ;;  %s11998_s17 = scalar_lea.vmem %s10160_s15, 512  ;;  %p12003_p1 = scmp.lt.s32.totalorder %s10160_s15, %s10160_s15 }
  0x81   :  { %v145_v6 = vld [vmem:[#allocation5 + $0xc0] sm:$0xff]  ;;  %v146_v19 = vld [vmem:[#allocation5 + $0xc8] sm:$0xff]  ;;  %v10181_v1 = vcombine.high %v123_v58, %v131_v59  ;;  %p11999_p0 = scmp.ne.s32.totalorder %s10160_s15, %s11998_s17  ;;  %p12004_p2 = scmp.lt.s32.totalorder %s11998_s17, %s11998_s17 }
  0x82   :  { %v10193_v7 = vcombine.high %v137_v3, %v145_v6  ;;  %v153_v8 = vld [vmem:[#allocation5 + $0x100] sm:$0xff]  ;;  %985 = vmatprep.subr.bf16.mxu0 %v10177_v4  ;;  %v10192_v10 = vcombine.low %v137_v3, %v145_v6  ;;  %v10195_v21 = vcombine.high %v138_v18, %v146_v19  ;;  %v154_v22 = vld [vmem:[#allocation5 + $0x108] sm:$0xff]  ;;  %1038 = vmatprep.subr.bf16.mxu1 %v10179_v16  ;;  %v139_v3 = vld [vmem:[#allocation5 + $0x90] sm:$0xff] }
  0x83   :  { %v161_v9 = vld [vmem:[#allocation5 + $0x140] sm:$0xff]  ;;  %986 = vmatpush1.bf16.msra.mxu0 %v10176_v5  ;;  %v162_v23 = vld [vmem:[#allocation5 + $0x148] sm:$0xff]  ;;  %1039 = vmatpush1.bf16.msra.mxu1 %v10178_v17  ;;  %v10194_v27 = vcombine.low %v138_v18, %v146_v19  ;;  %v147_v4 = vld [vmem:[#allocation5 + $0xd0] sm:$0xff]  ;;  %p12005_p3 = por %p12004_p2, %p12003_p1 }
  0x84   :  { %987 = vmatprep.subr.bf16.mxu0 %v10193_v7  ;;  %v10209_v11 = vcombine.high %v153_v8, %v161_v9  ;;  %v169_v12 = vld [vmem:[#allocation5 + $0x180] sm:$0xff]  ;;  %v10208_v20 = vcombine.low %v153_v8, %v161_v9  ;;  %1040 = vmatprep.subr.bf16.mxu1 %v10195_v21  ;;  %v10211_v28 = vcombine.high %v154_v22, %v162_v23  ;;  %v170_v30 = vld [vmem:[#allocation5 + $0x188] sm:$0xff]  ;;  %v12177_v5 = vld [vmem:[#allocation2] sm:$0xff]  }
  0x85   :  { %v177_v13 = vld [vmem:[#allocation5 + $0x1c0] sm:$0xff]  ;;  %v178_v31 = vld [vmem:[#allocation5 + $0x1c8] sm:$0xff]  ;;  %v10210_v35 = vcombine.low %v154_v22, %v162_v23  ;;  %v10180_v7 = vcombine.low %v123_v58, %v131_v59  ;;  %v124_v8 = vld [vmem:[#allocation5 + $0x18] sm:$0xff]  ;;  %v10196_v15 = vcombine.low %v139_v3, %v147_v4  ;;  %p12006_p4 = pnand %p12005_p3, %p11999_p0 }
  0x86   :  { %v10225_v24 = vcombine.high %v169_v12, %v177_v13  ;;  %v185_v25 = vld [vmem:[#allocation5 + $0x200] sm:$0xff]  ;;  %v10224_v29 = vcombine.low %v169_v12, %v177_v13  ;;  %v10227_v36 = vcombine.high %v170_v30, %v178_v31  ;;  %v186_v38 = vld [vmem:[#allocation5 + $0x208] sm:$0xff]  ;;  %v10226_v43 = vcombine.low %v170_v30, %v178_v31  ;;  %v132_v9 = vld [vmem:[#allocation5 + $0x58] sm:$0xff] }
  0x87   :  { %988 = vmatpush1.bf16.msra.mxu0 %v10192_v10  ;;  %v193_v26 = vld [vmem:[#allocation5 + $0x240] sm:$0xff]  ;;  %1041 = vmatpush1.bf16.msra.mxu1 %v10194_v27  ;;  %v194_v39 = vld [vmem:[#allocation5 + $0x248] sm:$0xff]  ;;  %v10197_v10 = vcombine.high %v139_v3, %v147_v4  ;;  %v155_v12 = vld [vmem:[#allocation5 + $0x110] sm:$0xff]  ;;  %v10183_v14 = vcombine.high %v124_v8, %v132_v9  ;;  %v10182_v19 = vcombine.low %v124_v8, %v132_v9 }
  0x88   :  { %989 = vmatprep.subr.bf16.mxu0 %v10209_v11  ;;  %v10241_v32 = vcombine.high %v185_v25, %v193_v26  ;;  %v201_v33 = vld [vmem:[#allocation5 + $0x280] sm:$0xff]  ;;  %1042 = vmatprep.subr.bf16.mxu1 %v10211_v28  ;;  %v10240_v37 = vcombine.low %v185_v25, %v193_v26  ;;  %v10243_v44 = vcombine.high %v186_v38, %v194_v39  ;;  %v202_v46 = vld [vmem:[#allocation5 + $0x288] sm:$0xff]  ;;  %v163_v13 = vld [vmem:[#allocation5 + $0x150] sm:$0xff] }
  0x89   :  { %v209_v34 = vld [vmem:[#allocation5 + $0x2c0] sm:$0xff]  ;;  %v210_v47 = vld [vmem:[#allocation5 + $0x2c8] sm:$0xff]  ;;  %v10242_v51 = vcombine.low %v186_v38, %v194_v39  ;;  %v140_v16 = vld [vmem:[#allocation5 + $0x98] sm:$0xff]  ;;  %v10213_v18 = vcombine.high %v155_v12, %v163_v13 }
  0x8a   :  { %v10257_v40 = vcombine.high %v201_v33, %v209_v34  ;;  %v217_v41 = vld [vmem:[#allocation5 + $0x300] sm:$0xff]  ;;  %v10256_v45 = vcombine.low %v201_v33, %v209_v34  ;;  %v10259_v52 = vcombine.high %v202_v46, %v210_v47  ;;  %v218_v54 = vld [vmem:[#allocation5 + $0x308] sm:$0xff]  ;;  %v10258_v57 = vcombine.low %v202_v46, %v210_v47  ;;  %v148_v17 = vld [vmem:[#allocation5 + $0xd8] sm:$0xff] }
  0x8b   :  { %990 = vmatpush1.bf16.msra.mxu0 %v10208_v20  ;;  %v225_v42 = vld [vmem:[#allocation5 + $0x340] sm:$0xff]  ;;  %1043 = vmatpush1.bf16.msra.mxu1 %v10210_v35  ;;  %v226_v55 = vld [vmem:[#allocation5 + $0x348] sm:$0xff]  ;;  %v171_v20 = vld [vmem:[#allocation5 + $0x190] sm:$0xff]  ;;  %v10199_v23 = vcombine.high %v140_v16, %v148_v17  ;;  %v10198_v28 = vcombine.low %v140_v16, %v148_v17 }
  0x8c   :  { %991 = vmatprep.subr.bf16.mxu0 %v10225_v24  ;;  %1044 = vmatprep.subr.bf16.mxu1 %v10227_v36  ;;  %v10273_v48 = vcombine.high %v217_v41, %v225_v42  ;;  %v233_v49 = vld [vmem:[#allocation5 + $0x380] sm:$0xff]  ;;  %v10272_v53 = vcombine.low %v217_v41, %v225_v42  ;;  %v10275_v60 = vcombine.high %v218_v54, %v226_v55  ;;  %v234_v62 = vld [vmem:[#allocation5 + $0x388] sm:$0xff]  ;;  %v179_v21 = vld [vmem:[#allocation5 + $0x1d0] sm:$0xff] }
  0x8d   :  { %v241_v50 = vld [vmem:[#allocation5 + $0x3c0] sm:$0xff]  ;;  %v242_v63 = vld [vmem:[#allocation5 + $0x3c8] sm:$0xff]  ;;  %v10274_v2 = vcombine.low %v218_v54, %v226_v55  ;;  %v12181_v22 = vld [vmem:[#allocation2 + $0x8] sm:$0xff]   ;;  %v10212_v24 = vcombine.low %v155_v12, %v163_v13  ;;  %v10229_v27 = vcombine.high %v171_v20, %v179_v21 }
  0x8e   :  { %v10289_v56 = vcombine.high %v233_v49, %v241_v50  ;;  %v10288_v61 = vcombine.low %v233_v49, %v241_v50  ;;  %v10291_v6 = vcombine.high %v234_v62, %v242_v63  ;;  %v10290_v11 = vcombine.low %v234_v62, %v242_v63  ;;  %v156_v25 = vld [vmem:[#allocation5 + $0x118] sm:$0xff]  ;;  %v195_v30 = vld [vmem:[#allocation5 + $0x250] sm:$0xff]  ;;  %v133_v62 = vld [vmem:[#allocation5 + $0x60] sm:$0xff] }
  0x8f   :  { %992 = vmatpush1.bf16.msra.mxu0 %v10224_v29  ;;  %1045 = vmatpush1.bf16.msra.mxu1 %v10226_v43  ;;  %v164_v26 = vld [vmem:[#allocation5 + $0x158] sm:$0xff]  ;;  %v187_v29 = vld [vmem:[#allocation5 + $0x210] sm:$0xff]  ;;  %v149_v8 = vld [vmem:[#allocation5 + $0xe0] sm:$0xff] }
  0x90   :  { %993 = vmatprep.subr.bf16.mxu0 %v10241_v32  ;;  %1046 = vmatprep.subr.bf16.mxu1 %v10243_v44  ;;  %v10215_v31 = vcombine.high %v156_v25, %v164_v26  ;;  %v10228_v32 = vcombine.low %v171_v20, %v179_v21  ;;  %v172_v33 = vld [vmem:[#allocation5 + $0x198] sm:$0xff]  ;;  %v10245_v35 = vcombine.high %v187_v29, %v195_v30  ;;  %v211_v38 = vld [vmem:[#allocation5 + $0x2d0] sm:$0xff]  ;;  %v157_v13 = vld [vmem:[#allocation5 + $0x120] sm:$0xff] }
  0x91   :  { %v180_v34 = vld [vmem:[#allocation5 + $0x1d8] sm:$0xff]  ;;  %v10214_v36 = vcombine.low %v156_v25, %v164_v26  ;;  %v227_v46 = vld [vmem:[#allocation5 + $0x350] sm:$0xff]  ;;  %v142_v17 = vld [vmem:[#allocation5 + $0xa8] sm:$0xff] }
  0x92   :  { %v10231_v39 = vcombine.high %v172_v33, %v180_v34  ;;  %v188_v41 = vld [vmem:[#allocation5 + $0x218] sm:$0xff]  ;;  %v10230_v44 = vcombine.low %v172_v33, %v180_v34  ;;  %v243_v54 = vld [vmem:[#allocation5 + $0x3d0] sm:$0xff]  ;;  %v173_v21 = vld [vmem:[#allocation5 + $0x1a0] sm:$0xff] }
  0x93   :  { %994 = vmatpush1.bf16.msra.mxu0 %v10240_v37  ;;  %1047 = vmatpush1.bf16.msra.mxu1 %v10242_v51  ;;  %v203_v37 = vld [vmem:[#allocation5 + $0x290] sm:$0xff]  ;;  %v196_v42 = vld [vmem:[#allocation5 + $0x258] sm:$0xff]  ;;  %v158_v26 = vld [vmem:[#allocation5 + $0x128] sm:$0xff] }
  0x94   :  { %995 = vmatprep.subr.bf16.mxu0 %v10257_v40  ;;  %1048 = vmatprep.subr.bf16.mxu1 %v10259_v52  ;;  %v10244_v40 = vcombine.low %v187_v29, %v195_v30  ;;  %v10261_v43 = vcombine.high %v203_v37, %v211_v38  ;;  %v10247_v47 = vcombine.high %v188_v41, %v196_v42  ;;  %v204_v49 = vld [vmem:[#allocation5 + $0x298] sm:$0xff]  ;;  %v189_v30 = vld [vmem:[#allocation5 + $0x220] sm:$0xff]  ;;  %v174_v34 = vld [vmem:[#allocation5 + $0x1a8] sm:$0xff] }
  0x95   :  { %v212_v50 = vld [vmem:[#allocation5 + $0x2d8] sm:$0xff]  ;;  %v10246_v52 = vcombine.low %v188_v41, %v196_v42  ;;  %v190_v42 = vld [vmem:[#allocation5 + $0x228] sm:$0xff] }
  0x96   :  { %v10263_v55 = vcombine.high %v204_v49, %v212_v50  ;;  %v228_v58 = vld [vmem:[#allocation5 + $0x358] sm:$0xff] }
  0x97   :  { %996 = vmatpush1.bf16.msra.mxu0 %v10256_v45  ;;  %1049 = vmatpush1.bf16.msra.mxu1 %v10258_v57  ;;  %v219_v45 = vld [vmem:[#allocation5 + $0x310] sm:$0xff]  ;;  %v220_v57 = vld [vmem:[#allocation5 + $0x318] sm:$0xff] }
  0x98   :  { %997 = vmatprep.subr.bf16.mxu0 %v10273_v48  ;;  %1050 = vmatprep.subr.bf16.mxu1 %v10275_v60  ;;  %v10260_v48 = vcombine.low %v203_v37, %v211_v38  ;;  %v10277_v51 = vcombine.high %v219_v45, %v227_v46  ;;  %v10262_v60 = vcombine.low %v204_v49, %v212_v50  ;;  %v244_v3 = vld [vmem:[#allocation5 + $0x3d8] sm:$0xff]  ;;  %v205_v38 = vld [vmem:[#allocation5 + $0x2a0] sm:$0xff]  ;;  %v206_v50 = vld [vmem:[#allocation5 + $0x2a8] sm:$0xff] }
  0x99   :  { %v10279_v63 = vcombine.high %v220_v57, %v228_v58 }
  0x9b   :  { %998 = vmatpush1.bf16.msra.mxu0 %v10272_v53  ;;  %1051 = vmatpush1.bf16.msra.mxu1 %v10274_v2  ;;  %v235_v53 = vld [vmem:[#allocation5 + $0x390] sm:$0xff]  ;;  %v236_v2 = vld [vmem:[#allocation5 + $0x398] sm:$0xff] }
  0x9c   :  { %999 = vmatprep.subr.bf16.mxu0 %v10289_v56  ;;  %1052 = vmatprep.subr.bf16.mxu1 %v10291_v6  ;;  %v10276_v56 = vcombine.low %v219_v45, %v227_v46  ;;  %v10293_v59 = vcombine.high %v235_v53, %v243_v54  ;;  %v10278_v6 = vcombine.low %v220_v57, %v228_v58  ;;  %v221_v46 = vld [vmem:[#allocation5 + $0x320] sm:$0xff]  ;;  %v222_v58 = vld [vmem:[#allocation5 + $0x328] sm:$0xff] }
  0x9d   :  { %v10295_v9 = vcombine.high %v236_v2, %v244_v3  ;;  %v10294_v16 = vcombine.low %v236_v2, %v244_v3  ;;  %v238_v3 = vld [vmem:[#allocation5 + $0x3a8] sm:$0xff] }
  0x9f   :  { %1000 = vmatpush1.bf16.msra.mxu0 %v10288_v61  ;;  %1053 = vmatpush1.bf16.msra.mxu1 %v10290_v11  ;;  %v125_v61 = vld [vmem:[#allocation5 + $0x20] sm:$0xff]  ;;  %v134_v11 = vld [vmem:[#allocation5 + $0x68] sm:$0xff] }
  0xa0   :  { %1091 = vmatprep.subr.bf16.mxu0 %v10181_v1  ;;  %1144 = vmatprep.subr.bf16.mxu1 %v10183_v14  ;;  %v10292_v1 = vcombine.low %v235_v53, %v243_v54  ;;  %v10185_v4 = vcombine.high %v125_v61, %v133_v62  ;;  %v10184_v12 = vcombine.low %v125_v61, %v133_v62  ;;  %v237_v54 = vld [vmem:[#allocation5 + $0x3a0] sm:$0xff]  ;;  %v127_v62 = vld [vmem:[#allocation5 + $0x30] sm:$0xff] }
  0xa2   :  { %1018 = vmatmul.mubr.bf16.vlgmr.msra.gmra.mrb[0].mxu0 %v12177_v5  ;;  %1071 = vmatmul.mubr.bf16.vlgmr.msra.gmra.mrb[0].mxu1 %v12177_v5 }
  0xa3   :  { %1027 = vmatprep.mubr.bf16.mxu0 %v12042_v0  ;;  %1092 = vmatpush1.bf16.msra.mxu0 %v10180_v7  ;;  %v141_v7 = vld [vmem:[#allocation5 + $0xa0] sm:$0xff] }
  0xa4   :  { %1093 = vmatprep.subr.bf16.mxu0 %v10197_v10  ;;  %1145 = vmatpush1.bf16.msra.mxu1 %v10182_v19  ;;  %v126_v10 = vld [vmem:[#allocation5 + $0x28] sm:$0xff]  ;;  %v10201_v14 = vcombine.high %v141_v7, %v149_v8  ;;  %v10200_v20 = vcombine.low %v141_v7, %v149_v8  ;;  %v143_v8 = vld [vmem:[#allocation5 + $0xb0] sm:$0xff] }
  0xa5   :  { %1080 = vmatprep.mubr.bf16.mxu1 %v12042_v0  ;;  %1146 = vmatprep.subr.bf16.mxu1 %v10199_v23  ;;  %v150_v19 = vld [vmem:[#allocation5 + $0xe8] sm:$0xff]  ;;  %v181_v23 = vld [vmem:[#allocation5 + $0x1e0] sm:$0xff]  ;;  %v10186_v25 = vcombine.low %v126_v10, %v134_v11 }
  0xa6   :  { %v10202_v33 = vcombine.low %v142_v17, %v150_v19  ;;  %v10232_v37 = vcombine.low %v173_v21, %v181_v23 }
  0xa7   :  { %1094 = vmatpush1.bf16.msra.mxu0 %v10196_v15  ;;  %v165_v15 = vld [vmem:[#allocation5 + $0x160] sm:$0xff] }
  0xa8   :  { %1095 = vmatprep.subr.bf16.mxu0 %v10213_v18  ;;  %1147 = vmatpush1.bf16.msra.mxu1 %v10198_v28  ;;  %v10187_v18 = vcombine.high %v126_v10, %v134_v11  ;;  %v10203_v28 = vcombine.high %v142_v17, %v150_v19  ;;  %v10216_v29 = vcombine.low %v157_v13, %v165_v15  ;;  %v167_v17 = vld [vmem:[#allocation5 + $0x170] sm:$0xff] }
  0xa9   :  { %1148 = vmatprep.subr.bf16.mxu1 %v10215_v31  ;;  %v197_v31 = vld [vmem:[#allocation5 + $0x260] sm:$0xff] }
  0xaa   :  { %1028 = vmatmul.mubr.bf16.gmra.mrb[4].mxu0 %v12181_v22  ;;  %1081 = vmatmul.mubr.bf16.gmra.mrb[4].mxu1 %v12181_v22  ;;  %v10248_v45 = vcombine.low %v189_v30, %v197_v31 }
  0xab   :  { %1096 = vmatpush1.bf16.msra.mxu0 %v10212_v24  ;;  %1123 = vmatprep.mubr.bf16.mxu0 %v12042_v0  ;;  %v10217_v24 = vcombine.high %v157_v13, %v165_v15  ;;  %v136_v13 = vld [vmem:[#allocation5 + $0x78] sm:$0xff] }
  0xac   :  { %1097 = vmatprep.subr.bf16.mxu0 %v10229_v27  ;;  %1149 = vmatpush1.bf16.msra.mxu1 %v10214_v36  ;;  %v166_v27 = vld [vmem:[#allocation5 + $0x168] sm:$0xff] }
  0xad   :  { %1176 = vmatprep.mubr.bf16.mxu1 %v12042_v0  ;;  %1150 = vmatprep.subr.bf16.mxu1 %v10231_v39  ;;  %v10219_v36 = vcombine.high %v158_v26, %v166_v27  ;;  %v213_v39 = vld [vmem:[#allocation5 + $0x2e0] sm:$0xff]  ;;  %v10218_v41 = vcombine.low %v158_v26, %v166_v27  ;;  %v183_v26 = vld [vmem:[#allocation5 + $0x1f0] sm:$0xff] }
  0xae   :  { %v10264_v53 = vcombine.low %v205_v38, %v213_v39 }
  0xaf   :  { %1098 = vmatpush1.bf16.msra.mxu0 %v10228_v32  ;;  %v10233_v32 = vcombine.high %v173_v21, %v181_v23  ;;  %v152_v21 = vld [vmem:[#allocation5 + $0xf8] sm:$0xff] }
  0xb0   :  { %1099 = vmatprep.subr.bf16.mxu0 %v10245_v35  ;;  %1151 = vmatpush1.bf16.msra.mxu1 %v10230_v44  ;;  %v182_v35 = vld [vmem:[#allocation5 + $0x1e8] sm:$0xff] }
  0xb1   :  { %1152 = vmatprep.subr.bf16.mxu1 %v10247_v47  ;;  %v10235_v44 = vcombine.high %v174_v34, %v182_v35  ;;  %v229_v47 = vld [vmem:[#allocation5 + $0x360] sm:$0xff]  ;;  %v10234_v49 = vcombine.low %v174_v34, %v182_v35  ;;  %v199_v34 = vld [vmem:[#allocation5 + $0x270] sm:$0xff] }
  0xb2   :  { %v10280_v61 = vcombine.low %v221_v46, %v229_v47 }
  0xb3   :  { %1100 = vmatpush1.bf16.msra.mxu0 %v10244_v40  ;;  %v10249_v40 = vcombine.high %v189_v30, %v197_v31  ;;  %v168_v30 = vld [vmem:[#allocation5 + $0x178] sm:$0xff] }
  0xb4   :  { %1101 = vmatprep.subr.bf16.mxu0 %v10261_v43  ;;  %1153 = vmatpush1.bf16.msra.mxu1 %v10246_v52  ;;  %v198_v43 = vld [vmem:[#allocation5 + $0x268] sm:$0xff] }
  0xb5   :  { %1154 = vmatprep.subr.bf16.mxu1 %v10263_v55  ;;  %v10251_v52 = vcombine.high %v190_v42, %v198_v43  ;;  %v245_v55 = vld [vmem:[#allocation5 + $0x3e0] sm:$0xff]  ;;  %v10250_v57 = vcombine.low %v190_v42, %v198_v43  ;;  %v207_v43 = vld [vmem:[#allocation5 + $0x2b0] sm:$0xff] }
  0xb6   :  { %v10296_v7 = vcombine.low %v237_v54, %v245_v55 }
  0xb7   :  { %1102 = vmatpush1.bf16.msra.mxu0 %v10260_v48  ;;  %v10265_v48 = vcombine.high %v205_v38, %v213_v39  ;;  %v176_v39 = vld [vmem:[#allocation5 + $0x1b8] sm:$0xff] }
  0xb8   :  { %1103 = vmatprep.subr.bf16.mxu0 %v10277_v51  ;;  %1155 = vmatpush1.bf16.msra.mxu1 %v10262_v60  ;;  %v214_v51 = vld [vmem:[#allocation5 + $0x2e8] sm:$0xff] }
  0xb9   :  { %1156 = vmatprep.subr.bf16.mxu1 %v10279_v63  ;;  %v10267_v60 = vcombine.high %v206_v50, %v214_v51  ;;  %v135_v63 = vld [vmem:[#allocation5 + $0x70] sm:$0xff]  ;;  %v10266_v2 = vcombine.low %v206_v50, %v214_v51 }
  0xba   :  { %v10189_v10 = vcombine.high %v127_v62, %v135_v63  ;;  %v10188_v15 = vcombine.low %v127_v62, %v135_v63  ;;  %v223_v51 = vld [vmem:[#allocation5 + $0x330] sm:$0xff]  ;;  %v224_v63 = vld [vmem:[#allocation5 + $0x338] sm:$0xff] }
  0xbb   :  { %1104 = vmatpush1.bf16.msra.mxu0 %v10276_v56  ;;  %v10281_v56 = vcombine.high %v221_v46, %v229_v47  ;;  %v192_v47 = vld [vmem:[#allocation5 + $0x238] sm:$0xff] }
  0xbc   :  { %1105 = vmatprep.subr.bf16.mxu0 %v10293_v59  ;;  %1157 = vmatpush1.bf16.msra.mxu1 %v10278_v6  ;;  %v230_v59 = vld [vmem:[#allocation5 + $0x368] sm:$0xff] }
  0xbd   :  { %1158 = vmatprep.subr.bf16.mxu1 %v10295_v9  ;;  %v10283_v6 = vcombine.high %v222_v58, %v230_v59  ;;  %v151_v9 = vld [vmem:[#allocation5 + $0xf0] sm:$0xff]  ;;  %v10282_v11 = vcombine.low %v222_v58, %v230_v59 }
  0xbe   :  { %v239_v59 = vld [vmem:[#allocation5 + $0x3b0] sm:$0xff] }
  0xbf   :  { %1106 = vmatpush1.bf16.msra.mxu0 %v10292_v1  ;;  %v10297_v1 = vcombine.high %v237_v54, %v245_v55  ;;  %v208_v55 = vld [vmem:[#allocation5 + $0x2b8] sm:$0xff] }
  0xc0   :  { %1197 = vmatprep.subr.bf16.mxu0 %v10185_v4  ;;  %1159 = vmatpush1.bf16.msra.mxu1 %v10294_v16  ;;  %v246_v4 = vld [vmem:[#allocation5 + $0x3e8] sm:$0xff]  ;;  %v159_v16 = vld [vmem:[#allocation5 + $0x130] sm:$0xff] }
  0xc1   :  { %1250 = vmatprep.subr.bf16.mxu1 %v10187_v18  ;;  %v10205_v18 = vcombine.high %v143_v8, %v151_v9  ;;  %v10298_v19 = vcombine.low %v238_v3, %v246_v4  ;;  %v10221_v27 = vcombine.high %v159_v16, %v167_v17 }
  0xc2   :  { %1124 = vmatmul.mubr.bf16.vlgmr.msra.gmra.mrb[8].mxu0 %v12177_v5 }
  0xc3   :  { %1198 = vmatpush1.bf16.msra.mxu0 %v10184_v12  ;;  %1133 = vmatprep.mubr.bf16.mxu0 %v12042_v0  ;;  %v128_v12 = vld [vmem:[#allocation5 + $0x38] sm:$0xff] }
  0xc4   :  { %1199 = vmatprep.subr.bf16.mxu0 %v10201_v14  ;;  %1177 = vmatmul.mubr.bf16.vlgmr.msra.gmra.mrb[8].mxu1 %v12177_v5  ;;  %v10299_v14 = vcombine.high %v238_v3, %v246_v4  ;;  %v10191_v23 = vcombine.high %v128_v12, %v136_v13  ;;  %v1505_v4 = vld [vmem:[#allocation8] sm:$0xff] }
  0xc5   :  { %1251 = vmatpush1.bf16.msra.mxu1 %v10186_v25  ;;  %1186 = vmatprep.mubr.bf16.mxu1 %v12042_v0  ;;  %v175_v25 = vld [vmem:[#allocation5 + $0x1b0] sm:$0xff] }
  0xc6   :  { %1252 = vmatprep.subr.bf16.mxu1 %v10203_v28  ;;  %v10190_v28 = vcombine.low %v128_v12, %v136_v13  ;;  %v10237_v35 = vcombine.high %v175_v25, %v183_v26  ;;  %v10236_v38 = vcombine.low %v175_v25, %v183_v26  ;;  %v12205_v12 = vld [vmem:[#allocation8 + $0x400] sm:$0xff] }
  0xc7   :  { %1200 = vmatpush1.bf16.msra.mxu0 %v10200_v20  ;;  %v144_v20 = vld [vmem:[#allocation5 + $0xb8] sm:$0xff]  ;;  %v12207_v13 = vld [vmem:[#allocation8 + $0x420] sm:$0xff] }
  0xc8   :  { %1201 = vmatprep.subr.bf16.mxu0 %v10217_v24  ;;  %v10204_v24 = vcombine.low %v143_v8, %v151_v9  ;;  %v10207_v31 = vcombine.high %v144_v20, %v152_v21  ;;  %v240_v9 = vld [vmem:[#allocation5 + $0x3b8] sm:$0xff]  ;;  %v1521_v25 = vld [vmem:[#allocation8 + $0x80] sm:$0xff] }
  0xc9   :  { %1253 = vmatpush1.bf16.msra.mxu1 %v10202_v33  ;;  %v191_v33 = vld [vmem:[#allocation5 + $0x230] sm:$0xff] }
  0xca   :  { %1134 = vmatmul.mubr.bf16.gmra.mrb[12].mxu0 %v12181_v22  ;;  %1254 = vmatprep.subr.bf16.mxu1 %v10219_v36  ;;  %v10206_v36 = vcombine.low %v144_v20, %v152_v21  ;;  %v10252_v46 = vcombine.low %v191_v33, %v199_v34  ;;  %v1506_v20 = vld [vmem:[#allocation8 + $0x8] sm:$0xff]  ;;  %v1525_v26 = vld [vmem:[#allocation8 + $0xa0] sm:$0xff] }
  0xcb   :  { %1202 = vmatpush1.bf16.msra.mxu0 %v10216_v29  ;;  %1229 = vmatprep.mubr.bf16.mxu0 %v12042_v0  ;;  %v160_v29 = vld [vmem:[#allocation5 + $0x138] sm:$0xff] }
  0xcc   :  { %1203 = vmatprep.subr.bf16.mxu0 %v10233_v32  ;;  %1187 = vmatmul.mubr.bf16.gmra.mrb[12].mxu1 %v12181_v22  ;;  %v10220_v32 = vcombine.low %v159_v16, %v167_v17  ;;  %v10222_v42 = vcombine.low %v160_v29, %v168_v30  ;;  %v1517_v16 = vld [vmem:[#allocation8 + $0x60] sm:$0xff]  ;;  %v1510_v21 = vld [vmem:[#allocation8 + $0x28] sm:$0xff] }
  0xcd   :  { %1255 = vmatpush1.bf16.msra.mxu1 %v10218_v41  ;;  %1282 = vmatprep.mubr.bf16.mxu1 %v12042_v0  ;;  %v10253_v41 = vcombine.high %v191_v33, %v199_v34  ;;  %v1529_v33 = vld [vmem:[#allocation8 + $0xc0] sm:$0xff] }
  0xce   :  { %1256 = vmatprep.subr.bf16.mxu1 %v10235_v44  ;;  %v215_v44 = vld [vmem:[#allocation5 + $0x2f0] sm:$0xff] }
  0xcf   :  { %1204 = vmatpush1.bf16.msra.mxu0 %v10232_v37  ;;  %v10223_v37 = vcombine.high %v160_v29, %v168_v30  ;;  %v10268_v54 = vcombine.low %v207_v43, %v215_v44  ;;  %v1514_v29 = vld [vmem:[#allocation8 + $0x48] sm:$0xff]  ;;  %v1533_v34 = vld [vmem:[#allocation8 + $0xe0] sm:$0xff] }
  0xd0   :  { %1205 = vmatprep.subr.bf16.mxu0 %v10249_v40  ;;  %v184_v40 = vld [vmem:[#allocation5 + $0x1f8] sm:$0xff] }
  0xd1   :  { %1257 = vmatpush1.bf16.msra.mxu1 %v10234_v49  ;;  %v10269_v49 = vcombine.high %v207_v43, %v215_v44  ;;  %v10238_v50 = vcombine.low %v176_v39, %v184_v40  ;;  %v1518_v30 = vld [vmem:[#allocation8 + $0x68] sm:$0xff]  ;;  %v10328_v44 = vcombine.low %v1529_v33, %v1533_v34 }
  0xd2   :  { %1258 = vmatprep.subr.bf16.mxu1 %v10251_v52  ;;  %v231_v52 = vld [vmem:[#allocation5 + $0x370] sm:$0xff] }
  0xd3   :  { %1206 = vmatpush1.bf16.msra.mxu0 %v10248_v45  ;;  %v10239_v45 = vcombine.high %v176_v39, %v184_v40  ;;  %v10284_v62 = vcombine.low %v223_v51, %v231_v52  ;;  %v10329_v39 = vcombine.high %v1529_v33, %v1533_v34  ;;  %v10314_v40 = vcombine.low %v1514_v29, %v1518_v30  ;;  %v1582_v33 = vld [vmem:[#allocation8 + $0x268] sm:$0xff] }
  0xd4   :  { %1207 = vmatprep.subr.bf16.mxu0 %v10265_v48  ;;  %v200_v48 = vld [vmem:[#allocation5 + $0x278] sm:$0xff] }
  0xd5   :  { %1259 = vmatpush1.bf16.msra.mxu1 %v10250_v57  ;;  %v10285_v57 = vcombine.high %v223_v51, %v231_v52  ;;  %v10254_v58 = vcombine.low %v192_v47, %v200_v48  ;;  %v1538_v52 = vld [vmem:[#allocation8 + $0x108] sm:$0xff] }
  0xd6   :  { %1260 = vmatprep.subr.bf16.mxu1 %v10267_v60  ;;  %v247_v60 = vld [vmem:[#allocation5 + $0x3f0] sm:$0xff] }
  0xd7   :  { %1208 = vmatpush1.bf16.msra.mxu0 %v10264_v53  ;;  %v10255_v53 = vcombine.high %v192_v47, %v200_v48  ;;  %v10300_v8 = vcombine.low %v239_v59, %v247_v60  ;;  %v1545_v48 = vld [vmem:[#allocation8 + $0x140] sm:$0xff] }
  0xd8   :  { %1209 = vmatprep.subr.bf16.mxu0 %v10281_v56  ;;  %v216_v56 = vld [vmem:[#allocation5 + $0x2f8] sm:$0xff] }
  0xd9   :  { %1261 = vmatpush1.bf16.msra.mxu1 %v10266_v2  ;;  %v10301_v2 = vcombine.high %v239_v59, %v247_v60  ;;  %v10270_v3 = vcombine.low %v208_v55, %v216_v56  ;;  %v1546_v59 = vld [vmem:[#allocation8 + $0x148] sm:$0xff] }
  0xda   :  { %1262 = vmatprep.subr.bf16.mxu1 %v10283_v6  ;;  %v1509_v6 = vld [vmem:[#allocation8 + $0x20] sm:$0xff]  ;;  %v1550_v60 = vld [vmem:[#allocation8 + $0x168] sm:$0xff] }
  0xdb   :  { %1210 = vmatpush1.bf16.msra.mxu0 %v10280_v61  ;;  %v10271_v61 = vcombine.high %v208_v55, %v216_v56  ;;  %v1553_v55 = vld [vmem:[#allocation8 + $0x180] sm:$0xff] }
  0xdc   :  { %1211 = vmatprep.subr.bf16.mxu0 %v10297_v1  ;;  %v232_v1 = vld [vmem:[#allocation5 + $0x378] sm:$0xff]  ;;  %v1557_v56 = vld [vmem:[#allocation8 + $0x1a0] sm:$0xff] }
  0xdd   :  { %1263 = vmatpush1.bf16.msra.mxu1 %v10282_v11  ;;  %v10305_v11 = vcombine.high %v1505_v4, %v1509_v6 }
  0xde   :  { %1264 = vmatprep.subr.bf16.mxu1 %v10299_v14  ;;  %v10286_v14 = vcombine.low %v224_v63, %v232_v1 }
  0xdf   :  { %1212 = vmatpush1.bf16.msra.mxu0 %v10296_v7  ;;  %v10287_v7 = vcombine.high %v224_v63, %v232_v1  ;;  %v1561_v63 = vld [vmem:[#allocation8 + $0x1c0] sm:$0xff] }
  0xe0   :  { %1303 = vmatprep.subr.bf16.mxu0 %v10189_v10  ;;  %v248_v10 = vld [vmem:[#allocation5 + $0x3f8] sm:$0xff]  ;;  %v1565_v1 = vld [vmem:[#allocation8 + $0x1e0] sm:$0xff] }
  0xe1   :  { %1265 = vmatpush1.bf16.msra.mxu1 %v10298_v19  ;;  %v10303_v17 = vcombine.high %v240_v9, %v248_v10  ;;  %v10304_v19 = vcombine.low %v1505_v4, %v1509_v6  ;;  %v1558_v4 = vld [vmem:[#allocation8 + $0x1a8] sm:$0xff]  ;;  %v10361_v6 = vcombine.high %v1561_v63, %v1565_v1 }
  0xe2   :  { %1230 = vmatmul.mubr.bf16.vlgmr.msra.gmra.mrb[16].mxu0 %v12177_v5  ;;  %1356 = vmatprep.subr.bf16.mxu1 %v10191_v23 }
  0xe3   :  { %1304 = vmatpush1.bf16.msra.mxu0 %v10188_v15  ;;  %1239 = vmatprep.mubr.bf16.mxu0 %v12042_v0  ;;  %v1513_v15 = vld [vmem:[#allocation8 + $0x40] sm:$0xff] }
  0xe4   :  { %1305 = vmatprep.subr.bf16.mxu0 %v10205_v18  ;;  %1283 = vmatmul.mubr.bf16.vlgmr.msra.gmra.mrb[16].mxu1 %v12177_v5  ;;  %v10432_v18 = vcombine.low %v12205_v12, %v12207_v13  ;;  %v10313_v23 = vcombine.high %v1513_v15, %v1517_v16 }
  0xe5   :  { %1357 = vmatpush1.bf16.msra.mxu1 %v10190_v28  ;;  %1292 = vmatprep.mubr.bf16.mxu1 %v12042_v0  ;;  %v10312_v28 = vcombine.low %v1513_v15, %v1517_v16  ;;  %v1566_v15 = vld [vmem:[#allocation8 + $0x1e8] sm:$0xff] }
  0xe6   :  { %1358 = vmatprep.subr.bf16.mxu1 %v10207_v31  ;;  %v10321_v31 = vcombine.high %v1521_v25, %v1525_v26 }
  0xe7   :  { %1306 = vmatpush1.bf16.msra.mxu0 %v10204_v24  ;;  %v10302_v24 = vcombine.low %v240_v9, %v248_v10  ;;  %v1573_v9 = vld [vmem:[#allocation8 + $0x220] sm:$0xff] }
  0xe8   :  { %1307 = vmatprep.subr.bf16.mxu0 %v10221_v27  ;;  %v10307_v27 = vcombine.high %v1506_v20, %v1510_v21 }
  0xe9   :  { %1359 = vmatpush1.bf16.msra.mxu1 %v10206_v36  ;;  %v10320_v36 = vcombine.low %v1521_v25, %v1525_v26  ;;  %v1574_v25 = vld [vmem:[#allocation8 + $0x228] sm:$0xff] }
  0xea   :  { %1240 = vmatmul.mubr.bf16.gmra.mrb[20].mxu0 %v12181_v22  ;;  %1360 = vmatprep.subr.bf16.mxu1 %v10223_v37  ;;  %v1522_v37 = vld [vmem:[#allocation8 + $0x88] sm:$0xff] }
  0xeb   :  { %1308 = vmatpush1.bf16.msra.mxu0 %v10220_v32  ;;  %1335 = vmatprep.mubr.bf16.mxu0 %v12042_v0  ;;  %v10306_v32 = vcombine.low %v1506_v20, %v1510_v21  ;;  %v1581_v20 = vld [vmem:[#allocation8 + $0x260] sm:$0xff] }
  0xec   :  { %1309 = vmatprep.subr.bf16.mxu0 %v10237_v35  ;;  %1293 = vmatmul.mubr.bf16.gmra.mrb[20].mxu1 %v12181_v22  ;;  %v10315_v35 = vcombine.high %v1514_v29, %v1518_v30  ;;  %v1589_v29 = vld [vmem:[#allocation8 + $0x2a0] sm:$0xff] }
  0xed   :  { %1361 = vmatpush1.bf16.msra.mxu1 %v10222_v42  ;;  %1388 = vmatprep.mubr.bf16.mxu1 %v12042_v0  ;;  %v1541_v42 = vld [vmem:[#allocation8 + $0x120] sm:$0xff] }
  0xee   :  { %1362 = vmatprep.subr.bf16.mxu1 %v10239_v45  ;;  %v1530_v45 = vld [vmem:[#allocation8 + $0xc8] sm:$0xff] }
  0xef   :  { %1310 = vmatpush1.bf16.msra.mxu0 %v10236_v38  ;;  %v1526_v38 = vld [vmem:[#allocation8 + $0xa8] sm:$0xff] }
  0xf0   :  { %1311 = vmatprep.subr.bf16.mxu0 %v10253_v41  ;;  %v1537_v41 = vld [vmem:[#allocation8 + $0x100] sm:$0xff]  ;;  %v10323_v43 = vcombine.high %v1522_v37, %v1526_v38 }
  0xf1   :  { %1363 = vmatpush1.bf16.msra.mxu1 %v10238_v50  ;;  %v10337_v47 = vcombine.high %v1537_v41, %v1541_v42  ;;  %v10336_v51 = vcombine.low %v1537_v41, %v1541_v42  ;;  %v1590_v41 = vld [vmem:[#allocation8 + $0x2a8] sm:$0xff] }
  0xf2   :  { %1364 = vmatprep.subr.bf16.mxu1 %v10255_v53 }
  0xf3   :  { %1312 = vmatpush1.bf16.msra.mxu0 %v10252_v46  ;;  %v1534_v46 = vld [vmem:[#allocation8 + $0xe8] sm:$0xff] }
  0xf4   :  { %1313 = vmatprep.subr.bf16.mxu0 %v10269_v49  ;;  %v1549_v49 = vld [vmem:[#allocation8 + $0x160] sm:$0xff]  ;;  %v10331_v50 = vcombine.high %v1530_v45, %v1534_v46 }
  0xf5   :  { %1365 = vmatpush1.bf16.msra.mxu1 %v10254_v58  ;;  %v10345_v53 = vcombine.high %v1545_v48, %v1549_v49  ;;  %v10344_v58 = vcombine.low %v1545_v48, %v1549_v49  ;;  %v1598_v48 = vld [vmem:[#allocation8 + $0x2e8] sm:$0xff] }
  0xf6   :  { %1366 = vmatprep.subr.bf16.mxu1 %v10271_v61  ;;  %v10353_v61 = vcombine.high %v1553_v55, %v1557_v56 }
  0xf7   :  { %1314 = vmatpush1.bf16.msra.mxu0 %v10268_v54  ;;  %v10330_v54 = vcombine.low %v1530_v45, %v1534_v46  ;;  %v1605_v45 = vld [vmem:[#allocation8 + $0x320] sm:$0xff] }
  0xf8   :  { %1315 = vmatprep.subr.bf16.mxu0 %v10285_v57 }
  0xf9   :  { %1367 = vmatpush1.bf16.msra.mxu1 %v10270_v3  ;;  %v1554_v3 = vld [vmem:[#allocation8 + $0x188] sm:$0xff] }
  0xfa   :  { %1368 = vmatprep.subr.bf16.mxu1 %v10287_v7  ;;  %v10346_v7 = vcombine.low %v1546_v59, %v1550_v60  ;;  %v10355_v10 = vcombine.high %v1554_v3, %v1558_v4 }
  0xfb   :  { %1316 = vmatpush1.bf16.msra.mxu0 %v10284_v62 }
  0xfc   :  { %1317 = vmatprep.subr.bf16.mxu0 %v10301_v2  ;;  %v10347_v2 = vcombine.high %v1546_v59, %v1550_v60  ;;  %v1621_v59 = vld [vmem:[#allocation8 + $0x3a0] sm:$0xff] }
  0xfd   :  { %1369 = vmatpush1.bf16.msra.mxu1 %v10286_v14  ;;  %v1562_v14 = vld [vmem:[#allocation8 + $0x1c8] sm:$0xff] }
  0xfe   :  { %1370 = vmatprep.subr.bf16.mxu1 %v10303_v17  ;;  %v10354_v17 = vcombine.low %v1554_v3, %v1558_v4  ;;  %v10363_v21 = vcombine.high %v1562_v14, %v1566_v15  ;;  %v1629_v3 = vld [vmem:[#allocation8 + $0x3e0] sm:$0xff] }
  0xff   :  { %1318 = vmatpush1.bf16.msra.mxu0 %v10300_v8  ;;  %v1569_v8 = vld [vmem:[#allocation8 + $0x200] sm:$0xff] }
 0x100   :  { %7691 = vmatprep.subr.bf16.mxu0 %v10305_v11  ;;  %v10360_v11 = vcombine.low %v1561_v63, %v1565_v1  ;;  %v10369_v16 = vcombine.high %v1569_v8, %v1573_v9  ;;  %v1614_v63 = vld [vmem:[#allocation8 + $0x368] sm:$0xff] }
 0x101   :  { %1371 = vmatpush1.bf16.msra.mxu1 %v10302_v24  ;;  %v1570_v24 = vld [vmem:[#allocation8 + $0x208] sm:$0xff] }
 0x102   :  { %1336 = vmatmul.mubr.bf16.vlgmr.msra.gmra.mrb[24].mxu0 %v12177_v5  ;;  %8115 = vmatprep.subr.bf16.mxu1 %v10307_v27  ;;  %v10362_v27 = vcombine.low %v1562_v14, %v1566_v15  ;;  %v10371_v30 = vcombine.high %v1570_v24, %v1574_v25  ;;  %v1626_v15 = vld [vmem:[#allocation8 + $0x3c8] sm:$0xff] }
 0x103   :  { %7692 = vmatpush1.bf16.msra.mxu0 %v10304_v19  ;;  %1345 = vmatprep.mubr.bf16.mxu0 %v12042_v0  ;;  %v1577_v19 = vld [vmem:[#allocation8 + $0x240] sm:$0xff] }
 0x104   :  { %7693 = vmatprep.subr.bf16.mxu0 %v10313_v23  ;;  %1389 = vmatmul.mubr.bf16.vlgmr.msra.gmra.mrb[24].mxu1 %v12177_v5  ;;  %v10322_v5 = vcombine.low %v1522_v37, %v1526_v38  ;;  %v10368_v23 = vcombine.low %v1569_v8, %v1573_v9  ;;  %v10377_v26 = vcombine.high %v1577_v19, %v1581_v20  ;;  %v1597_v37 = vld [vmem:[#allocation8 + $0x2e0] sm:$0xff]  ;;  %v1622_v8 = vld [vmem:[#allocation8 + $0x3a8] sm:$0xff] }
 0x105   :  { %8116 = vmatpush1.bf16.msra.mxu1 %v10306_v32  ;;  %1398 = vmatprep.mubr.bf16.mxu1 %v12042_v0  ;;  %v1542_v0 = vld [vmem:[#allocation8 + $0x128] sm:$0xff] }
 0x106   :  { %8117 = vmatprep.subr.bf16.mxu1 %v10315_v35  ;;  %v10339_v57 = vcombine.high %v1538_v52, %v1542_v0  ;;  %v10338_v62 = vcombine.low %v1538_v52, %v1542_v0  ;;  %v1578_v32 = vld [vmem:[#allocation8 + $0x248] sm:$0xff]  ;;  %v10370_v35 = vcombine.low %v1570_v24, %v1574_v25  ;;  %v1613_v52 = vld [vmem:[#allocation8 + $0x360] sm:$0xff] }
 0x107   :  { %7694 = vmatpush1.bf16.msra.mxu0 %v10312_v28  ;;  %v1585_v28 = vld [vmem:[#allocation8 + $0x280] sm:$0xff]  ;;  %v10379_v38 = vcombine.high %v1578_v32, %v1582_v33 }
 0x108   :  { %7695 = vmatprep.subr.bf16.mxu0 %v10321_v31  ;;  %v10376_v31 = vcombine.low %v1577_v19, %v1581_v20  ;;  %v10385_v34 = vcombine.high %v1585_v28, %v1589_v29 }
 0x109   :  { %8118 = vmatpush1.bf16.msra.mxu1 %v10314_v40  ;;  %v1586_v40 = vld [vmem:[#allocation8 + $0x288] sm:$0xff] }
 0x10a   :  { %1346 = vmatmul.mubr.bf16.gmra.mrb[28].mxu0 %v12181_v22  ;;  %8119 = vmatprep.subr.bf16.mxu1 %v10323_v43  ;;  %v10378_v43 = vcombine.low %v1578_v32, %v1582_v33  ;;  %v10387_v46 = vcombine.high %v1586_v40, %v1590_v41 }
 0x10b   :  { %7696 = vmatpush1.bf16.msra.mxu0 %v10320_v36  ;;  %v1593_v36 = vld [vmem:[#allocation8 + $0x2c0] sm:$0xff] }
 0x10c   :  { %7697 = vmatprep.subr.bf16.mxu0 %v10329_v39  ;;  %1399 = vmatmul.mubr.bf16.gmra.mrb[28].mxu1 %v12181_v22  ;;  %v10352_v22 = vcombine.low %v1553_v55, %v1557_v56  ;;  %v10384_v39 = vcombine.low %v1585_v28, %v1589_v29  ;;  %v10393_v42 = vcombine.high %v1593_v36, %v1597_v37  ;;  %v1606_v55 = vld [vmem:[#allocation8 + $0x328] sm:$0xff]  ;;  %v12230_v29 = vld [vmem:[#allocation7] sm:$0xff] }
 0x10d   :  { %8120 = vmatpush1.bf16.msra.mxu1 %v10322_v5  ;;  %v1594_v5 = vld [vmem:[#allocation8 + $0x2c8] sm:$0xff] }
 0x10e   :  { %8121 = vmatprep.subr.bf16.mxu1 %v10331_v50  ;;  %v10386_v50 = vcombine.low %v1586_v40, %v1590_v41  ;;  %v10395_v0 = vcombine.high %v1594_v5, %v1598_v48 }
 0x10f   :  { %7698 = vmatpush1.bf16.msra.mxu0 %v10328_v44  ;;  %v1601_v44 = vld [vmem:[#allocation8 + $0x300] sm:$0xff] }
 0x110   :  { %7699 = vmatprep.subr.bf16.mxu0 %v10337_v47  ;;  %v10392_v47 = vcombine.low %v1593_v36, %v1597_v37  ;;  %v10401_v49 = vcombine.high %v1601_v44, %v1605_v45 }
 0x111   :  { %8122 = vmatpush1.bf16.msra.mxu1 %v10330_v54  ;;  %v1602_v54 = vld [vmem:[#allocation8 + $0x308] sm:$0xff] }
 0x112   :  { %8123 = vmatprep.subr.bf16.mxu1 %v10339_v57  ;;  %v10394_v57 = vcombine.low %v1594_v5, %v1598_v48  ;;  %v10403_v60 = vcombine.high %v1602_v54, %v1606_v55  ;;  %v1645_v5 = vld [vmem:[#allocation8 + $0x460] sm:$0xff] }
 0x113   :  { %7700 = vmatpush1.bf16.msra.mxu0 %v10336_v51  ;;  %v1609_v51 = vld [vmem:[#allocation8 + $0x340] sm:$0xff] }
 0x114   :  { %7701 = vmatprep.subr.bf16.mxu0 %v10345_v53  ;;  %v10400_v53 = vcombine.low %v1601_v44, %v1605_v45  ;;  %v10409_v56 = vcombine.high %v1609_v51, %v1613_v52 }
 0x115   :  { %8124 = vmatpush1.bf16.msra.mxu1 %v10338_v62  ;;  %v1610_v62 = vld [vmem:[#allocation8 + $0x348] sm:$0xff] }
 0x116   :  { %8125 = vmatprep.subr.bf16.mxu1 %v10347_v2  ;;  %v10402_v2 = vcombine.low %v1602_v54, %v1606_v55  ;;  %v10411_v4 = vcombine.high %v1610_v62, %v1614_v63 }
 0x117   :  { %7702 = vmatpush1.bf16.msra.mxu0 %v10344_v58  ;;  %v1617_v58 = vld [vmem:[#allocation8 + $0x380] sm:$0xff] }
 0x118   :  { %7703 = vmatprep.subr.bf16.mxu0 %v10353_v61  ;;  %v10408_v61 = vcombine.low %v1609_v51, %v1613_v52  ;;  %v10417_v1 = vcombine.high %v1617_v58, %v1621_v59  ;;  %v1646_v51 = vld [vmem:[#allocation8 + $0x468] sm:$0xff] }
 0x119   :  { %8126 = vmatpush1.bf16.msra.mxu1 %v10346_v7  ;;  %v1618_v7 = vld [vmem:[#allocation8 + $0x388] sm:$0xff] }
 0x11a   :  { %8127 = vmatprep.subr.bf16.mxu1 %v10355_v10  ;;  %v10410_v10 = vcombine.low %v1610_v62, %v1614_v63  ;;  %v10418_v19 = vcombine.low %v1618_v7, %v1622_v8  ;;  %v12261_v62 = vld [vmem:[#allocation8 + $0x480] sm:$0xff] }
 0x11b   :  { %7704 = vmatpush1.bf16.msra.mxu0 %v10352_v22  ;;  %v1625_v22 = vld [vmem:[#allocation8 + $0x3c0] sm:$0xff] }
 0x11c   :  { %7705 = vmatprep.subr.bf16.mxu0 %v10361_v6  ;;  %v10416_v6 = vcombine.low %v1617_v58, %v1621_v59  ;;  %v10425_v9 = vcombine.high %v1625_v22, %v1629_v3  ;;  %v10424_v14 = vcombine.low %v1625_v22, %v1629_v3 }
 0x11d   :  { %8128 = vmatpush1.bf16.msra.mxu1 %v10354_v17  ;;  %v10433_v17 = vcombine.high %v12205_v12, %v12207_v13 }
 0x11e   :  { %8129 = vmatprep.subr.bf16.mxu1 %v10363_v21  ;;  %v12219_v21 = vld [vmem:[#allocation8 + $0x408] sm:$0xff] }
 0x11f   :  { %7706 = vmatpush1.bf16.msra.mxu0 %v10360_v11  ;;  %v10419_v11 = vcombine.high %v1618_v7, %v1622_v8  ;;  %v1654_v7 = vld [vmem:[#allocation8 + $0x4a8] sm:$0xff] }
 0x120   :  { %7707 = vmatprep.subr.bf16.mxu0 %v10369_v16  ;;  %v1630_v16 = vld [vmem:[#allocation8 + $0x3e8] sm:$0xff] }
 0x121   :  { %8130 = vmatpush1.bf16.msra.mxu1 %v10362_v27  ;;  %v10427_v20 = vcombine.high %v1626_v15, %v1630_v16  ;;  %v10426_v24 = vcombine.low %v1626_v15, %v1630_v16 }
 0x122   :  { %8131 = vmatprep.subr.bf16.mxu1 %v10371_v30 }
 0x123   :  { %7708 = vmatpush1.bf16.msra.mxu0 %v10368_v23  ;;  %v12221_v23 = vld [vmem:[#allocation8 + $0x428] sm:$0xff] }
 0x124   :  { %7709 = vmatprep.subr.bf16.mxu0 %v10377_v26  ;;  %v10435_v25 = vcombine.high %v12219_v21, %v12221_v23  ;;  %v253_v26 = vlaneseq }
 0x125   :  { %8132 = vmatpush1.bf16.msra.mxu1 %v10370_v35 }
 0x126   :  { %8133 = vmatprep.subr.bf16.mxu1 %v10379_v38  ;;  %v12225_v27 = vshrl.u32 %v253_v26, 7 }
 0x127   :  { %7710 = vmatpush1.bf16.msra.mxu0 %v10376_v31 }
 0x128   :  { %7711 = vmatprep.subr.bf16.mxu0 %v10385_v34  ;;  %v12228_v28 = vsub.s32 0, %v12225_v27  ;;  %v12233_v30 = vsub.s32 1, %v12225_v27  ;;  %v12240_v33 = vsub.s32 2, %v12225_v27  ;;  %v12243_v35 = vsub.s32 3, %v12225_v27 }
 0x129   :  { %8134 = vmatpush1.bf16.msra.mxu1 %v10378_v43 }
 0x12a   :  { %8135 = vmatprep.subr.bf16.mxu1 %v10387_v46  ;;  %12698 = vst [vmem:[#allocation20_spill] sm:$0xff] %v12233_v30  ;;  %v256_v31 = vrot.slane %v12230_v29, %v12228_v28  ;;  %v260_v32 = vrot.slane %v12230_v29, %v12233_v30  ;;  %12699 = vst [vmem:[#allocation21_spill] sm:$0xff] %v12243_v35  ;;  %v12251_v44 = vrot.slane %v12230_v29, %v12243_v35 }
 0x12b   :  { %7712 = vmatpush1.bf16.msra.mxu0 %v10384_v39 }
 0x12c   :  { %7713 = vmatprep.subr.bf16.mxu0 %v10393_v42  ;;  %v12247_v42 = vrot.slane %v12230_v29, %v12240_v33 }
 0x12d   :  { %8136 = vmatpush1.bf16.msra.mxu1 %v10386_v50  ;;  %v1642_v50 = vld [vmem:[#allocation8 + $0x448] sm:$0xff] }
 0x12e   :  { %8137 = vmatprep.subr.bf16.mxu1 %v10395_v0 }
 0x12f   :  { %7714 = vmatpush1.bf16.msra.mxu0 %v10392_v47  ;;  %v1641_v47 = vld [vmem:[#allocation8 + $0x440] sm:$0xff] }
 0x130   :  { %7715 = vmatprep.subr.bf16.mxu0 %v10401_v49 }
 0x131   :  { %8138 = vmatpush1.bf16.msra.mxu1 %v10394_v57  ;;  %v10441_v57 = vcombine.high %v1641_v47, %v1645_v5 }
 0x132   :  { %8139 = vmatprep.subr.bf16.mxu1 %v10403_v60 }
 0x133   :  { %7716 = vmatpush1.bf16.msra.mxu0 %v10400_v53 }
 0x134   :  { %7717 = vmatprep.subr.bf16.mxu0 %v10409_v56  ;;  %v10434_v56 = vcombine.low %v12219_v21, %v12221_v23 }
 0x135   :  { %8140 = vmatpush1.bf16.msra.mxu1 %v10402_v2 }
 0x136   :  { %8141 = vmatprep.subr.bf16.mxu1 %v10411_v4  ;;  %v1653_v4 = vld [vmem:[#allocation8 + $0x4a0] sm:$0xff] }
 0x137   :  { %7718 = vmatpush1.bf16.msra.mxu0 %v10408_v61  ;;  %v10443_v61 = vcombine.high %v1642_v50, %v1646_v51 }
 0x138   :  { %7719 = vmatprep.subr.bf16.mxu0 %v10417_v1 }
 0x139   :  { %8142 = vmatpush1.bf16.msra.mxu1 %v10410_v10 }
 0x13a   :  { %8143 = vmatprep.subr.bf16.mxu1 %v10419_v11 }
 0x13b   :  { %7720 = vmatpush1.bf16.msra.mxu0 %v10416_v6  ;;  %v1650_v6 = vld [vmem:[#allocation8 + $0x488] sm:$0xff] }
 0x13c   :  { %7721 = vmatprep.subr.bf16.mxu0 %v10425_v9  ;;  %v10451_v26 = vcombine.high %v1650_v6, %v1654_v7 }
 0x13d   :  { %8144 = vmatpush1.bf16.msra.mxu1 %v10418_v19 }
 0x13e   :  { %8145 = vmatprep.subr.bf16.mxu1 %v10427_v20  ;;  %v10442_v20 = vcombine.low %v1642_v50, %v1646_v51  ;;  %v1665_v50 = vld [vmem:[#allocation8 + $0x500] sm:$0xff] }
 0x13f   :  { %7722 = vmatpush1.bf16.msra.mxu0 %v10424_v14  ;;  %v10440_v14 = vcombine.low %v1641_v47, %v1645_v5 }
 0x140   :  { %7744 = vmatprep.subr.bf16.mxu0 %v10433_v17 }
 0x141   :  { %8146 = vmatpush1.bf16.msra.mxu1 %v10426_v24 }
 0x142   :  { %8168 = vmatprep.subr.bf16.mxu1 %v10435_v25  ;;  %v10449_v25 = vcombine.high %v12261_v62, %v1653_v4 }
 0x175   :  { %v1019_v34 = vpop.f32.mrb[0].mxu0  ;;  %v1072_v52 = vpop.f32.mrb[0].mxu1 }
 0x176   :  { %v1020_v36 = vadd.f32 %v1019_v34, %v256_v31  ;;  %v1021_v37 = vpop.f32.mrb[1].mxu0  ;;  %v1073_v53 = vadd.f32 %v1072_v52, %v12247_v42  ;;  %v1074_v54 = vpop.f32.mrb[1].mxu1  ;;  %v1657_v34 = vld [vmem:[#allocation8 + $0x4c0] sm:$0xff] }
 0x177   :  { %v1022_v38 = vadd.f32 %v1021_v37, %v260_v32  ;;  %v1023_v39 = vpop.f32.mrb[2].mxu0  ;;  %v1075_v59 = vadd.f32 %v1074_v54, %v12251_v44  ;;  %v1076_v60 = vpop.f32.mrb[2].mxu1  ;;  %v1669_v54 = vld [vmem:[#allocation8 + $0x520] sm:$0xff] }
 0x178   :  { %v1024_v40 = vadd.f32 %v1023_v39, %v256_v31  ;;  %v1025_v41 = vpop.f32.mrb[3].mxu0  ;;  %v1409_v45 = vmax.f32 %v1020_v36, 0.0  ;;  %v1411_v2 = vmax.f32 %v1073_v53, 0.0  ;;  %v1077_v22 = vadd.f32 %v1076_v60, %v12247_v42  ;;  %v1078_v3 = vpop.f32.mrb[3].mxu1  ;;  %v1662_v39 = vld [vmem:[#allocation8 + $0x4e8] sm:$0xff] }
 0x179   :  { %v1026_v43 = vadd.f32 %v1025_v41, %v260_v32  ;;  %v1410_v48 = vmax.f32 %v1022_v38, 0.0  ;;  %v1412_v10 = vmax.f32 %v1075_v59, 0.0  ;;  %v1079_v11 = vadd.f32 %v1078_v3, %v12251_v44  ;;  %v1658_v38 = vld [vmem:[#allocation8 + $0x4c8] sm:$0xff]  ;;  %v1677_v3 = vld [vmem:[#allocation8 + $0x560] sm:$0xff] }
 0x17a   :  { %v1425_v46 = vmax.f32 %v1024_v40, 0.0  ;;  %v1427_v19 = vmax.f32 %v1077_v22, 0.0 }
 0x17b   :  { %v1426_v49 = vmax.f32 %v1026_v43, 0.0  ;;  %v1428_v24 = vmax.f32 %v1079_v11, 0.0  ;;  %v1681_v11 = vld [vmem:[#allocation8 + $0x580] sm:$0xff] }
 0x17c   :  { %v12253_v0 = vpack.c.bf16 %v1425_v46, %v1409_v45  ;;  %v12273_v37 = vpack.c.bf16 %v1427_v19, %v1411_v2  ;;  %v10450_v45 = vcombine.low %v1650_v6, %v1654_v7  ;;  %v1673_v2 = vld [vmem:[#allocation8 + $0x540] sm:$0xff]  ;;  %v10464_v7 = vcombine.low %v1665_v50, %v1669_v54 }
 0x17d   :  { %v12256_v55 = vpack.c.bf16 %v1426_v49, %v1410_v48  ;;  %v1029_v58 = vpop.f32.mrb[4].mxu0  ;;  %v12275_v12 = vpack.c.bf16 %v1428_v24, %v1412_v10  ;;  %v1082_v13 = vpop.f32.mrb[4].mxu1  ;;  %v10459_v49 = vcombine.high %v1658_v38, %v1662_v39  ;;  %v12300_v19 = vsub.s32 5, %v12225_v27 }
 0x17e   :  { %v1030_v63 = vadd.f32 %v1029_v58, %v256_v31  ;;  %v1031_v1 = vpop.f32.mrb[5].mxu0  ;;  %v1083_v41 = vadd.f32 %v1082_v13, %v12247_v42  ;;  %v1084_v43 = vpop.f32.mrb[5].mxu1 }
 0x17f   :  { %7723 = vmatprep.mubr.bf16.mxu0 %v12256_v55  ;;  %8147 = vmatprep.mubr.bf16.mxu1 %v12256_v55  ;;  %v1032_v8 = vadd.f32 %v1031_v1, %v260_v32  ;;  %v1033_v9 = vpop.f32.mrb[6].mxu0  ;;  %v1085_v47 = vadd.f32 %v1084_v43, %v12251_v44  ;;  %v1086_v5 = vpop.f32.mrb[6].mxu1  ;;  %12701 = vst [vmem:[#allocation23_spill] sm:$0xff] %v12300_v19 }
 0x180   :  { %7724 = vmatmul.mubr.bf16.vlgmr.msra.gmra.mrb[32].mxu0 %v12253_v0  ;;  %8148 = vmatmul.mubr.bf16.vlgmr.msra.gmra.mrb[32].mxu1 %v12253_v0  ;;  %v1441_v15 = vmax.f32 %v1030_v63, 0.0  ;;  %v1034_v16 = vadd.f32 %v1033_v9, %v256_v31  ;;  %v1035_v17 = vpop.f32.mrb[7].mxu0  ;;  %v1661_v31 = vld [vmem:[#allocation8 + $0x4e0] sm:$0xff]  ;;  %v1443_v51 = vmax.f32 %v1083_v41, 0.0  ;;  %v1087_v52 = vadd.f32 %v1086_v5, %v12247_v42  ;;  %v1088_v53 = vpop.f32.mrb[7].mxu1 }
 0x181   :  { %7745 = vmatpush1.bf16.msra.mxu0 %v10432_v18  ;;  %8169 = vmatpush1.bf16.msra.mxu1 %v10434_v56  ;;  %v1442_v21 = vmax.f32 %v1032_v8, 0.0  ;;  %v1036_v23 = vadd.f32 %v1035_v17, %v260_v32  ;;  %v10448_v18 = vcombine.low %v12261_v62, %v1653_v4  ;;  %v10457_v48 = vcombine.high %v1657_v34, %v1661_v31  ;;  %v1666_v56 = vld [vmem:[#allocation8 + $0x508] sm:$0xff] }
 0x182   :  { %7746 = vmatprep.subr.bf16.mxu0 %v10441_v57  ;;  %8170 = vmatprep.subr.bf16.mxu1 %v10443_v61  ;;  %v1457_v36 = vmax.f32 %v1034_v16, 0.0  ;;  %v1670_v57 = vld [vmem:[#allocation8 + $0x528] sm:$0xff]  ;;  %v1444_v58 = vmax.f32 %v1085_v47, 0.0  ;;  %v1089_v59 = vadd.f32 %v1088_v53, %v12251_v44  ;;  %v1459_v60 = vmax.f32 %v1087_v52, 0.0  ;;  %v12316_v47 = vld [vmem:[#allocation8 + $0x600] sm:$0xff] }
 0x183   :  { %v1458_v40 = vmax.f32 %v1036_v23, 0.0  ;;  %v10456_v61 = vcombine.low %v1657_v34, %v1661_v31  ;;  %v10458_v42 = vcombine.low %v1658_v38, %v1662_v39  ;;  %v10465_v63 = vcombine.high %v1665_v50, %v1669_v54  ;;  %v1674_v4 = vld [vmem:[#allocation8 + $0x548] sm:$0xff]  ;;  %v1693_v34 = vld [vmem:[#allocation8 + $0x5e0] sm:$0xff] }
 0x184   :  { %v12278_v32 = vpack.c.bf16 %v1457_v36, %v1441_v15  ;;  %v1460_v62 = vmax.f32 %v1089_v59, 0.0  ;;  %v10467_v1 = vcombine.high %v1666_v56, %v1670_v57  ;;  %v12290_v22 = vpack.c.bf16 %v1459_v60, %v1443_v51  ;;  %v1678_v44 = vld [vmem:[#allocation8 + $0x568] sm:$0xff]  ;;  %v1685_v15 = vld [vmem:[#allocation8 + $0x5a0] sm:$0xff] }
 0x185   :  { %7747 = vmatpush1.bf16.msra.mxu0 %v10440_v14  ;;  %8171 = vmatpush1.bf16.msra.mxu1 %v10442_v20  ;;  %v12281_v46 = vpack.c.bf16 %v1458_v40, %v1442_v21  ;;  %v10466_v8 = vcombine.low %v1666_v56, %v1670_v57  ;;  %v10473_v9 = vcombine.high %v1673_v2, %v1677_v3  ;;  %v12297_v14 = vsub.s32 4, %v12225_v27  ;;  %v1682_v16 = vld [vmem:[#allocation8 + $0x588] sm:$0xff] }
 0x186   :  { %7748 = vmatprep.subr.bf16.mxu0 %v10449_v25  ;;  %8172 = vmatprep.subr.bf16.mxu1 %v10451_v26  ;;  %v12294_v6 = vpack.c.bf16 %v1460_v62, %v1444_v58  ;;  %v10475_v10 = vcombine.high %v1674_v4, %v1678_v44  ;;  %v1686_v17 = vld [vmem:[#allocation8 + $0x5a8] sm:$0xff]  ;;  %v10472_v20 = vcombine.low %v1673_v2, %v1677_v3  ;;  %v1689_v25 = vld [vmem:[#allocation8 + $0x5c0] sm:$0xff]  ;;  %v12311_v39 = vsub.s32 6, %v12225_v27 }
 0x187   :  { %7733 = vmatprep.mubr.bf16.mxu0 %v12281_v46  ;;  %8157 = vmatprep.mubr.bf16.mxu1 %v12281_v46  ;;  %12700 = vst [vmem:[#allocation22_spill] sm:$0xff] %v12297_v14  ;;  %v10474_v21 = vcombine.low %v1674_v4, %v1678_v44  ;;  %v10481_v23 = vcombine.high %v1681_v11, %v1685_v15  ;;  %v1690_v36 = vld [vmem:[#allocation8 + $0x5c8] sm:$0xff]  ;;  %v12314_v41 = vsub.s32 7, %v12225_v27  ;;  %v1709_v2 = vld [vmem:[#allocation8 + $0x660] sm:$0xff] }
 0x188   :  { %7734 = vmatmul.mubr.bf16.gmra.mrb[36].mxu0 %v12278_v32  ;;  %8158 = vmatmul.mubr.bf16.gmra.mrb[36].mxu1 %v12278_v32  ;;  %v10483_v24 = vcombine.high %v1682_v16, %v1686_v17  ;;  %v12304_v26 = vrot.slane %v12230_v29, %v12297_v14  ;;  %v1694_v31 = vld [vmem:[#allocation8 + $0x5e8] sm:$0xff]  ;;  %v12308_v38 = vrot.slane %v12230_v29, %v12300_v19 }
 0x189   :  { %7749 = vmatpush1.bf16.msra.mxu0 %v10448_v18  ;;  %8173 = vmatpush1.bf16.msra.mxu1 %v10450_v45  ;;  %12702 = vst [vmem:[#allocation24_spill] sm:$0xff] %v12311_v39  ;;  %v10480_v40 = vcombine.low %v1681_v11, %v1685_v15  ;;  %v10482_v13 = vcombine.low %v1682_v16, %v1686_v17  ;;  %12703 = vst [vmem:[#allocation25_spill] sm:$0xff] %v12314_v41  ;;  %v1698_v50 = vld [vmem:[#allocation8 + $0x608] sm:$0xff] }
 0x18a   :  { %7750 = vmatprep.subr.bf16.mxu0 %v10457_v48  ;;  %8174 = vmatprep.subr.bf16.mxu1 %v10459_v49  ;;  %v10489_v43 = vcombine.high %v1689_v25, %v1693_v34  ;;  %v10491_v45 = vcombine.high %v1690_v36, %v1694_v31  ;;  %v1701_v49 = vld [vmem:[#allocation8 + $0x620] sm:$0xff]  ;;  %v1702_v51 = vld [vmem:[#allocation8 + $0x628] sm:$0xff]  ;;  %v10488_v54 = vcombine.low %v1689_v25, %v1693_v34 }
 0x18b   :  { %7776 = vmatprep.mubr.bf16.mxu0 %v12275_v12  ;;  %8200 = vmatprep.mubr.bf16.mxu1 %v12275_v12  ;;  %v12323_v57 = vrot.slane %v12230_v29, %v12311_v39  ;;  %v10490_v59 = vcombine.low %v1690_v36, %v1694_v31  ;;  %v10497_v62 = vcombine.high %v12316_v47, %v1701_v49  ;;  %v1706_v4 = vld [vmem:[#allocation8 + $0x648] sm:$0xff]  ;;  %v1713_v25 = vld [vmem:[#allocation8 + $0x680] sm:$0xff] }
 0x18c   :  { %v1710_v44 = vld [vmem:[#allocation8 + $0x668] sm:$0xff] }
 0x18d   :  { %7751 = vmatpush1.bf16.msra.mxu0 %v10456_v61  ;;  %8175 = vmatpush1.bf16.msra.mxu1 %v10458_v42  ;;  %v12328_v42 = vrot.slane %v12230_v29, %v12314_v41 }
 0x18e   :  { %7752 = vmatprep.subr.bf16.mxu0 %v10465_v63  ;;  %8176 = vmatprep.subr.bf16.mxu1 %v10467_v1  ;;  %v10499_v63 = vcombine.high %v1698_v50, %v1702_v51  ;;  %v12331_v1 = vld [vmem:[#allocation8 + $0x640] sm:$0xff] }
 0x18f   :  { %v10505_v16 = vcombine.high %v12331_v1, %v1709_v2 }
 0x191   :  { %7753 = vmatpush1.bf16.msra.mxu0 %v10464_v7  ;;  %8177 = vmatpush1.bf16.msra.mxu1 %v10466_v8 }
 0x192   :  { %7754 = vmatprep.subr.bf16.mxu0 %v10473_v9  ;;  %8178 = vmatprep.subr.bf16.mxu1 %v10475_v10  ;;  %v10496_v9 = vcombine.low %v12316_v47, %v1701_v49  ;;  %v10498_v10 = vcombine.low %v1698_v50, %v1702_v51  ;;  %v10504_v50 = vcombine.low %v12331_v1, %v1709_v2  ;;  %v1725_v2 = vld [vmem:[#allocation8 + $0x6e0] sm:$0xff] }
 0x195   :  { %7755 = vmatpush1.bf16.msra.mxu0 %v10472_v20  ;;  %8179 = vmatpush1.bf16.msra.mxu1 %v10474_v21  ;;  %v1125_v18 = vpop.f32.mrb[8].mxu0 }
 0x196   :  { %7756 = vmatprep.subr.bf16.mxu0 %v10481_v23  ;;  %8180 = vmatprep.subr.bf16.mxu1 %v10483_v24  ;;  %v1126_v5 = vadd.f32 %v1125_v18, %v12304_v26  ;;  %v1127_v48 = vpop.f32.mrb[9].mxu0  ;;  %v10507_v24 = vcombine.high %v1706_v4, %v1710_v44  ;;  %v1717_v18 = vld [vmem:[#allocation8 + $0x6a0] sm:$0xff] }
 0x197   :  { %v1128_v52 = vadd.f32 %v1127_v48, %v12308_v38  ;;  %v1129_v53 = vpop.f32.mrb[10].mxu0  ;;  %v1178_v7 = vpop.f32.mrb[8].mxu1 }
 0x198   :  { %v1413_v56 = vmax.f32 %v1126_v5, 0.0  ;;  %v1130_v27 = vadd.f32 %v1129_v53, %v12304_v26  ;;  %v1131_v58 = vpop.f32.mrb[11].mxu0  ;;  %v1179_v29 = vadd.f32 %v1178_v7, %v12323_v57  ;;  %v1180_v15 = vpop.f32.mrb[9].mxu1  ;;  %v1726_v7 = vld [vmem:[#allocation8 + $0x6e8] sm:$0xff] }
 0x199   :  { %7757 = vmatpush1.bf16.msra.mxu0 %v10480_v40  ;;  %8181 = vmatpush1.bf16.msra.mxu1 %v10482_v13  ;;  %v1414_v60 = vmax.f32 %v1128_v52, 0.0  ;;  %v1132_v61 = vadd.f32 %v1131_v58, %v12308_v38  ;;  %v1181_v20 = vadd.f32 %v1180_v15, %v12328_v42  ;;  %v1182_v21 = vpop.f32.mrb[10].mxu1 }
 0x19a   :  { %7758 = vmatprep.subr.bf16.mxu0 %v10489_v43  ;;  %8182 = vmatprep.subr.bf16.mxu1 %v10491_v45  ;;  %v1429_v3 = vmax.f32 %v1130_v27, 0.0  ;;  %v1415_v34 = vmax.f32 %v1179_v29, 0.0  ;;  %v1183_v36 = vadd.f32 %v1182_v21, %v12323_v57  ;;  %v1184_v31 = vpop.f32.mrb[11].mxu1  ;;  %v1714_v43 = vld [vmem:[#allocation8 + $0x688] sm:$0xff] }
 0x19b   :  { %v1430_v8 = vmax.f32 %v1132_v61, 0.0  ;;  %v1718_v45 = vld [vmem:[#allocation8 + $0x6a8] sm:$0xff]  ;;  %v1416_v47 = vmax.f32 %v1181_v20, 0.0  ;;  %v1185_v5 = vadd.f32 %v1184_v31, %v12328_v42  ;;  %v1733_v31 = vld [vmem:[#allocation8 + $0x720] sm:$0xff] }
 0x19c   :  { %v12334_v11 = vpack.c.bf16 %v1429_v3, %v1413_v56  ;;  %v1431_v51 = vmax.f32 %v1183_v36, 0.0  ;;  %v10506_v56 = vcombine.low %v1706_v4, %v1710_v44  ;;  %v10515_v61 = vcombine.high %v1714_v43, %v1718_v45  ;;  %v1722_v3 = vld [vmem:[#allocation8 + $0x6c8] sm:$0xff] }
 0x19d   :  { %7759 = vmatpush1.bf16.msra.mxu0 %v10488_v54  ;;  %8183 = vmatpush1.bf16.msra.mxu1 %v10490_v59  ;;  %v12338_v17 = vpack.c.bf16 %v1430_v8, %v1414_v60  ;;  %v1135_v23 = vpop.f32.mrb[12].mxu0  ;;  %v1432_v27 = vmax.f32 %v1185_v5, 0.0  ;;  %v10513_v60 = vcombine.high %v1713_v25, %v1717_v18  ;;  %v10512_v4 = vcombine.low %v1713_v25, %v1717_v18 }
 0x19e   :  { %7760 = vmatprep.subr.bf16.mxu0 %v10497_v62  ;;  %8184 = vmatprep.subr.bf16.mxu1 %v10499_v63  ;;  %v1136_v40 = vadd.f32 %v1135_v23, %v12304_v26  ;;  %v1137_v13 = vpop.f32.mrb[13].mxu0  ;;  %v1721_v62 = vld [vmem:[#allocation8 + $0x6c0] sm:$0xff]  ;;  %v12348_v63 = vpack.c.bf16 %v1431_v51, %v1415_v34  ;;  %v10514_v29 = vcombine.low %v1714_v43, %v1718_v45 }
 0x19f   :  { %v1138_v48 = vadd.f32 %v1137_v13, %v12308_v38  ;;  %v1139_v49 = vpop.f32.mrb[14].mxu0  ;;  %v1188_v8 = vpop.f32.mrb[12].mxu1  ;;  %v10521_v21 = vcombine.high %v1721_v62, %v1725_v2  ;;  %v10523_v23 = vcombine.high %v1722_v3, %v1726_v7  ;;  %v1734_v13 = vld [vmem:[#allocation8 + $0x728] sm:$0xff]  ;;  %v10522_v5 = vcombine.low %v1722_v3, %v1726_v7  ;;  %v1737_v51 = vld [vmem:[#allocation8 + $0x740] sm:$0xff] }
 0x1a0   :  { %v1445_v52 = vmax.f32 %v1136_v40, 0.0  ;;  %v1140_v53 = vadd.f32 %v1139_v49, %v12304_v26  ;;  %v1141_v54 = vpop.f32.mrb[15].mxu0  ;;  %v12350_v26 = vpack.c.bf16 %v1432_v27, %v1416_v47  ;;  %v1730_v40 = vld [vmem:[#allocation8 + $0x708] sm:$0xff]  ;;  %v10520_v47 = vcombine.low %v1721_v62, %v1725_v2  ;;  %v12364_v2 = vld [vmem:[#allocation7 + $0x8] sm:$0xff] }
 0x1a1   :  { %7761 = vmatpush1.bf16.msra.mxu0 %v10496_v9  ;;  %8185 = vmatpush1.bf16.msra.mxu1 %v10498_v10  ;;  %v1446_v58 = vmax.f32 %v1138_v48, 0.0  ;;  %v1142_v59 = vadd.f32 %v1141_v54, %v12308_v38  ;;  %v1189_v38 = vadd.f32 %v1188_v8, %v12323_v57  ;;  %v1190_v10 = vpop.f32.mrb[13].mxu1  ;;  %v1742_v54 = vld [vmem:[#allocation8 + $0x768] sm:$0xff]  ;;  %v10530_v27 = vcombine.low %v1730_v40, %v1734_v13 }
 0x1a2   :  { %7762 = vmatprep.subr.bf16.mxu0 %v10505_v16  ;;  %8186 = vmatprep.subr.bf16.mxu1 %v10507_v24  ;;  %v1461_v1 = vmax.f32 %v1140_v53, 0.0  ;;  %v1191_v16 = vadd.f32 %v1190_v10, %v12328_v42  ;;  %v1192_v20 = vpop.f32.mrb[14].mxu1  ;;  %v1729_v24 = vld [vmem:[#allocation8 + $0x700] sm:$0xff]  ;;  %v1738_v53 = vld [vmem:[#allocation8 + $0x748] sm:$0xff] }
 0x1a3   :  { %v1462_v9 = vmax.f32 %v1142_v59, 0.0  ;;  %v1447_v34 = vmax.f32 %v1189_v38, 0.0  ;;  %v1193_v25 = vadd.f32 %v1192_v20, %v12323_v57  ;;  %v1194_v36 = vpop.f32.mrb[15].mxu1  ;;  %v10529_v49 = vcombine.high %v1729_v24, %v1733_v31  ;;  %v1741_v57 = vld [vmem:[#allocation8 + $0x760] sm:$0xff]  ;;  %v1746_v62 = vld [vmem:[#allocation8 + $0x788] sm:$0xff] }
 0x1a4   :  { %v12352_v44 = vpack.c.bf16 %v1461_v1, %v1445_v52  ;;  %v1448_v18 = vmax.f32 %v1191_v16, 0.0  ;;  %v1195_v43 = vadd.f32 %v1194_v36, %v12328_v42  ;;  %v10528_v42 = vcombine.low %v1729_v24, %v1733_v31  ;;  %v1750_v1 = vld [vmem:[#allocation8 + $0x7a8] sm:$0xff]  ;;  %v1757_v10 = vld [vmem:[#allocation8 + $0x7e0] sm:$0xff] }
 0x1a5   :  { %7763 = vmatpush1.bf16.msra.mxu0 %v10504_v50  ;;  %8187 = vmatpush1.bf16.msra.mxu1 %v10506_v56  ;;  %v12355_v15 = vpack.c.bf16 %v1462_v9, %v1446_v58  ;;  %v1463_v45 = vmax.f32 %v1193_v25, 0.0  ;;  %v10531_v50 = vcombine.high %v1730_v40, %v1734_v13  ;;  %v10537_v58 = vcombine.high %v1737_v51, %v1741_v57  ;;  %v1758_v16 = vld [vmem:[#allocation8 + $0x7e8] sm:$0xff]  ;;  %v12374_v36 = vld [vmem:[#allocation8 + $0x800] sm:$0xff] }
 0x1a6   :  { %7764 = vmatprep.subr.bf16.mxu0 %v10513_v60  ;;  %8188 = vmatprep.subr.bf16.mxu1 %v10515_v61  ;;  %v1464_v48 = vmax.f32 %v1195_v43, 0.0  ;;  %v10539_v59 = vcombine.high %v1738_v53, %v1742_v54  ;;  %v1745_v60 = vld [vmem:[#allocation8 + $0x780] sm:$0xff]  ;;  %v10536_v3 = vcombine.low %v1737_v51, %v1741_v57  ;;  %v10538_v7 = vcombine.low %v1738_v53, %v1742_v54  ;;  %v1766_v43 = vld [vmem:[#allocation8 + $0x828] sm:$0xff] }
 0x1a7   :  { %v12360_v52 = vpack.c.bf16 %v1463_v45, %v1447_v34  ;;  %v1749_v61 = vld [vmem:[#allocation8 + $0x7a0] sm:$0xff]  ;;  %v10547_v9 = vcombine.high %v1746_v62, %v1750_v1  ;;  %v12368_v38 = vrot.slane %v12364_v2, %v12228_v28  ;;  %v12372_v20 = vrot.slane %v12364_v2, %v12233_v30 }
 0x1a8   :  { %v12362_v56 = vpack.c.bf16 %v1464_v48, %v1448_v18  ;;  %v10545_v8 = vcombine.high %v1745_v60, %v1749_v61  ;;  %v1765_v13 = vld [vmem:[#allocation8 + $0x820] sm:$0xff]  ;;  %v1762_v18 = vld [vmem:[#allocation8 + $0x808] sm:$0xff] }
 0x1a9   :  { %7765 = vmatpush1.bf16.msra.mxu0 %v10512_v4  ;;  %8189 = vmatpush1.bf16.msra.mxu1 %v10514_v29  ;;  %v1753_v4 = vld [vmem:[#allocation8 + $0x7c0] sm:$0xff]  ;;  %v1754_v29 = vld [vmem:[#allocation8 + $0x7c8] sm:$0xff] }
 0x1aa   :  { %7766 = vmatprep.subr.bf16.mxu0 %v10521_v21  ;;  %8190 = vmatprep.subr.bf16.mxu1 %v10523_v23  ;;  %v10544_v21 = vcombine.low %v1745_v60, %v1749_v61  ;;  %v10546_v23 = vcombine.low %v1746_v62, %v1750_v1  ;;  %v10553_v34 = vcombine.high %v1753_v4, %v1757_v10  ;;  %v12391_v60 = vld [vmem:[#allocation8 + $0x860] sm:$0xff]  ;;  %v12393_v62 = vld [vmem:[#allocation8 + $0x848] sm:$0xff] }
 0x1ab   :  { %v10555_v25 = vcombine.high %v1754_v29, %v1758_v16  ;;  %v10554_v57 = vcombine.low %v1754_v29, %v1758_v16  ;;  %v12395_v1 = vld [vmem:[#allocation8 + $0x868] sm:$0xff] }
 0x1ad   :  { %7767 = vmatpush1.bf16.msra.mxu0 %v10520_v47  ;;  %8191 = vmatpush1.bf16.msra.mxu1 %v10522_v5  ;;  %v10552_v5 = vcombine.low %v1753_v4, %v1757_v10 }
 0x1ae   :  { %7768 = vmatprep.subr.bf16.mxu0 %v10529_v49  ;;  %8192 = vmatprep.subr.bf16.mxu1 %v10531_v50  ;;  %v12381_v50 = vrot.slane %v12364_v2, %v12240_v33 }
 0x1b1   :  { %7769 = vmatpush1.bf16.msra.mxu0 %v10528_v42  ;;  %8193 = vmatpush1.bf16.msra.mxu1 %v10530_v27  ;;  %v12386_v42 = vrot.slane %v12364_v2, %v12243_v35  ;;  %v10561_v27 = vcombine.high %v12374_v36, %v1765_v13 }
 0x1b2   :  { %7770 = vmatprep.subr.bf16.mxu0 %v10537_v58  ;;  %8194 = vmatprep.subr.bf16.mxu1 %v10539_v59  ;;  %v10563_v58 = vcombine.high %v1762_v18, %v1766_v43  ;;  %v12389_v59 = vld [vmem:[#allocation8 + $0x840] sm:$0xff] }
 0x1b3   :  { %v10569_v16 = vcombine.high %v12389_v59, %v12391_v60 }
 0x1b5   :  { %7771 = vmatpush1.bf16.msra.mxu0 %v10536_v3  ;;  %8195 = vmatpush1.bf16.msra.mxu1 %v10538_v7  ;;  %v1231_v24 = vpop.f32.mrb[16].mxu0 }
 0x1b6   :  { %7772 = vmatprep.subr.bf16.mxu0 %v10545_v8  ;;  %8196 = vmatprep.subr.bf16.mxu1 %v10547_v9  ;;  %v1232_v31 = vadd.f32 %v1231_v24, %v12368_v38  ;;  %v1233_v40 = vpop.f32.mrb[17].mxu0  ;;  %v10560_v8 = vcombine.low %v12374_v36, %v1765_v13  ;;  %v10562_v9 = vcombine.low %v1762_v18, %v1766_v43  ;;  %v12408_v36 = vld [vmem:[#allocation8 + $0x880] sm:$0xff] }
 0x1b7   :  { %v1234_v45 = vadd.f32 %v1233_v40, %v12372_v20  ;;  %v1235_v47 = vpop.f32.mrb[18].mxu0  ;;  %v1284_v3 = vpop.f32.mrb[16].mxu1 }
 0x1b8   :  { %v1417_v48 = vmax.f32 %v1232_v31, 0.0  ;;  %v1236_v49 = vadd.f32 %v1235_v47, %v12368_v38  ;;  %v1237_v51 = vpop.f32.mrb[19].mxu0  ;;  %v1285_v10 = vadd.f32 %v1284_v3, %v12381_v50  ;;  %v1286_v29 = vpop.f32.mrb[17].mxu1  ;;  %v1778_v47 = vld [vmem:[#allocation8 + $0x888] sm:$0xff]  ;;  %v10570_v3 = vcombine.low %v12393_v62, %v12395_v1 }
 0x1b9   :  { %7773 = vmatpush1.bf16.msra.mxu0 %v10544_v21  ;;  %8197 = vmatpush1.bf16.msra.mxu1 %v10546_v23  ;;  %v1418_v53 = vmax.f32 %v1234_v45, 0.0  ;;  %v1238_v54 = vadd.f32 %v1237_v51, %v12372_v20  ;;  %v1287_v23 = vadd.f32 %v1286_v29, %v12386_v42  ;;  %v1288_v24 = vpop.f32.mrb[18].mxu1  ;;  %v1781_v45 = vld [vmem:[#allocation8 + $0x8a0] sm:$0xff] }
 0x1ba   :  { %7774 = vmatprep.subr.bf16.mxu0 %v10553_v34  ;;  %8198 = vmatprep.subr.bf16.mxu1 %v10555_v25  ;;  %v1433_v61 = vmax.f32 %v1236_v49, 0.0  ;;  %v10571_v25 = vcombine.high %v12393_v62, %v12395_v1  ;;  %v1419_v31 = vmax.f32 %v1285_v10, 0.0  ;;  %v1289_v40 = vadd.f32 %v1288_v24, %v12381_v50  ;;  %v1290_v13 = vpop.f32.mrb[19].mxu1 }
 0x1bb   :  { %v1434_v7 = vmax.f32 %v1238_v54, 0.0  ;;  %v1291_v49 = vadd.f32 %v1290_v13, %v12386_v42 }
 0x1bc   :  { %v12398_v4 = vpack.c.bf16 %v1433_v61, %v1417_v48  ;;  %v1420_v48 = vmax.f32 %v1287_v23, 0.0  ;;  %v1435_v54 = vmax.f32 %v1289_v40, 0.0  ;;  %v10577_v23 = vcombine.high %v12408_v36, %v1781_v45  ;;  %v1786_v40 = vld [vmem:[#allocation8 + $0x8c8] sm:$0xff] }
 0x1bd   :  { %7775 = vmatpush1.bf16.msra.mxu0 %v10552_v5  ;;  %8199 = vmatpush1.bf16.msra.mxu1 %v10554_v57  ;;  %v12403_v21 = vpack.c.bf16 %v1434_v7, %v1418_v53  ;;  %v1241_v34 = vpop.f32.mrb[20].mxu0  ;;  %v1782_v5 = vld [vmem:[#allocation8 + $0x8a8] sm:$0xff]  ;;  %v10568_v53 = vcombine.low %v12389_v59, %v12391_v60  ;;  %v1436_v7 = vmax.f32 %v1291_v49, 0.0  ;;  %v1785_v59 = vld [vmem:[#allocation8 + $0x8c0] sm:$0xff] }
 0x1be   :  { %7797 = vmatprep.subr.bf16.mxu0 %v10561_v27  ;;  %8221 = vmatprep.subr.bf16.mxu1 %v10563_v58  ;;  %v1242_v18 = vadd.f32 %v1241_v34, %v12368_v38  ;;  %v1243_v43 = vpop.f32.mrb[21].mxu0  ;;  %v10579_v24 = vcombine.high %v1778_v47, %v1782_v5  ;;  %v12423_v60 = vpack.c.bf16 %v1435_v54, %v1419_v31 }
 0x1bf   :  { %v1244_v51 = vadd.f32 %v1243_v43, %v12372_v20  ;;  %v1245_v57 = vpop.f32.mrb[22].mxu0  ;;  %v12427_v62 = vpack.c.bf16 %v1436_v7, %v1420_v48  ;;  %v1294_v1 = vpop.f32.mrb[20].mxu1  ;;  %v10578_v13 = vcombine.low %v1778_v47, %v1782_v5 }
 0x1c0   :  { %7777 = vmatmul.mubr.bf16.vlgmr.msra.gmra.mrb[32].mxu0 %v12273_v37  ;;  %8201 = vmatmul.mubr.bf16.vlgmr.msra.gmra.mrb[32].mxu1 %v12273_v37  ;;  %v1449_v27 = vmax.f32 %v1242_v18, 0.0  ;;  %v1246_v58 = vadd.f32 %v1245_v57, %v12368_v38  ;;  %v1247_v61 = vpop.f32.mrb[23].mxu0  ;;  %v1789_v38 = vld [vmem:[#allocation8 + $0x8e0] sm:$0xff]  ;;  %v1296_v31 = vpop.f32.mrb[21].mxu1 }
 0x1c1   :  { %7798 = vmatpush1.bf16.msra.mxu0 %v10560_v8  ;;  %8222 = vmatpush1.bf16.msra.mxu1 %v10562_v9  ;;  %v1450_v10 = vmax.f32 %v1244_v51, 0.0  ;;  %v1248_v29 = vadd.f32 %v1247_v61, %v12372_v20  ;;  %v1790_v8 = vld [vmem:[#allocation8 + $0x8e8] sm:$0xff]  ;;  %v10576_v9 = vcombine.low %v12408_v36, %v1781_v45  ;;  %v1297_v43 = vadd.f32 %v1296_v31, %v12386_v42  ;;  %v1298_v49 = vpop.f32.mrb[22].mxu1  ;;  %v1793_v57 = vld [vmem:[#allocation8 + $0x900] sm:$0xff] }
 0x1c2   :  { %7799 = vmatprep.subr.bf16.mxu0 %v10569_v16  ;;  %8223 = vmatprep.subr.bf16.mxu1 %v10571_v25  ;;  %v1465_v34 = vmax.f32 %v1246_v58, 0.0  ;;  %v1295_v25 = vadd.f32 %v1294_v1, %v12381_v50  ;;  %v10585_v48 = vcombine.high %v1785_v59, %v1789_v38  ;;  %v10587_v51 = vcombine.high %v1786_v40, %v1790_v8  ;;  %v1300_v45 = vpop.f32.mrb[23].mxu1  ;;  %v1794_v58 = vld [vmem:[#allocation8 + $0x908] sm:$0xff] }
 0x1c3   :  { %7786 = vmatprep.mubr.bf16.mxu0 %v12294_v6  ;;  %8210 = vmatprep.mubr.bf16.mxu1 %v12294_v6  ;;  %v1466_v20 = vmax.f32 %v1248_v29, 0.0  ;;  %v1299_v36 = vadd.f32 %v1298_v49, %v12381_v50  ;;  %v1798_v61 = vld [vmem:[#allocation8 + $0x928] sm:$0xff]  ;;  %v1301_v47 = vadd.f32 %v1300_v45, %v12386_v42  ;;  %v10586_v7 = vcombine.low %v1786_v40, %v1790_v8 }
 0x1c4   :  { %v12430_v16 = vpack.c.bf16 %v1465_v34, %v1449_v27  ;;  %v1451_v54 = vmax.f32 %v1295_v25, 0.0  ;;  %v1797_v27 = vld [vmem:[#allocation8 + $0x920] sm:$0xff]  ;;  %v10595_v29 = vcombine.high %v1794_v58, %v1798_v61  ;;  %v1802_v1 = vld [vmem:[#allocation8 + $0x948] sm:$0xff] }
 0x1c5   :  { %7800 = vmatpush1.bf16.msra.mxu0 %v10568_v53  ;;  %8224 = vmatpush1.bf16.msra.mxu1 %v10570_v3  ;;  %v12433_v18 = vpack.c.bf16 %v1466_v20, %v1450_v10  ;;  %v1452_v53 = vmax.f32 %v1297_v43, 0.0  ;;  %v1467_v5 = vmax.f32 %v1299_v36, 0.0  ;;  %v10584_v3 = vcombine.low %v1785_v59, %v1789_v38  ;;  %v1805_v34 = vld [vmem:[#allocation8 + $0x960] sm:$0xff]  ;;  %v1806_v42 = vld [vmem:[#allocation8 + $0x968] sm:$0xff] }
 0x1c6   :  { %7801 = vmatprep.subr.bf16.mxu0 %v10577_v23  ;;  %8225 = vmatprep.subr.bf16.mxu1 %v10579_v24  ;;  %v1468_v10 = vmax.f32 %v1301_v47, 0.0  ;;  %v10593_v50 = vcombine.high %v1793_v57, %v1797_v27  ;;  %v1801_v23 = vld [vmem:[#allocation8 + $0x940] sm:$0xff]  ;;  %v10592_v59 = vcombine.low %v1793_v57, %v1797_v27  ;;  %v10594_v38 = vcombine.low %v1794_v58, %v1798_v61  ;;  %v1810_v31 = vld [vmem:[#allocation8 + $0x988] sm:$0xff] }
 0x1c7   :  { %v12440_v24 = vpack.c.bf16 %v1467_v5, %v1451_v54  ;;  %v10601_v40 = vcombine.high %v1801_v23, %v1805_v34  ;;  %v10603_v8 = vcombine.high %v1802_v1, %v1806_v42  ;;  %v1813_v25 = vld [vmem:[#allocation8 + $0x9a0] sm:$0xff]  ;;  %v10600_v43 = vcombine.low %v1801_v23, %v1805_v34  ;;  %v1818_v45 = vld [vmem:[#allocation8 + $0x9c8] sm:$0xff] }
 0x1c8   :  { %7787 = vmatmul.mubr.bf16.gmra.mrb[36].mxu0 %v12290_v22  ;;  %8211 = vmatmul.mubr.bf16.gmra.mrb[36].mxu1 %v12290_v22  ;;  %v12444_v20 = vpack.c.bf16 %v1468_v10, %v1452_v53  ;;  %v10602_v49 = vcombine.low %v1802_v1, %v1806_v42  ;;  %v1817_v54 = vld [vmem:[#allocation8 + $0x9c0] sm:$0xff]  ;;  %v12448_v57 = vrot.slane %v12364_v2, %v12297_v14  ;;  %v1822_v27 = vld [vmem:[#allocation8 + $0x9e8] sm:$0xff] }
 0x1c9   :  { %7802 = vmatpush1.bf16.msra.mxu0 %v10576_v9  ;;  %8226 = vmatpush1.bf16.msra.mxu1 %v10578_v13  ;;  %v1809_v9 = vld [vmem:[#allocation8 + $0x980] sm:$0xff]  ;;  %v1814_v13 = vld [vmem:[#allocation8 + $0x9a8] sm:$0xff]  ;;  %v12452_v58 = vrot.slane %v12364_v2, %v12300_v19 }
 0x1ca   :  { %7803 = vmatprep.subr.bf16.mxu0 %v10585_v48  ;;  %8227 = vmatprep.subr.bf16.mxu1 %v10587_v51  ;;  %v10609_v48 = vcombine.high %v1809_v9, %v1813_v25  ;;  %v10611_v51 = vcombine.high %v1810_v31, %v1814_v13  ;;  %v1821_v36 = vld [vmem:[#allocation8 + $0x9e0] sm:$0xff]  ;;  %v10608_v61 = vcombine.low %v1809_v9, %v1813_v25  ;;  %v1826_v23 = vld [vmem:[#allocation8 + $0xa08] sm:$0xff] }
 0x1cb   :  { %7829 = vmatprep.mubr.bf16.mxu0 %v12338_v17  ;;  %8253 = vmatprep.mubr.bf16.mxu1 %v12338_v17  ;;  %v10610_v53 = vcombine.low %v1810_v31, %v1814_v13  ;;  %v10617_v5 = vcombine.high %v1817_v54, %v1821_v36  ;;  %v1830_v34 = vld [vmem:[#allocation8 + $0xa28] sm:$0xff]  ;;  %v10618_v25 = vcombine.low %v1818_v45, %v1822_v27 }
 0x1cd   :  { %7804 = vmatpush1.bf16.msra.mxu0 %v10584_v3  ;;  %8228 = vmatpush1.bf16.msra.mxu1 %v10586_v7  ;;  %v10619_v3 = vcombine.high %v1818_v45, %v1822_v27  ;;  %v12454_v7 = vld [vmem:[#allocation8 + $0xa00] sm:$0xff] }
 0x1ce   :  { %7805 = vmatprep.subr.bf16.mxu0 %v10593_v50  ;;  %8229 = vmatprep.subr.bf16.mxu1 %v10595_v29  ;;  %v1829_v29 = vld [vmem:[#allocation8 + $0xa20] sm:$0xff] }
 0x1cf   :  { %v10624_v27 = vcombine.low %v12454_v7, %v1829_v29 }
 0x1d1   :  { %7806 = vmatpush1.bf16.msra.mxu0 %v10592_v59  ;;  %8230 = vmatpush1.bf16.msra.mxu1 %v10594_v38  ;;  %v10616_v59 = vcombine.low %v1817_v54, %v1821_v36  ;;  %v1837_v54 = vld [vmem:[#allocation8 + $0xa60] sm:$0xff] }
 0x1d2   :  { %7807 = vmatprep.subr.bf16.mxu0 %v10601_v40  ;;  %8231 = vmatprep.subr.bf16.mxu1 %v10603_v8  ;;  %v12461_v8 = vrot.slane %v12364_v2, %v12311_v39 }
 0x1d5   :  { %7808 = vmatpush1.bf16.msra.mxu0 %v10600_v43  ;;  %8232 = vmatpush1.bf16.msra.mxu1 %v10602_v49  ;;  %v1337_v47 = vpop.f32.mrb[24].mxu0  ;;  %v12466_v43 = vrot.slane %v12364_v2, %v12314_v41  ;;  %v10625_v49 = vcombine.high %v12454_v7, %v1829_v29  ;;  %v1841_v7 = vld [vmem:[#allocation8 + $0xa80] sm:$0xff] }
 0x1d6   :  { %7809 = vmatprep.subr.bf16.mxu0 %v10609_v48  ;;  %8233 = vmatprep.subr.bf16.mxu1 %v10611_v51  ;;  %v1338_v10 = vadd.f32 %v1337_v47, %v12448_v57  ;;  %v1339_v50 = vpop.f32.mrb[25].mxu0  ;;  %v10627_v48 = vcombine.high %v1826_v23, %v1830_v34  ;;  %v12469_v51 = vld [vmem:[#allocation8 + $0xa40] sm:$0xff]  ;;  %v1834_v47 = vld [vmem:[#allocation8 + $0xa48] sm:$0xff] }
 0x1d7   :  { %v1340_v1 = vadd.f32 %v1339_v50, %v12452_v58  ;;  %v1341_v42 = vpop.f32.mrb[26].mxu0 }
 0x1d8   :  { %v1421_v38 = vmax.f32 %v1338_v10, 0.0  ;;  %v1342_v40 = vadd.f32 %v1341_v42, %v12448_v57  ;;  %v1343_v9 = vpop.f32.mrb[27].mxu0  ;;  %v10626_v10 = vcombine.low %v1826_v23, %v1830_v34 }
 0x1d9   :  { %7810 = vmatpush1.bf16.msra.mxu0 %v10608_v61  ;;  %8234 = vmatpush1.bf16.msra.mxu1 %v10610_v53  ;;  %v1422_v31 = vmax.f32 %v1340_v1, 0.0  ;;  %v1344_v13 = vadd.f32 %v1343_v9, %v12452_v58  ;;  %v1838_v61 = vld [vmem:[#allocation8 + $0xa68] sm:$0xff]  ;;  %v1390_v53 = vpop.f32.mrb[24].mxu1 }
 0x1da   :  { %7811 = vmatprep.subr.bf16.mxu0 %v10617_v5  ;;  %8235 = vmatprep.subr.bf16.mxu1 %v10619_v3  ;;  %v1437_v36 = vmax.f32 %v1342_v40, 0.0  ;;  %v1391_v2 = vadd.f32 %v1390_v53, %v12461_v8  ;;  %v1392_v5 = vpop.f32.mrb[25].mxu1  ;;  %v10633_v3 = vcombine.high %v12469_v51, %v1837_v54  ;;  %v1846_v53 = vld [vmem:[#allocation8 + $0xaa8] sm:$0xff] }
 0x1db   :  { %v1438_v45 = vmax.f32 %v1344_v13, 0.0  ;;  %v1393_v42 = vadd.f32 %v1392_v5, %v12466_v43  ;;  %v1394_v40 = vpop.f32.mrb[26].mxu1  ;;  %v10635_v13 = vcombine.high %v1834_v47, %v1838_v61 }
 0x1dc   :  { %v12472_v50 = vpack.c.bf16 %v1437_v36, %v1421_v38  ;;  %v1423_v29 = vmax.f32 %v1391_v2, 0.0  ;;  %v1395_v23 = vadd.f32 %v1394_v40, %v12461_v8  ;;  %v1396_v34 = vpop.f32.mrb[27].mxu1  ;;  %v1842_v36 = vld [vmem:[#allocation8 + $0xa88] sm:$0xff] }
 0x1dd   :  { %7812 = vmatpush1.bf16.msra.mxu0 %v10616_v59  ;;  %8236 = vmatpush1.bf16.msra.mxu1 %v10618_v25  ;;  %v12476_v1 = vpack.c.bf16 %v1438_v45, %v1422_v31  ;;  %v1347_v9 = vpop.f32.mrb[28].mxu0  ;;  %v1845_v25 = vld [vmem:[#allocation8 + $0xaa0] sm:$0xff]  ;;  %v1424_v31 = vmax.f32 %v1393_v42, 0.0  ;;  %v1397_v45 = vadd.f32 %v1396_v34, %v12466_v43  ;;  %v10643_v34 = vcombine.high %v1842_v36, %v1846_v53 }
 0x1de   :  { %7813 = vmatprep.subr.bf16.mxu0 %v10625_v49  ;;  %8237 = vmatprep.subr.bf16.mxu1 %v10627_v48  ;;  %v1348_v38 = vadd.f32 %v1347_v9, %v12448_v57  ;;  %v1349_v59 = vpop.f32.mrb[29].mxu0  ;;  %v10632_v49 = vcombine.low %v12469_v51, %v1837_v54  ;;  %v1439_v48 = vmax.f32 %v1395_v23, 0.0  ;;  %v10634_v9 = vcombine.low %v1834_v47, %v1838_v61  ;;  %v1853_v54 = vld [vmem:[#allocation8 + $0xae0] sm:$0xff]  ;;  %v1850_v23 = vld [vmem:[#allocation8 + $0xac8] sm:$0xff] }
 0x1df   :  { %v1350_v5 = vadd.f32 %v1349_v59, %v12452_v58  ;;  %v1351_v41 = vpop.f32.mrb[30].mxu0  ;;  %v1440_v39 = vmax.f32 %v1397_v45, 0.0  ;;  %v10641_v42 = vcombine.high %v1841_v7, %v1845_v25  ;;  %v1849_v59 = vld [vmem:[#allocation8 + $0xac0] sm:$0xff]  ;;  %v10640_v47 = vcombine.low %v1841_v7, %v1845_v25 }
 0x1e0   :  { %v1453_v19 = vmax.f32 %v1348_v38, 0.0  ;;  %v1352_v2 = vadd.f32 %v1351_v41, %v12448_v57  ;;  %v1353_v40 = vpop.f32.mrb[31].mxu0  ;;  %v12486_v30 = vpack.c.bf16 %v1439_v48, %v1423_v29  ;;  %v1854_v38 = vld [vmem:[#allocation8 + $0xae8] sm:$0xff]  ;;  %v1400_v57 = vpop.f32.mrb[28].mxu1  ;;  %v1861_v25 = vld [vmem:[#allocation8 + $0xb20] sm:$0xff] }
 0x1e1   :  { %7814 = vmatpush1.bf16.msra.mxu0 %v10624_v27  ;;  %8238 = vmatpush1.bf16.msra.mxu1 %v10626_v10  ;;  %v1454_v14 = vmax.f32 %v1350_v5, 0.0  ;;  %v1354_v35 = vadd.f32 %v1353_v40, %v12452_v58  ;;  %v12488_v41 = vpack.c.bf16 %v1440_v39, %v1424_v31  ;;  %v1401_v58 = vadd.f32 %v1400_v57, %v12461_v8  ;;  %v1402_v10 = vpop.f32.mrb[29].mxu1  ;;  %v1857_v5 = vld [vmem:[#allocation8 + $0xb00] sm:$0xff]  ;;  %v1858_v48 = vld [vmem:[#allocation8 + $0xb08] sm:$0xff] }
 0x1e2   :  { %7815 = vmatprep.subr.bf16.mxu0 %v10633_v3  ;;  %8239 = vmatprep.subr.bf16.mxu1 %v10635_v13  ;;  %v1469_v51 = vmax.f32 %v1352_v2, 0.0  ;;  %v10642_v3 = vcombine.low %v1842_v36, %v1846_v53  ;;  %v1403_v29 = vadd.f32 %v1402_v10, %v12466_v43  ;;  %v1404_v45 = vpop.f32.mrb[30].mxu1  ;;  %v10649_v39 = vcombine.high %v1849_v59, %v1853_v54  ;;  %v1862_v2 = vld [vmem:[#allocation8 + $0xb28] sm:$0xff] }
 0x1e3   :  { %v1470_v27 = vmax.f32 %v1354_v35, 0.0  ;;  %v10651_v31 = vcombine.high %v1850_v23, %v1854_v38  ;;  %v1455_v35 = vmax.f32 %v1401_v58, 0.0  ;;  %v1406_v7 = vpop.f32.mrb[31].mxu1  ;;  %v10648_v53 = vcombine.low %v1849_v59, %v1853_v54  ;;  %v1870_v58 = vld [vmem:[#allocation8 + $0xb68] sm:$0xff] }
 0x1e4   :  { %v12490_v61 = vpack.c.bf16 %v1469_v51, %v1453_v19  ;;  %v1405_v19 = vadd.f32 %v1404_v45, %v12461_v8  ;;  %v1407_v36 = vadd.f32 %v1406_v7, %v12466_v43  ;;  %v10650_v40 = vcombine.low %v1850_v23, %v1854_v38  ;;  %v1865_v51 = vld [vmem:[#allocation8 + $0xb40] sm:$0xff] }
 0x1e5   :  { %7816 = vmatpush1.bf16.msra.mxu0 %v10632_v49  ;;  %8240 = vmatpush1.bf16.msra.mxu1 %v10634_v9  ;;  %v12493_v13 = vpack.c.bf16 %v1470_v27, %v1454_v14  ;;  %v1456_v49 = vmax.f32 %v1403_v29, 0.0  ;;  %v1869_v8 = vld [vmem:[#allocation8 + $0xb60] sm:$0xff]  ;;  %v1866_v27 = vld [vmem:[#allocation8 + $0xb48] sm:$0xff]  ;;  %v10656_v43 = vcombine.low %v1857_v5, %v1861_v25 }
 0x1e6   :  { %7817 = vmatprep.subr.bf16.mxu0 %v10641_v42  ;;  %8241 = vmatprep.subr.bf16.mxu1 %v10643_v34  ;;  %v1471_v14 = vmax.f32 %v1405_v19, 0.0  ;;  %v1472_v9 = vmax.f32 %v1407_v36, 0.0  ;;  %v10657_v42 = vcombine.high %v1857_v5, %v1861_v25  ;;  %v10659_v34 = vcombine.high %v1858_v48, %v1862_v2  ;;  %v1873_v23 = vld [vmem:[#allocation8 + $0xb80] sm:$0xff]  ;;  %v1878_v29 = vld [vmem:[#allocation8 + $0xba8] sm:$0xff] }
 0x1e7   :  { %v10665_v59 = vcombine.high %v1865_v51, %v1869_v8  ;;  %v10667_v54 = vcombine.high %v1866_v27, %v1870_v58  ;;  %v1877_v38 = vld [vmem:[#allocation8 + $0xba0] sm:$0xff]  ;;  %v10664_v45 = vcombine.low %v1865_v51, %v1869_v8  ;;  %v1882_v5 = vld [vmem:[#allocation8 + $0xbc8] sm:$0xff] }
 0x1e8   :  { %v12498_v57 = vpack.c.bf16 %v1471_v14, %v1455_v35  ;;  %v12500_v10 = vpack.c.bf16 %v1472_v9, %v1456_v49  ;;  %v1881_v19 = vld [vmem:[#allocation8 + $0xbc0] sm:$0xff]  ;;  %v1886_v25 = vld [vmem:[#allocation8 + $0xbe8] sm:$0xff] }
 0x1e9   :  { %7818 = vmatpush1.bf16.msra.mxu0 %v10640_v47  ;;  %8242 = vmatpush1.bf16.msra.mxu1 %v10642_v3  ;;  %v10658_v47 = vcombine.low %v1858_v48, %v1862_v2  ;;  %v1874_v3 = vld [vmem:[#allocation8 + $0xb88] sm:$0xff]  ;;  %v1885_v7 = vld [vmem:[#allocation8 + $0xbe0] sm:$0xff]  ;;  %v10672_v48 = vcombine.low %v1873_v23, %v1877_v38  ;;  %v10683_v36 = vcombine.high %v1882_v5, %v1886_v25 }
 0x1ea   :  { %7819 = vmatprep.subr.bf16.mxu0 %v10649_v39  ;;  %8243 = vmatprep.subr.bf16.mxu1 %v10651_v31  ;;  %v10666_v39 = vcombine.low %v1866_v27, %v1870_v58  ;;  %v10673_v31 = vcombine.high %v1873_v23, %v1877_v38  ;;  %v10675_v35 = vcombine.high %v1874_v3, %v1878_v29  ;;  %v1889_v14 = vld [vmem:[#allocation8 + $0xc00] sm:$0xff]  ;;  %v1894_v9 = vld [vmem:[#allocation8 + $0xc28] sm:$0xff] }
 0x1eb   :  { %v10674_v2 = vcombine.low %v1874_v3, %v1878_v29  ;;  %v10681_v49 = vcombine.high %v1881_v19, %v1885_v7  ;;  %v1897_v27 = vld [vmem:[#allocation8 + $0xc40] sm:$0xff] }
 0x1ec   :  { %v1901_v58 = vld [vmem:[#allocation8 + $0xc60] sm:$0xff] }
 0x1ed   :  { %7820 = vmatpush1.bf16.msra.mxu0 %v10648_v53  ;;  %8244 = vmatpush1.bf16.msra.mxu1 %v10650_v40  ;;  %v1893_v53 = vld [vmem:[#allocation8 + $0xc20] sm:$0xff]  ;;  %v1890_v40 = vld [vmem:[#allocation8 + $0xc08] sm:$0xff]  ;;  %v10697_v23 = vcombine.high %v1897_v27, %v1901_v58 }
 0x1ee   :  { %7821 = vmatprep.subr.bf16.mxu0 %v10657_v42  ;;  %8245 = vmatprep.subr.bf16.mxu1 %v10659_v34  ;;  %v10680_v42 = vcombine.low %v1881_v19, %v1885_v7  ;;  %v10682_v34 = vcombine.low %v1882_v5, %v1886_v25  ;;  %v10689_v51 = vcombine.high %v1889_v14, %v1893_v53  ;;  %v1905_v3 = vld [vmem:[#allocation8 + $0xc80] sm:$0xff] }
 0x1ef   :  { %v10691_v8 = vcombine.high %v1890_v40, %v1894_v9  ;;  %v1909_v29 = vld [vmem:[#allocation8 + $0xca0] sm:$0xff] }
 0x1f0   :  { %v10705_v19 = vcombine.high %v1905_v3, %v1909_v29  ;;  %v1913_v5 = vld [vmem:[#allocation8 + $0xcc0] sm:$0xff] }
 0x1f1   :  { %7822 = vmatpush1.bf16.msra.mxu0 %v10656_v43  ;;  %8246 = vmatpush1.bf16.msra.mxu1 %v10658_v47  ;;  %v1898_v43 = vld [vmem:[#allocation8 + $0xc48] sm:$0xff]  ;;  %v1917_v25 = vld [vmem:[#allocation8 + $0xce0] sm:$0xff] }
 0x1f2   :  { %7823 = vmatprep.subr.bf16.mxu0 %v10665_v59  ;;  %8247 = vmatprep.subr.bf16.mxu1 %v10667_v54  ;;  %v1902_v47 = vld [vmem:[#allocation8 + $0xc68] sm:$0xff]  ;;  %v10688_v59 = vcombine.low %v1889_v14, %v1893_v53  ;;  %v10690_v54 = vcombine.low %v1890_v40, %v1894_v9  ;;  %v10713_v14 = vcombine.high %v1913_v5, %v1917_v25  ;;  %v1921_v40 = vld [vmem:[#allocation8 + $0xd00] sm:$0xff] }
 0x1f3   :  { %v10699_v38 = vcombine.high %v1898_v43, %v1902_v47  ;;  %v1925_v9 = vld [vmem:[#allocation8 + $0xd20] sm:$0xff] }
 0x1f5   :  { %7824 = vmatpush1.bf16.msra.mxu0 %v10664_v45  ;;  %8248 = vmatpush1.bf16.msra.mxu1 %v10666_v39  ;;  %v1906_v45 = vld [vmem:[#allocation8 + $0xc88] sm:$0xff] }
 0x1f6   :  { %7825 = vmatprep.subr.bf16.mxu0 %v10673_v31  ;;  %8249 = vmatprep.subr.bf16.mxu1 %v10675_v35  ;;  %v1910_v39 = vld [vmem:[#allocation8 + $0xca8] sm:$0xff]  ;;  %v10696_v31 = vcombine.low %v1897_v27, %v1901_v58  ;;  %v10698_v35 = vcombine.low %v1898_v43, %v1902_v47  ;;  %v10721_v27 = vcombine.high %v1921_v40, %v1925_v9  ;;  %v1929_v43 = vld [vmem:[#allocation8 + $0xd40] sm:$0xff] }
 0x1f7   :  { %v10707_v7 = vcombine.high %v1906_v45, %v1910_v39  ;;  %v1933_v47 = vld [vmem:[#allocation8 + $0xd60] sm:$0xff] }
 0x1f9   :  { %7826 = vmatpush1.bf16.msra.mxu0 %v10672_v48  ;;  %8250 = vmatpush1.bf16.msra.mxu1 %v10674_v2  ;;  %v1914_v48 = vld [vmem:[#allocation8 + $0xcc8] sm:$0xff] }
 0x1fa   :  { %7827 = vmatprep.subr.bf16.mxu0 %v10681_v49  ;;  %8251 = vmatprep.subr.bf16.mxu1 %v10683_v36  ;;  %v1918_v2 = vld [vmem:[#allocation8 + $0xce8] sm:$0xff]  ;;  %v10704_v49 = vcombine.low %v1905_v3, %v1909_v29  ;;  %v10706_v36 = vcombine.low %v1906_v45, %v1910_v39  ;;  %v10729_v3 = vcombine.high %v1929_v43, %v1933_v47  ;;  %v1937_v45 = vld [vmem:[#allocation8 + $0xd80] sm:$0xff] }
 0x1fb   :  { %v10715_v53 = vcombine.high %v1914_v48, %v1918_v2  ;;  %v1941_v39 = vld [vmem:[#allocation8 + $0xda0] sm:$0xff] }
 0x1fd   :  { %7828 = vmatpush1.bf16.msra.mxu0 %v10680_v42  ;;  %8252 = vmatpush1.bf16.msra.mxu1 %v10682_v34  ;;  %v1922_v42 = vld [vmem:[#allocation8 + $0xd08] sm:$0xff] }
 0x1fe   :  { %7850 = vmatprep.subr.bf16.mxu0 %v10689_v51  ;;  %8274 = vmatprep.subr.bf16.mxu1 %v10691_v8  ;;  %v1926_v34 = vld [vmem:[#allocation8 + $0xd28] sm:$0xff]  ;;  %v10712_v51 = vcombine.low %v1913_v5, %v1917_v25  ;;  %v10714_v8 = vcombine.low %v1914_v48, %v1918_v2  ;;  %v10737_v5 = vcombine.high %v1937_v45, %v1941_v39  ;;  %v1945_v48 = vld [vmem:[#allocation8 + $0xdc0] sm:$0xff] }
 0x1ff   :  { %v10723_v58 = vcombine.high %v1922_v42, %v1926_v34  ;;  %v1949_v2 = vld [vmem:[#allocation8 + $0xde0] sm:$0xff] }
 0x200   :  { %7830 = vmatmul.mubr.bf16.vlgmr.msra.gmra.mrb[32].mxu0 %v12334_v11  ;;  %8254 = vmatmul.mubr.bf16.vlgmr.msra.gmra.mrb[32].mxu1 %v12334_v11 }
 0x201   :  { %7839 = vmatprep.mubr.bf16.mxu0 %v12355_v15  ;;  %7851 = vmatpush1.bf16.msra.mxu0 %v10688_v59  ;;  %v1930_v59 = vld [vmem:[#allocation8 + $0xd48] sm:$0xff] }
 0x202   :  { %8263 = vmatprep.mubr.bf16.mxu1 %v12355_v15  ;;  %8275 = vmatpush1.bf16.msra.mxu1 %v10690_v54  ;;  %v1934_v54 = vld [vmem:[#allocation8 + $0xd68] sm:$0xff] }
 0x203   :  { %7852 = vmatprep.subr.bf16.mxu0 %v10697_v23  ;;  %8276 = vmatprep.subr.bf16.mxu1 %v10699_v38  ;;  %v10720_v23 = vcombine.low %v1921_v40, %v1925_v9  ;;  %v10722_v38 = vcombine.low %v1922_v42, %v1926_v34  ;;  %v10731_v29 = vcombine.high %v1930_v59, %v1934_v54  ;;  %v1953_v42 = vld [vmem:[#allocation8 + $0xe00] sm:$0xff] }
 0x204   :  { %v10745_v40 = vcombine.high %v1945_v48, %v1949_v2  ;;  %v1957_v34 = vld [vmem:[#allocation8 + $0xe20] sm:$0xff] }
 0x205   :  { %7853 = vmatpush1.bf16.msra.mxu0 %v10696_v31  ;;  %v1938_v31 = vld [vmem:[#allocation8 + $0xd88] sm:$0xff] }
 0x206   :  { %8277 = vmatpush1.bf16.msra.mxu1 %v10698_v35  ;;  %7854 = vmatprep.subr.bf16.mxu0 %v10705_v19  ;;  %v1942_v35 = vld [vmem:[#allocation8 + $0xda8] sm:$0xff]  ;;  %v10728_v19 = vcombine.low %v1929_v43, %v1933_v47  ;;  %v10753_v43 = vcombine.high %v1953_v42, %v1957_v34 }
 0x207   :  { %8278 = vmatprep.subr.bf16.mxu1 %v10707_v7  ;;  %v10730_v7 = vcombine.low %v1930_v59, %v1934_v54  ;;  %v10739_v25 = vcombine.high %v1938_v31, %v1942_v35  ;;  %v1961_v59 = vld [vmem:[#allocation8 + $0xe40] sm:$0xff] }
 0x208   :  { %7840 = vmatmul.mubr.bf16.gmra.mrb[36].mxu0 %v12352_v44  ;;  %8264 = vmatmul.mubr.bf16.gmra.mrb[36].mxu1 %v12352_v44  ;;  %v1965_v54 = vld [vmem:[#allocation8 + $0xe60] sm:$0xff] }
 0x209   :  { %7855 = vmatpush1.bf16.msra.mxu0 %v10704_v49  ;;  %7882 = vmatprep.mubr.bf16.mxu0 %v12350_v26  ;;  %v1946_v49 = vld [vmem:[#allocation8 + $0xdc8] sm:$0xff] }
 0x20a   :  { %8279 = vmatpush1.bf16.msra.mxu1 %v10706_v36  ;;  %8306 = vmatprep.mubr.bf16.mxu1 %v12350_v26  ;;  %v1950_v36 = vld [vmem:[#allocation8 + $0xde8] sm:$0xff] }
 0x20b   :  { %7856 = vmatprep.subr.bf16.mxu0 %v10713_v14  ;;  %8280 = vmatprep.subr.bf16.mxu1 %v10715_v53  ;;  %v10736_v14 = vcombine.low %v1937_v45, %v1941_v39  ;;  %v10738_v53 = vcombine.low %v1938_v31, %v1942_v35  ;;  %v10747_v9 = vcombine.high %v1946_v49, %v1950_v36  ;;  %v1969_v31 = vld [vmem:[#allocation8 + $0xe80] sm:$0xff] }
 0x20c   :  { %v10761_v45 = vcombine.high %v1961_v59, %v1965_v54  ;;  %v1973_v35 = vld [vmem:[#allocation8 + $0xea0] sm:$0xff] }
 0x20d   :  { %7857 = vmatpush1.bf16.msra.mxu0 %v10712_v51  ;;  %v1954_v51 = vld [vmem:[#allocation8 + $0xe08] sm:$0xff] }
 0x20e   :  { %8281 = vmatpush1.bf16.msra.mxu1 %v10714_v8  ;;  %7858 = vmatprep.subr.bf16.mxu0 %v10721_v27  ;;  %v1958_v8 = vld [vmem:[#allocation8 + $0xe28] sm:$0xff]  ;;  %v10744_v27 = vcombine.low %v1945_v48, %v1949_v2  ;;  %v10769_v48 = vcombine.high %v1969_v31, %v1973_v35 }
 0x20f   :  { %8282 = vmatprep.subr.bf16.mxu1 %v10723_v58  ;;  %v10746_v58 = vcombine.low %v1946_v49, %v1950_v36  ;;  %v10755_v47 = vcombine.high %v1954_v51, %v1958_v8  ;;  %v1977_v49 = vld [vmem:[#allocation8 + $0xec0] sm:$0xff] }
 0x210   :  { %v1981_v36 = vld [vmem:[#allocation8 + $0xee0] sm:$0xff] }
 0x211   :  { %7859 = vmatpush1.bf16.msra.mxu0 %v10720_v23  ;;  %v1962_v23 = vld [vmem:[#allocation8 + $0xe48] sm:$0xff] }
 0x212   :  { %8283 = vmatpush1.bf16.msra.mxu1 %v10722_v38  ;;  %7860 = vmatprep.subr.bf16.mxu0 %v10729_v3  ;;  %v1966_v38 = vld [vmem:[#allocation8 + $0xe68] sm:$0xff]  ;;  %v10752_v3 = vcombine.low %v1953_v42, %v1957_v34  ;;  %v10777_v42 = vcombine.high %v1977_v49, %v1981_v36 }
 0x213   :  { %8284 = vmatprep.subr.bf16.mxu1 %v10731_v29  ;;  %v10754_v29 = vcombine.low %v1954_v51, %v1958_v8  ;;  %v10763_v39 = vcombine.high %v1962_v23, %v1966_v38  ;;  %v1985_v51 = vld [vmem:[#allocation8 + $0xf00] sm:$0xff] }
 0x214   :  { %v1989_v8 = vld [vmem:[#allocation8 + $0xf20] sm:$0xff] }
 0x215   :  { %7861 = vmatpush1.bf16.msra.mxu0 %v10728_v19  ;;  %v1970_v19 = vld [vmem:[#allocation8 + $0xe88] sm:$0xff] }
 0x216   :  { %8285 = vmatpush1.bf16.msra.mxu1 %v10730_v7  ;;  %7862 = vmatprep.subr.bf16.mxu0 %v10737_v5  ;;  %v1974_v7 = vld [vmem:[#allocation8 + $0xea8] sm:$0xff]  ;;  %v10760_v5 = vcombine.low %v1961_v59, %v1965_v54  ;;  %v10785_v59 = vcombine.high %v1985_v51, %v1989_v8 }
 0x217   :  { %8286 = vmatprep.subr.bf16.mxu1 %v10739_v25  ;;  %v10762_v25 = vcombine.low %v1962_v23, %v1966_v38  ;;  %v10771_v2 = vcombine.high %v1970_v19, %v1974_v7  ;;  %v1993_v23 = vld [vmem:[#allocation8 + $0xf40] sm:$0xff] }
 0x218   :  { %v1997_v38 = vld [vmem:[#allocation8 + $0xf60] sm:$0xff] }
 0x219   :  { %7863 = vmatpush1.bf16.msra.mxu0 %v10736_v14  ;;  %v1978_v14 = vld [vmem:[#allocation8 + $0xec8] sm:$0xff] }
 0x21a   :  { %8287 = vmatpush1.bf16.msra.mxu1 %v10738_v53  ;;  %7864 = vmatprep.subr.bf16.mxu0 %v10745_v40  ;;  %v1982_v53 = vld [vmem:[#allocation8 + $0xee8] sm:$0xff]  ;;  %v10768_v40 = vcombine.low %v1969_v31, %v1973_v35  ;;  %v10793_v31 = vcombine.high %v1993_v23, %v1997_v38 }
 0x21b   :  { %8288 = vmatprep.subr.bf16.mxu1 %v10747_v9  ;;  %v10770_v9 = vcombine.low %v1970_v19, %v1974_v7  ;;  %v10779_v34 = vcombine.high %v1978_v14, %v1982_v53  ;;  %v2001_v19 = vld [vmem:[#allocation8 + $0xf80] sm:$0xff] }
 0x21c   :  { %v2005_v7 = vld [vmem:[#allocation8 + $0xfa0] sm:$0xff] }
 0x21d   :  { %7865 = vmatpush1.bf16.msra.mxu0 %v10744_v27  ;;  %v1986_v27 = vld [vmem:[#allocation8 + $0xf08] sm:$0xff] }
 0x21e   :  { %8289 = vmatpush1.bf16.msra.mxu1 %v10746_v58  ;;  %7866 = vmatprep.subr.bf16.mxu0 %v10753_v43  ;;  %v1990_v58 = vld [vmem:[#allocation8 + $0xf28] sm:$0xff]  ;;  %v10776_v43 = vcombine.low %v1977_v49, %v1981_v36  ;;  %v10801_v49 = vcombine.high %v2001_v19, %v2005_v7 }
 0x21f   :  { %8290 = vmatprep.subr.bf16.mxu1 %v10755_v47  ;;  %v10778_v47 = vcombine.low %v1978_v14, %v1982_v53  ;;  %v10787_v54 = vcombine.high %v1986_v27, %v1990_v58  ;;  %v2009_v14 = vld [vmem:[#allocation8 + $0xfc0] sm:$0xff] }
 0x220   :  { %v2013_v53 = vld [vmem:[#allocation8 + $0xfe0] sm:$0xff] }
 0x221   :  { %7867 = vmatpush1.bf16.msra.mxu0 %v10752_v3  ;;  %v1994_v3 = vld [vmem:[#allocation8 + $0xf48] sm:$0xff] }
 0x222   :  { %8291 = vmatpush1.bf16.msra.mxu1 %v10754_v29  ;;  %7868 = vmatprep.subr.bf16.mxu0 %v10761_v45  ;;  %v1998_v29 = vld [vmem:[#allocation8 + $0xf68] sm:$0xff]  ;;  %v10784_v45 = vcombine.low %v1985_v51, %v1989_v8  ;;  %v10809_v51 = vcombine.high %v2009_v14, %v2013_v53 }
 0x223   :  { %8292 = vmatprep.subr.bf16.mxu1 %v10763_v39  ;;  %v10786_v39 = vcombine.low %v1986_v27, %v1990_v58  ;;  %v10795_v35 = vcombine.high %v1994_v3, %v1998_v29  ;;  %v2017_v27 = vld [vmem:[#allocation8 + $0x1000] sm:$0xff] }
 0x224   :  { %v2021_v58 = vld [vmem:[#allocation8 + $0x1020] sm:$0xff] }
 0x225   :  { %7869 = vmatpush1.bf16.msra.mxu0 %v10760_v5  ;;  %v2002_v5 = vld [vmem:[#allocation8 + $0xf88] sm:$0xff] }
 0x226   :  { %8293 = vmatpush1.bf16.msra.mxu1 %v10762_v25  ;;  %7870 = vmatprep.subr.bf16.mxu0 %v10769_v48  ;;  %v2006_v25 = vld [vmem:[#allocation8 + $0xfa8] sm:$0xff]  ;;  %v10792_v48 = vcombine.low %v1993_v23, %v1997_v38  ;;  %v10817_v23 = vcombine.high %v2017_v27, %v2021_v58 }
 0x227   :  { %8294 = vmatprep.subr.bf16.mxu1 %v10771_v2  ;;  %v10794_v2 = vcombine.low %v1994_v3, %v1998_v29  ;;  %v10803_v36 = vcombine.high %v2002_v5, %v2006_v25  ;;  %v2025_v3 = vld [vmem:[#allocation8 + $0x1040] sm:$0xff] }
 0x228   :  { %v2029_v29 = vld [vmem:[#allocation8 + $0x1060] sm:$0xff] }
 0x229   :  { %7871 = vmatpush1.bf16.msra.mxu0 %v10768_v40  ;;  %v2010_v40 = vld [vmem:[#allocation8 + $0xfc8] sm:$0xff] }
 0x22a   :  { %8295 = vmatpush1.bf16.msra.mxu1 %v10770_v9  ;;  %7872 = vmatprep.subr.bf16.mxu0 %v10777_v42  ;;  %v2014_v9 = vld [vmem:[#allocation8 + $0xfe8] sm:$0xff]  ;;  %v10800_v42 = vcombine.low %v2001_v19, %v2005_v7  ;;  %v10825_v19 = vcombine.high %v2025_v3, %v2029_v29 }
 0x22b   :  { %8296 = vmatprep.subr.bf16.mxu1 %v10779_v34  ;;  %v10802_v34 = vcombine.low %v2002_v5, %v2006_v25  ;;  %v10811_v8 = vcombine.high %v2010_v40, %v2014_v9  ;;  %v2033_v5 = vld [vmem:[#allocation8 + $0x1080] sm:$0xff] }
 0x22c   :  { %v2037_v25 = vld [vmem:[#allocation8 + $0x10a0] sm:$0xff] }
 0x22d   :  { %7873 = vmatpush1.bf16.msra.mxu0 %v10776_v43  ;;  %v2018_v43 = vld [vmem:[#allocation8 + $0x1008] sm:$0xff] }
 0x22e   :  { %8297 = vmatpush1.bf16.msra.mxu1 %v10778_v47  ;;  %7874 = vmatprep.subr.bf16.mxu0 %v10785_v59  ;;  %v2022_v47 = vld [vmem:[#allocation8 + $0x1028] sm:$0xff]  ;;  %v10808_v59 = vcombine.low %v2009_v14, %v2013_v53  ;;  %v10833_v14 = vcombine.high %v2033_v5, %v2037_v25 }
 0x22f   :  { %8298 = vmatprep.subr.bf16.mxu1 %v10787_v54  ;;  %v10810_v54 = vcombine.low %v2010_v40, %v2014_v9  ;;  %v10819_v38 = vcombine.high %v2018_v43, %v2022_v47  ;;  %v2041_v40 = vld [vmem:[#allocation8 + $0x10c0] sm:$0xff] }
 0x230   :  { %v2045_v9 = vld [vmem:[#allocation8 + $0x10e0] sm:$0xff] }
 0x231   :  { %7875 = vmatpush1.bf16.msra.mxu0 %v10784_v45  ;;  %v2026_v45 = vld [vmem:[#allocation8 + $0x1048] sm:$0xff] }
 0x232   :  { %8299 = vmatpush1.bf16.msra.mxu1 %v10786_v39  ;;  %7876 = vmatprep.subr.bf16.mxu0 %v10793_v31  ;;  %v2030_v39 = vld [vmem:[#allocation8 + $0x1068] sm:$0xff]  ;;  %v10816_v31 = vcombine.low %v2017_v27, %v2021_v58  ;;  %v10841_v27 = vcombine.high %v2041_v40, %v2045_v9 }
 0x233   :  { %8300 = vmatprep.subr.bf16.mxu1 %v10795_v35  ;;  %v10818_v35 = vcombine.low %v2018_v43, %v2022_v47  ;;  %v10827_v7 = vcombine.high %v2026_v45, %v2030_v39  ;;  %v2049_v43 = vld [vmem:[#allocation8 + $0x1100] sm:$0xff] }
 0x234   :  { %v2053_v47 = vld [vmem:[#allocation8 + $0x1120] sm:$0xff] }
 0x235   :  { %7877 = vmatpush1.bf16.msra.mxu0 %v10792_v48  ;;  %v2034_v48 = vld [vmem:[#allocation8 + $0x1088] sm:$0xff] }
 0x236   :  { %8301 = vmatpush1.bf16.msra.mxu1 %v10794_v2  ;;  %7878 = vmatprep.subr.bf16.mxu0 %v10801_v49  ;;  %v2038_v2 = vld [vmem:[#allocation8 + $0x10a8] sm:$0xff]  ;;  %v10824_v49 = vcombine.low %v2025_v3, %v2029_v29  ;;  %v10849_v3 = vcombine.high %v2049_v43, %v2053_v47 }
 0x237   :  { %8302 = vmatprep.subr.bf16.mxu1 %v10803_v36  ;;  %v10826_v36 = vcombine.low %v2026_v45, %v2030_v39  ;;  %v10835_v53 = vcombine.high %v2034_v48, %v2038_v2  ;;  %v2057_v45 = vld [vmem:[#allocation8 + $0x1140] sm:$0xff] }
 0x238   :  { %v2061_v39 = vld [vmem:[#allocation8 + $0x1160] sm:$0xff] }
 0x239   :  { %7879 = vmatpush1.bf16.msra.mxu0 %v10800_v42  ;;  %v2042_v42 = vld [vmem:[#allocation8 + $0x10c8] sm:$0xff] }
 0x23a   :  { %8303 = vmatpush1.bf16.msra.mxu1 %v10802_v34  ;;  %7880 = vmatprep.subr.bf16.mxu0 %v10809_v51  ;;  %v2046_v34 = vld [vmem:[#allocation8 + $0x10e8] sm:$0xff]  ;;  %v10832_v51 = vcombine.low %v2033_v5, %v2037_v25  ;;  %v10857_v5 = vcombine.high %v2057_v45, %v2061_v39 }
 0x23b   :  { %8304 = vmatprep.subr.bf16.mxu1 %v10811_v8  ;;  %v10834_v8 = vcombine.low %v2034_v48, %v2038_v2  ;;  %v10843_v58 = vcombine.high %v2042_v42, %v2046_v34  ;;  %v2065_v48 = vld [vmem:[#allocation8 + $0x1180] sm:$0xff] }
 0x23c   :  { %v2069_v2 = vld [vmem:[#allocation8 + $0x11a0] sm:$0xff] }
 0x23d   :  { %7881 = vmatpush1.bf16.msra.mxu0 %v10808_v59  ;;  %v2050_v59 = vld [vmem:[#allocation8 + $0x1108] sm:$0xff] }
 0x23e   :  { %8305 = vmatpush1.bf16.msra.mxu1 %v10810_v54  ;;  %7903 = vmatprep.subr.bf16.mxu0 %v10817_v23  ;;  %v2054_v54 = vld [vmem:[#allocation8 + $0x1128] sm:$0xff]  ;;  %v10840_v23 = vcombine.low %v2041_v40, %v2045_v9  ;;  %v10865_v40 = vcombine.high %v2065_v48, %v2069_v2 }
 0x23f   :  { %8327 = vmatprep.subr.bf16.mxu1 %v10819_v38  ;;  %v10842_v38 = vcombine.low %v2042_v42, %v2046_v34  ;;  %v10851_v29 = vcombine.high %v2050_v59, %v2054_v54  ;;  %v2073_v42 = vld [vmem:[#allocation8 + $0x11c0] sm:$0xff] }
 0x240   :  { %7883 = vmatmul.mubr.bf16.vlgmr.msra.gmra.mrb[32].mxu0 %v12348_v63  ;;  %v2077_v34 = vld [vmem:[#allocation8 + $0x11e0] sm:$0xff] }
 0x241   :  { %8307 = vmatmul.mubr.bf16.vlgmr.msra.gmra.mrb[32].mxu1 %v12348_v63  ;;  %7892 = vmatprep.mubr.bf16.mxu0 %v12362_v56 }
 0x242   :  { %7904 = vmatpush1.bf16.msra.mxu0 %v10816_v31  ;;  %8316 = vmatprep.mubr.bf16.mxu1 %v12362_v56  ;;  %v2058_v31 = vld [vmem:[#allocation8 + $0x1148] sm:$0xff] }
 0x243   :  { %8328 = vmatpush1.bf16.msra.mxu1 %v10818_v35  ;;  %7905 = vmatprep.subr.bf16.mxu0 %v10825_v19  ;;  %v2062_v35 = vld [vmem:[#allocation8 + $0x1168] sm:$0xff]  ;;  %v10848_v19 = vcombine.low %v2049_v43, %v2053_v47  ;;  %v10873_v43 = vcombine.high %v2073_v42, %v2077_v34 }
 0x244   :  { %8329 = vmatprep.subr.bf16.mxu1 %v10827_v7  ;;  %v10850_v7 = vcombine.low %v2050_v59, %v2054_v54  ;;  %v10859_v25 = vcombine.high %v2058_v31, %v2062_v35  ;;  %v2081_v59 = vld [vmem:[#allocation8 + $0x1200] sm:$0xff] }
 0x245   :  { %v2085_v54 = vld [vmem:[#allocation8 + $0x1220] sm:$0xff] }
 0x246   :  { %7906 = vmatpush1.bf16.msra.mxu0 %v10824_v49  ;;  %v2066_v49 = vld [vmem:[#allocation8 + $0x1188] sm:$0xff] }
 0x247   :  { %8330 = vmatpush1.bf16.msra.mxu1 %v10826_v36  ;;  %7907 = vmatprep.subr.bf16.mxu0 %v10833_v14  ;;  %v2070_v36 = vld [vmem:[#allocation8 + $0x11a8] sm:$0xff]  ;;  %v10856_v14 = vcombine.low %v2057_v45, %v2061_v39  ;;  %v10881_v45 = vcombine.high %v2081_v59, %v2085_v54 }
 0x248   :  { %7893 = vmatmul.mubr.bf16.gmra.mrb[36].mxu0 %v12360_v52  ;;  %8331 = vmatprep.subr.bf16.mxu1 %v10835_v53  ;;  %v10858_v53 = vcombine.low %v2058_v31, %v2062_v35  ;;  %v10867_v9 = vcombine.high %v2066_v49, %v2070_v36  ;;  %v2089_v31 = vld [vmem:[#allocation8 + $0x1240] sm:$0xff] }
 0x249   :  { %8317 = vmatmul.mubr.bf16.gmra.mrb[36].mxu1 %v12360_v52  ;;  %7935 = vmatprep.mubr.bf16.mxu0 %v12403_v21  ;;  %v2093_v35 = vld [vmem:[#allocation8 + $0x1260] sm:$0xff] }
 0x24a   :  { %7908 = vmatpush1.bf16.msra.mxu0 %v10832_v51  ;;  %8359 = vmatprep.mubr.bf16.mxu1 %v12403_v21  ;;  %v2074_v51 = vld [vmem:[#allocation8 + $0x11c8] sm:$0xff] }
 0x24b   :  { %8332 = vmatpush1.bf16.msra.mxu1 %v10834_v8  ;;  %7909 = vmatprep.subr.bf16.mxu0 %v10841_v27  ;;  %v2078_v8 = vld [vmem:[#allocation8 + $0x11e8] sm:$0xff]  ;;  %v10864_v27 = vcombine.low %v2065_v48, %v2069_v2  ;;  %v10889_v48 = vcombine.high %v2089_v31, %v2093_v35 }
 0x24c   :  { %8333 = vmatprep.subr.bf16.mxu1 %v10843_v58  ;;  %v10866_v58 = vcombine.low %v2066_v49, %v2070_v36  ;;  %v10875_v47 = vcombine.high %v2074_v51, %v2078_v8  ;;  %v2097_v49 = vld [vmem:[#allocation8 + $0x1280] sm:$0xff] }
 0x24d   :  { %v2101_v36 = vld [vmem:[#allocation8 + $0x12a0] sm:$0xff] }
 0x24e   :  { %7910 = vmatpush1.bf16.msra.mxu0 %v10840_v23  ;;  %v2082_v23 = vld [vmem:[#allocation8 + $0x1208] sm:$0xff] }
 0x24f   :  { %8334 = vmatpush1.bf16.msra.mxu1 %v10842_v38  ;;  %7911 = vmatprep.subr.bf16.mxu0 %v10849_v3  ;;  %v2086_v38 = vld [vmem:[#allocation8 + $0x1228] sm:$0xff]  ;;  %v10872_v3 = vcombine.low %v2073_v42, %v2077_v34  ;;  %v10897_v42 = vcombine.high %v2097_v49, %v2101_v36 }
 0x250   :  { %8335 = vmatprep.subr.bf16.mxu1 %v10851_v29  ;;  %v10874_v29 = vcombine.low %v2074_v51, %v2078_v8  ;;  %v10883_v39 = vcombine.high %v2082_v23, %v2086_v38  ;;  %v2105_v51 = vld [vmem:[#allocation8 + $0x12c0] sm:$0xff] }
 0x251   :  { %v2109_v8 = vld [vmem:[#allocation8 + $0x12e0] sm:$0xff] }
 0x252   :  { %7912 = vmatpush1.bf16.msra.mxu0 %v10848_v19  ;;  %v2090_v19 = vld [vmem:[#allocation8 + $0x1248] sm:$0xff] }
 0x253   :  { %8336 = vmatpush1.bf16.msra.mxu1 %v10850_v7  ;;  %7913 = vmatprep.subr.bf16.mxu0 %v10857_v5  ;;  %v2094_v7 = vld [vmem:[#allocation8 + $0x1268] sm:$0xff]  ;;  %v10880_v5 = vcombine.low %v2081_v59, %v2085_v54  ;;  %v10905_v59 = vcombine.high %v2105_v51, %v2109_v8 }
 0x254   :  { %8337 = vmatprep.subr.bf16.mxu1 %v10859_v25  ;;  %v10882_v25 = vcombine.low %v2082_v23, %v2086_v38  ;;  %v10891_v2 = vcombine.high %v2090_v19, %v2094_v7  ;;  %v2113_v23 = vld [vmem:[#allocation8 + $0x1300] sm:$0xff] }
 0x255   :  { %v2117_v38 = vld [vmem:[#allocation8 + $0x1320] sm:$0xff] }
 0x256   :  { %7914 = vmatpush1.bf16.msra.mxu0 %v10856_v14  ;;  %v2098_v14 = vld [vmem:[#allocation8 + $0x1288] sm:$0xff] }
 0x257   :  { %8338 = vmatpush1.bf16.msra.mxu1 %v10858_v53  ;;  %7915 = vmatprep.subr.bf16.mxu0 %v10865_v40  ;;  %v2102_v53 = vld [vmem:[#allocation8 + $0x12a8] sm:$0xff]  ;;  %v10888_v40 = vcombine.low %v2089_v31, %v2093_v35  ;;  %v10913_v31 = vcombine.high %v2113_v23, %v2117_v38 }
 0x258   :  { %8339 = vmatprep.subr.bf16.mxu1 %v10867_v9  ;;  %v10890_v9 = vcombine.low %v2090_v19, %v2094_v7  ;;  %v10899_v34 = vcombine.high %v2098_v14, %v2102_v53  ;;  %v2121_v19 = vld [vmem:[#allocation8 + $0x1340] sm:$0xff] }
 0x259   :  { %v2125_v7 = vld [vmem:[#allocation8 + $0x1360] sm:$0xff] }
 0x25a   :  { %7916 = vmatpush1.bf16.msra.mxu0 %v10864_v27  ;;  %v2106_v27 = vld [vmem:[#allocation8 + $0x12c8] sm:$0xff] }
 0x25b   :  { %8340 = vmatpush1.bf16.msra.mxu1 %v10866_v58  ;;  %7917 = vmatprep.subr.bf16.mxu0 %v10873_v43  ;;  %v2110_v58 = vld [vmem:[#allocation8 + $0x12e8] sm:$0xff]  ;;  %v10896_v43 = vcombine.low %v2097_v49, %v2101_v36  ;;  %v10921_v49 = vcombine.high %v2121_v19, %v2125_v7 }
 0x25c   :  { %8341 = vmatprep.subr.bf16.mxu1 %v10875_v47  ;;  %v10898_v47 = vcombine.low %v2098_v14, %v2102_v53  ;;  %v10907_v54 = vcombine.high %v2106_v27, %v2110_v58  ;;  %v2129_v14 = vld [vmem:[#allocation8 + $0x1380] sm:$0xff] }
 0x25d   :  { %v2133_v53 = vld [vmem:[#allocation8 + $0x13a0] sm:$0xff] }
 0x25e   :  { %7918 = vmatpush1.bf16.msra.mxu0 %v10872_v3  ;;  %v2114_v3 = vld [vmem:[#allocation8 + $0x1308] sm:$0xff] }
 0x25f   :  { %8342 = vmatpush1.bf16.msra.mxu1 %v10874_v29  ;;  %7919 = vmatprep.subr.bf16.mxu0 %v10881_v45  ;;  %v2118_v29 = vld [vmem:[#allocation8 + $0x1328] sm:$0xff]  ;;  %v10904_v45 = vcombine.low %v2105_v51, %v2109_v8  ;;  %v10929_v51 = vcombine.high %v2129_v14, %v2133_v53 }
 0x260   :  { %8343 = vmatprep.subr.bf16.mxu1 %v10883_v39  ;;  %v10906_v39 = vcombine.low %v2106_v27, %v2110_v58  ;;  %v10915_v35 = vcombine.high %v2114_v3, %v2118_v29  ;;  %v2137_v27 = vld [vmem:[#allocation8 + $0x13c0] sm:$0xff] }
 0x261   :  { %v2141_v58 = vld [vmem:[#allocation8 + $0x13e0] sm:$0xff] }
 0x262   :  { %7920 = vmatpush1.bf16.msra.mxu0 %v10880_v5  ;;  %v2122_v5 = vld [vmem:[#allocation8 + $0x1348] sm:$0xff] }
 0x263   :  { %8344 = vmatpush1.bf16.msra.mxu1 %v10882_v25  ;;  %7921 = vmatprep.subr.bf16.mxu0 %v10889_v48  ;;  %v2126_v25 = vld [vmem:[#allocation8 + $0x1368] sm:$0xff]  ;;  %v10912_v48 = vcombine.low %v2113_v23, %v2117_v38  ;;  %v10937_v23 = vcombine.high %v2137_v27, %v2141_v58 }
 0x264   :  { %8345 = vmatprep.subr.bf16.mxu1 %v10891_v2  ;;  %v10914_v2 = vcombine.low %v2114_v3, %v2118_v29  ;;  %v10923_v36 = vcombine.high %v2122_v5, %v2126_v25  ;;  %v2145_v3 = vld [vmem:[#allocation8 + $0x1400] sm:$0xff] }
 0x265   :  { %v2149_v29 = vld [vmem:[#allocation8 + $0x1420] sm:$0xff] }
 0x266   :  { %7922 = vmatpush1.bf16.msra.mxu0 %v10888_v40  ;;  %v2130_v40 = vld [vmem:[#allocation8 + $0x1388] sm:$0xff] }
 0x267   :  { %8346 = vmatpush1.bf16.msra.mxu1 %v10890_v9  ;;  %7923 = vmatprep.subr.bf16.mxu0 %v10897_v42  ;;  %v2134_v9 = vld [vmem:[#allocation8 + $0x13a8] sm:$0xff]  ;;  %v10920_v42 = vcombine.low %v2121_v19, %v2125_v7  ;;  %v10945_v19 = vcombine.high %v2145_v3, %v2149_v29 }
 0x268   :  { %8347 = vmatprep.subr.bf16.mxu1 %v10899_v34  ;;  %v10922_v34 = vcombine.low %v2122_v5, %v2126_v25  ;;  %v10931_v8 = vcombine.high %v2130_v40, %v2134_v9  ;;  %v2153_v5 = vld [vmem:[#allocation8 + $0x1440] sm:$0xff] }
 0x269   :  { %v2157_v25 = vld [vmem:[#allocation8 + $0x1460] sm:$0xff] }
 0x26a   :  { %7924 = vmatpush1.bf16.msra.mxu0 %v10896_v43  ;;  %v2138_v43 = vld [vmem:[#allocation8 + $0x13c8] sm:$0xff] }
 0x26b   :  { %8348 = vmatpush1.bf16.msra.mxu1 %v10898_v47  ;;  %7925 = vmatprep.subr.bf16.mxu0 %v10905_v59  ;;  %v2142_v47 = vld [vmem:[#allocation8 + $0x13e8] sm:$0xff]  ;;  %v10928_v59 = vcombine.low %v2129_v14, %v2133_v53  ;;  %v10953_v14 = vcombine.high %v2153_v5, %v2157_v25 }
 0x26c   :  { %8349 = vmatprep.subr.bf16.mxu1 %v10907_v54  ;;  %v10930_v54 = vcombine.low %v2130_v40, %v2134_v9  ;;  %v10939_v38 = vcombine.high %v2138_v43, %v2142_v47  ;;  %v2161_v40 = vld [vmem:[#allocation8 + $0x1480] sm:$0xff] }
 0x26d   :  { %v2165_v9 = vld [vmem:[#allocation8 + $0x14a0] sm:$0xff] }
 0x26e   :  { %7926 = vmatpush1.bf16.msra.mxu0 %v10904_v45  ;;  %v2146_v45 = vld [vmem:[#allocation8 + $0x1408] sm:$0xff] }
 0x26f   :  { %8350 = vmatpush1.bf16.msra.mxu1 %v10906_v39  ;;  %7927 = vmatprep.subr.bf16.mxu0 %v10913_v31  ;;  %v2150_v39 = vld [vmem:[#allocation8 + $0x1428] sm:$0xff]  ;;  %v10936_v31 = vcombine.low %v2137_v27, %v2141_v58  ;;  %v10961_v27 = vcombine.high %v2161_v40, %v2165_v9 }
 0x270   :  { %8351 = vmatprep.subr.bf16.mxu1 %v10915_v35  ;;  %v10938_v35 = vcombine.low %v2138_v43, %v2142_v47  ;;  %v10947_v7 = vcombine.high %v2146_v45, %v2150_v39  ;;  %v2169_v43 = vld [vmem:[#allocation8 + $0x14c0] sm:$0xff] }
 0x271   :  { %v2173_v47 = vld [vmem:[#allocation8 + $0x14e0] sm:$0xff] }
 0x272   :  { %7928 = vmatpush1.bf16.msra.mxu0 %v10912_v48  ;;  %v2154_v48 = vld [vmem:[#allocation8 + $0x1448] sm:$0xff] }
 0x273   :  { %8352 = vmatpush1.bf16.msra.mxu1 %v10914_v2  ;;  %7929 = vmatprep.subr.bf16.mxu0 %v10921_v49  ;;  %v2158_v2 = vld [vmem:[#allocation8 + $0x1468] sm:$0xff]  ;;  %v10944_v49 = vcombine.low %v2145_v3, %v2149_v29  ;;  %v10969_v3 = vcombine.high %v2169_v43, %v2173_v47 }
 0x274   :  { %8353 = vmatprep.subr.bf16.mxu1 %v10923_v36  ;;  %v10946_v36 = vcombine.low %v2146_v45, %v2150_v39  ;;  %v10955_v53 = vcombine.high %v2154_v48, %v2158_v2  ;;  %v2177_v45 = vld [vmem:[#allocation8 + $0x1500] sm:$0xff] }
 0x275   :  { %v2181_v39 = vld [vmem:[#allocation8 + $0x1520] sm:$0xff] }
 0x276   :  { %7930 = vmatpush1.bf16.msra.mxu0 %v10920_v42  ;;  %v2162_v42 = vld [vmem:[#allocation8 + $0x1488] sm:$0xff] }
 0x277   :  { %8354 = vmatpush1.bf16.msra.mxu1 %v10922_v34  ;;  %7931 = vmatprep.subr.bf16.mxu0 %v10929_v51  ;;  %v2166_v34 = vld [vmem:[#allocation8 + $0x14a8] sm:$0xff]  ;;  %v10952_v51 = vcombine.low %v2153_v5, %v2157_v25  ;;  %v10977_v5 = vcombine.high %v2177_v45, %v2181_v39 }
 0x278   :  { %8355 = vmatprep.subr.bf16.mxu1 %v10931_v8  ;;  %v10954_v8 = vcombine.low %v2154_v48, %v2158_v2  ;;  %v10963_v58 = vcombine.high %v2162_v42, %v2166_v34  ;;  %v2185_v48 = vld [vmem:[#allocation8 + $0x1540] sm:$0xff] }
 0x279   :  { %v2189_v2 = vld [vmem:[#allocation8 + $0x1560] sm:$0xff] }
 0x27a   :  { %7932 = vmatpush1.bf16.msra.mxu0 %v10928_v59  ;;  %v2170_v59 = vld [vmem:[#allocation8 + $0x14c8] sm:$0xff] }
 0x27b   :  { %8356 = vmatpush1.bf16.msra.mxu1 %v10930_v54  ;;  %7933 = vmatprep.subr.bf16.mxu0 %v10937_v23  ;;  %v2174_v54 = vld [vmem:[#allocation8 + $0x14e8] sm:$0xff]  ;;  %v10960_v23 = vcombine.low %v2161_v40, %v2165_v9  ;;  %v10985_v40 = vcombine.high %v2185_v48, %v2189_v2 }
 0x27c   :  { %8357 = vmatprep.subr.bf16.mxu1 %v10939_v38  ;;  %v10962_v38 = vcombine.low %v2162_v42, %v2166_v34  ;;  %v10971_v29 = vcombine.high %v2170_v59, %v2174_v54  ;;  %v2193_v42 = vld [vmem:[#allocation8 + $0x1580] sm:$0xff] }
 0x27d   :  { %v2197_v34 = vld [vmem:[#allocation8 + $0x15a0] sm:$0xff] }
 0x27e   :  { %7934 = vmatpush1.bf16.msra.mxu0 %v10936_v31  ;;  %v2178_v31 = vld [vmem:[#allocation8 + $0x1508] sm:$0xff] }
 0x27f   :  { %8358 = vmatpush1.bf16.msra.mxu1 %v10938_v35  ;;  %7956 = vmatprep.subr.bf16.mxu0 %v10945_v19  ;;  %v2182_v35 = vld [vmem:[#allocation8 + $0x1528] sm:$0xff]  ;;  %v10968_v19 = vcombine.low %v2169_v43, %v2173_v47  ;;  %v10993_v43 = vcombine.high %v2193_v42, %v2197_v34 }
 0x280   :  { %8380 = vmatprep.subr.bf16.mxu1 %v10947_v7  ;;  %v10970_v7 = vcombine.low %v2170_v59, %v2174_v54  ;;  %v10979_v25 = vcombine.high %v2178_v31, %v2182_v35  ;;  %v2201_v59 = vld [vmem:[#allocation8 + $0x15c0] sm:$0xff] }
 0x281   :  { %7936 = vmatmul.mubr.bf16.vlgmr.msra.gmra.mrb[32].mxu0 %v12398_v4  ;;  %v2205_v54 = vld [vmem:[#allocation8 + $0x15e0] sm:$0xff] }
 0x282   :  { %8360 = vmatmul.mubr.bf16.vlgmr.msra.gmra.mrb[32].mxu1 %v12398_v4  ;;  %7945 = vmatprep.mubr.bf16.mxu0 %v12433_v18 }
 0x283   :  { %7957 = vmatpush1.bf16.msra.mxu0 %v10944_v49  ;;  %8369 = vmatprep.mubr.bf16.mxu1 %v12433_v18  ;;  %v2186_v49 = vld [vmem:[#allocation8 + $0x1548] sm:$0xff] }
 0x284   :  { %8381 = vmatpush1.bf16.msra.mxu1 %v10946_v36  ;;  %7958 = vmatprep.subr.bf16.mxu0 %v10953_v14  ;;  %v2190_v36 = vld [vmem:[#allocation8 + $0x1568] sm:$0xff]  ;;  %v10976_v14 = vcombine.low %v2177_v45, %v2181_v39  ;;  %v11001_v45 = vcombine.high %v2201_v59, %v2205_v54 }
 0x285   :  { %8382 = vmatprep.subr.bf16.mxu1 %v10955_v53  ;;  %v10978_v53 = vcombine.low %v2178_v31, %v2182_v35  ;;  %v10987_v9 = vcombine.high %v2186_v49, %v2190_v36  ;;  %v2209_v31 = vld [vmem:[#allocation8 + $0x1600] sm:$0xff] }
 0x286   :  { %v2213_v35 = vld [vmem:[#allocation8 + $0x1620] sm:$0xff] }
 0x287   :  { %7959 = vmatpush1.bf16.msra.mxu0 %v10952_v51  ;;  %v2194_v51 = vld [vmem:[#allocation8 + $0x1588] sm:$0xff] }
 0x288   :  { %8383 = vmatpush1.bf16.msra.mxu1 %v10954_v8  ;;  %7960 = vmatprep.subr.bf16.mxu0 %v10961_v27  ;;  %v2198_v8 = vld [vmem:[#allocation8 + $0x15a8] sm:$0xff]  ;;  %v10984_v27 = vcombine.low %v2185_v48, %v2189_v2  ;;  %v11009_v48 = vcombine.high %v2209_v31, %v2213_v35 }
 0x289   :  { %7946 = vmatmul.mubr.bf16.gmra.mrb[36].mxu0 %v12430_v16  ;;  %8384 = vmatprep.subr.bf16.mxu1 %v10963_v58  ;;  %v10986_v58 = vcombine.low %v2186_v49, %v2190_v36  ;;  %v10995_v47 = vcombine.high %v2194_v51, %v2198_v8  ;;  %v2217_v49 = vld [vmem:[#allocation8 + $0x1640] sm:$0xff] }
 0x28a   :  { %8370 = vmatmul.mubr.bf16.gmra.mrb[36].mxu1 %v12430_v16  ;;  %7988 = vmatprep.mubr.bf16.mxu0 %v12427_v62  ;;  %v2221_v36 = vld [vmem:[#allocation8 + $0x1660] sm:$0xff] }
 0x28b   :  { %7961 = vmatpush1.bf16.msra.mxu0 %v10960_v23  ;;  %8412 = vmatprep.mubr.bf16.mxu1 %v12427_v62  ;;  %v2202_v23 = vld [vmem:[#allocation8 + $0x15c8] sm:$0xff] }
 0x28c   :  { %8385 = vmatpush1.bf16.msra.mxu1 %v10962_v38  ;;  %7962 = vmatprep.subr.bf16.mxu0 %v10969_v3  ;;  %v2206_v38 = vld [vmem:[#allocation8 + $0x15e8] sm:$0xff]  ;;  %v10992_v3 = vcombine.low %v2193_v42, %v2197_v34  ;;  %v11017_v42 = vcombine.high %v2217_v49, %v2221_v36 }
 0x28d   :  { %8386 = vmatprep.subr.bf16.mxu1 %v10971_v29  ;;  %v10994_v29 = vcombine.low %v2194_v51, %v2198_v8  ;;  %v11003_v39 = vcombine.high %v2202_v23, %v2206_v38  ;;  %v2225_v51 = vld [vmem:[#allocation8 + $0x1680] sm:$0xff] }
 0x28e   :  { %v2229_v8 = vld [vmem:[#allocation8 + $0x16a0] sm:$0xff] }
 0x28f   :  { %7963 = vmatpush1.bf16.msra.mxu0 %v10968_v19  ;;  %v2210_v19 = vld [vmem:[#allocation8 + $0x1608] sm:$0xff] }
 0x290   :  { %8387 = vmatpush1.bf16.msra.mxu1 %v10970_v7  ;;  %7964 = vmatprep.subr.bf16.mxu0 %v10977_v5  ;;  %v2214_v7 = vld [vmem:[#allocation8 + $0x1628] sm:$0xff]  ;;  %v11000_v5 = vcombine.low %v2201_v59, %v2205_v54  ;;  %v11025_v59 = vcombine.high %v2225_v51, %v2229_v8 }
 0x291   :  { %8388 = vmatprep.subr.bf16.mxu1 %v10979_v25  ;;  %v11002_v25 = vcombine.low %v2202_v23, %v2206_v38  ;;  %v11011_v2 = vcombine.high %v2210_v19, %v2214_v7  ;;  %v2233_v23 = vld [vmem:[#allocation8 + $0x16c0] sm:$0xff] }
 0x292   :  { %v2237_v38 = vld [vmem:[#allocation8 + $0x16e0] sm:$0xff] }
 0x293   :  { %7965 = vmatpush1.bf16.msra.mxu0 %v10976_v14  ;;  %v2218_v14 = vld [vmem:[#allocation8 + $0x1648] sm:$0xff] }
 0x294   :  { %8389 = vmatpush1.bf16.msra.mxu1 %v10978_v53  ;;  %7966 = vmatprep.subr.bf16.mxu0 %v10985_v40  ;;  %v2222_v53 = vld [vmem:[#allocation8 + $0x1668] sm:$0xff]  ;;  %v11008_v40 = vcombine.low %v2209_v31, %v2213_v35  ;;  %v11033_v31 = vcombine.high %v2233_v23, %v2237_v38 }
 0x295   :  { %8390 = vmatprep.subr.bf16.mxu1 %v10987_v9  ;;  %v11010_v9 = vcombine.low %v2210_v19, %v2214_v7  ;;  %v11019_v34 = vcombine.high %v2218_v14, %v2222_v53  ;;  %v2241_v19 = vld [vmem:[#allocation8 + $0x1700] sm:$0xff] }
 0x296   :  { %v2245_v7 = vld [vmem:[#allocation8 + $0x1720] sm:$0xff] }
 0x297   :  { %7967 = vmatpush1.bf16.msra.mxu0 %v10984_v27  ;;  %v2226_v27 = vld [vmem:[#allocation8 + $0x1688] sm:$0xff] }
 0x298   :  { %8391 = vmatpush1.bf16.msra.mxu1 %v10986_v58  ;;  %7968 = vmatprep.subr.bf16.mxu0 %v10993_v43  ;;  %v2230_v58 = vld [vmem:[#allocation8 + $0x16a8] sm:$0xff]  ;;  %v11016_v43 = vcombine.low %v2217_v49, %v2221_v36  ;;  %v11041_v49 = vcombine.high %v2241_v19, %v2245_v7 }
 0x299   :  { %8392 = vmatprep.subr.bf16.mxu1 %v10995_v47  ;;  %v11018_v47 = vcombine.low %v2218_v14, %v2222_v53  ;;  %v11027_v54 = vcombine.high %v2226_v27, %v2230_v58  ;;  %v2249_v14 = vld [vmem:[#allocation8 + $0x1740] sm:$0xff] }
 0x29a   :  { %v2253_v53 = vld [vmem:[#allocation8 + $0x1760] sm:$0xff] }
 0x29b   :  { %7969 = vmatpush1.bf16.msra.mxu0 %v10992_v3  ;;  %v2234_v3 = vld [vmem:[#allocation8 + $0x16c8] sm:$0xff] }
 0x29c   :  { %8393 = vmatpush1.bf16.msra.mxu1 %v10994_v29  ;;  %7970 = vmatprep.subr.bf16.mxu0 %v11001_v45  ;;  %v2238_v29 = vld [vmem:[#allocation8 + $0x16e8] sm:$0xff]  ;;  %v11024_v45 = vcombine.low %v2225_v51, %v2229_v8  ;;  %v11049_v51 = vcombine.high %v2249_v14, %v2253_v53 }
 0x29d   :  { %8394 = vmatprep.subr.bf16.mxu1 %v11003_v39  ;;  %v11026_v39 = vcombine.low %v2226_v27, %v2230_v58  ;;  %v11035_v35 = vcombine.high %v2234_v3, %v2238_v29  ;;  %v2257_v27 = vld [vmem:[#allocation8 + $0x1780] sm:$0xff] }
 0x29e   :  { %v2261_v58 = vld [vmem:[#allocation8 + $0x17a0] sm:$0xff] }
 0x29f   :  { %7971 = vmatpush1.bf16.msra.mxu0 %v11000_v5  ;;  %v2242_v5 = vld [vmem:[#allocation8 + $0x1708] sm:$0xff] }
 0x2a0   :  { %8395 = vmatpush1.bf16.msra.mxu1 %v11002_v25  ;;  %7972 = vmatprep.subr.bf16.mxu0 %v11009_v48  ;;  %v2246_v25 = vld [vmem:[#allocation8 + $0x1728] sm:$0xff]  ;;  %v11032_v48 = vcombine.low %v2233_v23, %v2237_v38  ;;  %v11057_v23 = vcombine.high %v2257_v27, %v2261_v58 }
 0x2a1   :  { %8396 = vmatprep.subr.bf16.mxu1 %v11011_v2  ;;  %v11034_v2 = vcombine.low %v2234_v3, %v2238_v29  ;;  %v11043_v36 = vcombine.high %v2242_v5, %v2246_v25  ;;  %v2265_v3 = vld [vmem:[#allocation8 + $0x17c0] sm:$0xff] }
 0x2a2   :  { %v2269_v29 = vld [vmem:[#allocation8 + $0x17e0] sm:$0xff] }
 0x2a3   :  { %7973 = vmatpush1.bf16.msra.mxu0 %v11008_v40  ;;  %v2250_v40 = vld [vmem:[#allocation8 + $0x1748] sm:$0xff] }
 0x2a4   :  { %8397 = vmatpush1.bf16.msra.mxu1 %v11010_v9  ;;  %7974 = vmatprep.subr.bf16.mxu0 %v11017_v42  ;;  %v2254_v9 = vld [vmem:[#allocation8 + $0x1768] sm:$0xff]  ;;  %v11040_v42 = vcombine.low %v2241_v19, %v2245_v7  ;;  %v11065_v19 = vcombine.high %v2265_v3, %v2269_v29 }
 0x2a5   :  { %8398 = vmatprep.subr.bf16.mxu1 %v11019_v34  ;;  %v11042_v34 = vcombine.low %v2242_v5, %v2246_v25  ;;  %v11051_v8 = vcombine.high %v2250_v40, %v2254_v9  ;;  %v2273_v5 = vld [vmem:[#allocation8 + $0x1800] sm:$0xff] }
 0x2a6   :  { %v2277_v25 = vld [vmem:[#allocation8 + $0x1820] sm:$0xff] }
 0x2a7   :  { %7975 = vmatpush1.bf16.msra.mxu0 %v11016_v43  ;;  %v2258_v43 = vld [vmem:[#allocation8 + $0x1788] sm:$0xff] }
 0x2a8   :  { %8399 = vmatpush1.bf16.msra.mxu1 %v11018_v47  ;;  %7976 = vmatprep.subr.bf16.mxu0 %v11025_v59  ;;  %v2262_v47 = vld [vmem:[#allocation8 + $0x17a8] sm:$0xff]  ;;  %v11048_v59 = vcombine.low %v2249_v14, %v2253_v53  ;;  %v11073_v14 = vcombine.high %v2273_v5, %v2277_v25 }
 0x2a9   :  { %8400 = vmatprep.subr.bf16.mxu1 %v11027_v54  ;;  %v11050_v54 = vcombine.low %v2250_v40, %v2254_v9  ;;  %v11059_v38 = vcombine.high %v2258_v43, %v2262_v47  ;;  %v2281_v40 = vld [vmem:[#allocation8 + $0x1840] sm:$0xff] }
 0x2aa   :  { %v2285_v9 = vld [vmem:[#allocation8 + $0x1860] sm:$0xff] }
 0x2ab   :  { %7977 = vmatpush1.bf16.msra.mxu0 %v11024_v45  ;;  %v2266_v45 = vld [vmem:[#allocation8 + $0x17c8] sm:$0xff] }
 0x2ac   :  { %8401 = vmatpush1.bf16.msra.mxu1 %v11026_v39  ;;  %7978 = vmatprep.subr.bf16.mxu0 %v11033_v31  ;;  %v2270_v39 = vld [vmem:[#allocation8 + $0x17e8] sm:$0xff]  ;;  %v11056_v31 = vcombine.low %v2257_v27, %v2261_v58  ;;  %v11081_v27 = vcombine.high %v2281_v40, %v2285_v9 }
 0x2ad   :  { %8402 = vmatprep.subr.bf16.mxu1 %v11035_v35  ;;  %v11058_v35 = vcombine.low %v2258_v43, %v2262_v47  ;;  %v11067_v7 = vcombine.high %v2266_v45, %v2270_v39  ;;  %v2289_v43 = vld [vmem:[#allocation8 + $0x1880] sm:$0xff] }
 0x2ae   :  { %v2293_v47 = vld [vmem:[#allocation8 + $0x18a0] sm:$0xff] }
 0x2af   :  { %7979 = vmatpush1.bf16.msra.mxu0 %v11032_v48  ;;  %v2274_v48 = vld [vmem:[#allocation8 + $0x1808] sm:$0xff] }
 0x2b0   :  { %8403 = vmatpush1.bf16.msra.mxu1 %v11034_v2  ;;  %7980 = vmatprep.subr.bf16.mxu0 %v11041_v49  ;;  %v2278_v2 = vld [vmem:[#allocation8 + $0x1828] sm:$0xff]  ;;  %v11064_v49 = vcombine.low %v2265_v3, %v2269_v29  ;;  %v11089_v3 = vcombine.high %v2289_v43, %v2293_v47 }
 0x2b1   :  { %8404 = vmatprep.subr.bf16.mxu1 %v11043_v36  ;;  %v11066_v36 = vcombine.low %v2266_v45, %v2270_v39  ;;  %v11075_v53 = vcombine.high %v2274_v48, %v2278_v2  ;;  %v2297_v45 = vld [vmem:[#allocation8 + $0x18c0] sm:$0xff] }
 0x2b2   :  { %v2301_v39 = vld [vmem:[#allocation8 + $0x18e0] sm:$0xff] }
 0x2b3   :  { %7981 = vmatpush1.bf16.msra.mxu0 %v11040_v42  ;;  %v2282_v42 = vld [vmem:[#allocation8 + $0x1848] sm:$0xff] }
 0x2b4   :  { %8405 = vmatpush1.bf16.msra.mxu1 %v11042_v34  ;;  %7982 = vmatprep.subr.bf16.mxu0 %v11049_v51  ;;  %v2286_v34 = vld [vmem:[#allocation8 + $0x1868] sm:$0xff]  ;;  %v11072_v51 = vcombine.low %v2273_v5, %v2277_v25  ;;  %v11097_v5 = vcombine.high %v2297_v45, %v2301_v39 }
 0x2b5   :  { %8406 = vmatprep.subr.bf16.mxu1 %v11051_v8  ;;  %v11074_v8 = vcombine.low %v2274_v48, %v2278_v2  ;;  %v11083_v58 = vcombine.high %v2282_v42, %v2286_v34  ;;  %v2305_v48 = vld [vmem:[#allocation8 + $0x1900] sm:$0xff] }
 0x2b6   :  { %v2309_v2 = vld [vmem:[#allocation8 + $0x1920] sm:$0xff] }
 0x2b7   :  { %7983 = vmatpush1.bf16.msra.mxu0 %v11048_v59  ;;  %v2290_v59 = vld [vmem:[#allocation8 + $0x1888] sm:$0xff] }
 0x2b8   :  { %8407 = vmatpush1.bf16.msra.mxu1 %v11050_v54  ;;  %7984 = vmatprep.subr.bf16.mxu0 %v11057_v23  ;;  %v2294_v54 = vld [vmem:[#allocation8 + $0x18a8] sm:$0xff]  ;;  %v11080_v23 = vcombine.low %v2281_v40, %v2285_v9  ;;  %v11105_v40 = vcombine.high %v2305_v48, %v2309_v2 }
 0x2b9   :  { %8408 = vmatprep.subr.bf16.mxu1 %v11059_v38  ;;  %v11082_v38 = vcombine.low %v2282_v42, %v2286_v34  ;;  %v11091_v29 = vcombine.high %v2290_v59, %v2294_v54  ;;  %v2313_v42 = vld [vmem:[#allocation8 + $0x1940] sm:$0xff] }
 0x2ba   :  { %v2317_v34 = vld [vmem:[#allocation8 + $0x1960] sm:$0xff] }
 0x2bb   :  { %7985 = vmatpush1.bf16.msra.mxu0 %v11056_v31  ;;  %v2298_v31 = vld [vmem:[#allocation8 + $0x18c8] sm:$0xff] }
 0x2bc   :  { %8409 = vmatpush1.bf16.msra.mxu1 %v11058_v35  ;;  %7986 = vmatprep.subr.bf16.mxu0 %v11065_v19  ;;  %v2302_v35 = vld [vmem:[#allocation8 + $0x18e8] sm:$0xff]  ;;  %v11088_v19 = vcombine.low %v2289_v43, %v2293_v47  ;;  %v11113_v43 = vcombine.high %v2313_v42, %v2317_v34 }
 0x2bd   :  { %8410 = vmatprep.subr.bf16.mxu1 %v11067_v7  ;;  %v11090_v7 = vcombine.low %v2290_v59, %v2294_v54  ;;  %v11099_v25 = vcombine.high %v2298_v31, %v2302_v35  ;;  %v2321_v59 = vld [vmem:[#allocation8 + $0x1980] sm:$0xff] }
 0x2be   :  { %v2325_v54 = vld [vmem:[#allocation8 + $0x19a0] sm:$0xff] }
 0x2bf   :  { %7987 = vmatpush1.bf16.msra.mxu0 %v11064_v49  ;;  %v2306_v49 = vld [vmem:[#allocation8 + $0x1908] sm:$0xff] }
 0x2c0   :  { %8411 = vmatpush1.bf16.msra.mxu1 %v11066_v36  ;;  %8009 = vmatprep.subr.bf16.mxu0 %v11073_v14  ;;  %v2310_v36 = vld [vmem:[#allocation8 + $0x1928] sm:$0xff]  ;;  %v11096_v14 = vcombine.low %v2297_v45, %v2301_v39  ;;  %v11121_v45 = vcombine.high %v2321_v59, %v2325_v54 }
 0x2c1   :  { %8433 = vmatprep.subr.bf16.mxu1 %v11075_v53  ;;  %v11098_v53 = vcombine.low %v2298_v31, %v2302_v35  ;;  %v11107_v9 = vcombine.high %v2306_v49, %v2310_v36  ;;  %v2329_v31 = vld [vmem:[#allocation8 + $0x19c0] sm:$0xff] }
 0x2c2   :  { %7989 = vmatmul.mubr.bf16.vlgmr.msra.gmra.mrb[32].mxu0 %v12423_v60  ;;  %v2333_v35 = vld [vmem:[#allocation8 + $0x19e0] sm:$0xff] }
 0x2c3   :  { %8413 = vmatmul.mubr.bf16.vlgmr.msra.gmra.mrb[32].mxu1 %v12423_v60  ;;  %7998 = vmatprep.mubr.bf16.mxu0 %v12444_v20 }
 0x2c4   :  { %8010 = vmatpush1.bf16.msra.mxu0 %v11072_v51  ;;  %8422 = vmatprep.mubr.bf16.mxu1 %v12444_v20  ;;  %v2314_v51 = vld [vmem:[#allocation8 + $0x1948] sm:$0xff] }
 0x2c5   :  { %8434 = vmatpush1.bf16.msra.mxu1 %v11074_v8  ;;  %8011 = vmatprep.subr.bf16.mxu0 %v11081_v27  ;;  %v2318_v8 = vld [vmem:[#allocation8 + $0x1968] sm:$0xff]  ;;  %v11104_v27 = vcombine.low %v2305_v48, %v2309_v2  ;;  %v11129_v48 = vcombine.high %v2329_v31, %v2333_v35 }
 0x2c6   :  { %8435 = vmatprep.subr.bf16.mxu1 %v11083_v58  ;;  %v11106_v58 = vcombine.low %v2306_v49, %v2310_v36  ;;  %v11115_v47 = vcombine.high %v2314_v51, %v2318_v8  ;;  %v2337_v49 = vld [vmem:[#allocation8 + $0x1a00] sm:$0xff] }
 0x2c7   :  { %v2341_v36 = vld [vmem:[#allocation8 + $0x1a20] sm:$0xff] }
 0x2c8   :  { %8012 = vmatpush1.bf16.msra.mxu0 %v11080_v23  ;;  %v2322_v23 = vld [vmem:[#allocation8 + $0x1988] sm:$0xff] }
 0x2c9   :  { %8436 = vmatpush1.bf16.msra.mxu1 %v11082_v38  ;;  %8013 = vmatprep.subr.bf16.mxu0 %v11089_v3  ;;  %v2326_v38 = vld [vmem:[#allocation8 + $0x19a8] sm:$0xff]  ;;  %v11112_v3 = vcombine.low %v2313_v42, %v2317_v34  ;;  %v11137_v42 = vcombine.high %v2337_v49, %v2341_v36 }
 0x2ca   :  { %7999 = vmatmul.mubr.bf16.gmra.mrb[36].mxu0 %v12440_v24  ;;  %8437 = vmatprep.subr.bf16.mxu1 %v11091_v29  ;;  %v11114_v29 = vcombine.low %v2314_v51, %v2318_v8  ;;  %v11123_v39 = vcombine.high %v2322_v23, %v2326_v38  ;;  %v2345_v51 = vld [vmem:[#allocation8 + $0x1a40] sm:$0xff] }
 0x2cb   :  { %8423 = vmatmul.mubr.bf16.gmra.mrb[36].mxu1 %v12440_v24  ;;  %8041 = vmatprep.mubr.bf16.mxu0 %v12476_v1  ;;  %v2349_v8 = vld [vmem:[#allocation8 + $0x1a60] sm:$0xff] }
 0x2cc   :  { %8014 = vmatpush1.bf16.msra.mxu0 %v11088_v19  ;;  %8465 = vmatprep.mubr.bf16.mxu1 %v12476_v1  ;;  %v2330_v19 = vld [vmem:[#allocation8 + $0x19c8] sm:$0xff] }
 0x2cd   :  { %8438 = vmatpush1.bf16.msra.mxu1 %v11090_v7  ;;  %8015 = vmatprep.subr.bf16.mxu0 %v11097_v5  ;;  %v2334_v7 = vld [vmem:[#allocation8 + $0x19e8] sm:$0xff]  ;;  %v11120_v5 = vcombine.low %v2321_v59, %v2325_v54  ;;  %v11145_v59 = vcombine.high %v2345_v51, %v2349_v8 }
 0x2ce   :  { %8439 = vmatprep.subr.bf16.mxu1 %v11099_v25  ;;  %v11122_v25 = vcombine.low %v2322_v23, %v2326_v38  ;;  %v11131_v2 = vcombine.high %v2330_v19, %v2334_v7  ;;  %v2353_v23 = vld [vmem:[#allocation8 + $0x1a80] sm:$0xff] }
 0x2cf   :  { %v2357_v38 = vld [vmem:[#allocation8 + $0x1aa0] sm:$0xff] }
 0x2d0   :  { %8016 = vmatpush1.bf16.msra.mxu0 %v11096_v14  ;;  %v2338_v14 = vld [vmem:[#allocation8 + $0x1a08] sm:$0xff] }
 0x2d1   :  { %8440 = vmatpush1.bf16.msra.mxu1 %v11098_v53  ;;  %8017 = vmatprep.subr.bf16.mxu0 %v11105_v40  ;;  %v2342_v53 = vld [vmem:[#allocation8 + $0x1a28] sm:$0xff]  ;;  %v11128_v40 = vcombine.low %v2329_v31, %v2333_v35  ;;  %v11153_v31 = vcombine.high %v2353_v23, %v2357_v38 }
 0x2d2   :  { %8441 = vmatprep.subr.bf16.mxu1 %v11107_v9  ;;  %v11130_v9 = vcombine.low %v2330_v19, %v2334_v7  ;;  %v11139_v34 = vcombine.high %v2338_v14, %v2342_v53  ;;  %v2361_v19 = vld [vmem:[#allocation8 + $0x1ac0] sm:$0xff] }
 0x2d3   :  { %v2365_v7 = vld [vmem:[#allocation8 + $0x1ae0] sm:$0xff] }
 0x2d4   :  { %8018 = vmatpush1.bf16.msra.mxu0 %v11104_v27  ;;  %v2346_v27 = vld [vmem:[#allocation8 + $0x1a48] sm:$0xff] }
 0x2d5   :  { %8442 = vmatpush1.bf16.msra.mxu1 %v11106_v58  ;;  %8019 = vmatprep.subr.bf16.mxu0 %v11113_v43  ;;  %v2350_v58 = vld [vmem:[#allocation8 + $0x1a68] sm:$0xff]  ;;  %v11136_v43 = vcombine.low %v2337_v49, %v2341_v36  ;;  %v11161_v49 = vcombine.high %v2361_v19, %v2365_v7 }
 0x2d6   :  { %8443 = vmatprep.subr.bf16.mxu1 %v11115_v47  ;;  %v11138_v47 = vcombine.low %v2338_v14, %v2342_v53  ;;  %v11147_v54 = vcombine.high %v2346_v27, %v2350_v58  ;;  %v2369_v14 = vld [vmem:[#allocation8 + $0x1b00] sm:$0xff] }
 0x2d7   :  { %v2373_v53 = vld [vmem:[#allocation8 + $0x1b20] sm:$0xff] }
 0x2d8   :  { %8020 = vmatpush1.bf16.msra.mxu0 %v11112_v3  ;;  %v2354_v3 = vld [vmem:[#allocation8 + $0x1a88] sm:$0xff] }
 0x2d9   :  { %8444 = vmatpush1.bf16.msra.mxu1 %v11114_v29  ;;  %8021 = vmatprep.subr.bf16.mxu0 %v11121_v45  ;;  %v2358_v29 = vld [vmem:[#allocation8 + $0x1aa8] sm:$0xff]  ;;  %v11144_v45 = vcombine.low %v2345_v51, %v2349_v8  ;;  %v11169_v51 = vcombine.high %v2369_v14, %v2373_v53 }
 0x2da   :  { %8445 = vmatprep.subr.bf16.mxu1 %v11123_v39  ;;  %v11146_v39 = vcombine.low %v2346_v27, %v2350_v58  ;;  %v11155_v35 = vcombine.high %v2354_v3, %v2358_v29  ;;  %v2377_v27 = vld [vmem:[#allocation8 + $0x1b40] sm:$0xff] }
 0x2db   :  { %v2381_v58 = vld [vmem:[#allocation8 + $0x1b60] sm:$0xff] }
 0x2dc   :  { %8022 = vmatpush1.bf16.msra.mxu0 %v11120_v5  ;;  %v2362_v5 = vld [vmem:[#allocation8 + $0x1ac8] sm:$0xff] }
 0x2dd   :  { %8446 = vmatpush1.bf16.msra.mxu1 %v11122_v25  ;;  %8023 = vmatprep.subr.bf16.mxu0 %v11129_v48  ;;  %v2366_v25 = vld [vmem:[#allocation8 + $0x1ae8] sm:$0xff]  ;;  %v11152_v48 = vcombine.low %v2353_v23, %v2357_v38  ;;  %v11177_v23 = vcombine.high %v2377_v27, %v2381_v58 }
 0x2de   :  { %8447 = vmatprep.subr.bf16.mxu1 %v11131_v2  ;;  %v11154_v2 = vcombine.low %v2354_v3, %v2358_v29  ;;  %v11163_v36 = vcombine.high %v2362_v5, %v2366_v25  ;;  %v2385_v3 = vld [vmem:[#allocation8 + $0x1b80] sm:$0xff] }
 0x2df   :  { %v2389_v29 = vld [vmem:[#allocation8 + $0x1ba0] sm:$0xff] }
 0x2e0   :  { %8024 = vmatpush1.bf16.msra.mxu0 %v11128_v40  ;;  %v2370_v40 = vld [vmem:[#allocation8 + $0x1b08] sm:$0xff] }
 0x2e1   :  { %8448 = vmatpush1.bf16.msra.mxu1 %v11130_v9  ;;  %8025 = vmatprep.subr.bf16.mxu0 %v11137_v42  ;;  %v2374_v9 = vld [vmem:[#allocation8 + $0x1b28] sm:$0xff]  ;;  %v11160_v42 = vcombine.low %v2361_v19, %v2365_v7  ;;  %v11185_v19 = vcombine.high %v2385_v3, %v2389_v29 }
 0x2e2   :  { %8449 = vmatprep.subr.bf16.mxu1 %v11139_v34  ;;  %v11162_v34 = vcombine.low %v2362_v5, %v2366_v25  ;;  %v11171_v8 = vcombine.high %v2370_v40, %v2374_v9  ;;  %v2393_v5 = vld [vmem:[#allocation8 + $0x1bc0] sm:$0xff] }
 0x2e3   :  { %v2397_v25 = vld [vmem:[#allocation8 + $0x1be0] sm:$0xff] }
 0x2e4   :  { %8026 = vmatpush1.bf16.msra.mxu0 %v11136_v43  ;;  %v2378_v43 = vld [vmem:[#allocation8 + $0x1b48] sm:$0xff] }
 0x2e5   :  { %8450 = vmatpush1.bf16.msra.mxu1 %v11138_v47  ;;  %8027 = vmatprep.subr.bf16.mxu0 %v11145_v59  ;;  %v2382_v47 = vld [vmem:[#allocation8 + $0x1b68] sm:$0xff]  ;;  %v11168_v59 = vcombine.low %v2369_v14, %v2373_v53  ;;  %v11193_v14 = vcombine.high %v2393_v5, %v2397_v25 }
 0x2e6   :  { %8451 = vmatprep.subr.bf16.mxu1 %v11147_v54  ;;  %v11170_v54 = vcombine.low %v2370_v40, %v2374_v9  ;;  %v11179_v38 = vcombine.high %v2378_v43, %v2382_v47  ;;  %v2401_v40 = vld [vmem:[#allocation8 + $0x1c00] sm:$0xff] }
 0x2e7   :  { %v2405_v9 = vld [vmem:[#allocation8 + $0x1c20] sm:$0xff] }
 0x2e8   :  { %8028 = vmatpush1.bf16.msra.mxu0 %v11144_v45  ;;  %v2386_v45 = vld [vmem:[#allocation8 + $0x1b88] sm:$0xff] }
 0x2e9   :  { %8452 = vmatpush1.bf16.msra.mxu1 %v11146_v39  ;;  %8029 = vmatprep.subr.bf16.mxu0 %v11153_v31  ;;  %v2390_v39 = vld [vmem:[#allocation8 + $0x1ba8] sm:$0xff]  ;;  %v11176_v31 = vcombine.low %v2377_v27, %v2381_v58  ;;  %v11201_v27 = vcombine.high %v2401_v40, %v2405_v9 }
 0x2ea   :  { %8453 = vmatprep.subr.bf16.mxu1 %v11155_v35  ;;  %v11178_v35 = vcombine.low %v2378_v43, %v2382_v47  ;;  %v11187_v7 = vcombine.high %v2386_v45, %v2390_v39  ;;  %v2409_v43 = vld [vmem:[#allocation8 + $0x1c40] sm:$0xff] }
 0x2eb   :  { %v2413_v47 = vld [vmem:[#allocation8 + $0x1c60] sm:$0xff] }
 0x2ec   :  { %8030 = vmatpush1.bf16.msra.mxu0 %v11152_v48  ;;  %v2394_v48 = vld [vmem:[#allocation8 + $0x1bc8] sm:$0xff] }
 0x2ed   :  { %8454 = vmatpush1.bf16.msra.mxu1 %v11154_v2  ;;  %8031 = vmatprep.subr.bf16.mxu0 %v11161_v49  ;;  %v2398_v2 = vld [vmem:[#allocation8 + $0x1be8] sm:$0xff]  ;;  %v11184_v49 = vcombine.low %v2385_v3, %v2389_v29  ;;  %v11209_v3 = vcombine.high %v2409_v43, %v2413_v47 }
 0x2ee   :  { %8455 = vmatprep.subr.bf16.mxu1 %v11163_v36  ;;  %v11186_v36 = vcombine.low %v2386_v45, %v2390_v39  ;;  %v11195_v53 = vcombine.high %v2394_v48, %v2398_v2  ;;  %v2417_v45 = vld [vmem:[#allocation8 + $0x1c80] sm:$0xff] }
 0x2ef   :  { %v2421_v39 = vld [vmem:[#allocation8 + $0x1ca0] sm:$0xff] }
 0x2f0   :  { %8032 = vmatpush1.bf16.msra.mxu0 %v11160_v42  ;;  %v2402_v42 = vld [vmem:[#allocation8 + $0x1c08] sm:$0xff] }
 0x2f1   :  { %8456 = vmatpush1.bf16.msra.mxu1 %v11162_v34  ;;  %8033 = vmatprep.subr.bf16.mxu0 %v11169_v51  ;;  %v2406_v34 = vld [vmem:[#allocation8 + $0x1c28] sm:$0xff]  ;;  %v11192_v51 = vcombine.low %v2393_v5, %v2397_v25  ;;  %v11217_v5 = vcombine.high %v2417_v45, %v2421_v39 }
 0x2f2   :  { %8457 = vmatprep.subr.bf16.mxu1 %v11171_v8  ;;  %v11194_v8 = vcombine.low %v2394_v48, %v2398_v2  ;;  %v11203_v58 = vcombine.high %v2402_v42, %v2406_v34  ;;  %v2425_v48 = vld [vmem:[#allocation8 + $0x1cc0] sm:$0xff] }
 0x2f3   :  { %v2429_v2 = vld [vmem:[#allocation8 + $0x1ce0] sm:$0xff] }
 0x2f4   :  { %8034 = vmatpush1.bf16.msra.mxu0 %v11168_v59  ;;  %v2410_v59 = vld [vmem:[#allocation8 + $0x1c48] sm:$0xff] }
 0x2f5   :  { %8458 = vmatpush1.bf16.msra.mxu1 %v11170_v54  ;;  %8035 = vmatprep.subr.bf16.mxu0 %v11177_v23  ;;  %v2414_v54 = vld [vmem:[#allocation8 + $0x1c68] sm:$0xff]  ;;  %v11200_v23 = vcombine.low %v2401_v40, %v2405_v9  ;;  %v11225_v40 = vcombine.high %v2425_v48, %v2429_v2 }
 0x2f6   :  { %8459 = vmatprep.subr.bf16.mxu1 %v11179_v38  ;;  %v11202_v38 = vcombine.low %v2402_v42, %v2406_v34  ;;  %v11211_v29 = vcombine.high %v2410_v59, %v2414_v54  ;;  %v2433_v42 = vld [vmem:[#allocation8 + $0x1d00] sm:$0xff] }
 0x2f7   :  { %v2437_v34 = vld [vmem:[#allocation8 + $0x1d20] sm:$0xff] }
 0x2f8   :  { %8036 = vmatpush1.bf16.msra.mxu0 %v11176_v31  ;;  %v2418_v31 = vld [vmem:[#allocation8 + $0x1c88] sm:$0xff] }
 0x2f9   :  { %8460 = vmatpush1.bf16.msra.mxu1 %v11178_v35  ;;  %8037 = vmatprep.subr.bf16.mxu0 %v11185_v19  ;;  %v2422_v35 = vld [vmem:[#allocation8 + $0x1ca8] sm:$0xff]  ;;  %v11208_v19 = vcombine.low %v2409_v43, %v2413_v47  ;;  %v11233_v43 = vcombine.high %v2433_v42, %v2437_v34 }
 0x2fa   :  { %8461 = vmatprep.subr.bf16.mxu1 %v11187_v7  ;;  %v11210_v7 = vcombine.low %v2410_v59, %v2414_v54  ;;  %v11219_v25 = vcombine.high %v2418_v31, %v2422_v35  ;;  %v2441_v59 = vld [vmem:[#allocation8 + $0x1d40] sm:$0xff] }
 0x2fb   :  { %v2445_v54 = vld [vmem:[#allocation8 + $0x1d60] sm:$0xff] }
 0x2fc   :  { %8038 = vmatpush1.bf16.msra.mxu0 %v11184_v49  ;;  %v2426_v49 = vld [vmem:[#allocation8 + $0x1cc8] sm:$0xff] }
 0x2fd   :  { %8462 = vmatpush1.bf16.msra.mxu1 %v11186_v36  ;;  %8039 = vmatprep.subr.bf16.mxu0 %v11193_v14  ;;  %v2430_v36 = vld [vmem:[#allocation8 + $0x1ce8] sm:$0xff]  ;;  %v11216_v14 = vcombine.low %v2417_v45, %v2421_v39  ;;  %v11241_v45 = vcombine.high %v2441_v59, %v2445_v54 }
 0x2fe   :  { %8463 = vmatprep.subr.bf16.mxu1 %v11195_v53  ;;  %v11218_v53 = vcombine.low %v2418_v31, %v2422_v35  ;;  %v11227_v9 = vcombine.high %v2426_v49, %v2430_v36  ;;  %v2449_v31 = vld [vmem:[#allocation8 + $0x1d80] sm:$0xff] }
 0x2ff   :  { %v2453_v35 = vld [vmem:[#allocation8 + $0x1da0] sm:$0xff] }
 0x300   :  { %8040 = vmatpush1.bf16.msra.mxu0 %v11192_v51  ;;  %v2434_v51 = vld [vmem:[#allocation8 + $0x1d08] sm:$0xff] }
 0x301   :  { %8464 = vmatpush1.bf16.msra.mxu1 %v11194_v8  ;;  %8062 = vmatprep.subr.bf16.mxu0 %v11201_v27  ;;  %v2438_v8 = vld [vmem:[#allocation8 + $0x1d28] sm:$0xff]  ;;  %v11224_v27 = vcombine.low %v2425_v48, %v2429_v2  ;;  %v11249_v48 = vcombine.high %v2449_v31, %v2453_v35 }
 0x302   :  { %8486 = vmatprep.subr.bf16.mxu1 %v11203_v58  ;;  %v11226_v58 = vcombine.low %v2426_v49, %v2430_v36  ;;  %v11235_v47 = vcombine.high %v2434_v51, %v2438_v8  ;;  %v2457_v49 = vld [vmem:[#allocation8 + $0x1dc0] sm:$0xff] }
 0x303   :  { %8042 = vmatmul.mubr.bf16.vlgmr.msra.gmra.mrb[32].mxu0 %v12472_v50  ;;  %v2461_v36 = vld [vmem:[#allocation8 + $0x1de0] sm:$0xff] }
 0x304   :  { %8466 = vmatmul.mubr.bf16.vlgmr.msra.gmra.mrb[32].mxu1 %v12472_v50  ;;  %8051 = vmatprep.mubr.bf16.mxu0 %v12493_v13 }
 0x305   :  { %8063 = vmatpush1.bf16.msra.mxu0 %v11200_v23  ;;  %8475 = vmatprep.mubr.bf16.mxu1 %v12493_v13  ;;  %v2442_v23 = vld [vmem:[#allocation8 + $0x1d48] sm:$0xff] }
 0x306   :  { %8487 = vmatpush1.bf16.msra.mxu1 %v11202_v38  ;;  %8064 = vmatprep.subr.bf16.mxu0 %v11209_v3  ;;  %v2446_v38 = vld [vmem:[#allocation8 + $0x1d68] sm:$0xff]  ;;  %v11232_v3 = vcombine.low %v2433_v42, %v2437_v34  ;;  %v11257_v42 = vcombine.high %v2457_v49, %v2461_v36 }
 0x307   :  { %8488 = vmatprep.subr.bf16.mxu1 %v11211_v29  ;;  %v11234_v29 = vcombine.low %v2434_v51, %v2438_v8  ;;  %v11243_v39 = vcombine.high %v2442_v23, %v2446_v38  ;;  %v2465_v51 = vld [vmem:[#allocation8 + $0x1e00] sm:$0xff] }
 0x308   :  { %v2469_v8 = vld [vmem:[#allocation8 + $0x1e20] sm:$0xff] }
 0x309   :  { %8065 = vmatpush1.bf16.msra.mxu0 %v11208_v19  ;;  %v2450_v19 = vld [vmem:[#allocation8 + $0x1d88] sm:$0xff] }
 0x30a   :  { %8489 = vmatpush1.bf16.msra.mxu1 %v11210_v7  ;;  %8066 = vmatprep.subr.bf16.mxu0 %v11217_v5  ;;  %v2454_v7 = vld [vmem:[#allocation8 + $0x1da8] sm:$0xff]  ;;  %v11240_v5 = vcombine.low %v2441_v59, %v2445_v54  ;;  %v11265_v59 = vcombine.high %v2465_v51, %v2469_v8 }
 0x30b   :  { %8052 = vmatmul.mubr.bf16.gmra.mrb[36].mxu0 %v12490_v61  ;;  %8490 = vmatprep.subr.bf16.mxu1 %v11219_v25  ;;  %v11242_v25 = vcombine.low %v2442_v23, %v2446_v38  ;;  %v11251_v2 = vcombine.high %v2450_v19, %v2454_v7  ;;  %v2473_v23 = vld [vmem:[#allocation8 + $0x1e40] sm:$0xff] }
 0x30c   :  { %8476 = vmatmul.mubr.bf16.gmra.mrb[36].mxu1 %v12490_v61  ;;  %8094 = vmatprep.mubr.bf16.mxu0 %v12488_v41  ;;  %v2477_v38 = vld [vmem:[#allocation8 + $0x1e60] sm:$0xff] }
 0x30d   :  { %8067 = vmatpush1.bf16.msra.mxu0 %v11216_v14  ;;  %8518 = vmatprep.mubr.bf16.mxu1 %v12488_v41  ;;  %v2458_v14 = vld [vmem:[#allocation8 + $0x1dc8] sm:$0xff] }
 0x30e   :  { %8491 = vmatpush1.bf16.msra.mxu1 %v11218_v53  ;;  %8068 = vmatprep.subr.bf16.mxu0 %v11225_v40  ;;  %v2462_v53 = vld [vmem:[#allocation8 + $0x1de8] sm:$0xff]  ;;  %v11248_v40 = vcombine.low %v2449_v31, %v2453_v35  ;;  %v11273_v31 = vcombine.high %v2473_v23, %v2477_v38 }
 0x30f   :  { %8492 = vmatprep.subr.bf16.mxu1 %v11227_v9  ;;  %v11250_v9 = vcombine.low %v2450_v19, %v2454_v7  ;;  %v11259_v34 = vcombine.high %v2458_v14, %v2462_v53  ;;  %v2481_v19 = vld [vmem:[#allocation8 + $0x1e80] sm:$0xff] }
 0x310   :  { %v2485_v7 = vld [vmem:[#allocation8 + $0x1ea0] sm:$0xff] }
 0x311   :  { %8069 = vmatpush1.bf16.msra.mxu0 %v11224_v27  ;;  %v2466_v27 = vld [vmem:[#allocation8 + $0x1e08] sm:$0xff] }
 0x312   :  { %8493 = vmatpush1.bf16.msra.mxu1 %v11226_v58  ;;  %8070 = vmatprep.subr.bf16.mxu0 %v11233_v43  ;;  %v2470_v58 = vld [vmem:[#allocation8 + $0x1e28] sm:$0xff]  ;;  %v11256_v43 = vcombine.low %v2457_v49, %v2461_v36  ;;  %v11281_v49 = vcombine.high %v2481_v19, %v2485_v7 }
 0x313   :  { %8494 = vmatprep.subr.bf16.mxu1 %v11235_v47  ;;  %v11258_v47 = vcombine.low %v2458_v14, %v2462_v53  ;;  %v11267_v54 = vcombine.high %v2466_v27, %v2470_v58  ;;  %v2489_v14 = vld [vmem:[#allocation8 + $0x1ec0] sm:$0xff] }
 0x314   :  { %v2493_v53 = vld [vmem:[#allocation8 + $0x1ee0] sm:$0xff] }
 0x315   :  { %8071 = vmatpush1.bf16.msra.mxu0 %v11232_v3  ;;  %v2474_v3 = vld [vmem:[#allocation8 + $0x1e48] sm:$0xff] }
 0x316   :  { %8495 = vmatpush1.bf16.msra.mxu1 %v11234_v29  ;;  %8072 = vmatprep.subr.bf16.mxu0 %v11241_v45  ;;  %v2478_v29 = vld [vmem:[#allocation8 + $0x1e68] sm:$0xff]  ;;  %v11264_v45 = vcombine.low %v2465_v51, %v2469_v8  ;;  %v11289_v51 = vcombine.high %v2489_v14, %v2493_v53 }
 0x317   :  { %8496 = vmatprep.subr.bf16.mxu1 %v11243_v39  ;;  %v11266_v39 = vcombine.low %v2466_v27, %v2470_v58  ;;  %v11275_v35 = vcombine.high %v2474_v3, %v2478_v29  ;;  %v2497_v27 = vld [vmem:[#allocation8 + $0x1f00] sm:$0xff] }
 0x318   :  { %v2501_v58 = vld [vmem:[#allocation8 + $0x1f20] sm:$0xff] }
 0x319   :  { %8073 = vmatpush1.bf16.msra.mxu0 %v11240_v5  ;;  %v2482_v5 = vld [vmem:[#allocation8 + $0x1e88] sm:$0xff] }
 0x31a   :  { %8497 = vmatpush1.bf16.msra.mxu1 %v11242_v25  ;;  %8074 = vmatprep.subr.bf16.mxu0 %v11249_v48  ;;  %v2486_v25 = vld [vmem:[#allocation8 + $0x1ea8] sm:$0xff]  ;;  %v11272_v48 = vcombine.low %v2473_v23, %v2477_v38  ;;  %v11297_v23 = vcombine.high %v2497_v27, %v2501_v58 }
 0x31b   :  { %8498 = vmatprep.subr.bf16.mxu1 %v11251_v2  ;;  %v11274_v2 = vcombine.low %v2474_v3, %v2478_v29  ;;  %v11283_v36 = vcombine.high %v2482_v5, %v2486_v25  ;;  %v2505_v3 = vld [vmem:[#allocation8 + $0x1f40] sm:$0xff] }
 0x31c   :  { %v2509_v29 = vld [vmem:[#allocation8 + $0x1f60] sm:$0xff] }
 0x31d   :  { %8075 = vmatpush1.bf16.msra.mxu0 %v11248_v40  ;;  %v2490_v40 = vld [vmem:[#allocation8 + $0x1ec8] sm:$0xff] }
 0x31e   :  { %8499 = vmatpush1.bf16.msra.mxu1 %v11250_v9  ;;  %8076 = vmatprep.subr.bf16.mxu0 %v11257_v42  ;;  %v2494_v9 = vld [vmem:[#allocation8 + $0x1ee8] sm:$0xff]  ;;  %v11280_v42 = vcombine.low %v2481_v19, %v2485_v7  ;;  %v11305_v19 = vcombine.high %v2505_v3, %v2509_v29 }
 0x31f   :  { %8500 = vmatprep.subr.bf16.mxu1 %v11259_v34  ;;  %v11282_v34 = vcombine.low %v2482_v5, %v2486_v25  ;;  %v11291_v8 = vcombine.high %v2490_v40, %v2494_v9  ;;  %v2513_v5 = vld [vmem:[#allocation8 + $0x1f80] sm:$0xff] }
 0x320   :  { %v2517_v25 = vld [vmem:[#allocation8 + $0x1fa0] sm:$0xff] }
 0x321   :  { %8077 = vmatpush1.bf16.msra.mxu0 %v11256_v43  ;;  %v2498_v43 = vld [vmem:[#allocation8 + $0x1f08] sm:$0xff] }
 0x322   :  { %8501 = vmatpush1.bf16.msra.mxu1 %v11258_v47  ;;  %8078 = vmatprep.subr.bf16.mxu0 %v11265_v59  ;;  %v2502_v47 = vld [vmem:[#allocation8 + $0x1f28] sm:$0xff]  ;;  %v11288_v59 = vcombine.low %v2489_v14, %v2493_v53  ;;  %v11313_v14 = vcombine.high %v2513_v5, %v2517_v25 }
 0x323   :  { %8502 = vmatprep.subr.bf16.mxu1 %v11267_v54  ;;  %v11290_v54 = vcombine.low %v2490_v40, %v2494_v9  ;;  %v11299_v38 = vcombine.high %v2498_v43, %v2502_v47  ;;  %v2521_v40 = vld [vmem:[#allocation8 + $0x1fc0] sm:$0xff] }
 0x324   :  { %v2525_v9 = vld [vmem:[#allocation8 + $0x1fe0] sm:$0xff] }
 0x325   :  { %8079 = vmatpush1.bf16.msra.mxu0 %v11264_v45  ;;  %v2506_v45 = vld [vmem:[#allocation8 + $0x1f48] sm:$0xff] }
 0x326   :  { %8503 = vmatpush1.bf16.msra.mxu1 %v11266_v39  ;;  %8080 = vmatprep.subr.bf16.mxu0 %v11273_v31  ;;  %v2510_v39 = vld [vmem:[#allocation8 + $0x1f68] sm:$0xff]  ;;  %v11296_v31 = vcombine.low %v2497_v27, %v2501_v58  ;;  %v11321_v27 = vcombine.high %v2521_v40, %v2525_v9 }
 0x327   :  { %8504 = vmatprep.subr.bf16.mxu1 %v11275_v35  ;;  %v11298_v35 = vcombine.low %v2498_v43, %v2502_v47  ;;  %v11307_v7 = vcombine.high %v2506_v45, %v2510_v39  ;;  %v1507_v43 = vld [vmem:[#allocation8 + $0x10] sm:$0xff] }
 0x328   :  { %v1511_v47 = vld [vmem:[#allocation8 + $0x30] sm:$0xff] }
 0x329   :  { %8081 = vmatpush1.bf16.msra.mxu0 %v11272_v48  ;;  %v2514_v48 = vld [vmem:[#allocation8 + $0x1f88] sm:$0xff] }
 0x32a   :  { %8505 = vmatpush1.bf16.msra.mxu1 %v11274_v2  ;;  %8082 = vmatprep.subr.bf16.mxu0 %v11281_v49  ;;  %v2518_v2 = vld [vmem:[#allocation8 + $0x1fa8] sm:$0xff]  ;;  %v11304_v49 = vcombine.low %v2505_v3, %v2509_v29  ;;  %v10309_v3 = vcombine.high %v1507_v43, %v1511_v47 }
 0x32b   :  { %8506 = vmatprep.subr.bf16.mxu1 %v11283_v36  ;;  %v11306_v36 = vcombine.low %v2506_v45, %v2510_v39  ;;  %v11315_v53 = vcombine.high %v2514_v48, %v2518_v2  ;;  %v1515_v45 = vld [vmem:[#allocation8 + $0x50] sm:$0xff] }
 0x32c   :  { %v1519_v39 = vld [vmem:[#allocation8 + $0x70] sm:$0xff] }
 0x32d   :  { %8083 = vmatpush1.bf16.msra.mxu0 %v11280_v42  ;;  %v2522_v42 = vld [vmem:[#allocation8 + $0x1fc8] sm:$0xff] }
 0x32e   :  { %8507 = vmatpush1.bf16.msra.mxu1 %v11282_v34  ;;  %8084 = vmatprep.subr.bf16.mxu0 %v11289_v51  ;;  %v2526_v34 = vld [vmem:[#allocation8 + $0x1fe8] sm:$0xff]  ;;  %v11312_v51 = vcombine.low %v2513_v5, %v2517_v25  ;;  %v10317_v5 = vcombine.high %v1515_v45, %v1519_v39 }
 0x32f   :  { %8508 = vmatprep.subr.bf16.mxu1 %v11291_v8  ;;  %v11314_v8 = vcombine.low %v2514_v48, %v2518_v2  ;;  %v11323_v58 = vcombine.high %v2522_v42, %v2526_v34  ;;  %v1523_v48 = vld [vmem:[#allocation8 + $0x90] sm:$0xff] }
 0x330   :  { %v1527_v2 = vld [vmem:[#allocation8 + $0xb0] sm:$0xff] }
 0x331   :  { %8085 = vmatpush1.bf16.msra.mxu0 %v11288_v59  ;;  %v1508_v59 = vld [vmem:[#allocation8 + $0x18] sm:$0xff] }
 0x332   :  { %8509 = vmatpush1.bf16.msra.mxu1 %v11290_v54  ;;  %8086 = vmatprep.subr.bf16.mxu0 %v11297_v23  ;;  %v1512_v54 = vld [vmem:[#allocation8 + $0x38] sm:$0xff]  ;;  %v11320_v23 = vcombine.low %v2521_v40, %v2525_v9  ;;  %v10325_v40 = vcombine.high %v1523_v48, %v1527_v2 }
 0x333   :  { %8510 = vmatprep.subr.bf16.mxu1 %v11299_v38  ;;  %v11322_v38 = vcombine.low %v2522_v42, %v2526_v34  ;;  %v10311_v29 = vcombine.high %v1508_v59, %v1512_v54  ;;  %v1531_v42 = vld [vmem:[#allocation8 + $0xd0] sm:$0xff] }
 0x334   :  { %v1535_v34 = vld [vmem:[#allocation8 + $0xf0] sm:$0xff] }
 0x335   :  { %8087 = vmatpush1.bf16.msra.mxu0 %v11296_v31  ;;  %v1516_v31 = vld [vmem:[#allocation8 + $0x58] sm:$0xff] }
 0x336   :  { %8511 = vmatpush1.bf16.msra.mxu1 %v11298_v35  ;;  %8088 = vmatprep.subr.bf16.mxu0 %v11305_v19  ;;  %v1520_v35 = vld [vmem:[#allocation8 + $0x78] sm:$0xff]  ;;  %v10308_v19 = vcombine.low %v1507_v43, %v1511_v47  ;;  %v10333_v43 = vcombine.high %v1531_v42, %v1535_v34 }
 0x337   :  { %8512 = vmatprep.subr.bf16.mxu1 %v11307_v7  ;;  %v10310_v7 = vcombine.low %v1508_v59, %v1512_v54  ;;  %v10319_v25 = vcombine.high %v1516_v31, %v1520_v35  ;;  %v1539_v59 = vld [vmem:[#allocation8 + $0x110] sm:$0xff] }
 0x338   :  { %v1543_v54 = vld [vmem:[#allocation8 + $0x130] sm:$0xff] }
 0x339   :  { %8089 = vmatpush1.bf16.msra.mxu0 %v11304_v49  ;;  %v1524_v49 = vld [vmem:[#allocation8 + $0x98] sm:$0xff] }
 0x33a   :  { %8513 = vmatpush1.bf16.msra.mxu1 %v11306_v36  ;;  %8090 = vmatprep.subr.bf16.mxu0 %v11313_v14  ;;  %v1528_v36 = vld [vmem:[#allocation8 + $0xb8] sm:$0xff]  ;;  %v10316_v14 = vcombine.low %v1515_v45, %v1519_v39  ;;  %v10341_v45 = vcombine.high %v1539_v59, %v1543_v54 }
 0x33b   :  { %8514 = vmatprep.subr.bf16.mxu1 %v11315_v53  ;;  %v10318_v53 = vcombine.low %v1516_v31, %v1520_v35  ;;  %v10327_v9 = vcombine.high %v1524_v49, %v1528_v36  ;;  %v1547_v31 = vld [vmem:[#allocation8 + $0x150] sm:$0xff] }
 0x33c   :  { %v1551_v35 = vld [vmem:[#allocation8 + $0x170] sm:$0xff] }
 0x33d   :  { %8091 = vmatpush1.bf16.msra.mxu0 %v11312_v51  ;;  %v1532_v51 = vld [vmem:[#allocation8 + $0xd8] sm:$0xff] }
 0x33e   :  { %8515 = vmatpush1.bf16.msra.mxu1 %v11314_v8  ;;  %8092 = vmatprep.subr.bf16.mxu0 %v11321_v27  ;;  %v1536_v8 = vld [vmem:[#allocation8 + $0xf8] sm:$0xff]  ;;  %v10324_v27 = vcombine.low %v1523_v48, %v1527_v2  ;;  %v10349_v48 = vcombine.high %v1547_v31, %v1551_v35 }
 0x33f   :  { %8516 = vmatprep.subr.bf16.mxu1 %v11323_v58  ;;  %v10326_v58 = vcombine.low %v1524_v49, %v1528_v36  ;;  %v10335_v47 = vcombine.high %v1532_v51, %v1536_v8  ;;  %v1559_v49 = vld [vmem:[#allocation8 + $0x1b0] sm:$0xff]  ;;  %v1556_v36 = vld [vmem:[#allocation8 + $0x198] sm:$0xff] }
 0x341   :  { %8093 = vmatpush1.bf16.msra.mxu0 %v11320_v23  ;;  %v1540_v23 = vld [vmem:[#allocation8 + $0x118] sm:$0xff] }
 0x342   :  { %8517 = vmatpush1.bf16.msra.mxu1 %v11322_v38  ;;  %8539 = vmatprep.subr.bf16.mxu0 %v10309_v3  ;;  %v1544_v38 = vld [vmem:[#allocation8 + $0x138] sm:$0xff]  ;;  %v10332_v3 = vcombine.low %v1531_v42, %v1535_v34  ;;  %v1563_v34 = vld [vmem:[#allocation8 + $0x1d0] sm:$0xff] }
 0x343   :  { %8963 = vmatprep.subr.bf16.mxu1 %v10311_v29  ;;  %v10334_v29 = vcombine.low %v1532_v51, %v1536_v8  ;;  %v10343_v39 = vcombine.high %v1540_v23, %v1544_v38  ;;  %v1567_v51 = vld [vmem:[#allocation8 + $0x1f0] sm:$0xff]  ;;  %v1564_v8 = vld [vmem:[#allocation8 + $0x1d8] sm:$0xff] }
 0x344   :  { %8095 = vmatmul.mubr.bf16.vlgmr.msra.gmra.mrb[32].mxu0 %v12486_v30 }
 0x345   :  { %8519 = vmatmul.mubr.bf16.vlgmr.msra.gmra.mrb[32].mxu1 %v12486_v30  ;;  %8104 = vmatprep.mubr.bf16.mxu0 %v12500_v10 }
 0x346   :  { %8528 = vmatprep.mubr.bf16.mxu1 %v12500_v10  ;;  %8540 = vmatpush1.bf16.msra.mxu0 %v10308_v19  ;;  %v1548_v19 = vld [vmem:[#allocation8 + $0x158] sm:$0xff] }
 0x347   :  { %8964 = vmatpush1.bf16.msra.mxu1 %v10310_v7  ;;  %8541 = vmatprep.subr.bf16.mxu0 %v10317_v5  ;;  %v1552_v7 = vld [vmem:[#allocation8 + $0x178] sm:$0xff]  ;;  %v10340_v5 = vcombine.low %v1539_v59, %v1543_v54  ;;  %v1571_v54 = vld [vmem:[#allocation8 + $0x210] sm:$0xff] }
 0x348   :  { %8965 = vmatprep.subr.bf16.mxu1 %v10319_v25  ;;  %v10342_v25 = vcombine.low %v1540_v23, %v1544_v38  ;;  %v10351_v2 = vcombine.high %v1548_v19, %v1552_v7  ;;  %v1575_v23 = vld [vmem:[#allocation8 + $0x230] sm:$0xff]  ;;  %v1572_v38 = vld [vmem:[#allocation8 + $0x218] sm:$0xff] }
 0x34a   :  { %8542 = vmatpush1.bf16.msra.mxu0 %v10316_v14  ;;  %v1560_v14 = vld [vmem:[#allocation8 + $0x1b8] sm:$0xff] }
 0x34b   :  { %8966 = vmatpush1.bf16.msra.mxu1 %v10318_v53  ;;  %8543 = vmatprep.subr.bf16.mxu0 %v10325_v40  ;;  %v10348_v53 = vcombine.low %v1547_v31, %v1551_v35  ;;  %v10350_v40 = vcombine.low %v1548_v19, %v1552_v7  ;;  %v10359_v42 = vcombine.high %v1556_v36, %v1560_v14  ;;  %v1579_v35 = vld [vmem:[#allocation8 + $0x250] sm:$0xff]  ;;  %v1580_v7 = vld [vmem:[#allocation8 + $0x258] sm:$0xff] }
 0x34c   :  { %8105 = vmatmul.mubr.bf16.gmra.mrb[36].mxu0 %v12498_v57  ;;  %8967 = vmatprep.subr.bf16.mxu1 %v10327_v9  ;;  %v1583_v19 = vld [vmem:[#allocation8 + $0x270] sm:$0xff] }
 0x34d   :  { %8529 = vmatmul.mubr.bf16.gmra.mrb[36].mxu1 %v12498_v57  ;;  %8571 = vmatprep.mubr.bf16.mxu0 %v12256_v55 }
 0x34e   :  { %8544 = vmatpush1.bf16.msra.mxu0 %v10324_v27  ;;  %8995 = vmatprep.mubr.bf16.mxu1 %v12256_v55  ;;  %v1555_v55 = vld [vmem:[#allocation8 + $0x190] sm:$0xff]  ;;  %v1568_v27 = vld [vmem:[#allocation8 + $0x1f8] sm:$0xff] }
 0x34f   :  { %8968 = vmatpush1.bf16.msra.mxu1 %v10326_v58  ;;  %8545 = vmatprep.subr.bf16.mxu0 %v10333_v43  ;;  %v10357_v9 = vcombine.high %v1555_v55, %v1559_v49  ;;  %v10356_v58 = vcombine.low %v1555_v55, %v1559_v49  ;;  %v10358_v43 = vcombine.low %v1556_v36, %v1560_v14  ;;  %v1587_v49 = vld [vmem:[#allocation8 + $0x290] sm:$0xff]  ;;  %v1588_v14 = vld [vmem:[#allocation8 + $0x298] sm:$0xff] }
 0x350   :  { %8969 = vmatprep.subr.bf16.mxu1 %v10335_v47  ;;  %v10365_v47 = vcombine.high %v1563_v34, %v1567_v51  ;;  %v10367_v59 = vcombine.high %v1564_v8, %v1568_v27  ;;  %v1591_v36 = vld [vmem:[#allocation8 + $0x2b0] sm:$0xff] }
 0x352   :  { %8546 = vmatpush1.bf16.msra.mxu0 %v10332_v3  ;;  %v1576_v3 = vld [vmem:[#allocation8 + $0x238] sm:$0xff] }
 0x353   :  { %8970 = vmatpush1.bf16.msra.mxu1 %v10334_v29  ;;  %8547 = vmatprep.subr.bf16.mxu0 %v10341_v45  ;;  %v10364_v29 = vcombine.low %v1563_v34, %v1567_v51  ;;  %v10366_v45 = vcombine.low %v1564_v8, %v1568_v27  ;;  %v10375_v31 = vcombine.high %v1572_v38, %v1576_v3  ;;  %v1595_v51 = vld [vmem:[#allocation8 + $0x2d0] sm:$0xff]  ;;  %v1596_v27 = vld [vmem:[#allocation8 + $0x2d8] sm:$0xff] }
 0x354   :  { %8971 = vmatprep.subr.bf16.mxu1 %v10343_v39  ;;  %v10373_v39 = vcombine.high %v1571_v54, %v1575_v23  ;;  %v1599_v8 = vld [vmem:[#allocation8 + $0x2f0] sm:$0xff] }
 0x356   :  { %8548 = vmatpush1.bf16.msra.mxu0 %v10340_v5  ;;  %v1584_v5 = vld [vmem:[#allocation8 + $0x278] sm:$0xff] }
 0x357   :  { %8972 = vmatpush1.bf16.msra.mxu1 %v10342_v25  ;;  %8549 = vmatprep.subr.bf16.mxu0 %v10349_v48  ;;  %v10372_v25 = vcombine.low %v1571_v54, %v1575_v23  ;;  %v10374_v48 = vcombine.low %v1572_v38, %v1576_v3  ;;  %v10383_v55 = vcombine.high %v1580_v7, %v1584_v5  ;;  %v1603_v23 = vld [vmem:[#allocation8 + $0x310] sm:$0xff]  ;;  %v1604_v3 = vld [vmem:[#allocation8 + $0x318] sm:$0xff] }
 0x358   :  { %8973 = vmatprep.subr.bf16.mxu1 %v10351_v2  ;;  %v10381_v2 = vcombine.high %v1579_v35, %v1583_v19  ;;  %v1607_v38 = vld [vmem:[#allocation8 + $0x330] sm:$0xff] }
 0x35a   :  { %8550 = vmatpush1.bf16.msra.mxu0 %v10348_v53  ;;  %v1592_v53 = vld [vmem:[#allocation8 + $0x2b8] sm:$0xff] }
 0x35b   :  { %8974 = vmatpush1.bf16.msra.mxu1 %v10350_v40  ;;  %8551 = vmatprep.subr.bf16.mxu0 %v10357_v9  ;;  %v10380_v40 = vcombine.low %v1579_v35, %v1583_v19  ;;  %v10382_v9 = vcombine.low %v1580_v7, %v1584_v5  ;;  %v10391_v34 = vcombine.high %v1588_v14, %v1592_v53  ;;  %v1611_v19 = vld [vmem:[#allocation8 + $0x350] sm:$0xff]  ;;  %v1612_v5 = vld [vmem:[#allocation8 + $0x358] sm:$0xff] }
 0x35c   :  { %8975 = vmatprep.subr.bf16.mxu1 %v10359_v42  ;;  %v10389_v42 = vcombine.high %v1587_v49, %v1591_v36  ;;  %v1615_v7 = vld [vmem:[#allocation8 + $0x370] sm:$0xff] }
 0x35e   :  { %8552 = vmatpush1.bf16.msra.mxu0 %v10356_v58  ;;  %v1600_v58 = vld [vmem:[#allocation8 + $0x2f8] sm:$0xff] }
 0x35f   :  { %8976 = vmatpush1.bf16.msra.mxu1 %v10358_v43  ;;  %8553 = vmatprep.subr.bf16.mxu0 %v10365_v47  ;;  %v10388_v43 = vcombine.low %v1587_v49, %v1591_v36  ;;  %v10390_v47 = vcombine.low %v1588_v14, %v1592_v53  ;;  %v10399_v54 = vcombine.high %v1596_v27, %v1600_v58  ;;  %v1619_v36 = vld [vmem:[#allocation8 + $0x390] sm:$0xff]  ;;  %v1620_v53 = vld [vmem:[#allocation8 + $0x398] sm:$0xff] }
 0x360   :  { %8977 = vmatprep.subr.bf16.mxu1 %v10367_v59  ;;  %v10397_v59 = vcombine.high %v1595_v51, %v1599_v8  ;;  %v1623_v14 = vld [vmem:[#allocation8 + $0x3b0] sm:$0xff] }
 0x362   :  { %8554 = vmatpush1.bf16.msra.mxu0 %v10364_v29  ;;  %v1608_v29 = vld [vmem:[#allocation8 + $0x338] sm:$0xff] }
 0x363   :  { %8978 = vmatpush1.bf16.msra.mxu1 %v10366_v45  ;;  %8555 = vmatprep.subr.bf16.mxu0 %v10373_v39  ;;  %v10396_v45 = vcombine.low %v1595_v51, %v1599_v8  ;;  %v10398_v39 = vcombine.low %v1596_v27, %v1600_v58  ;;  %v10407_v35 = vcombine.high %v1604_v3, %v1608_v29  ;;  %v1627_v8 = vld [vmem:[#allocation8 + $0x3d0] sm:$0xff]  ;;  %v1628_v58 = vld [vmem:[#allocation8 + $0x3d8] sm:$0xff] }
 0x364   :  { %8979 = vmatprep.subr.bf16.mxu1 %v10375_v31  ;;  %v10405_v31 = vcombine.high %v1603_v23, %v1607_v38  ;;  %v1631_v27 = vld [vmem:[#allocation8 + $0x3f0] sm:$0xff] }
 0x366   :  { %8556 = vmatpush1.bf16.msra.mxu0 %v10372_v25  ;;  %v1616_v25 = vld [vmem:[#allocation8 + $0x378] sm:$0xff] }
 0x367   :  { %8980 = vmatpush1.bf16.msra.mxu1 %v10374_v48  ;;  %8557 = vmatprep.subr.bf16.mxu0 %v10381_v2  ;;  %v10404_v48 = vcombine.low %v1603_v23, %v1607_v38  ;;  %v10406_v2 = vcombine.low %v1604_v3, %v1608_v29  ;;  %v10415_v49 = vcombine.high %v1612_v5, %v1616_v25  ;;  %v1635_v38 = vld [vmem:[#allocation8 + $0x410] sm:$0xff]  ;;  %v1636_v29 = vld [vmem:[#allocation8 + $0x418] sm:$0xff] }
 0x368   :  { %8981 = vmatprep.subr.bf16.mxu1 %v10383_v55  ;;  %v10413_v55 = vcombine.high %v1611_v19, %v1615_v7  ;;  %v1639_v3 = vld [vmem:[#allocation8 + $0x430] sm:$0xff] }
 0x36a   :  { %8558 = vmatpush1.bf16.msra.mxu0 %v10380_v40  ;;  %v1624_v40 = vld [vmem:[#allocation8 + $0x3b8] sm:$0xff] }
 0x36b   :  { %8982 = vmatpush1.bf16.msra.mxu1 %v10382_v9  ;;  %8559 = vmatprep.subr.bf16.mxu0 %v10389_v42  ;;  %v10412_v9 = vcombine.low %v1611_v19, %v1615_v7  ;;  %v10414_v42 = vcombine.low %v1612_v5, %v1616_v25  ;;  %v10423_v51 = vcombine.high %v1620_v53, %v1624_v40  ;;  %v1643_v7 = vld [vmem:[#allocation8 + $0x450] sm:$0xff]  ;;  %v1644_v25 = vld [vmem:[#allocation8 + $0x458] sm:$0xff] }
 0x36c   :  { %8983 = vmatprep.subr.bf16.mxu1 %v10391_v34  ;;  %v10421_v34 = vcombine.high %v1619_v36, %v1623_v14  ;;  %v1647_v5 = vld [vmem:[#allocation8 + $0x470] sm:$0xff] }
 0x36e   :  { %8560 = vmatpush1.bf16.msra.mxu0 %v10388_v43  ;;  %v1632_v43 = vld [vmem:[#allocation8 + $0x3f8] sm:$0xff] }
 0x36f   :  { %8984 = vmatpush1.bf16.msra.mxu1 %v10390_v47  ;;  %8561 = vmatprep.subr.bf16.mxu0 %v10397_v59  ;;  %v10420_v47 = vcombine.low %v1619_v36, %v1623_v14  ;;  %v10422_v59 = vcombine.low %v1620_v53, %v1624_v40  ;;  %v10431_v23 = vcombine.high %v1628_v58, %v1632_v43  ;;  %v1651_v14 = vld [vmem:[#allocation8 + $0x490] sm:$0xff]  ;;  %v1652_v40 = vld [vmem:[#allocation8 + $0x498] sm:$0xff] }
 0x370   :  { %8985 = vmatprep.subr.bf16.mxu1 %v10399_v54  ;;  %v10429_v54 = vcombine.high %v1627_v8, %v1631_v27  ;;  %v1655_v53 = vld [vmem:[#allocation8 + $0x4b0] sm:$0xff] }
 0x372   :  { %8562 = vmatpush1.bf16.msra.mxu0 %v10396_v45  ;;  %v1640_v45 = vld [vmem:[#allocation8 + $0x438] sm:$0xff] }
 0x373   :  { %8986 = vmatpush1.bf16.msra.mxu1 %v10398_v39  ;;  %8563 = vmatprep.subr.bf16.mxu0 %v10405_v31  ;;  %v10428_v39 = vcombine.low %v1627_v8, %v1631_v27  ;;  %v10430_v31 = vcombine.low %v1628_v58, %v1632_v43  ;;  %v10439_v19 = vcombine.high %v1636_v29, %v1640_v45  ;;  %v1659_v27 = vld [vmem:[#allocation8 + $0x4d0] sm:$0xff]  ;;  %v1660_v43 = vld [vmem:[#allocation8 + $0x4d8] sm:$0xff] }
 0x374   :  { %8987 = vmatprep.subr.bf16.mxu1 %v10407_v35  ;;  %v10437_v35 = vcombine.high %v1635_v38, %v1639_v3  ;;  %v1663_v58 = vld [vmem:[#allocation8 + $0x4f0] sm:$0xff] }
 0x376   :  { %8564 = vmatpush1.bf16.msra.mxu0 %v10404_v48  ;;  %v1648_v48 = vld [vmem:[#allocation8 + $0x478] sm:$0xff] }
 0x377   :  { %8988 = vmatpush1.bf16.msra.mxu1 %v10406_v2  ;;  %8565 = vmatprep.subr.bf16.mxu0 %v10413_v55  ;;  %v10436_v2 = vcombine.low %v1635_v38, %v1639_v3  ;;  %v10438_v55 = vcombine.low %v1636_v29, %v1640_v45  ;;  %v10447_v36 = vcombine.high %v1644_v25, %v1648_v48  ;;  %v1671_v38 = vld [vmem:[#allocation8 + $0x530] sm:$0xff]  ;;  %v1668_v3 = vld [vmem:[#allocation8 + $0x518] sm:$0xff] }
 0x378   :  { %8989 = vmatprep.subr.bf16.mxu1 %v10415_v49  ;;  %v10445_v49 = vcombine.high %v1643_v7, %v1647_v5  ;;  %v1672_v29 = vld [vmem:[#allocation8 + $0x538] sm:$0xff]  ;;  %v10460_v45 = vcombine.low %v1659_v27, %v1663_v58 }
 0x37a   :  { %8566 = vmatpush1.bf16.msra.mxu0 %v10412_v9  ;;  %v1656_v9 = vld [vmem:[#allocation8 + $0x4b8] sm:$0xff] }
 0x37b   :  { %8990 = vmatpush1.bf16.msra.mxu1 %v10414_v42  ;;  %8567 = vmatprep.subr.bf16.mxu0 %v10421_v34  ;;  %v10444_v42 = vcombine.low %v1643_v7, %v1647_v5  ;;  %v10446_v34 = vcombine.low %v1644_v25, %v1648_v48  ;;  %v10455_v8 = vcombine.high %v1652_v40, %v1656_v9  ;;  %v1679_v7 = vld [vmem:[#allocation8 + $0x570] sm:$0xff]  ;;  %v1676_v5 = vld [vmem:[#allocation8 + $0x558] sm:$0xff] }
 0x37c   :  { %8991 = vmatprep.subr.bf16.mxu1 %v10423_v51  ;;  %v10453_v51 = vcombine.high %v1651_v14, %v1655_v53  ;;  %v1680_v25 = vld [vmem:[#allocation8 + $0x578] sm:$0xff]  ;;  %v10470_v48 = vcombine.low %v1668_v3, %v1672_v29 }
 0x37e   :  { %8568 = vmatpush1.bf16.msra.mxu0 %v10420_v47  ;;  %v1664_v47 = vld [vmem:[#allocation8 + $0x4f8] sm:$0xff] }
 0x37f   :  { %8992 = vmatpush1.bf16.msra.mxu1 %v10422_v59  ;;  %8569 = vmatprep.subr.bf16.mxu0 %v10429_v54  ;;  %v10454_v59 = vcombine.low %v1652_v40, %v1656_v9  ;;  %v10461_v54 = vcombine.high %v1659_v27, %v1663_v58  ;;  %v10478_v40 = vcombine.low %v1676_v5, %v1680_v25  ;;  %v1696_v27 = vld [vmem:[#allocation8 + $0x5f8] sm:$0xff] }
 0x380   :  { %8993 = vmatprep.subr.bf16.mxu1 %v10431_v23  ;;  %v1667_v23 = vld [vmem:[#allocation8 + $0x510] sm:$0xff] }
 0x382   :  { %8570 = vmatpush1.bf16.msra.mxu0 %v10428_v39  ;;  %v10462_v39 = vcombine.low %v1660_v43, %v1664_v47 }
 0x383   :  { %8994 = vmatpush1.bf16.msra.mxu1 %v10430_v31  ;;  %8592 = vmatprep.subr.bf16.mxu0 %v10437_v35  ;;  %v10469_v31 = vcombine.high %v1667_v23, %v1671_v38  ;;  %v10471_v35 = vcombine.high %v1668_v3, %v1672_v29 }
 0x384   :  { %9016 = vmatprep.subr.bf16.mxu1 %v10439_v19  ;;  %v1675_v19 = vld [vmem:[#allocation8 + $0x550] sm:$0xff] }
 0x385   :  { %8572 = vmatmul.mubr.bf16.vlgmr.msra.gmra.mrb[40].mxu0 %v12253_v0 }
 0x386   :  { %8996 = vmatmul.mubr.bf16.vlgmr.msra.gmra.mrb[40].mxu1 %v12253_v0  ;;  %8581 = vmatprep.mubr.bf16.mxu0 %v12281_v46  ;;  %v10452_v0 = vcombine.low %v1651_v14, %v1655_v53  ;;  %v1688_v14 = vld [vmem:[#allocation8 + $0x5b8] sm:$0xff]  ;;  %v10476_v53 = vcombine.low %v1675_v19, %v1679_v7 }
 0x387   :  { %8593 = vmatpush1.bf16.msra.mxu0 %v10436_v2  ;;  %9005 = vmatprep.mubr.bf16.mxu1 %v12281_v46  ;;  %v10463_v46 = vcombine.high %v1660_v43, %v1664_v47  ;;  %v10477_v2 = vcombine.high %v1675_v19, %v1679_v7  ;;  %v1712_v19 = vld [vmem:[#allocation8 + $0x678] sm:$0xff] }
 0x388   :  { %9017 = vmatpush1.bf16.msra.mxu1 %v10438_v55  ;;  %8594 = vmatprep.subr.bf16.mxu0 %v10445_v49  ;;  %v10479_v55 = vcombine.high %v1676_v5, %v1680_v25  ;;  %v1687_v49 = vld [vmem:[#allocation8 + $0x5b0] sm:$0xff] }
 0x389   :  { %9018 = vmatprep.subr.bf16.mxu1 %v10447_v36  ;;  %v1684_v36 = vld [vmem:[#allocation8 + $0x598] sm:$0xff] }
 0x38a   :  { %v10486_v43 = vcombine.low %v1684_v36, %v1688_v14 }
 0x38b   :  { %8595 = vmatpush1.bf16.msra.mxu0 %v10444_v42  ;;  %v10487_v42 = vcombine.high %v1684_v36, %v1688_v14 }
 0x38c   :  { %9019 = vmatpush1.bf16.msra.mxu1 %v10446_v34  ;;  %8596 = vmatprep.subr.bf16.mxu0 %v10453_v51  ;;  %v1691_v34 = vld [vmem:[#allocation8 + $0x5d0] sm:$0xff] }
 0x38d   :  { %8582 = vmatmul.mubr.bf16.gmra.mrb[44].mxu0 %v12278_v32  ;;  %9020 = vmatprep.subr.bf16.mxu1 %v10455_v8  ;;  %v1695_v51 = vld [vmem:[#allocation8 + $0x5f0] sm:$0xff]  ;;  %v1692_v8 = vld [vmem:[#allocation8 + $0x5d8] sm:$0xff] }
 0x38e   :  { %9006 = vmatmul.mubr.bf16.gmra.mrb[44].mxu1 %v12278_v32  ;;  %8624 = vmatprep.mubr.bf16.mxu0 %v12275_v12  ;;  %v10468_v32 = vcombine.low %v1667_v23, %v1671_v38  ;;  %v10493_v47 = vcombine.high %v1691_v34, %v1695_v51  ;;  %v1704_v23 = vld [vmem:[#allocation8 + $0x638] sm:$0xff]  ;;  %v10492_v38 = vcombine.low %v1691_v34, %v1695_v51 }
 0x38f   :  { %8597 = vmatpush1.bf16.msra.mxu0 %v10452_v0  ;;  %9048 = vmatprep.mubr.bf16.mxu1 %v12275_v12  ;;  %v1683_v12 = vld [vmem:[#allocation8 + $0x590] sm:$0xff]  ;;  %v10495_v0 = vcombine.high %v1692_v8, %v1696_v27  ;;  %v10494_v3 = vcombine.low %v1692_v8, %v1696_v27  ;;  %v1728_v34 = vld [vmem:[#allocation8 + $0x6f8] sm:$0xff] }
 0x390   :  { %9021 = vmatpush1.bf16.msra.mxu1 %v10454_v59  ;;  %8598 = vmatprep.subr.bf16.mxu0 %v10461_v54  ;;  %v10485_v9 = vcombine.high %v1683_v12, %v1687_v49  ;;  %v10484_v58 = vcombine.low %v1683_v12, %v1687_v49  ;;  %v1699_v59 = vld [vmem:[#allocation8 + $0x610] sm:$0xff]  ;;  %v1720_v12 = vld [vmem:[#allocation8 + $0x6b8] sm:$0xff] }
 0x391   :  { %9022 = vmatprep.subr.bf16.mxu1 %v10463_v46  ;;  %v1703_v54 = vld [vmem:[#allocation8 + $0x630] sm:$0xff]  ;;  %v1700_v46 = vld [vmem:[#allocation8 + $0x618] sm:$0xff] }
 0x392   :  { %v10501_v29 = vcombine.high %v1699_v59, %v1703_v54  ;;  %v10500_v7 = vcombine.low %v1699_v59, %v1703_v54  ;;  %v10502_v5 = vcombine.low %v1700_v46, %v1704_v23  ;;  %v1736_v59 = vld [vmem:[#allocation8 + $0x738] sm:$0xff] }
 0x393   :  { %8599 = vmatpush1.bf16.msra.mxu0 %v10460_v45  ;;  %v10503_v45 = vcombine.high %v1700_v46, %v1704_v23 }
 0x394   :  { %9023 = vmatpush1.bf16.msra.mxu1 %v10462_v39  ;;  %8600 = vmatprep.subr.bf16.mxu0 %v10469_v31  ;;  %v1707_v39 = vld [vmem:[#allocation8 + $0x650] sm:$0xff] }
 0x395   :  { %9024 = vmatprep.subr.bf16.mxu1 %v10471_v35  ;;  %v1711_v31 = vld [vmem:[#allocation8 + $0x670] sm:$0xff]  ;;  %v1708_v35 = vld [vmem:[#allocation8 + $0x658] sm:$0xff] }
 0x396   :  { %v10509_v25 = vcombine.high %v1707_v39, %v1711_v31  ;;  %v10508_v49 = vcombine.low %v1707_v39, %v1711_v31  ;;  %v10510_v36 = vcombine.low %v1708_v35, %v1712_v19  ;;  %v1744_v39 = vld [vmem:[#allocation8 + $0x778] sm:$0xff] }
 0x397   :  { %8601 = vmatpush1.bf16.msra.mxu0 %v10468_v32  ;;  %v10511_v32 = vcombine.high %v1708_v35, %v1712_v19 }
 0x398   :  { %9025 = vmatpush1.bf16.msra.mxu1 %v10470_v48  ;;  %8602 = vmatprep.subr.bf16.mxu0 %v10477_v2  ;;  %v1715_v48 = vld [vmem:[#allocation8 + $0x690] sm:$0xff] }
 0x399   :  { %9026 = vmatprep.subr.bf16.mxu1 %v10479_v55  ;;  %v1719_v2 = vld [vmem:[#allocation8 + $0x6b0] sm:$0xff]  ;;  %v1716_v55 = vld [vmem:[#allocation8 + $0x698] sm:$0xff] }
 0x39a   :  { %v10517_v14 = vcombine.high %v1715_v48, %v1719_v2  ;;  %v10516_v51 = vcombine.low %v1715_v48, %v1719_v2  ;;  %v10518_v8 = vcombine.low %v1716_v55, %v1720_v12  ;;  %v1752_v48 = vld [vmem:[#allocation8 + $0x7b8] sm:$0xff] }
 0x39b   :  { %8603 = vmatpush1.bf16.msra.mxu0 %v10476_v53  ;;  %v10519_v53 = vcombine.high %v1716_v55, %v1720_v12 }
 0x39c   :  { %9027 = vmatpush1.bf16.msra.mxu1 %v10478_v40  ;;  %8604 = vmatprep.subr.bf16.mxu0 %v10485_v9  ;;  %v1723_v40 = vld [vmem:[#allocation8 + $0x6d0] sm:$0xff] }
 0x39d   :  { %9028 = vmatprep.subr.bf16.mxu1 %v10487_v42  ;;  %v1727_v9 = vld [vmem:[#allocation8 + $0x6f0] sm:$0xff]  ;;  %v1724_v42 = vld [vmem:[#allocation8 + $0x6d8] sm:$0xff] }
 0x39e   :  { %v10525_v27 = vcombine.high %v1723_v40, %v1727_v9  ;;  %v10524_v54 = vcombine.low %v1723_v40, %v1727_v9  ;;  %v10526_v46 = vcombine.low %v1724_v42, %v1728_v34  ;;  %v1760_v40 = vld [vmem:[#allocation8 + $0x7f8] sm:$0xff] }
 0x39f   :  { %8605 = vmatpush1.bf16.msra.mxu0 %v10484_v58  ;;  %v10527_v58 = vcombine.high %v1724_v42, %v1728_v34 }
 0x3a0   :  { %9029 = vmatpush1.bf16.msra.mxu1 %v10486_v43  ;;  %8606 = vmatprep.subr.bf16.mxu0 %v10493_v47  ;;  %v1731_v43 = vld [vmem:[#allocation8 + $0x710] sm:$0xff] }
 0x3a1   :  { %9030 = vmatprep.subr.bf16.mxu1 %v10495_v0  ;;  %v1735_v47 = vld [vmem:[#allocation8 + $0x730] sm:$0xff]  ;;  %v1732_v0 = vld [vmem:[#allocation8 + $0x718] sm:$0xff] }
 0x3a2   :  { %v10533_v23 = vcombine.high %v1731_v43, %v1735_v47  ;;  %v10532_v31 = vcombine.low %v1731_v43, %v1735_v47  ;;  %v10534_v35 = vcombine.low %v1732_v0, %v1736_v59  ;;  %v1768_v43 = vld [vmem:[#allocation8 + $0x838] sm:$0xff] }
 0x3a3   :  { %8607 = vmatpush1.bf16.msra.mxu0 %v10492_v38  ;;  %v10535_v38 = vcombine.high %v1732_v0, %v1736_v59 }
 0x3a4   :  { %9031 = vmatpush1.bf16.msra.mxu1 %v10494_v3  ;;  %8608 = vmatprep.subr.bf16.mxu0 %v10501_v29  ;;  %v1739_v3 = vld [vmem:[#allocation8 + $0x750] sm:$0xff] }
 0x3a5   :  { %9032 = vmatprep.subr.bf16.mxu1 %v10503_v45  ;;  %v1743_v29 = vld [vmem:[#allocation8 + $0x770] sm:$0xff]  ;;  %v1740_v45 = vld [vmem:[#allocation8 + $0x758] sm:$0xff] }
 0x3a6   :  { %v10541_v19 = vcombine.high %v1739_v3, %v1743_v29  ;;  %v10540_v2 = vcombine.low %v1739_v3, %v1743_v29  ;;  %v10542_v55 = vcombine.low %v1740_v45, %v1744_v39  ;;  %v1776_v3 = vld [vmem:[#allocation8 + $0x878] sm:$0xff] }
 0x3a7   :  { %8609 = vmatpush1.bf16.msra.mxu0 %v10500_v7  ;;  %v10543_v7 = vcombine.high %v1740_v45, %v1744_v39 }
 0x3a8   :  { %9033 = vmatpush1.bf16.msra.mxu1 %v10502_v5  ;;  %8610 = vmatprep.subr.bf16.mxu0 %v10509_v25  ;;  %v1747_v5 = vld [vmem:[#allocation8 + $0x790] sm:$0xff] }
 0x3a9   :  { %9034 = vmatprep.subr.bf16.mxu1 %v10511_v32  ;;  %v1751_v25 = vld [vmem:[#allocation8 + $0x7b0] sm:$0xff]  ;;  %v1748_v32 = vld [vmem:[#allocation8 + $0x798] sm:$0xff] }
 0x3aa   :  { %v10549_v12 = vcombine.high %v1747_v5, %v1751_v25  ;;  %v10548_v9 = vcombine.low %v1747_v5, %v1751_v25  ;;  %v10550_v42 = vcombine.low %v1748_v32, %v1752_v48  ;;  %v1784_v5 = vld [vmem:[#allocation8 + $0x8b8] sm:$0xff] }
 0x3ab   :  { %8611 = vmatpush1.bf16.msra.mxu0 %v10508_v49  ;;  %v10551_v49 = vcombine.high %v1748_v32, %v1752_v48 }
 0x3ac   :  { %9035 = vmatpush1.bf16.msra.mxu1 %v10510_v36  ;;  %8612 = vmatprep.subr.bf16.mxu0 %v10517_v14  ;;  %v1755_v36 = vld [vmem:[#allocation8 + $0x7d0] sm:$0xff] }
 0x3ad   :  { %9036 = vmatprep.subr.bf16.mxu1 %v10519_v53  ;;  %v1759_v14 = vld [vmem:[#allocation8 + $0x7f0] sm:$0xff]  ;;  %v1756_v53 = vld [vmem:[#allocation8 + $0x7d8] sm:$0xff] }
 0x3ae   :  { %v10557_v34 = vcombine.high %v1755_v36, %v1759_v14  ;;  %v10556_v47 = vcombine.low %v1755_v36, %v1759_v14  ;;  %v10558_v0 = vcombine.low %v1756_v53, %v1760_v40  ;;  %v1792_v36 = vld [vmem:[#allocation8 + $0x8f8] sm:$0xff] }
 0x3af   :  { %8613 = vmatpush1.bf16.msra.mxu0 %v10516_v51  ;;  %v10559_v51 = vcombine.high %v1756_v53, %v1760_v40  ;;  %v1795_v40 = vld [vmem:[#allocation8 + $0x910] sm:$0xff] }
 0x3b0   :  { %9037 = vmatpush1.bf16.msra.mxu1 %v10518_v8  ;;  %8614 = vmatprep.subr.bf16.mxu0 %v10525_v27  ;;  %v1763_v8 = vld [vmem:[#allocation8 + $0x810] sm:$0xff] }
 0x3b1   :  { %9038 = vmatprep.subr.bf16.mxu1 %v10527_v58  ;;  %v1767_v27 = vld [vmem:[#allocation8 + $0x830] sm:$0xff]  ;;  %v1764_v58 = vld [vmem:[#allocation8 + $0x818] sm:$0xff] }
 0x3b2   :  { %v10565_v59 = vcombine.high %v1763_v8, %v1767_v27  ;;  %v10564_v29 = vcombine.low %v1763_v8, %v1767_v27  ;;  %v10566_v45 = vcombine.low %v1764_v58, %v1768_v43 }
 0x3b3   :  { %8615 = vmatpush1.bf16.msra.mxu0 %v10524_v54  ;;  %v10567_v54 = vcombine.high %v1764_v58, %v1768_v43  ;;  %v1803_v43 = vld [vmem:[#allocation8 + $0x950] sm:$0xff] }
 0x3b4   :  { %9039 = vmatpush1.bf16.msra.mxu1 %v10526_v46  ;;  %8616 = vmatprep.subr.bf16.mxu0 %v10533_v23  ;;  %v1771_v46 = vld [vmem:[#allocation8 + $0x850] sm:$0xff] }
 0x3b5   :  { %9040 = vmatprep.subr.bf16.mxu1 %v10535_v38  ;;  %v1775_v23 = vld [vmem:[#allocation8 + $0x870] sm:$0xff]  ;;  %v1772_v38 = vld [vmem:[#allocation8 + $0x858] sm:$0xff] }
 0x3b6   :  { %v10573_v39 = vcombine.high %v1771_v46, %v1775_v23  ;;  %v10572_v25 = vcombine.low %v1771_v46, %v1775_v23  ;;  %v10574_v32 = vcombine.low %v1772_v38, %v1776_v3 }
 0x3b7   :  { %8617 = vmatpush1.bf16.msra.mxu0 %v10532_v31  ;;  %v10575_v31 = vcombine.high %v1772_v38, %v1776_v3  ;;  %v1815_v38 = vld [vmem:[#allocation8 + $0x9b0] sm:$0xff]  ;;  %v1812_v3 = vld [vmem:[#allocation8 + $0x998] sm:$0xff] }
 0x3b8   :  { %9041 = vmatpush1.bf16.msra.mxu1 %v10534_v35  ;;  %8618 = vmatprep.subr.bf16.mxu0 %v10541_v19  ;;  %v1779_v35 = vld [vmem:[#allocation8 + $0x890] sm:$0xff] }
 0x3b9   :  { %9042 = vmatprep.subr.bf16.mxu1 %v10543_v7  ;;  %v1783_v19 = vld [vmem:[#allocation8 + $0x8b0] sm:$0xff]  ;;  %v1780_v7 = vld [vmem:[#allocation8 + $0x898] sm:$0xff] }
 0x3ba   :  { %v10581_v48 = vcombine.high %v1779_v35, %v1783_v19  ;;  %v10582_v14 = vcombine.low %v1780_v7, %v1784_v5 }
 0x3bb   :  { %8619 = vmatpush1.bf16.msra.mxu0 %v10540_v2  ;;  %v10583_v2 = vcombine.high %v1780_v7, %v1784_v5  ;;  %v1823_v7 = vld [vmem:[#allocation8 + $0x9f0] sm:$0xff]  ;;  %v1820_v5 = vld [vmem:[#allocation8 + $0x9d8] sm:$0xff] }
 0x3bc   :  { %9043 = vmatpush1.bf16.msra.mxu1 %v10542_v55  ;;  %8620 = vmatprep.subr.bf16.mxu0 %v10549_v12  ;;  %v1787_v55 = vld [vmem:[#allocation8 + $0x8d0] sm:$0xff] }
 0x3bd   :  { %9044 = vmatprep.subr.bf16.mxu1 %v10551_v49  ;;  %v1791_v12 = vld [vmem:[#allocation8 + $0x8f0] sm:$0xff]  ;;  %v1788_v49 = vld [vmem:[#allocation8 + $0x8d8] sm:$0xff] }
 0x3be   :  { %v10589_v53 = vcombine.high %v1787_v55, %v1791_v12  ;;  %v10590_v8 = vcombine.low %v1788_v49, %v1792_v36 }
 0x3bf   :  { %8621 = vmatpush1.bf16.msra.mxu0 %v10548_v9  ;;  %v1799_v9 = vld [vmem:[#allocation8 + $0x930] sm:$0xff] }
 0x3c0   :  { %9045 = vmatpush1.bf16.msra.mxu1 %v10550_v42  ;;  %8622 = vmatprep.subr.bf16.mxu0 %v10557_v34  ;;  %v1796_v42 = vld [vmem:[#allocation8 + $0x918] sm:$0xff]  ;;  %v10597_v27 = vcombine.high %v1795_v40, %v1799_v9 }
 0x3c1   :  { %9046 = vmatprep.subr.bf16.mxu1 %v10559_v51  ;;  %v1800_v34 = vld [vmem:[#allocation8 + $0x938] sm:$0xff]  ;;  %v10588_v51 = vcombine.low %v1787_v55, %v1791_v12  ;;  %v1827_v12 = vld [vmem:[#allocation8 + $0xa10] sm:$0xff] }
 0x3c2   :  { %v10599_v58 = vcombine.high %v1796_v42, %v1800_v34 }
 0x3c3   :  { %8623 = vmatpush1.bf16.msra.mxu0 %v10556_v47  ;;  %v1807_v47 = vld [vmem:[#allocation8 + $0x970] sm:$0xff] }
 0x3c4   :  { %9047 = vmatpush1.bf16.msra.mxu1 %v10558_v0  ;;  %8645 = vmatprep.subr.bf16.mxu0 %v10565_v59  ;;  %v1804_v0 = vld [vmem:[#allocation8 + $0x958] sm:$0xff]  ;;  %v10605_v46 = vcombine.high %v1803_v43, %v1807_v47 }
 0x3c5   :  { %9069 = vmatprep.subr.bf16.mxu1 %v10567_v54  ;;  %v1808_v59 = vld [vmem:[#allocation8 + $0x978] sm:$0xff]  ;;  %v10598_v54 = vcombine.low %v1796_v42, %v1800_v34  ;;  %v1839_v42 = vld [vmem:[#allocation8 + $0xa70] sm:$0xff] }
 0x3c6   :  { %8625 = vmatmul.mubr.bf16.vlgmr.msra.gmra.mrb[40].mxu0 %v12273_v37  ;;  %v10607_v23 = vcombine.high %v1804_v0, %v1808_v59  ;;  %v1836_v34 = vld [vmem:[#allocation8 + $0xa58] sm:$0xff] }
 0x3c7   :  { %9049 = vmatmul.mubr.bf16.vlgmr.msra.gmra.mrb[40].mxu1 %v12273_v37  ;;  %8634 = vmatprep.mubr.bf16.mxu0 %v12294_v6  ;;  %v10580_v37 = vcombine.low %v1779_v35, %v1783_v19  ;;  %v1819_v19 = vld [vmem:[#allocation8 + $0x9d0] sm:$0xff] }
 0x3c8   :  { %8646 = vmatpush1.bf16.msra.mxu0 %v10564_v29  ;;  %9058 = vmatprep.mubr.bf16.mxu1 %v12294_v6  ;;  %v10591_v6 = vcombine.high %v1788_v49, %v1792_v36  ;;  %v1816_v29 = vld [vmem:[#allocation8 + $0x9b8] sm:$0xff]  ;;  %v1831_v49 = vld [vmem:[#allocation8 + $0xa30] sm:$0xff] }
 0x3c9   :  { %9070 = vmatpush1.bf16.msra.mxu1 %v10566_v45  ;;  %8647 = vmatprep.subr.bf16.mxu0 %v10573_v39  ;;  %v10604_v45 = vcombine.low %v1803_v43, %v1807_v47  ;;  %v10606_v39 = vcombine.low %v1804_v0, %v1808_v59  ;;  %v10615_v35 = vcombine.high %v1812_v3, %v1816_v29  ;;  %v1828_v36 = vld [vmem:[#allocation8 + $0xa18] sm:$0xff]  ;;  %v1843_v47 = vld [vmem:[#allocation8 + $0xa90] sm:$0xff] }
 0x3ca   :  { %9071 = vmatprep.subr.bf16.mxu1 %v10575_v31  ;;  %v1847_v0 = vld [vmem:[#allocation8 + $0xab0] sm:$0xff]  ;;  %v1844_v59 = vld [vmem:[#allocation8 + $0xa98] sm:$0xff] }
 0x3cc   :  { %8648 = vmatpush1.bf16.msra.mxu0 %v10572_v25  ;;  %v1824_v25 = vld [vmem:[#allocation8 + $0x9f8] sm:$0xff] }
 0x3cd   :  { %9072 = vmatpush1.bf16.msra.mxu1 %v10574_v32  ;;  %8649 = vmatprep.subr.bf16.mxu0 %v10581_v48  ;;  %v10614_v48 = vcombine.low %v1812_v3, %v1816_v29  ;;  %v10623_v55 = vcombine.high %v1820_v5, %v1824_v25  ;;  %v1855_v3 = vld [vmem:[#allocation8 + $0xaf0] sm:$0xff]  ;;  %v1852_v29 = vld [vmem:[#allocation8 + $0xad8] sm:$0xff] }
 0x3ce   :  { %8635 = vmatmul.mubr.bf16.gmra.mrb[44].mxu0 %v12290_v22  ;;  %9073 = vmatprep.subr.bf16.mxu1 %v10583_v2  ;;  %v10621_v2 = vcombine.high %v1819_v19, %v1823_v7 }
 0x3cf   :  { %9059 = vmatmul.mubr.bf16.gmra.mrb[44].mxu1 %v12290_v22  ;;  %8677 = vmatprep.mubr.bf16.mxu0 %v12338_v17  ;;  %v10596_v22 = vcombine.low %v1795_v40, %v1799_v9  ;;  %v1835_v9 = vld [vmem:[#allocation8 + $0xa50] sm:$0xff] }
 0x3d0   :  { %8650 = vmatpush1.bf16.msra.mxu0 %v10580_v37  ;;  %9101 = vmatprep.mubr.bf16.mxu1 %v12338_v17  ;;  %v1811_v17 = vld [vmem:[#allocation8 + $0x990] sm:$0xff]  ;;  %v1832_v37 = vld [vmem:[#allocation8 + $0xa38] sm:$0xff] }
 0x3d1   :  { %9074 = vmatpush1.bf16.msra.mxu1 %v10582_v14  ;;  %8651 = vmatprep.subr.bf16.mxu0 %v10589_v53  ;;  %v10613_v31 = vcombine.high %v1811_v17, %v1815_v38  ;;  %v10612_v32 = vcombine.low %v1811_v17, %v1815_v38  ;;  %v10620_v14 = vcombine.low %v1819_v19, %v1823_v7  ;;  %v1851_v38 = vld [vmem:[#allocation8 + $0xad0] sm:$0xff] }
 0x3d2   :  { %9075 = vmatprep.subr.bf16.mxu1 %v10591_v6  ;;  %v10622_v53 = vcombine.low %v1820_v5, %v1824_v25  ;;  %v10629_v6 = vcombine.high %v1827_v12, %v1831_v49  ;;  %v10631_v40 = vcombine.high %v1828_v36, %v1832_v37  ;;  %v1859_v7 = vld [vmem:[#allocation8 + $0xb10] sm:$0xff]  ;;  %v1860_v25 = vld [vmem:[#allocation8 + $0xb18] sm:$0xff] }
 0x3d3   :  { %v1863_v5 = vld [vmem:[#allocation8 + $0xb30] sm:$0xff] }
 0x3d4   :  { %8652 = vmatpush1.bf16.msra.mxu0 %v10588_v51  ;;  %v1840_v51 = vld [vmem:[#allocation8 + $0xa78] sm:$0xff] }
 0x3d5   :  { %9076 = vmatpush1.bf16.msra.mxu1 %v10590_v8  ;;  %8653 = vmatprep.subr.bf16.mxu0 %v10597_v27  ;;  %v10628_v8 = vcombine.low %v1827_v12, %v1831_v49  ;;  %v10630_v27 = vcombine.low %v1828_v36, %v1832_v37  ;;  %v10639_v43 = vcombine.high %v1836_v34, %v1840_v51  ;;  %v1867_v49 = vld [vmem:[#allocation8 + $0xb50] sm:$0xff]  ;;  %v1868_v37 = vld [vmem:[#allocation8 + $0xb58] sm:$0xff] }
 0x3d6   :  { %9077 = vmatprep.subr.bf16.mxu1 %v10599_v58  ;;  %v10637_v58 = vcombine.high %v1835_v9, %v1839_v42  ;;  %v1871_v36 = vld [vmem:[#allocation8 + $0xb70] sm:$0xff] }
 0x3d8   :  { %8654 = vmatpush1.bf16.msra.mxu0 %v10596_v22  ;;  %v1848_v22 = vld [vmem:[#allocation8 + $0xab8] sm:$0xff] }
 0x3d9   :  { %9078 = vmatpush1.bf16.msra.mxu1 %v10598_v54  ;;  %8655 = vmatprep.subr.bf16.mxu0 %v10605_v46  ;;  %v10636_v54 = vcombine.low %v1835_v9, %v1839_v42  ;;  %v10638_v46 = vcombine.low %v1836_v34, %v1840_v51  ;;  %v10647_v17 = vcombine.high %v1844_v59, %v1848_v22  ;;  %v1875_v42 = vld [vmem:[#allocation8 + $0xb90] sm:$0xff]  ;;  %v1876_v51 = vld [vmem:[#allocation8 + $0xb98] sm:$0xff] }
 0x3da   :  { %9079 = vmatprep.subr.bf16.mxu1 %v10607_v23  ;;  %v10645_v23 = vcombine.high %v1843_v47, %v1847_v0  ;;  %v1879_v34 = vld [vmem:[#allocation8 + $0xbb0] sm:$0xff] }
 0x3dc   :  { %8656 = vmatpush1.bf16.msra.mxu0 %v10604_v45  ;;  %v1856_v45 = vld [vmem:[#allocation8 + $0xaf8] sm:$0xff] }
 0x3dd   :  { %9080 = vmatpush1.bf16.msra.mxu1 %v10606_v39  ;;  %8657 = vmatprep.subr.bf16.mxu0 %v10613_v31  ;;  %v10644_v39 = vcombine.low %v1843_v47, %v1847_v0  ;;  %v10646_v31 = vcombine.low %v1844_v59, %v1848_v22  ;;  %v10655_v19 = vcombine.high %v1852_v29, %v1856_v45  ;;  %v1883_v0 = vld [vmem:[#allocation8 + $0xbd0] sm:$0xff]  ;;  %v1884_v22 = vld [vmem:[#allocation8 + $0xbd8] sm:$0xff] }
 0x3de   :  { %9081 = vmatprep.subr.bf16.mxu1 %v10615_v35  ;;  %v10653_v35 = vcombine.high %v1851_v38, %v1855_v3  ;;  %v1887_v59 = vld [vmem:[#allocation8 + $0xbf0] sm:$0xff] }
 0x3e0   :  { %8658 = vmatpush1.bf16.msra.mxu0 %v10612_v32  ;;  %v1864_v32 = vld [vmem:[#allocation8 + $0xb38] sm:$0xff] }
 0x3e1   :  { %9082 = vmatpush1.bf16.msra.mxu1 %v10614_v48  ;;  %8659 = vmatprep.subr.bf16.mxu0 %v10621_v2  ;;  %v10652_v48 = vcombine.low %v1851_v38, %v1855_v3  ;;  %v10654_v2 = vcombine.low %v1852_v29, %v1856_v45  ;;  %v10663_v12 = vcombine.high %v1860_v25, %v1864_v32  ;;  %v1891_v3 = vld [vmem:[#allocation8 + $0xc10] sm:$0xff]  ;;  %v1892_v45 = vld [vmem:[#allocation8 + $0xc18] sm:$0xff] }
 0x3e2   :  { %9083 = vmatprep.subr.bf16.mxu1 %v10623_v55  ;;  %v10661_v55 = vcombine.high %v1859_v7, %v1863_v5  ;;  %v1895_v29 = vld [vmem:[#allocation8 + $0xc30] sm:$0xff] }
 0x3e4   :  { %8660 = vmatpush1.bf16.msra.mxu0 %v10620_v14  ;;  %v1872_v14 = vld [vmem:[#allocation8 + $0xb78] sm:$0xff] }
 0x3e5   :  { %9084 = vmatpush1.bf16.msra.mxu1 %v10622_v53  ;;  %8661 = vmatprep.subr.bf16.mxu0 %v10629_v6  ;;  %v10660_v53 = vcombine.low %v1859_v7, %v1863_v5  ;;  %v10662_v6 = vcombine.low %v1860_v25, %v1864_v32  ;;  %v10671_v9 = vcombine.high %v1868_v37, %v1872_v14  ;;  %v1899_v5 = vld [vmem:[#allocation8 + $0xc50] sm:$0xff]  ;;  %v1900_v32 = vld [vmem:[#allocation8 + $0xc58] sm:$0xff] }
 0x3e6   :  { %9085 = vmatprep.subr.bf16.mxu1 %v10631_v40  ;;  %v10669_v40 = vcombine.high %v1867_v49, %v1871_v36  ;;  %v1903_v25 = vld [vmem:[#allocation8 + $0xc70] sm:$0xff] }
 0x3e8   :  { %8662 = vmatpush1.bf16.msra.mxu0 %v10628_v8  ;;  %v1880_v8 = vld [vmem:[#allocation8 + $0xbb8] sm:$0xff] }
 0x3e9   :  { %9086 = vmatpush1.bf16.msra.mxu1 %v10630_v27  ;;  %8663 = vmatprep.subr.bf16.mxu0 %v10637_v58  ;;  %v10668_v27 = vcombine.low %v1867_v49, %v1871_v36  ;;  %v10670_v58 = vcombine.low %v1868_v37, %v1872_v14  ;;  %v10679_v47 = vcombine.high %v1876_v51, %v1880_v8  ;;  %v1907_v36 = vld [vmem:[#allocation8 + $0xc90] sm:$0xff]  ;;  %v1908_v14 = vld [vmem:[#allocation8 + $0xc98] sm:$0xff] }
 0x3ea   :  { %9087 = vmatprep.subr.bf16.mxu1 %v10639_v43  ;;  %v10677_v43 = vcombine.high %v1875_v42, %v1879_v34  ;;  %v1911_v37 = vld [vmem:[#allocation8 + $0xcb0] sm:$0xff] }
 0x3ec   :  { %8664 = vmatpush1.bf16.msra.mxu0 %v10636_v54  ;;  %v1888_v54 = vld [vmem:[#allocation8 + $0xbf8] sm:$0xff] }
 0x3ed   :  { %9088 = vmatpush1.bf16.msra.mxu1 %v10638_v46  ;;  %8665 = vmatprep.subr.bf16.mxu0 %v10645_v23  ;;  %v10676_v46 = vcombine.low %v1875_v42, %v1879_v34  ;;  %v10678_v23 = vcombine.low %v1876_v51, %v1880_v8  ;;  %v10687_v38 = vcombine.high %v1884_v22, %v1888_v54  ;;  %v1915_v34 = vld [vmem:[#allocation8 + $0xcd0] sm:$0xff]  ;;  %v1916_v8 = vld [vmem:[#allocation8 + $0xcd8] sm:$0xff] }
 0x3ee   :  { %9089 = vmatprep.subr.bf16.mxu1 %v10647_v17  ;;  %v10685_v17 = vcombine.high %v1883_v0, %v1887_v59  ;;  %v1919_v51 = vld [vmem:[#allocation8 + $0xcf0] sm:$0xff] }
 0x3f0   :  { %8666 = vmatpush1.bf16.msra.mxu0 %v10644_v39  ;;  %v1896_v39 = vld [vmem:[#allocation8 + $0xc38] sm:$0xff] }
 0x3f1   :  { %9090 = vmatpush1.bf16.msra.mxu1 %v10646_v31  ;;  %8667 = vmatprep.subr.bf16.mxu0 %v10653_v35  ;;  %v10684_v31 = vcombine.low %v1883_v0, %v1887_v59  ;;  %v10686_v35 = vcombine.low %v1884_v22, %v1888_v54  ;;  %v10695_v7 = vcombine.high %v1892_v45, %v1896_v39  ;;  %v1927_v0 = vld [vmem:[#allocation8 + $0xd30] sm:$0xff]  ;;  %v1924_v59 = vld [vmem:[#allocation8 + $0xd18] sm:$0xff] }
 0x3f2   :  { %9091 = vmatprep.subr.bf16.mxu1 %v10655_v19  ;;  %v10693_v19 = vcombine.high %v1891_v3, %v1895_v29  ;;  %v1928_v22 = vld [vmem:[#allocation8 + $0xd38] sm:$0xff]  ;;  %v10716_v54 = vcombine.low %v1915_v34, %v1919_v51 }
 0x3f4   :  { %8668 = vmatpush1.bf16.msra.mxu0 %v10652_v48  ;;  %v1904_v48 = vld [vmem:[#allocation8 + $0xc78] sm:$0xff] }
 0x3f5   :  { %9092 = vmatpush1.bf16.msra.mxu1 %v10654_v2  ;;  %8669 = vmatprep.subr.bf16.mxu0 %v10661_v55  ;;  %v10692_v2 = vcombine.low %v1891_v3, %v1895_v29  ;;  %v10694_v55 = vcombine.low %v1892_v45, %v1896_v39  ;;  %v10703_v49 = vcombine.high %v1900_v32, %v1904_v48  ;;  %v1931_v3 = vld [vmem:[#allocation8 + $0xd50] sm:$0xff]  ;;  %v1936_v39 = vld [vmem:[#allocation8 + $0xd78] sm:$0xff] }
 0x3f6   :  { %9093 = vmatprep.subr.bf16.mxu1 %v10663_v12  ;;  %v10701_v12 = vcombine.high %v1899_v5, %v1903_v25  ;;  %v1935_v29 = vld [vmem:[#allocation8 + $0xd70] sm:$0xff] }
 0x3f8   :  { %8670 = vmatpush1.bf16.msra.mxu0 %v10660_v53  ;;  %v1912_v53 = vld [vmem:[#allocation8 + $0xcb8] sm:$0xff] }
 0x3f9   :  { %9094 = vmatpush1.bf16.msra.mxu1 %v10662_v6  ;;  %8671 = vmatprep.subr.bf16.mxu0 %v10669_v40  ;;  %v10700_v6 = vcombine.low %v1899_v5, %v1903_v25  ;;  %v10702_v40 = vcombine.low %v1900_v32, %v1904_v48  ;;  %v10711_v42 = vcombine.high %v1908_v14, %v1912_v53  ;;  %v12705_v5 = vld [vmem:[#allocation21_spill] sm:$0xff] }
 0x3fa   :  { %9095 = vmatprep.subr.bf16.mxu1 %v10671_v9  ;;  %v10709_v9 = vcombine.high %v1907_v36, %v1911_v37  ;;  %v10733_v32 = vcombine.high %v1931_v3, %v1935_v29 }
 0x3fc   :  { %8672 = vmatpush1.bf16.msra.mxu0 %v10668_v27  ;;  %v1920_v27 = vld [vmem:[#allocation8 + $0xcf8] sm:$0xff] }
 0x3fd   :  { %9096 = vmatpush1.bf16.msra.mxu1 %v10670_v58  ;;  %8673 = vmatprep.subr.bf16.mxu0 %v10677_v43  ;;  %v10710_v58 = vcombine.low %v1908_v14, %v1912_v53  ;;  %v10717_v43 = vcombine.high %v1915_v34, %v1919_v51 }
 0x3fe   :  { %9097 = vmatprep.subr.bf16.mxu1 %v10679_v47  ;;  %v1923_v47 = vld [vmem:[#allocation8 + $0xd10] sm:$0xff] }
 0x400   :  { %8674 = vmatpush1.bf16.msra.mxu0 %v10676_v46  ;;  %v2529_v46 = vld [vmem:[#allocation10] sm:$0xff] }
 0x401   :  { %9098 = vmatpush1.bf16.msra.mxu1 %v10678_v23  ;;  %8675 = vmatprep.subr.bf16.mxu0 %v10685_v17  ;;  %v10718_v23 = vcombine.low %v1916_v8, %v1920_v27  ;;  %v10725_v17 = vcombine.high %v1923_v47, %v1927_v0  ;;  %v12575_v45 = vrot.slane %v2529_v46, %v12228_v28 }
 0x402   :  { %9099 = vmatprep.subr.bf16.mxu1 %v10687_v38  ;;  %v10727_v38 = vcombine.high %v1924_v59, %v1928_v22  ;;  %v12584_v25 = vrot.slane %v2529_v46, %v12705_v5 }
 0x404   :  { %8676 = vmatpush1.bf16.msra.mxu0 %v10684_v31  ;;  %v10724_v31 = vcombine.low %v1923_v47, %v1927_v0 }
 0x405   :  { %9100 = vmatpush1.bf16.msra.mxu1 %v10686_v35  ;;  %8698 = vmatprep.subr.bf16.mxu0 %v10693_v19  ;;  %v12578_v35 = vrot.slane %v2529_v46, %v12240_v33 }
 0x406   :  { %9122 = vmatprep.subr.bf16.mxu1 %v10695_v7  ;;  %v10726_v7 = vcombine.low %v1924_v59, %v1928_v22  ;;  %v12593_v59 = vld [vmem:[#allocation8 + $0xdd0] sm:$0xff] }
 0x407   :  { %8678 = vmatmul.mubr.bf16.vlgmr.msra.gmra.mrb[40].mxu0 %v12334_v11  ;;  %v1951_v22 = vld [vmem:[#allocation8 + $0xdf0] sm:$0xff] }
 0x408   :  { %9102 = vmatmul.mubr.bf16.vlgmr.msra.gmra.mrb[40].mxu1 %v12334_v11  ;;  %8687 = vmatprep.mubr.bf16.mxu0 %v12355_v15  ;;  %v10708_v11 = vcombine.low %v1907_v36, %v1911_v37  ;;  %v1940_v36 = vld [vmem:[#allocation8 + $0xd98] sm:$0xff] }
 0x409   :  { %8699 = vmatpush1.bf16.msra.mxu0 %v10692_v2  ;;  %9111 = vmatprep.mubr.bf16.mxu1 %v12355_v15  ;;  %v10719_v15 = vcombine.high %v1916_v8, %v1920_v27  ;;  %v1939_v2 = vld [vmem:[#allocation8 + $0xd90] sm:$0xff]  ;;  %v1944_v37 = vld [vmem:[#allocation8 + $0xdb8] sm:$0xff] }
 0x40a   :  { %9123 = vmatpush1.bf16.msra.mxu1 %v10694_v55  ;;  %8700 = vmatprep.subr.bf16.mxu0 %v10701_v12  ;;  %v1943_v55 = vld [vmem:[#allocation8 + $0xdb0] sm:$0xff]  ;;  %v10743_v0 = vcombine.high %v1940_v36, %v1944_v37 }
 0x40b   :  { %9124 = vmatprep.subr.bf16.mxu1 %v10703_v49  ;;  %v10740_v47 = vcombine.low %v1939_v2, %v1943_v55 }
 0x40d   :  { %8701 = vmatpush1.bf16.msra.mxu0 %v10700_v6 }
 0x40e   :  { %9125 = vmatpush1.bf16.msra.mxu1 %v10702_v40  ;;  %8702 = vmatprep.subr.bf16.mxu0 %v10709_v9  ;;  %v10732_v40 = vcombine.low %v1931_v3, %v1935_v29  ;;  %v1952_v3 = vld [vmem:[#allocation8 + $0xdf8] sm:$0xff] }
 0x40f   :  { %8688 = vmatmul.mubr.bf16.gmra.mrb[44].mxu0 %v12352_v44  ;;  %9126 = vmatprep.subr.bf16.mxu1 %v10711_v42 }
 0x410   :  { %9112 = vmatmul.mubr.bf16.gmra.mrb[44].mxu1 %v12352_v44  ;;  %8730 = vmatprep.mubr.bf16.mxu0 %v12350_v26  ;;  %v1932_v44 = vld [vmem:[#allocation8 + $0xd58] sm:$0xff] }
 0x411   :  { %8703 = vmatpush1.bf16.msra.mxu0 %v10708_v11  ;;  %9154 = vmatprep.mubr.bf16.mxu1 %v12350_v26  ;;  %v12704_v26 = vld [vmem:[#allocation20_spill] sm:$0xff]  ;;  %v10735_v48 = vcombine.high %v1932_v44, %v1936_v39  ;;  %v10734_v9 = vcombine.low %v1932_v44, %v1936_v39  ;;  %v10741_v11 = vcombine.high %v1939_v2, %v1943_v55 }
 0x412   :  { %9127 = vmatpush1.bf16.msra.mxu1 %v10710_v58  ;;  %8704 = vmatprep.subr.bf16.mxu0 %v10717_v43  ;;  %v12581_v19 = vrot.slane %v2529_v46, %v12704_v26 }
 0x413   :  { %9128 = vmatprep.subr.bf16.mxu1 %v10719_v15 }
 0x415   :  { %8705 = vmatpush1.bf16.msra.mxu0 %v10716_v54 }
 0x416   :  { %9129 = vmatpush1.bf16.msra.mxu1 %v10718_v23  ;;  %8706 = vmatprep.subr.bf16.mxu0 %v10725_v17  ;;  %v10742_v17 = vcombine.low %v1940_v36, %v1944_v37 }
 0x417   :  { %9130 = vmatprep.subr.bf16.mxu1 %v10727_v38  ;;  %v8096_v28 = vpop.f32.mrb[32].mxu0  ;;  %v1948_v38 = vld [vmem:[#allocation8 + $0xdd8] sm:$0xff] }
 0x418   :  { %v11505_v12 = vadd.f32 %v8096_v28, %v12575_v45  ;;  %v8520_v49 = vpop.f32.mrb[32].mxu1  ;;  %v8098_v33 = vpop.f32.mrb[33].mxu0  ;;  %v10751_v55 = vcombine.high %v1948_v38, %v1952_v3 }
 0x419   :  { %8707 = vmatpush1.bf16.msra.mxu0 %v10724_v31  ;;  %v11513_v14 = vadd.f32 %v8520_v49, %v12578_v35  ;;  %v11506_v53 = vadd.f32 %v8098_v33, %v12581_v19  ;;  %v8522_v6 = vpop.f32.mrb[33].mxu1  ;;  %v8100_v42 = vpop.f32.mrb[34].mxu0  ;;  %v1959_v49 = vld [vmem:[#allocation8 + $0xe30] sm:$0xff] }
 0x41a   :  { %9131 = vmatpush1.bf16.msra.mxu1 %v10726_v7  ;;  %v11514_v34 = vadd.f32 %v8522_v6, %v12584_v25  ;;  %8708 = vmatprep.subr.bf16.mxu0 %v10733_v32  ;;  %v11507_v51 = vadd.f32 %v8100_v42, %v12575_v45  ;;  %v8524_v8 = vpop.f32.mrb[34].mxu1  ;;  %v8102_v27 = vpop.f32.mrb[35].mxu0  ;;  %v9387_v54 = vmax.f32 %v11505_v12, 0.0  ;;  %v10749_v32 = vcombine.high %v12593_v59, %v1951_v22  ;;  %v1955_v12 = vld [vmem:[#allocation8 + $0xe10] sm:$0xff]  ;;  %v1960_v6 = vld [vmem:[#allocation8 + $0xe38] sm:$0xff] }
 0x41b   :  { %9132 = vmatprep.subr.bf16.mxu1 %v10735_v48  ;;  %v11515_v58 = vadd.f32 %v8524_v8, %v12578_v35  ;;  %v11508_v43 = vadd.f32 %v8102_v27, %v12581_v19  ;;  %v8526_v15 = vpop.f32.mrb[35].mxu1  ;;  %v9389_v29 = vmax.f32 %v11513_v14, 0.0  ;;  %v9388_v44 = vmax.f32 %v11506_v53, 0.0  ;;  %v1956_v53 = vld [vmem:[#allocation8 + $0xe18] sm:$0xff] }
 0x41c   :  { %v9395_v46 = vmax.f32 %v11507_v51, 0.0  ;;  %v11516_v23 = vadd.f32 %v8526_v15, %v12584_v25  ;;  %v9390_v26 = vmax.f32 %v11514_v34, 0.0  ;;  %v10748_v34 = vcombine.low %v12593_v59, %v1951_v22  ;;  %v1963_v59 = vld [vmem:[#allocation8 + $0xe50] sm:$0xff] }
 0x41d   :  { %v9397_v39 = vmax.f32 %v11515_v58, 0.0  ;;  %8709 = vmatpush1.bf16.msra.mxu0 %v10732_v40  ;;  %v9396_v31 = vmax.f32 %v11508_v43, 0.0  ;;  %v10750_v51 = vcombine.low %v1948_v38, %v1952_v3  ;;  %v10757_v15 = vcombine.high %v1955_v12, %v1959_v49  ;;  %v1967_v22 = vld [vmem:[#allocation8 + $0xe70] sm:$0xff] }
 0x41e   :  { %v12596_v7 = vpack.c.bf16 %v9395_v46, %v9387_v54  ;;  %9133 = vmatpush1.bf16.msra.mxu1 %v10734_v9  ;;  %v9398_v5 = vmax.f32 %v11516_v23, 0.0  ;;  %8710 = vmatprep.subr.bf16.mxu0 %v10741_v11  ;;  %v10756_v46 = vcombine.low %v1955_v12, %v1959_v49  ;;  %v10759_v23 = vcombine.high %v1956_v53, %v1960_v6  ;;  %v1971_v49 = vld [vmem:[#allocation8 + $0xe90] sm:$0xff] }
 0x41f   :  { %v12599_v28 = vpack.c.bf16 %v9397_v39, %v9389_v29  ;;  %v12601_v48 = vpack.c.bf16 %v9396_v31, %v9388_v44  ;;  %9134 = vmatprep.subr.bf16.mxu1 %v10743_v0  ;;  %v8106_v2 = vpop.f32.mrb[36].mxu0  ;;  %v10758_v29 = vcombine.low %v1956_v53, %v1960_v6  ;;  %v1964_v44 = vld [vmem:[#allocation8 + $0xe58] sm:$0xff]  ;;  %v10764_v6 = vcombine.low %v1963_v59, %v1967_v22 }
 0x420   :  { %v12603_v33 = vpack.c.bf16 %v9398_v5, %v9390_v26  ;;  %v11509_v36 = vadd.f32 %v8106_v2, %v12575_v45  ;;  %v8530_v37 = vpop.f32.mrb[36].mxu1  ;;  %v8108_v14 = vpop.f32.mrb[37].mxu0  ;;  %v10765_v2 = vcombine.high %v1963_v59, %v1967_v22  ;;  %v1976_v53 = vld [vmem:[#allocation8 + $0xeb8] sm:$0xff] }
 0x421   :  { %8711 = vmatpush1.bf16.msra.mxu0 %v10740_v47  ;;  %v11517_v40 = vadd.f32 %v8530_v37, %v12578_v35  ;;  %v11510_v9 = vadd.f32 %v8108_v14, %v12581_v19  ;;  %v8532_v42 = vpop.f32.mrb[37].mxu1  ;;  %v8110_v8 = vpop.f32.mrb[38].mxu0  ;;  %v1972_v14 = vld [vmem:[#allocation8 + $0xe98] sm:$0xff] }
 0x422   :  { %9135 = vmatpush1.bf16.msra.mxu1 %v10742_v17  ;;  %v11518_v27 = vadd.f32 %v8532_v42, %v12584_v25  ;;  %8712 = vmatprep.subr.bf16.mxu0 %v10749_v32  ;;  %v11511_v11 = vadd.f32 %v8110_v8, %v12575_v45  ;;  %v8534_v58 = vpop.f32.mrb[38].mxu1  ;;  %v8112_v43 = vpop.f32.mrb[39].mxu0  ;;  %v9403_v38 = vmax.f32 %v11509_v36, 0.0  ;;  %v1968_v45 = vld [vmem:[#allocation8 + $0xe78] sm:$0xff]  ;;  %v1975_v36 = vld [vmem:[#allocation8 + $0xeb0] sm:$0xff]  ;;  %v10775_v42 = vcombine.high %v1972_v14, %v1976_v53 }
 0x423   :  { %9136 = vmatprep.subr.bf16.mxu1 %v10751_v55  ;;  %v11519_v47 = vadd.f32 %v8534_v58, %v12578_v35  ;;  %v11512_v0 = vadd.f32 %v8112_v43, %v12581_v19  ;;  %v8536_v54 = vpop.f32.mrb[39].mxu1  ;;  %v9405_v39 = vmax.f32 %v11517_v40, 0.0  ;;  %v9404_v31 = vmax.f32 %v11510_v9, 0.0  ;;  %v1980_v8 = vld [vmem:[#allocation8 + $0xed8] sm:$0xff] }
 0x424   :  { %v9411_v17 = vmax.f32 %v11511_v11, 0.0  ;;  %v11520_v3 = vadd.f32 %v8536_v54, %v12584_v25  ;;  %v9406_v35 = vmax.f32 %v11518_v27, 0.0  ;;  %v10767_v25 = vcombine.high %v1964_v44, %v1968_v45  ;;  %v1984_v27 = vld [vmem:[#allocation8 + $0xef8] sm:$0xff] }
 0x425   :  { %v9413_v26 = vmax.f32 %v11519_v47, 0.0  ;;  %8713 = vmatpush1.bf16.msra.mxu0 %v10748_v34  ;;  %v9412_v5 = vmax.f32 %v11512_v0, 0.0  ;;  %v10766_v40 = vcombine.low %v1964_v44, %v1968_v45  ;;  %v10773_v9 = vcombine.high %v1971_v49, %v1975_v36  ;;  %v1979_v34 = vld [vmem:[#allocation8 + $0xed0] sm:$0xff]  ;;  %v1988_v54 = vld [vmem:[#allocation8 + $0xf18] sm:$0xff] }
 0x426   :  { %v12614_v32 = vpack.c.bf16 %v9411_v17, %v9403_v38  ;;  %9137 = vmatpush1.bf16.msra.mxu1 %v10750_v51  ;;  %v9414_v19 = vmax.f32 %v11520_v3, 0.0  ;;  %8714 = vmatprep.subr.bf16.mxu0 %v10757_v15  ;;  %v1983_v51 = vld [vmem:[#allocation8 + $0xef0] sm:$0xff]  ;;  %v10772_v11 = vcombine.low %v1971_v49, %v1975_v36  ;;  %v10774_v58 = vcombine.low %v1972_v14, %v1976_v53  ;;  %v2000_v44 = vld [vmem:[#allocation8 + $0xf78] sm:$0xff] }
 0x427   :  { %v12616_v55 = vpack.c.bf16 %v9413_v26, %v9405_v39  ;;  %v12618_v12 = vpack.c.bf16 %v9412_v5, %v9404_v31  ;;  %9138 = vmatprep.subr.bf16.mxu1 %v10759_v23  ;;  %v10781_v43 = vcombine.high %v1979_v34, %v1983_v51  ;;  %v10783_v15 = vcombine.high %v1980_v8, %v1984_v27  ;;  %v1987_v47 = vld [vmem:[#allocation8 + $0xf10] sm:$0xff] }
 0x428   :  { %v12620_v37 = vpack.c.bf16 %v9414_v19, %v9406_v35  ;;  %v1991_v0 = vld [vmem:[#allocation8 + $0xf30] sm:$0xff]  ;;  %v10780_v23 = vcombine.low %v1979_v34, %v1983_v51  ;;  %v10782_v59 = vcombine.low %v1980_v8, %v1984_v27  ;;  %v2004_v19 = vld [vmem:[#allocation8 + $0xf98] sm:$0xff] }
 0x429   :  { %8715 = vmatpush1.bf16.msra.mxu0 %v10756_v46  ;;  %v1992_v46 = vld [vmem:[#allocation8 + $0xf38] sm:$0xff]  ;;  %v10789_v22 = vcombine.high %v1987_v47, %v1991_v0  ;;  %v1995_v17 = vld [vmem:[#allocation8 + $0xf50] sm:$0xff]  ;;  %v10788_v45 = vcombine.low %v1987_v47, %v1991_v0 }
 0x42a   :  { %9139 = vmatpush1.bf16.msra.mxu1 %v10758_v29  ;;  %8716 = vmatprep.subr.bf16.mxu0 %v10765_v2  ;;  %v10791_v38 = vcombine.high %v1988_v54, %v1992_v46  ;;  %v1999_v3 = vld [vmem:[#allocation8 + $0xf70] sm:$0xff]  ;;  %v1996_v29 = vld [vmem:[#allocation8 + $0xf58] sm:$0xff]  ;;  %v10790_v39 = vcombine.low %v1988_v54, %v1992_v46 }
 0x42b   :  { %9140 = vmatprep.subr.bf16.mxu1 %v10767_v25  ;;  %v10797_v31 = vcombine.high %v1995_v17, %v1999_v3  ;;  %v10799_v26 = vcombine.high %v1996_v29, %v2000_v44  ;;  %v2003_v5 = vld [vmem:[#allocation8 + $0xf90] sm:$0xff]  ;;  %v2008_v2 = vld [vmem:[#allocation8 + $0xfb8] sm:$0xff]  ;;  %v10796_v25 = vcombine.low %v1995_v17, %v1999_v3  ;;  %v10798_v49 = vcombine.low %v1996_v29, %v2000_v44 }
 0x42c   :  { %v2007_v35 = vld [vmem:[#allocation8 + $0xfb0] sm:$0xff]  ;;  %v10807_v14 = vcombine.high %v2004_v19, %v2008_v2  ;;  %v10806_v34 = vcombine.low %v2004_v19, %v2008_v2 }
 0x42d   :  { %8717 = vmatpush1.bf16.msra.mxu0 %v10764_v6  ;;  %v10805_v36 = vcombine.high %v2003_v5, %v2007_v35  ;;  %v2011_v53 = vld [vmem:[#allocation8 + $0xfd0] sm:$0xff] }
 0x42e   :  { %9141 = vmatpush1.bf16.msra.mxu1 %v10766_v40  ;;  %8718 = vmatprep.subr.bf16.mxu0 %v10773_v9  ;;  %v2015_v6 = vld [vmem:[#allocation8 + $0xff0] sm:$0xff]  ;;  %v2012_v40 = vld [vmem:[#allocation8 + $0xfd8] sm:$0xff] }
 0x42f   :  { %9142 = vmatprep.subr.bf16.mxu1 %v10775_v42  ;;  %v2016_v9 = vld [vmem:[#allocation8 + $0xff8] sm:$0xff]  ;;  %v10804_v42 = vcombine.low %v2003_v5, %v2007_v35  ;;  %v10813_v51 = vcombine.high %v2011_v53, %v2015_v6  ;;  %v2019_v27 = vld [vmem:[#allocation8 + $0x1010] sm:$0xff] }
 0x430   :  { %v10815_v8 = vcombine.high %v2012_v40, %v2016_v9  ;;  %v10814_v47 = vcombine.low %v2012_v40, %v2016_v9  ;;  %v2027_v46 = vld [vmem:[#allocation8 + $0x1050] sm:$0xff]  ;;  %v2052_v9 = vld [vmem:[#allocation8 + $0x1118] sm:$0xff] }
 0x431   :  { %8719 = vmatpush1.bf16.msra.mxu0 %v10772_v11  ;;  %v2023_v11 = vld [vmem:[#allocation8 + $0x1030] sm:$0xff] }
 0x432   :  { %9143 = vmatpush1.bf16.msra.mxu1 %v10774_v58  ;;  %8720 = vmatprep.subr.bf16.mxu0 %v10781_v43  ;;  %v2020_v58 = vld [vmem:[#allocation8 + $0x1018] sm:$0xff]  ;;  %v10821_v0 = vcombine.high %v2019_v27, %v2023_v11  ;;  %v2035_v44 = vld [vmem:[#allocation8 + $0x1090] sm:$0xff] }
 0x433   :  { %9144 = vmatprep.subr.bf16.mxu1 %v10783_v15  ;;  %v2024_v43 = vld [vmem:[#allocation8 + $0x1038] sm:$0xff]  ;;  %v10812_v15 = vcombine.low %v2011_v53, %v2015_v6  ;;  %v2043_v2 = vld [vmem:[#allocation8 + $0x10d0] sm:$0xff] }
 0x434   :  { %v10823_v54 = vcombine.high %v2020_v58, %v2024_v43  ;;  %v10822_v17 = vcombine.low %v2020_v58, %v2024_v43  ;;  %v2051_v6 = vld [vmem:[#allocation8 + $0x1110] sm:$0xff]  ;;  %v2060_v43 = vld [vmem:[#allocation8 + $0x1158] sm:$0xff] }
 0x435   :  { %8721 = vmatpush1.bf16.msra.mxu0 %v10780_v23  ;;  %v2031_v23 = vld [vmem:[#allocation8 + $0x1070] sm:$0xff] }
 0x436   :  { %9145 = vmatpush1.bf16.msra.mxu1 %v10782_v59  ;;  %8722 = vmatprep.subr.bf16.mxu0 %v10789_v22  ;;  %v2028_v59 = vld [vmem:[#allocation8 + $0x1058] sm:$0xff]  ;;  %v10829_v3 = vcombine.high %v2027_v46, %v2031_v23  ;;  %v2055_v40 = vld [vmem:[#allocation8 + $0x1130] sm:$0xff] }
 0x437   :  { %9146 = vmatprep.subr.bf16.mxu1 %v10791_v38  ;;  %v2032_v22 = vld [vmem:[#allocation8 + $0x1078] sm:$0xff]  ;;  %v10820_v38 = vcombine.low %v2019_v27, %v2023_v11  ;;  %v2059_v11 = vld [vmem:[#allocation8 + $0x1150] sm:$0xff] }
 0x438   :  { %v10831_v29 = vcombine.high %v2028_v59, %v2032_v22  ;;  %v10830_v5 = vcombine.low %v2028_v59, %v2032_v22  ;;  %v2063_v58 = vld [vmem:[#allocation8 + $0x1170] sm:$0xff]  ;;  %v2072_v59 = vld [vmem:[#allocation8 + $0x11b8] sm:$0xff] }
 0x439   :  { %8723 = vmatpush1.bf16.msra.mxu0 %v10788_v45  ;;  %v2039_v45 = vld [vmem:[#allocation8 + $0x10b0] sm:$0xff]  ;;  %v10860_v22 = vcombine.low %v2059_v11, %v2063_v58 }
 0x43a   :  { %9147 = vmatpush1.bf16.msra.mxu1 %v10790_v39  ;;  %8724 = vmatprep.subr.bf16.mxu0 %v10797_v31  ;;  %v2036_v39 = vld [vmem:[#allocation8 + $0x1098] sm:$0xff]  ;;  %v10837_v35 = vcombine.high %v2035_v44, %v2039_v45 }
 0x43b   :  { %9148 = vmatprep.subr.bf16.mxu1 %v10799_v26  ;;  %v2040_v31 = vld [vmem:[#allocation8 + $0x10b8] sm:$0xff]  ;;  %v10828_v26 = vcombine.low %v2027_v46, %v2031_v23  ;;  %v2071_v46 = vld [vmem:[#allocation8 + $0x11b0] sm:$0xff] }
 0x43c   :  { %v10839_v19 = vcombine.high %v2036_v39, %v2040_v31  ;;  %v2068_v23 = vld [vmem:[#allocation8 + $0x1198] sm:$0xff] }
 0x43d   :  { %8725 = vmatpush1.bf16.msra.mxu0 %v10796_v25  ;;  %v2047_v25 = vld [vmem:[#allocation8 + $0x10f0] sm:$0xff] }
 0x43e   :  { %9149 = vmatpush1.bf16.msra.mxu1 %v10798_v49  ;;  %8726 = vmatprep.subr.bf16.mxu0 %v10805_v36  ;;  %v2044_v49 = vld [vmem:[#allocation8 + $0x10d8] sm:$0xff]  ;;  %v10845_v53 = vcombine.high %v2043_v2, %v2047_v25 }
 0x43f   :  { %9150 = vmatprep.subr.bf16.mxu1 %v10807_v14  ;;  %v2048_v36 = vld [vmem:[#allocation8 + $0x10f8] sm:$0xff]  ;;  %v10838_v14 = vcombine.low %v2036_v39, %v2040_v31 }
 0x440   :  { %v2080_v39 = vld [vmem:[#allocation8 + $0x11f8] sm:$0xff] }
 0x441   :  { %8727 = vmatpush1.bf16.msra.mxu0 %v10804_v42  ;;  %v2056_v42 = vld [vmem:[#allocation8 + $0x1138] sm:$0xff] }
 0x442   :  { %9151 = vmatpush1.bf16.msra.mxu1 %v10806_v34  ;;  %8728 = vmatprep.subr.bf16.mxu0 %v10813_v51  ;;  %v10844_v34 = vcombine.low %v2043_v2, %v2047_v25  ;;  %v10846_v51 = vcombine.low %v2044_v49, %v2048_v36  ;;  %v10855_v27 = vcombine.high %v2052_v9, %v2056_v42  ;;  %v2087_v2 = vld [vmem:[#allocation8 + $0x1230] sm:$0xff]  ;;  %v2084_v25 = vld [vmem:[#allocation8 + $0x1218] sm:$0xff] }
 0x443   :  { %9152 = vmatprep.subr.bf16.mxu1 %v10815_v8  ;;  %v10853_v8 = vcombine.high %v2051_v6, %v2055_v40 }
 0x445   :  { %8729 = vmatpush1.bf16.msra.mxu0 %v10812_v15  ;;  %v2064_v15 = vld [vmem:[#allocation8 + $0x1178] sm:$0xff] }
 0x446   :  { %9153 = vmatpush1.bf16.msra.mxu1 %v10814_v47  ;;  %8751 = vmatprep.subr.bf16.mxu0 %v10821_v0  ;;  %v10854_v47 = vcombine.low %v2052_v9, %v2056_v42  ;;  %v10861_v0 = vcombine.high %v2059_v11, %v2063_v58  ;;  %v2096_v9 = vld [vmem:[#allocation8 + $0x1278] sm:$0xff]  ;;  %v2103_v11 = vld [vmem:[#allocation8 + $0x12b0] sm:$0xff] }
 0x447   :  { %9175 = vmatprep.subr.bf16.mxu1 %v10823_v54  ;;  %v10863_v54 = vcombine.high %v2060_v43, %v2064_v15  ;;  %v2100_v58 = vld [vmem:[#allocation8 + $0x1298] sm:$0xff] }
 0x448   :  { %8731 = vmatmul.mubr.bf16.vlgmr.msra.gmra.mrb[40].mxu0 %v12348_v63 }
 0x449   :  { %9155 = vmatmul.mubr.bf16.vlgmr.msra.gmra.mrb[40].mxu1 %v12348_v63  ;;  %8740 = vmatprep.mubr.bf16.mxu0 %v12362_v56  ;;  %v10836_v63 = vcombine.low %v2035_v44, %v2039_v45  ;;  %v2079_v44 = vld [vmem:[#allocation8 + $0x11f0] sm:$0xff]  ;;  %v2076_v45 = vld [vmem:[#allocation8 + $0x11d8] sm:$0xff] }
 0x44a   :  { %8752 = vmatpush1.bf16.msra.mxu0 %v10820_v38  ;;  %9164 = vmatprep.mubr.bf16.mxu1 %v12362_v56  ;;  %v10847_v56 = vcombine.high %v2044_v49, %v2048_v36  ;;  %v10862_v38 = vcombine.low %v2060_v43, %v2064_v15  ;;  %v2088_v49 = vld [vmem:[#allocation8 + $0x1238] sm:$0xff] }
 0x44b   :  { %9176 = vmatpush1.bf16.msra.mxu1 %v10822_v17  ;;  %8753 = vmatprep.subr.bf16.mxu0 %v10829_v3  ;;  %v10871_v3 = vcombine.high %v2068_v23, %v2072_v59  ;;  %v2104_v43 = vld [vmem:[#allocation8 + $0x12b8] sm:$0xff] }
 0x44c   :  { %9177 = vmatprep.subr.bf16.mxu1 %v10831_v29  ;;  %v2075_v29 = vld [vmem:[#allocation8 + $0x11d0] sm:$0xff] }
 0x44d   :  { %v10876_v36 = vcombine.low %v2075_v29, %v2079_v44 }
 0x44e   :  { %8754 = vmatpush1.bf16.msra.mxu0 %v10828_v26  ;;  %v10870_v26 = vcombine.low %v2068_v23, %v2072_v59  ;;  %v2112_v23 = vld [vmem:[#allocation8 + $0x12f8] sm:$0xff] }
 0x44f   :  { %9178 = vmatpush1.bf16.msra.mxu1 %v10830_v5  ;;  %8755 = vmatprep.subr.bf16.mxu0 %v10837_v35  ;;  %v10877_v5 = vcombine.high %v2075_v29, %v2079_v44  ;;  %v10879_v35 = vcombine.high %v2076_v45, %v2080_v39  ;;  %v2119_v29 = vld [vmem:[#allocation8 + $0x1330] sm:$0xff]  ;;  %v2116_v44 = vld [vmem:[#allocation8 + $0x1318] sm:$0xff] }
 0x450   :  { %8741 = vmatmul.mubr.bf16.gmra.mrb[44].mxu0 %v12360_v52  ;;  %9179 = vmatprep.subr.bf16.mxu1 %v10839_v19  ;;  %v2083_v19 = vld [vmem:[#allocation8 + $0x1210] sm:$0xff] }
 0x451   :  { %9165 = vmatmul.mubr.bf16.gmra.mrb[44].mxu1 %v12360_v52  ;;  %8783 = vmatprep.mubr.bf16.mxu0 %v12403_v21  ;;  %v10852_v52 = vcombine.low %v2051_v6, %v2055_v40  ;;  %v2095_v6 = vld [vmem:[#allocation8 + $0x1270] sm:$0xff]  ;;  %v2092_v40 = vld [vmem:[#allocation8 + $0x1258] sm:$0xff]  ;;  %v10884_v42 = vcombine.low %v2083_v19, %v2087_v2 }
 0x452   :  { %8756 = vmatpush1.bf16.msra.mxu0 %v10836_v63  ;;  %9207 = vmatprep.mubr.bf16.mxu1 %v12403_v21  ;;  %v2067_v21 = vld [vmem:[#allocation8 + $0x1190] sm:$0xff]  ;;  %v10878_v63 = vcombine.low %v2076_v45, %v2080_v39  ;;  %v2120_v45 = vld [vmem:[#allocation8 + $0x1338] sm:$0xff] }
 0x453   :  { %9180 = vmatpush1.bf16.msra.mxu1 %v10838_v14  ;;  %8757 = vmatprep.subr.bf16.mxu0 %v10845_v53  ;;  %v10869_v17 = vcombine.high %v2067_v21, %v2071_v46  ;;  %v10868_v31 = vcombine.low %v2067_v21, %v2071_v46  ;;  %v10885_v14 = vcombine.high %v2083_v19, %v2087_v2  ;;  %v2111_v21 = vld [vmem:[#allocation8 + $0x12f0] sm:$0xff]  ;;  %v2108_v46 = vld [vmem:[#allocation8 + $0x12d8] sm:$0xff] }
 0x454   :  { %9181 = vmatprep.subr.bf16.mxu1 %v10847_v56  ;;  %v10887_v53 = vcombine.high %v2084_v25, %v2088_v49  ;;  %v2091_v56 = vld [vmem:[#allocation8 + $0x1250] sm:$0xff]  ;;  %v2124_v2 = vld [vmem:[#allocation8 + $0x1358] sm:$0xff] }
 0x455   :  { %v10892_v15 = vcombine.low %v2091_v56, %v2095_v6  ;;  %v2127_v19 = vld [vmem:[#allocation8 + $0x1370] sm:$0xff] }
 0x456   :  { %8758 = vmatpush1.bf16.msra.mxu0 %v10844_v34  ;;  %v10886_v34 = vcombine.low %v2084_v25, %v2088_v49  ;;  %v2128_v25 = vld [vmem:[#allocation8 + $0x1378] sm:$0xff] }
 0x457   :  { %9182 = vmatpush1.bf16.msra.mxu1 %v10846_v51  ;;  %8759 = vmatprep.subr.bf16.mxu0 %v10853_v8  ;;  %v10893_v51 = vcombine.high %v2091_v56, %v2095_v6  ;;  %v10895_v8 = vcombine.high %v2092_v40, %v2096_v9  ;;  %v2135_v56 = vld [vmem:[#allocation8 + $0x13b0] sm:$0xff]  ;;  %v2132_v6 = vld [vmem:[#allocation8 + $0x1398] sm:$0xff] }
 0x458   :  { %9183 = vmatprep.subr.bf16.mxu1 %v10855_v27  ;;  %v2099_v27 = vld [vmem:[#allocation8 + $0x1290] sm:$0xff] }
 0x459   :  { %v10900_v59 = vcombine.low %v2099_v27, %v2103_v11 }
 0x45a   :  { %8760 = vmatpush1.bf16.msra.mxu0 %v10852_v52  ;;  %v10894_v52 = vcombine.low %v2092_v40, %v2096_v9  ;;  %v2136_v40 = vld [vmem:[#allocation8 + $0x13b8] sm:$0xff] }
 0x45b   :  { %9184 = vmatpush1.bf16.msra.mxu1 %v10854_v47  ;;  %8761 = vmatprep.subr.bf16.mxu0 %v10861_v0  ;;  %v10901_v47 = vcombine.high %v2099_v27, %v2103_v11  ;;  %v10903_v0 = vcombine.high %v2100_v58, %v2104_v43  ;;  %v2143_v27 = vld [vmem:[#allocation8 + $0x13f0] sm:$0xff]  ;;  %v2140_v11 = vld [vmem:[#allocation8 + $0x13d8] sm:$0xff] }
 0x45c   :  { %9185 = vmatprep.subr.bf16.mxu1 %v10863_v54  ;;  %v2107_v54 = vld [vmem:[#allocation8 + $0x12d0] sm:$0xff] }
 0x45d   :  { %v10908_v39 = vcombine.low %v2107_v54, %v2111_v21 }
 0x45e   :  { %8762 = vmatpush1.bf16.msra.mxu0 %v10860_v22  ;;  %v10902_v22 = vcombine.low %v2100_v58, %v2104_v43  ;;  %v2144_v58 = vld [vmem:[#allocation8 + $0x13f8] sm:$0xff] }
 0x45f   :  { %9186 = vmatpush1.bf16.msra.mxu1 %v10862_v38  ;;  %8763 = vmatprep.subr.bf16.mxu0 %v10869_v17  ;;  %v10909_v38 = vcombine.high %v2107_v54, %v2111_v21  ;;  %v10911_v17 = vcombine.high %v2108_v46, %v2112_v23  ;;  %v2151_v54 = vld [vmem:[#allocation8 + $0x1430] sm:$0xff]  ;;  %v2148_v21 = vld [vmem:[#allocation8 + $0x1418] sm:$0xff] }
 0x460   :  { %9187 = vmatprep.subr.bf16.mxu1 %v10871_v3  ;;  %v2115_v3 = vld [vmem:[#allocation8 + $0x1310] sm:$0xff] }
 0x461   :  { %v10916_v49 = vcombine.low %v2115_v3, %v2119_v29 }
 0x462   :  { %8764 = vmatpush1.bf16.msra.mxu0 %v10868_v31  ;;  %v10910_v31 = vcombine.low %v2108_v46, %v2112_v23  ;;  %v2152_v46 = vld [vmem:[#allocation8 + $0x1438] sm:$0xff] }
 0x463   :  { %9188 = vmatpush1.bf16.msra.mxu1 %v10870_v26  ;;  %8765 = vmatprep.subr.bf16.mxu0 %v10877_v5  ;;  %v10917_v26 = vcombine.high %v2115_v3, %v2119_v29  ;;  %v10919_v5 = vcombine.high %v2116_v44, %v2120_v45  ;;  %v2159_v3 = vld [vmem:[#allocation8 + $0x1470] sm:$0xff]  ;;  %v2156_v29 = vld [vmem:[#allocation8 + $0x1458] sm:$0xff] }
 0x464   :  { %9189 = vmatprep.subr.bf16.mxu1 %v10879_v35  ;;  %v2123_v35 = vld [vmem:[#allocation8 + $0x1350] sm:$0xff] }
 0x465   :  { %v10924_v9 = vcombine.low %v2123_v35, %v2127_v19 }
 0x466   :  { %8766 = vmatpush1.bf16.msra.mxu0 %v10876_v36  ;;  %v10918_v36 = vcombine.low %v2116_v44, %v2120_v45  ;;  %v2160_v44 = vld [vmem:[#allocation8 + $0x1478] sm:$0xff] }
 0x467   :  { %9190 = vmatpush1.bf16.msra.mxu1 %v10878_v63  ;;  %8767 = vmatprep.subr.bf16.mxu0 %v10885_v14  ;;  %v10925_v63 = vcombine.high %v2123_v35, %v2127_v19  ;;  %v10927_v14 = vcombine.high %v2124_v2, %v2128_v25  ;;  %v2167_v35 = vld [vmem:[#allocation8 + $0x14b0] sm:$0xff]  ;;  %v2164_v19 = vld [vmem:[#allocation8 + $0x1498] sm:$0xff] }
 0x468   :  { %9191 = vmatprep.subr.bf16.mxu1 %v10887_v53  ;;  %v2131_v53 = vld [vmem:[#allocation8 + $0x1390] sm:$0xff] }
 0x469   :  { %v10932_v43 = vcombine.low %v2131_v53, %v2135_v56 }
 0x46a   :  { %8768 = vmatpush1.bf16.msra.mxu0 %v10884_v42  ;;  %v10926_v42 = vcombine.low %v2124_v2, %v2128_v25  ;;  %v2168_v2 = vld [vmem:[#allocation8 + $0x14b8] sm:$0xff] }
 0x46b   :  { %9192 = vmatpush1.bf16.msra.mxu1 %v10886_v34  ;;  %8769 = vmatprep.subr.bf16.mxu0 %v10893_v51  ;;  %v10933_v34 = vcombine.high %v2131_v53, %v2135_v56  ;;  %v10935_v51 = vcombine.high %v2132_v6, %v2136_v40  ;;  %v2175_v53 = vld [vmem:[#allocation8 + $0x14f0] sm:$0xff]  ;;  %v2172_v56 = vld [vmem:[#allocation8 + $0x14d8] sm:$0xff] }
 0x46c   :  { %9193 = vmatprep.subr.bf16.mxu1 %v10895_v8  ;;  %v2139_v8 = vld [vmem:[#allocation8 + $0x13d0] sm:$0xff] }
 0x46d   :  { %v10940_v23 = vcombine.low %v2139_v8, %v2143_v27 }
 0x46e   :  { %8770 = vmatpush1.bf16.msra.mxu0 %v10892_v15  ;;  %v10934_v15 = vcombine.low %v2132_v6, %v2136_v40  ;;  %v2176_v6 = vld [vmem:[#allocation8 + $0x14f8] sm:$0xff]  ;;  %v10966_v40 = vcombine.low %v2164_v19, %v2168_v2 }
 0x46f   :  { %9194 = vmatpush1.bf16.msra.mxu1 %v10894_v52  ;;  %8771 = vmatprep.subr.bf16.mxu0 %v10901_v47  ;;  %v10941_v52 = vcombine.high %v2139_v8, %v2143_v27  ;;  %v10943_v47 = vcombine.high %v2140_v11, %v2144_v58  ;;  %v2184_v8 = vld [vmem:[#allocation8 + $0x1538] sm:$0xff] }
 0x470   :  { %9195 = vmatprep.subr.bf16.mxu1 %v10903_v0  ;;  %v2147_v0 = vld [vmem:[#allocation8 + $0x1410] sm:$0xff] }
 0x471   :  { %v10948_v45 = vcombine.low %v2147_v0, %v2151_v54 }
 0x472   :  { %8772 = vmatpush1.bf16.msra.mxu0 %v10900_v59  ;;  %v10942_v59 = vcombine.low %v2140_v11, %v2144_v58  ;;  %v10974_v11 = vcombine.low %v2172_v56, %v2176_v6 }
 0x473   :  { %9196 = vmatpush1.bf16.msra.mxu1 %v10902_v22  ;;  %8773 = vmatprep.subr.bf16.mxu0 %v10909_v38  ;;  %v10949_v22 = vcombine.high %v2147_v0, %v2151_v54  ;;  %v10951_v38 = vcombine.high %v2148_v21, %v2152_v46  ;;  %v2192_v0 = vld [vmem:[#allocation8 + $0x1578] sm:$0xff] }
 0x474   :  { %9197 = vmatprep.subr.bf16.mxu1 %v10911_v17  ;;  %v2155_v17 = vld [vmem:[#allocation8 + $0x1450] sm:$0xff] }
 0x475   :  { %v10956_v25 = vcombine.low %v2155_v17, %v2159_v3 }
 0x476   :  { %8774 = vmatpush1.bf16.msra.mxu0 %v10908_v39  ;;  %v10950_v39 = vcombine.low %v2148_v21, %v2152_v46 }
 0x477   :  { %9198 = vmatpush1.bf16.msra.mxu1 %v10910_v31  ;;  %8775 = vmatprep.subr.bf16.mxu0 %v10917_v26  ;;  %v10957_v31 = vcombine.high %v2155_v17, %v2159_v3  ;;  %v10959_v26 = vcombine.high %v2156_v29, %v2160_v44 }
 0x478   :  { %9199 = vmatprep.subr.bf16.mxu1 %v10919_v5  ;;  %v2163_v5 = vld [vmem:[#allocation8 + $0x1490] sm:$0xff] }
 0x47a   :  { %8776 = vmatpush1.bf16.msra.mxu0 %v10916_v49  ;;  %v10958_v49 = vcombine.low %v2156_v29, %v2160_v44  ;;  %v2203_v44 = vld [vmem:[#allocation8 + $0x15d0] sm:$0xff] }
 0x47b   :  { %9200 = vmatpush1.bf16.msra.mxu1 %v10918_v36  ;;  %8777 = vmatprep.subr.bf16.mxu0 %v10925_v63  ;;  %v10965_v36 = vcombine.high %v2163_v5, %v2167_v35  ;;  %v10967_v63 = vcombine.high %v2164_v19, %v2168_v2  ;;  %v2211_v2 = vld [vmem:[#allocation8 + $0x1610] sm:$0xff] }
 0x47c   :  { %9201 = vmatprep.subr.bf16.mxu1 %v10927_v14  ;;  %v2171_v14 = vld [vmem:[#allocation8 + $0x14d0] sm:$0xff] }
 0x47d   :  { %v10972_v27 = vcombine.low %v2171_v14, %v2175_v53 }
 0x47e   :  { %8778 = vmatpush1.bf16.msra.mxu0 %v10924_v9  ;;  %v10973_v9 = vcombine.high %v2171_v14, %v2175_v53 }
 0x47f   :  { %9202 = vmatpush1.bf16.msra.mxu1 %v10926_v42  ;;  %8779 = vmatprep.subr.bf16.mxu0 %v10933_v34  ;;  %v2179_v42 = vld [vmem:[#allocation8 + $0x1510] sm:$0xff] }
 0x480   :  { %9203 = vmatprep.subr.bf16.mxu1 %v10935_v51  ;;  %v2183_v34 = vld [vmem:[#allocation8 + $0x1530] sm:$0xff]  ;;  %v2180_v51 = vld [vmem:[#allocation8 + $0x1518] sm:$0xff] }
 0x481   :  { %v10981_v58 = vcombine.high %v2179_v42, %v2183_v34  ;;  %v10982_v54 = vcombine.low %v2180_v51, %v2184_v8 }
 0x482   :  { %8780 = vmatpush1.bf16.msra.mxu0 %v10932_v43  ;;  %v10983_v43 = vcombine.high %v2180_v51, %v2184_v8  ;;  %v2227_v8 = vld [vmem:[#allocation8 + $0x1690] sm:$0xff] }
 0x483   :  { %9204 = vmatpush1.bf16.msra.mxu1 %v10934_v15  ;;  %8781 = vmatprep.subr.bf16.mxu0 %v10941_v52  ;;  %v2187_v15 = vld [vmem:[#allocation8 + $0x1550] sm:$0xff] }
 0x484   :  { %9205 = vmatprep.subr.bf16.mxu1 %v10943_v47  ;;  %v2191_v52 = vld [vmem:[#allocation8 + $0x1570] sm:$0xff]  ;;  %v2188_v47 = vld [vmem:[#allocation8 + $0x1558] sm:$0xff] }
 0x485   :  { %v10989_v21 = vcombine.high %v2187_v15, %v2191_v52  ;;  %v10991_v46 = vcombine.high %v2188_v47, %v2192_v0  ;;  %v10990_v17 = vcombine.low %v2188_v47, %v2192_v0  ;;  %v2235_v0 = vld [vmem:[#allocation8 + $0x16d0] sm:$0xff] }
 0x486   :  { %8782 = vmatpush1.bf16.msra.mxu0 %v10940_v23  ;;  %v2199_v23 = vld [vmem:[#allocation8 + $0x15b0] sm:$0xff] }
 0x487   :  { %9206 = vmatpush1.bf16.msra.mxu1 %v10942_v59  ;;  %8804 = vmatprep.subr.bf16.mxu0 %v10949_v22  ;;  %v2196_v59 = vld [vmem:[#allocation8 + $0x1598] sm:$0xff] }
 0x488   :  { %9228 = vmatprep.subr.bf16.mxu1 %v10951_v38  ;;  %v2200_v22 = vld [vmem:[#allocation8 + $0x15b8] sm:$0xff]  ;;  %v10988_v38 = vcombine.low %v2187_v15, %v2191_v52 }
 0x489   :  { %8784 = vmatmul.mubr.bf16.vlgmr.msra.gmra.mrb[40].mxu0 %v12398_v4  ;;  %v10999_v29 = vcombine.high %v2196_v59, %v2200_v22 }
 0x48a   :  { %9208 = vmatmul.mubr.bf16.vlgmr.msra.gmra.mrb[40].mxu1 %v12398_v4  ;;  %8793 = vmatprep.mubr.bf16.mxu0 %v12433_v18  ;;  %v10964_v4 = vcombine.low %v2163_v5, %v2167_v35  ;;  %v10998_v5 = vcombine.low %v2196_v59, %v2200_v22  ;;  %v2243_v22 = vld [vmem:[#allocation8 + $0x1710] sm:$0xff] }
 0x48b   :  { %8805 = vmatpush1.bf16.msra.mxu0 %v10948_v45  ;;  %9217 = vmatprep.mubr.bf16.mxu1 %v12433_v18  ;;  %v10975_v18 = vcombine.high %v2172_v56, %v2176_v6  ;;  %v2207_v45 = vld [vmem:[#allocation8 + $0x15f0] sm:$0xff] }
 0x48c   :  { %9229 = vmatpush1.bf16.msra.mxu1 %v10950_v39  ;;  %8806 = vmatprep.subr.bf16.mxu0 %v10957_v31  ;;  %v2204_v39 = vld [vmem:[#allocation8 + $0x15d8] sm:$0xff]  ;;  %v11005_v35 = vcombine.high %v2203_v44, %v2207_v45  ;;  %v2219_v6 = vld [vmem:[#allocation8 + $0x1650] sm:$0xff] }
 0x48d   :  { %9230 = vmatprep.subr.bf16.mxu1 %v10959_v26  ;;  %v2208_v31 = vld [vmem:[#allocation8 + $0x15f8] sm:$0xff] }
 0x48e   :  { %v11007_v19 = vcombine.high %v2204_v39, %v2208_v31  ;;  %v11006_v14 = vcombine.low %v2204_v39, %v2208_v31  ;;  %v2251_v31 = vld [vmem:[#allocation8 + $0x1750] sm:$0xff] }
 0x48f   :  { %8807 = vmatpush1.bf16.msra.mxu0 %v10956_v25  ;;  %v2215_v25 = vld [vmem:[#allocation8 + $0x1630] sm:$0xff] }
 0x490   :  { %9231 = vmatpush1.bf16.msra.mxu1 %v10958_v49  ;;  %8808 = vmatprep.subr.bf16.mxu0 %v10965_v36  ;;  %v2212_v49 = vld [vmem:[#allocation8 + $0x1618] sm:$0xff]  ;;  %v11013_v53 = vcombine.high %v2211_v2, %v2215_v25 }
 0x491   :  { %8794 = vmatmul.mubr.bf16.gmra.mrb[44].mxu0 %v12430_v16  ;;  %9232 = vmatprep.subr.bf16.mxu1 %v10967_v63  ;;  %v2216_v36 = vld [vmem:[#allocation8 + $0x1638] sm:$0xff]  ;;  %v11004_v63 = vcombine.low %v2203_v44, %v2207_v45 }
 0x492   :  { %9218 = vmatmul.mubr.bf16.gmra.mrb[44].mxu1 %v12430_v16  ;;  %8836 = vmatprep.mubr.bf16.mxu0 %v12427_v62  ;;  %v10980_v16 = vcombine.low %v2179_v42, %v2183_v34  ;;  %v11015_v56 = vcombine.high %v2212_v49, %v2216_v36  ;;  %v11014_v42 = vcombine.low %v2212_v49, %v2216_v36  ;;  %v2259_v36 = vld [vmem:[#allocation8 + $0x1790] sm:$0xff] }
 0x493   :  { %8809 = vmatpush1.bf16.msra.mxu0 %v10964_v4  ;;  %9260 = vmatprep.mubr.bf16.mxu1 %v12427_v62  ;;  %v2195_v62 = vld [vmem:[#allocation8 + $0x1590] sm:$0xff] }
 0x494   :  { %9233 = vmatpush1.bf16.msra.mxu1 %v10966_v40  ;;  %8810 = vmatprep.subr.bf16.mxu0 %v10973_v9  ;;  %v10997_v3 = vcombine.high %v2195_v62, %v2199_v23  ;;  %v10996_v26 = vcombine.low %v2195_v62, %v2199_v23  ;;  %v2223_v4 = vld [vmem:[#allocation8 + $0x1670] sm:$0xff]  ;;  %v2220_v40 = vld [vmem:[#allocation8 + $0x1658] sm:$0xff] }
 0x495   :  { %9234 = vmatprep.subr.bf16.mxu1 %v10975_v18  ;;  %v2224_v9 = vld [vmem:[#allocation8 + $0x1678] sm:$0xff]  ;;  %v11012_v18 = vcombine.low %v2211_v2, %v2215_v25  ;;  %v11021_v34 = vcombine.high %v2219_v6, %v2223_v4 }
 0x496   :  { %v11023_v51 = vcombine.high %v2220_v40, %v2224_v9  ;;  %v11022_v15 = vcombine.low %v2220_v40, %v2224_v9  ;;  %v2267_v9 = vld [vmem:[#allocation8 + $0x17d0] sm:$0xff] }
 0x497   :  { %8811 = vmatpush1.bf16.msra.mxu0 %v10972_v27  ;;  %v2231_v27 = vld [vmem:[#allocation8 + $0x16b0] sm:$0xff] }
 0x498   :  { %9235 = vmatpush1.bf16.msra.mxu1 %v10974_v11  ;;  %8812 = vmatprep.subr.bf16.mxu0 %v10981_v58  ;;  %v2228_v11 = vld [vmem:[#allocation8 + $0x1698] sm:$0xff]  ;;  %v11029_v52 = vcombine.high %v2227_v8, %v2231_v27 }
 0x499   :  { %9236 = vmatprep.subr.bf16.mxu1 %v10983_v43  ;;  %v2232_v58 = vld [vmem:[#allocation8 + $0x16b8] sm:$0xff]  ;;  %v11020_v43 = vcombine.low %v2219_v6, %v2223_v4 }
 0x49a   :  { %v11031_v47 = vcombine.high %v2228_v11, %v2232_v58  ;;  %v11030_v62 = vcombine.low %v2228_v11, %v2232_v58  ;;  %v2275_v58 = vld [vmem:[#allocation8 + $0x1810] sm:$0xff] }
 0x49b   :  { %8813 = vmatpush1.bf16.msra.mxu0 %v10980_v16  ;;  %v2239_v16 = vld [vmem:[#allocation8 + $0x16f0] sm:$0xff] }
 0x49c   :  { %9237 = vmatpush1.bf16.msra.mxu1 %v10982_v54  ;;  %8814 = vmatprep.subr.bf16.mxu0 %v10989_v21  ;;  %v2236_v54 = vld [vmem:[#allocation8 + $0x16d8] sm:$0xff]  ;;  %v11037_v23 = vcombine.high %v2235_v0, %v2239_v16 }
 0x49d   :  { %9238 = vmatprep.subr.bf16.mxu1 %v10991_v46  ;;  %v2240_v21 = vld [vmem:[#allocation8 + $0x16f8] sm:$0xff]  ;;  %v11028_v46 = vcombine.low %v2227_v8, %v2231_v27 }
 0x49e   :  { %v11039_v59 = vcombine.high %v2236_v54, %v2240_v21  ;;  %v11038_v44 = vcombine.low %v2236_v54, %v2240_v21  ;;  %v2283_v21 = vld [vmem:[#allocation8 + $0x1850] sm:$0xff] }
 0x49f   :  { %8815 = vmatpush1.bf16.msra.mxu0 %v10988_v38  ;;  %v2247_v38 = vld [vmem:[#allocation8 + $0x1730] sm:$0xff] }
 0x4a0   :  { %9239 = vmatpush1.bf16.msra.mxu1 %v10990_v17  ;;  %8816 = vmatprep.subr.bf16.mxu0 %v10997_v3  ;;  %v2244_v17 = vld [vmem:[#allocation8 + $0x1718] sm:$0xff]  ;;  %v11045_v45 = vcombine.high %v2243_v22, %v2247_v38 }
 0x4a1   :  { %9240 = vmatprep.subr.bf16.mxu1 %v10999_v29  ;;  %v2248_v3 = vld [vmem:[#allocation8 + $0x1738] sm:$0xff]  ;;  %v11036_v29 = vcombine.low %v2235_v0, %v2239_v16 }
 0x4a2   :  { %v11047_v39 = vcombine.high %v2244_v17, %v2248_v3  ;;  %v11046_v2 = vcombine.low %v2244_v17, %v2248_v3  ;;  %v2291_v3 = vld [vmem:[#allocation8 + $0x1890] sm:$0xff] }
 0x4a3   :  { %8817 = vmatpush1.bf16.msra.mxu0 %v10996_v26  ;;  %v2255_v26 = vld [vmem:[#allocation8 + $0x1770] sm:$0xff] }
 0x4a4   :  { %9241 = vmatpush1.bf16.msra.mxu1 %v10998_v5  ;;  %8818 = vmatprep.subr.bf16.mxu0 %v11005_v35  ;;  %v2252_v5 = vld [vmem:[#allocation8 + $0x1758] sm:$0xff]  ;;  %v11053_v25 = vcombine.high %v2251_v31, %v2255_v26 }
 0x4a5   :  { %9242 = vmatprep.subr.bf16.mxu1 %v11007_v19  ;;  %v2256_v35 = vld [vmem:[#allocation8 + $0x1778] sm:$0xff]  ;;  %v11044_v19 = vcombine.low %v2243_v22, %v2247_v38 }
 0x4a6   :  { %v11055_v49 = vcombine.high %v2252_v5, %v2256_v35  ;;  %v11054_v6 = vcombine.low %v2252_v5, %v2256_v35  ;;  %v2299_v35 = vld [vmem:[#allocation8 + $0x18d0] sm:$0xff] }
 0x4a7   :  { %8819 = vmatpush1.bf16.msra.mxu0 %v11004_v63  ;;  %v2263_v63 = vld [vmem:[#allocation8 + $0x17b0] sm:$0xff] }
 0x4a8   :  { %9243 = vmatpush1.bf16.msra.mxu1 %v11006_v14  ;;  %8820 = vmatprep.subr.bf16.mxu0 %v11013_v53  ;;  %v2260_v14 = vld [vmem:[#allocation8 + $0x1798] sm:$0xff]  ;;  %v11061_v4 = vcombine.high %v2259_v36, %v2263_v63 }
 0x4a9   :  { %9244 = vmatprep.subr.bf16.mxu1 %v11015_v56  ;;  %v2264_v53 = vld [vmem:[#allocation8 + $0x17b8] sm:$0xff]  ;;  %v11052_v56 = vcombine.low %v2251_v31, %v2255_v26 }
 0x4aa   :  { %v11063_v40 = vcombine.high %v2260_v14, %v2264_v53  ;;  %v11062_v8 = vcombine.low %v2260_v14, %v2264_v53  ;;  %v2311_v14 = vld [vmem:[#allocation8 + $0x1930] sm:$0xff]  ;;  %v2308_v53 = vld [vmem:[#allocation8 + $0x1918] sm:$0xff] }
 0x4ab   :  { %8821 = vmatpush1.bf16.msra.mxu0 %v11012_v18  ;;  %v2271_v18 = vld [vmem:[#allocation8 + $0x17f0] sm:$0xff] }
 0x4ac   :  { %9245 = vmatpush1.bf16.msra.mxu1 %v11014_v42  ;;  %8822 = vmatprep.subr.bf16.mxu0 %v11021_v34  ;;  %v2268_v42 = vld [vmem:[#allocation8 + $0x17d8] sm:$0xff]  ;;  %v11069_v27 = vcombine.high %v2267_v9, %v2271_v18 }
 0x4ad   :  { %9246 = vmatprep.subr.bf16.mxu1 %v11023_v51  ;;  %v2272_v34 = vld [vmem:[#allocation8 + $0x17f8] sm:$0xff]  ;;  %v11060_v51 = vcombine.low %v2259_v36, %v2263_v63  ;;  %v2307_v63 = vld [vmem:[#allocation8 + $0x1910] sm:$0xff] }
 0x4ae   :  { %v11071_v11 = vcombine.high %v2268_v42, %v2272_v34  ;;  %v11070_v0 = vcombine.low %v2268_v42, %v2272_v34  ;;  %v2319_v42 = vld [vmem:[#allocation8 + $0x1970] sm:$0xff]  ;;  %v2316_v34 = vld [vmem:[#allocation8 + $0x1958] sm:$0xff] }
 0x4af   :  { %8823 = vmatpush1.bf16.msra.mxu0 %v11020_v43  ;;  %v2279_v43 = vld [vmem:[#allocation8 + $0x1830] sm:$0xff] }
 0x4b0   :  { %9247 = vmatpush1.bf16.msra.mxu1 %v11022_v15  ;;  %8824 = vmatprep.subr.bf16.mxu0 %v11029_v52  ;;  %v2276_v15 = vld [vmem:[#allocation8 + $0x1818] sm:$0xff]  ;;  %v11077_v16 = vcombine.high %v2275_v58, %v2279_v43 }
 0x4b1   :  { %9248 = vmatprep.subr.bf16.mxu1 %v11031_v47  ;;  %v2280_v52 = vld [vmem:[#allocation8 + $0x1838] sm:$0xff]  ;;  %v11068_v47 = vcombine.low %v2267_v9, %v2271_v18  ;;  %v2315_v18 = vld [vmem:[#allocation8 + $0x1950] sm:$0xff] }
 0x4b2   :  { %v11079_v54 = vcombine.high %v2276_v15, %v2280_v52  ;;  %v11078_v22 = vcombine.low %v2276_v15, %v2280_v52  ;;  %v2328_v15 = vld [vmem:[#allocation8 + $0x19b8] sm:$0xff]  ;;  %v11116_v52 = vcombine.low %v2315_v18, %v2319_v42 }
 0x4b3   :  { %8825 = vmatpush1.bf16.msra.mxu0 %v11028_v46  ;;  %v2287_v46 = vld [vmem:[#allocation8 + $0x1870] sm:$0xff] }
 0x4b4   :  { %9249 = vmatpush1.bf16.msra.mxu1 %v11030_v62  ;;  %8826 = vmatprep.subr.bf16.mxu0 %v11037_v23  ;;  %v2284_v62 = vld [vmem:[#allocation8 + $0x1858] sm:$0xff]  ;;  %v11085_v38 = vcombine.high %v2283_v21, %v2287_v46 }
 0x4b5   :  { %9250 = vmatprep.subr.bf16.mxu1 %v11039_v59  ;;  %v2288_v23 = vld [vmem:[#allocation8 + $0x1878] sm:$0xff]  ;;  %v11076_v59 = vcombine.low %v2275_v58, %v2279_v43  ;;  %v2327_v58 = vld [vmem:[#allocation8 + $0x19b0] sm:$0xff] }
 0x4b6   :  { %v11087_v17 = vcombine.high %v2284_v62, %v2288_v23  ;;  %v11086_v31 = vcombine.low %v2284_v62, %v2288_v23  ;;  %v2324_v43 = vld [vmem:[#allocation8 + $0x1998] sm:$0xff] }
 0x4b7   :  { %8827 = vmatpush1.bf16.msra.mxu0 %v11036_v29  ;;  %v2295_v29 = vld [vmem:[#allocation8 + $0x18b0] sm:$0xff]  ;;  %v2336_v62 = vld [vmem:[#allocation8 + $0x19f8] sm:$0xff] }
 0x4b8   :  { %9251 = vmatpush1.bf16.msra.mxu1 %v11038_v44  ;;  %8828 = vmatprep.subr.bf16.mxu0 %v11045_v45  ;;  %v2292_v44 = vld [vmem:[#allocation8 + $0x1898] sm:$0xff]  ;;  %v11093_v26 = vcombine.high %v2291_v3, %v2295_v29 }
 0x4b9   :  { %9252 = vmatprep.subr.bf16.mxu1 %v11047_v39  ;;  %v2296_v45 = vld [vmem:[#allocation8 + $0x18b8] sm:$0xff]  ;;  %v11084_v39 = vcombine.low %v2283_v21, %v2287_v46  ;;  %v2335_v21 = vld [vmem:[#allocation8 + $0x19f0] sm:$0xff] }
 0x4ba   :  { %v11095_v5 = vcombine.high %v2292_v44, %v2296_v45  ;;  %v2332_v46 = vld [vmem:[#allocation8 + $0x19d8] sm:$0xff] }
 0x4bb   :  { %8829 = vmatpush1.bf16.msra.mxu0 %v11044_v19  ;;  %v2303_v19 = vld [vmem:[#allocation8 + $0x18f0] sm:$0xff] }
 0x4bc   :  { %9253 = vmatpush1.bf16.msra.mxu1 %v11046_v2  ;;  %8830 = vmatprep.subr.bf16.mxu0 %v11053_v25  ;;  %v2300_v2 = vld [vmem:[#allocation8 + $0x18d8] sm:$0xff]  ;;  %v11101_v36 = vcombine.high %v2299_v35, %v2303_v19 }
 0x4bd   :  { %9254 = vmatprep.subr.bf16.mxu1 %v11055_v49  ;;  %v2304_v25 = vld [vmem:[#allocation8 + $0x18f8] sm:$0xff]  ;;  %v11094_v49 = vcombine.low %v2292_v44, %v2296_v45 }
 0x4be   :  { %v2344_v44 = vld [vmem:[#allocation8 + $0x1a38] sm:$0xff] }
 0x4bf   :  { %8831 = vmatpush1.bf16.msra.mxu0 %v11052_v56  ;;  %v2312_v56 = vld [vmem:[#allocation8 + $0x1938] sm:$0xff] }
 0x4c0   :  { %9255 = vmatpush1.bf16.msra.mxu1 %v11054_v6  ;;  %8832 = vmatprep.subr.bf16.mxu0 %v11061_v4  ;;  %v11100_v6 = vcombine.low %v2299_v35, %v2303_v19  ;;  %v11102_v4 = vcombine.low %v2300_v2, %v2304_v25  ;;  %v11111_v9 = vcombine.high %v2308_v53, %v2312_v56  ;;  %v2351_v35 = vld [vmem:[#allocation8 + $0x1a70] sm:$0xff]  ;;  %v2348_v19 = vld [vmem:[#allocation8 + $0x1a58] sm:$0xff] }
 0x4c1   :  { %9256 = vmatprep.subr.bf16.mxu1 %v11063_v40  ;;  %v11109_v40 = vcombine.high %v2307_v63, %v2311_v14 }
 0x4c3   :  { %8833 = vmatpush1.bf16.msra.mxu0 %v11060_v51  ;;  %v2320_v51 = vld [vmem:[#allocation8 + $0x1978] sm:$0xff] }
 0x4c4   :  { %9257 = vmatpush1.bf16.msra.mxu1 %v11062_v8  ;;  %8834 = vmatprep.subr.bf16.mxu0 %v11069_v27  ;;  %v11110_v8 = vcombine.low %v2308_v53, %v2312_v56  ;;  %v11117_v27 = vcombine.high %v2315_v18, %v2319_v42  ;;  %v2360_v53 = vld [vmem:[#allocation8 + $0x1ab8] sm:$0xff]  ;;  %v2367_v18 = vld [vmem:[#allocation8 + $0x1af0] sm:$0xff] }
 0x4c5   :  { %9258 = vmatprep.subr.bf16.mxu1 %v11071_v11  ;;  %v11119_v11 = vcombine.high %v2316_v34, %v2320_v51  ;;  %v2364_v42 = vld [vmem:[#allocation8 + $0x1ad8] sm:$0xff] }
 0x4c7   :  { %8835 = vmatpush1.bf16.msra.mxu0 %v11068_v47  ;;  %v11118_v47 = vcombine.low %v2316_v34, %v2320_v51  ;;  %v2368_v34 = vld [vmem:[#allocation8 + $0x1af8] sm:$0xff] }
 0x4c8   :  { %9259 = vmatpush1.bf16.msra.mxu1 %v11070_v0  ;;  %8857 = vmatprep.subr.bf16.mxu0 %v11077_v16  ;;  %v11127_v16 = vcombine.high %v2324_v43, %v2328_v15 }
 0x4c9   :  { %9281 = vmatprep.subr.bf16.mxu1 %v11079_v54  ;;  %v2331_v54 = vld [vmem:[#allocation8 + $0x19d0] sm:$0xff] }
 0x4ca   :  { %8837 = vmatmul.mubr.bf16.vlgmr.msra.gmra.mrb[40].mxu0 %v12423_v60  ;;  %v11132_v45 = vcombine.low %v2331_v54, %v2335_v21 }
 0x4cb   :  { %9261 = vmatmul.mubr.bf16.vlgmr.msra.gmra.mrb[40].mxu1 %v12423_v60  ;;  %8846 = vmatprep.mubr.bf16.mxu0 %v12444_v20  ;;  %v11092_v60 = vcombine.low %v2291_v3, %v2295_v29  ;;  %v2343_v3 = vld [vmem:[#allocation8 + $0x1a30] sm:$0xff]  ;;  %v2340_v29 = vld [vmem:[#allocation8 + $0x1a18] sm:$0xff] }
 0x4cc   :  { %8858 = vmatpush1.bf16.msra.mxu0 %v11076_v59  ;;  %9270 = vmatprep.mubr.bf16.mxu1 %v12444_v20  ;;  %v11103_v20 = vcombine.high %v2300_v2, %v2304_v25  ;;  %v11126_v59 = vcombine.low %v2324_v43, %v2328_v15  ;;  %v2352_v2 = vld [vmem:[#allocation8 + $0x1a78] sm:$0xff] }
 0x4cd   :  { %9282 = vmatpush1.bf16.msra.mxu1 %v11078_v22  ;;  %8859 = vmatprep.subr.bf16.mxu0 %v11085_v38  ;;  %v11133_v22 = vcombine.high %v2331_v54, %v2335_v21  ;;  %v11135_v38 = vcombine.high %v2332_v46, %v2336_v62  ;;  %v2376_v43 = vld [vmem:[#allocation8 + $0x1b38] sm:$0xff]  ;;  %v2383_v54 = vld [vmem:[#allocation8 + $0x1b70] sm:$0xff] }
 0x4ce   :  { %9283 = vmatprep.subr.bf16.mxu1 %v11087_v17  ;;  %v2339_v17 = vld [vmem:[#allocation8 + $0x1a10] sm:$0xff]  ;;  %v2380_v21 = vld [vmem:[#allocation8 + $0x1b58] sm:$0xff] }
 0x4cf   :  { %v11140_v25 = vcombine.low %v2339_v17, %v2343_v3 }
 0x4d0   :  { %8860 = vmatpush1.bf16.msra.mxu0 %v11084_v39  ;;  %v11134_v39 = vcombine.low %v2332_v46, %v2336_v62  ;;  %v2384_v46 = vld [vmem:[#allocation8 + $0x1b78] sm:$0xff] }
 0x4d1   :  { %9284 = vmatpush1.bf16.msra.mxu1 %v11086_v31  ;;  %8861 = vmatprep.subr.bf16.mxu0 %v11093_v26  ;;  %v11141_v31 = vcombine.high %v2339_v17, %v2343_v3  ;;  %v11143_v26 = vcombine.high %v2340_v29, %v2344_v44  ;;  %v2391_v17 = vld [vmem:[#allocation8 + $0x1bb0] sm:$0xff]  ;;  %v2388_v3 = vld [vmem:[#allocation8 + $0x1b98] sm:$0xff] }
 0x4d2   :  { %8847 = vmatmul.mubr.bf16.gmra.mrb[44].mxu0 %v12440_v24  ;;  %9285 = vmatprep.subr.bf16.mxu1 %v11095_v5  ;;  %v2347_v5 = vld [vmem:[#allocation8 + $0x1a50] sm:$0xff] }
 0x4d3   :  { %9271 = vmatmul.mubr.bf16.gmra.mrb[44].mxu1 %v12440_v24  ;;  %8889 = vmatprep.mubr.bf16.mxu0 %v12476_v1  ;;  %v11108_v24 = vcombine.low %v2307_v63, %v2311_v14  ;;  %v2359_v63 = vld [vmem:[#allocation8 + $0x1ab0] sm:$0xff]  ;;  %v2356_v14 = vld [vmem:[#allocation8 + $0x1a98] sm:$0xff]  ;;  %v11148_v56 = vcombine.low %v2347_v5, %v2351_v35 }
 0x4d4   :  { %8862 = vmatpush1.bf16.msra.mxu0 %v11092_v60  ;;  %9313 = vmatprep.mubr.bf16.mxu1 %v12476_v1  ;;  %v2323_v1 = vld [vmem:[#allocation8 + $0x1990] sm:$0xff]  ;;  %v11142_v60 = vcombine.low %v2340_v29, %v2344_v44  ;;  %v2392_v29 = vld [vmem:[#allocation8 + $0x1bb8] sm:$0xff] }
 0x4d5   :  { %9286 = vmatpush1.bf16.msra.mxu1 %v11094_v49  ;;  %8863 = vmatprep.subr.bf16.mxu0 %v11101_v36  ;;  %v11125_v0 = vcombine.high %v2323_v1, %v2327_v58  ;;  %v11124_v23 = vcombine.low %v2323_v1, %v2327_v58  ;;  %v11149_v49 = vcombine.high %v2347_v5, %v2351_v35  ;;  %v2375_v1 = vld [vmem:[#allocation8 + $0x1b30] sm:$0xff]  ;;  %v2372_v58 = vld [vmem:[#allocation8 + $0x1b18] sm:$0xff] }
 0x4d6   :  { %9287 = vmatprep.subr.bf16.mxu1 %v11103_v20  ;;  %v11151_v36 = vcombine.high %v2348_v19, %v2352_v2  ;;  %v2355_v20 = vld [vmem:[#allocation8 + $0x1a90] sm:$0xff]  ;;  %v2396_v35 = vld [vmem:[#allocation8 + $0x1bd8] sm:$0xff] }
 0x4d7   :  { %v11156_v51 = vcombine.low %v2355_v20, %v2359_v63  ;;  %v2399_v5 = vld [vmem:[#allocation8 + $0x1bf0] sm:$0xff] }
 0x4d8   :  { %8864 = vmatpush1.bf16.msra.mxu0 %v11100_v6  ;;  %v11150_v6 = vcombine.low %v2348_v19, %v2352_v2  ;;  %v2400_v19 = vld [vmem:[#allocation8 + $0x1bf8] sm:$0xff] }
 0x4d9   :  { %9288 = vmatpush1.bf16.msra.mxu1 %v11102_v4  ;;  %8865 = vmatprep.subr.bf16.mxu0 %v11109_v40  ;;  %v11157_v4 = vcombine.high %v2355_v20, %v2359_v63  ;;  %v11159_v40 = vcombine.high %v2356_v14, %v2360_v53  ;;  %v2407_v20 = vld [vmem:[#allocation8 + $0x1c30] sm:$0xff]  ;;  %v2404_v63 = vld [vmem:[#allocation8 + $0x1c18] sm:$0xff] }
 0x4da   :  { %9289 = vmatprep.subr.bf16.mxu1 %v11111_v9  ;;  %v2363_v9 = vld [vmem:[#allocation8 + $0x1ad0] sm:$0xff] }
 0x4db   :  { %v11164_v15 = vcombine.low %v2363_v9, %v2367_v18 }
 0x4dc   :  { %8866 = vmatpush1.bf16.msra.mxu0 %v11108_v24  ;;  %v11158_v24 = vcombine.low %v2356_v14, %v2360_v53  ;;  %v2408_v14 = vld [vmem:[#allocation8 + $0x1c38] sm:$0xff] }
 0x4dd   :  { %9290 = vmatpush1.bf16.msra.mxu1 %v11110_v8  ;;  %8867 = vmatprep.subr.bf16.mxu0 %v11117_v27  ;;  %v11165_v8 = vcombine.high %v2363_v9, %v2367_v18  ;;  %v11167_v27 = vcombine.high %v2364_v42, %v2368_v34  ;;  %v2415_v9 = vld [vmem:[#allocation8 + $0x1c70] sm:$0xff]  ;;  %v2412_v18 = vld [vmem:[#allocation8 + $0x1c58] sm:$0xff] }
 0x4de   :  { %9291 = vmatprep.subr.bf16.mxu1 %v11119_v11  ;;  %v2371_v11 = vld [vmem:[#allocation8 + $0x1b10] sm:$0xff] }
 0x4df   :  { %v11172_v62 = vcombine.low %v2371_v11, %v2375_v1 }
 0x4e0   :  { %8868 = vmatpush1.bf16.msra.mxu0 %v11116_v52  ;;  %v11166_v52 = vcombine.low %v2364_v42, %v2368_v34  ;;  %v2416_v42 = vld [vmem:[#allocation8 + $0x1c78] sm:$0xff] }
 0x4e1   :  { %9292 = vmatpush1.bf16.msra.mxu1 %v11118_v47  ;;  %8869 = vmatprep.subr.bf16.mxu0 %v11125_v0  ;;  %v11173_v47 = vcombine.high %v2371_v11, %v2375_v1  ;;  %v11175_v0 = vcombine.high %v2372_v58, %v2376_v43  ;;  %v2423_v11 = vld [vmem:[#allocation8 + $0x1cb0] sm:$0xff]  ;;  %v2420_v1 = vld [vmem:[#allocation8 + $0x1c98] sm:$0xff] }
 0x4e2   :  { %9293 = vmatprep.subr.bf16.mxu1 %v11127_v16  ;;  %v2379_v16 = vld [vmem:[#allocation8 + $0x1b50] sm:$0xff] }
 0x4e3   :  { %v11180_v44 = vcombine.low %v2379_v16, %v2383_v54 }
 0x4e4   :  { %8870 = vmatpush1.bf16.msra.mxu0 %v11124_v23  ;;  %v11174_v23 = vcombine.low %v2372_v58, %v2376_v43  ;;  %v2424_v58 = vld [vmem:[#allocation8 + $0x1cb8] sm:$0xff] }
 0x4e5   :  { %9294 = vmatpush1.bf16.msra.mxu1 %v11126_v59  ;;  %8871 = vmatprep.subr.bf16.mxu0 %v11133_v22  ;;  %v11181_v59 = vcombine.high %v2379_v16, %v2383_v54  ;;  %v11183_v22 = vcombine.high %v2380_v21, %v2384_v46  ;;  %v2431_v16 = vld [vmem:[#allocation8 + $0x1cf0] sm:$0xff]  ;;  %v2428_v54 = vld [vmem:[#allocation8 + $0x1cd8] sm:$0xff] }
 0x4e6   :  { %9295 = vmatprep.subr.bf16.mxu1 %v11135_v38  ;;  %v2387_v38 = vld [vmem:[#allocation8 + $0x1b90] sm:$0xff] }
 0x4e7   :  { %v11188_v2 = vcombine.low %v2387_v38, %v2391_v17 }
 0x4e8   :  { %8872 = vmatpush1.bf16.msra.mxu0 %v11132_v45  ;;  %v11182_v45 = vcombine.low %v2380_v21, %v2384_v46  ;;  %v2432_v21 = vld [vmem:[#allocation8 + $0x1cf8] sm:$0xff]  ;;  %v11222_v46 = vcombine.low %v2420_v1, %v2424_v58 }
 0x4e9   :  { %9296 = vmatpush1.bf16.msra.mxu1 %v11134_v39  ;;  %8873 = vmatprep.subr.bf16.mxu0 %v11141_v31  ;;  %v11189_v39 = vcombine.high %v2387_v38, %v2391_v17  ;;  %v11191_v31 = vcombine.high %v2388_v3, %v2392_v29  ;;  %v2440_v38 = vld [vmem:[#allocation8 + $0x1d38] sm:$0xff] }
 0x4ea   :  { %9297 = vmatprep.subr.bf16.mxu1 %v11143_v26  ;;  %v2395_v26 = vld [vmem:[#allocation8 + $0x1bd0] sm:$0xff] }
 0x4eb   :  { %v11196_v53 = vcombine.low %v2395_v26, %v2399_v5 }
 0x4ec   :  { %8874 = vmatpush1.bf16.msra.mxu0 %v11140_v25  ;;  %v11190_v25 = vcombine.low %v2388_v3, %v2392_v29  ;;  %v11230_v3 = vcombine.low %v2428_v54, %v2432_v21 }
 0x4ed   :  { %9298 = vmatpush1.bf16.msra.mxu1 %v11142_v60  ;;  %8875 = vmatprep.subr.bf16.mxu0 %v11149_v49  ;;  %v11197_v60 = vcombine.high %v2395_v26, %v2399_v5  ;;  %v11199_v49 = vcombine.high %v2396_v35, %v2400_v19  ;;  %v2448_v26 = vld [vmem:[#allocation8 + $0x1d78] sm:$0xff] }
 0x4ee   :  { %9299 = vmatprep.subr.bf16.mxu1 %v11151_v36  ;;  %v2403_v36 = vld [vmem:[#allocation8 + $0x1c10] sm:$0xff] }
 0x4ef   :  { %v11204_v34 = vcombine.low %v2403_v36, %v2407_v20 }
 0x4f0   :  { %8876 = vmatpush1.bf16.msra.mxu0 %v11148_v56  ;;  %v11198_v56 = vcombine.low %v2396_v35, %v2400_v19 }
 0x4f1   :  { %9300 = vmatpush1.bf16.msra.mxu1 %v11150_v6  ;;  %8877 = vmatprep.subr.bf16.mxu0 %v11157_v4  ;;  %v11205_v6 = vcombine.high %v2403_v36, %v2407_v20  ;;  %v11207_v4 = vcombine.high %v2404_v63, %v2408_v14 }
 0x4f2   :  { %9301 = vmatprep.subr.bf16.mxu1 %v11159_v40  ;;  %v2411_v40 = vld [vmem:[#allocation8 + $0x1c50] sm:$0xff] }
 0x4f3   :  { %v11212_v43 = vcombine.low %v2411_v40, %v2415_v9 }
 0x4f4   :  { %8878 = vmatpush1.bf16.msra.mxu0 %v11156_v51  ;;  %v11206_v51 = vcombine.low %v2404_v63, %v2408_v14  ;;  %v2459_v14 = vld [vmem:[#allocation8 + $0x1dd0] sm:$0xff] }
 0x4f5   :  { %9302 = vmatpush1.bf16.msra.mxu1 %v11158_v24  ;;  %8879 = vmatprep.subr.bf16.mxu0 %v11165_v8  ;;  %v11213_v24 = vcombine.high %v2411_v40, %v2415_v9  ;;  %v11215_v8 = vcombine.high %v2412_v18, %v2416_v42 }
 0x4f6   :  { %9303 = vmatprep.subr.bf16.mxu1 %v11167_v27  ;;  %v2419_v27 = vld [vmem:[#allocation8 + $0x1c90] sm:$0xff] }
 0x4f8   :  { %8880 = vmatpush1.bf16.msra.mxu0 %v11164_v15  ;;  %v11214_v15 = vcombine.low %v2412_v18, %v2416_v42  ;;  %v2467_v42 = vld [vmem:[#allocation8 + $0x1e10] sm:$0xff] }
 0x4f9   :  { %9304 = vmatpush1.bf16.msra.mxu1 %v11166_v52  ;;  %8881 = vmatprep.subr.bf16.mxu0 %v11173_v47  ;;  %v11221_v52 = vcombine.high %v2419_v27, %v2423_v11  ;;  %v11223_v47 = vcombine.high %v2420_v1, %v2424_v58  ;;  %v2475_v58 = vld [vmem:[#allocation8 + $0x1e50] sm:$0xff] }
 0x4fa   :  { %9305 = vmatprep.subr.bf16.mxu1 %v11175_v0  ;;  %v2427_v0 = vld [vmem:[#allocation8 + $0x1cd0] sm:$0xff] }
 0x4fb   :  { %v11228_v17 = vcombine.low %v2427_v0, %v2431_v16 }
 0x4fc   :  { %8882 = vmatpush1.bf16.msra.mxu0 %v11172_v62  ;;  %v11229_v62 = vcombine.high %v2427_v0, %v2431_v16 }
 0x4fd   :  { %9306 = vmatpush1.bf16.msra.mxu1 %v11174_v23  ;;  %8883 = vmatprep.subr.bf16.mxu0 %v11181_v59  ;;  %v2435_v23 = vld [vmem:[#allocation8 + $0x1d10] sm:$0xff] }
 0x4fe   :  { %9307 = vmatprep.subr.bf16.mxu1 %v11183_v22  ;;  %v2439_v59 = vld [vmem:[#allocation8 + $0x1d30] sm:$0xff]  ;;  %v2436_v22 = vld [vmem:[#allocation8 + $0x1d18] sm:$0xff] }
 0x4ff   :  { %v11237_v29 = vcombine.high %v2435_v23, %v2439_v59  ;;  %v11238_v5 = vcombine.low %v2436_v22, %v2440_v38 }
 0x500   :  { %8884 = vmatpush1.bf16.msra.mxu0 %v11180_v44  ;;  %v11239_v44 = vcombine.high %v2436_v22, %v2440_v38  ;;  %v2491_v38 = vld [vmem:[#allocation8 + $0x1ed0] sm:$0xff] }
 0x501   :  { %9308 = vmatpush1.bf16.msra.mxu1 %v11182_v45  ;;  %8885 = vmatprep.subr.bf16.mxu0 %v11189_v39  ;;  %v2443_v45 = vld [vmem:[#allocation8 + $0x1d50] sm:$0xff] }
 0x502   :  { %9309 = vmatprep.subr.bf16.mxu1 %v11191_v31  ;;  %v2447_v39 = vld [vmem:[#allocation8 + $0x1d70] sm:$0xff]  ;;  %v2444_v31 = vld [vmem:[#allocation8 + $0x1d58] sm:$0xff] }
 0x503   :  { %v11245_v35 = vcombine.high %v2443_v45, %v2447_v39  ;;  %v11247_v19 = vcombine.high %v2444_v31, %v2448_v26  ;;  %v11246_v36 = vcombine.low %v2444_v31, %v2448_v26  ;;  %v2499_v26 = vld [vmem:[#allocation8 + $0x1f10] sm:$0xff] }
 0x504   :  { %8886 = vmatpush1.bf16.msra.mxu0 %v11188_v2  ;;  %v2455_v2 = vld [vmem:[#allocation8 + $0x1db0] sm:$0xff] }
 0x505   :  { %9310 = vmatpush1.bf16.msra.mxu1 %v11190_v25  ;;  %8887 = vmatprep.subr.bf16.mxu0 %v11197_v60  ;;  %v2452_v25 = vld [vmem:[#allocation8 + $0x1d98] sm:$0xff] }
 0x506   :  { %9311 = vmatprep.subr.bf16.mxu1 %v11199_v49  ;;  %v2456_v60 = vld [vmem:[#allocation8 + $0x1db8] sm:$0xff]  ;;  %v11244_v49 = vcombine.low %v2443_v45, %v2447_v39 }
 0x507   :  { %v11255_v63 = vcombine.high %v2452_v25, %v2456_v60  ;;  %v11254_v40 = vcombine.low %v2452_v25, %v2456_v60  ;;  %v2507_v60 = vld [vmem:[#allocation8 + $0x1f50] sm:$0xff] }
 0x508   :  { %8888 = vmatpush1.bf16.msra.mxu0 %v11196_v53  ;;  %v2463_v53 = vld [vmem:[#allocation8 + $0x1df0] sm:$0xff] }
 0x509   :  { %9312 = vmatpush1.bf16.msra.mxu1 %v11198_v56  ;;  %8910 = vmatprep.subr.bf16.mxu0 %v11205_v6  ;;  %v2460_v56 = vld [vmem:[#allocation8 + $0x1dd8] sm:$0xff]  ;;  %v11261_v9 = vcombine.high %v2459_v14, %v2463_v53 }
 0x50a   :  { %9334 = vmatprep.subr.bf16.mxu1 %v11207_v4  ;;  %v2464_v6 = vld [vmem:[#allocation8 + $0x1df8] sm:$0xff] }
 0x50b   :  { %8890 = vmatmul.mubr.bf16.vlgmr.msra.gmra.mrb[40].mxu0 %v12472_v50  ;;  %v11263_v18 = vcombine.high %v2460_v56, %v2464_v6 }
 0x50c   :  { %9314 = vmatmul.mubr.bf16.vlgmr.msra.gmra.mrb[40].mxu1 %v12472_v50  ;;  %8899 = vmatprep.mubr.bf16.mxu0 %v12493_v13  ;;  %v11220_v50 = vcombine.low %v2419_v27, %v2423_v11  ;;  %v11262_v27 = vcombine.low %v2460_v56, %v2464_v6  ;;  %v2515_v6 = vld [vmem:[#allocation8 + $0x1f90] sm:$0xff] }
 0x50d   :  { %8911 = vmatpush1.bf16.msra.mxu0 %v11204_v34  ;;  %9323 = vmatprep.mubr.bf16.mxu1 %v12493_v13  ;;  %v11231_v13 = vcombine.high %v2428_v54, %v2432_v21  ;;  %v2471_v34 = vld [vmem:[#allocation8 + $0x1e30] sm:$0xff] }
 0x50e   :  { %9335 = vmatpush1.bf16.msra.mxu1 %v11206_v51  ;;  %8912 = vmatprep.subr.bf16.mxu0 %v11213_v24  ;;  %v2468_v51 = vld [vmem:[#allocation8 + $0x1e18] sm:$0xff]  ;;  %v11269_v11 = vcombine.high %v2467_v42, %v2471_v34  ;;  %v2483_v21 = vld [vmem:[#allocation8 + $0x1e90] sm:$0xff] }
 0x50f   :  { %9336 = vmatprep.subr.bf16.mxu1 %v11215_v8  ;;  %v2472_v24 = vld [vmem:[#allocation8 + $0x1e38] sm:$0xff]  ;;  %v11260_v8 = vcombine.low %v2459_v14, %v2463_v53 }
 0x510   :  { %v11271_v1 = vcombine.high %v2468_v51, %v2472_v24  ;;  %v11270_v0 = vcombine.low %v2468_v51, %v2472_v24  ;;  %v2523_v24 = vld [vmem:[#allocation8 + $0x1fd0] sm:$0xff] }
 0x511   :  { %8913 = vmatpush1.bf16.msra.mxu0 %v11212_v43  ;;  %v2479_v43 = vld [vmem:[#allocation8 + $0x1e70] sm:$0xff] }
 0x512   :  { %9337 = vmatpush1.bf16.msra.mxu1 %v11214_v15  ;;  %8914 = vmatprep.subr.bf16.mxu0 %v11221_v52  ;;  %v2476_v15 = vld [vmem:[#allocation8 + $0x1e58] sm:$0xff]  ;;  %v11277_v16 = vcombine.high %v2475_v58, %v2479_v43 }
 0x513   :  { %8900 = vmatmul.mubr.bf16.gmra.mrb[44].mxu0 %v12490_v61  ;;  %9338 = vmatprep.subr.bf16.mxu1 %v11223_v47  ;;  %v2480_v52 = vld [vmem:[#allocation8 + $0x1e78] sm:$0xff]  ;;  %v11268_v47 = vcombine.low %v2467_v42, %v2471_v34 }
 0x514   :  { %9324 = vmatmul.mubr.bf16.gmra.mrb[44].mxu1 %v12490_v61  ;;  %8942 = vmatprep.mubr.bf16.mxu0 %v12488_v41  ;;  %v11236_v61 = vcombine.low %v2435_v23, %v2439_v59  ;;  %v11279_v54 = vcombine.high %v2476_v15, %v2480_v52  ;;  %v11278_v23 = vcombine.low %v2476_v15, %v2480_v52 }
 0x515   :  { %8915 = vmatpush1.bf16.msra.mxu0 %v11220_v50  ;;  %9366 = vmatprep.mubr.bf16.mxu1 %v12488_v41  ;;  %v2451_v41 = vld [vmem:[#allocation8 + $0x1d90] sm:$0xff] }
 0x516   :  { %9339 = vmatpush1.bf16.msra.mxu1 %v11222_v46  ;;  %8916 = vmatprep.subr.bf16.mxu0 %v11229_v62  ;;  %v11253_v20 = vcombine.high %v2451_v41, %v2455_v2  ;;  %v11252_v4 = vcombine.low %v2451_v41, %v2455_v2  ;;  %v2487_v50 = vld [vmem:[#allocation8 + $0x1eb0] sm:$0xff]  ;;  %v2484_v46 = vld [vmem:[#allocation8 + $0x1e98] sm:$0xff] }
 0x517   :  { %9340 = vmatprep.subr.bf16.mxu1 %v11231_v13  ;;  %v2488_v62 = vld [vmem:[#allocation8 + $0x1eb8] sm:$0xff]  ;;  %v11276_v13 = vcombine.low %v2475_v58, %v2479_v43  ;;  %v11285_v59 = vcombine.high %v2483_v21, %v2487_v50 }
 0x518   :  { %v11287_v22 = vcombine.high %v2484_v46, %v2488_v62  ;;  %v11286_v45 = vcombine.low %v2484_v46, %v2488_v62  ;;  %v11784_v46 = vld [vmem:[#allocation11 + $0xc8] sm:$0xff]  }
 0x519   :  { %8917 = vmatpush1.bf16.msra.mxu0 %v11228_v17  ;;  %v2495_v17 = vld [vmem:[#allocation8 + $0x1ef0] sm:$0xff] }
 0x51a   :  { %9341 = vmatpush1.bf16.msra.mxu1 %v11230_v3  ;;  %8918 = vmatprep.subr.bf16.mxu0 %v11237_v29  ;;  %v2492_v3 = vld [vmem:[#allocation8 + $0x1ed8] sm:$0xff]  ;;  %v11293_v39 = vcombine.high %v2491_v38, %v2495_v17  ;;  %v11785_v62 = vld [vmem:[#allocation11 + $0x8] sm:$0xff]  }
 0x51b   :  { %9342 = vmatprep.subr.bf16.mxu1 %v11239_v44  ;;  %v2496_v29 = vld [vmem:[#allocation8 + $0x1ef8] sm:$0xff]  ;;  %v11284_v44 = vcombine.low %v2483_v21, %v2487_v50  ;;  %v11782_v21 = vld [vmem:[#allocation11 + $0x80] sm:$0xff]   ;;  %v11783_v50 = vld [vmem:[#allocation11 + $0x48] sm:$0xff]  }
 0x51c   :  { %v11295_v31 = vcombine.high %v2492_v3, %v2496_v29  ;;  %v11294_v41 = vcombine.low %v2492_v3, %v2496_v29  ;;  %v11794_v3 = vld [vmem:[#allocation11 + $0x98] sm:$0xff]   ;;  %v11795_v29 = vld [vmem:[#allocation11 + $0x60] sm:$0xff]  }
 0x51d   :  { %8919 = vmatpush1.bf16.msra.mxu0 %v11236_v61  ;;  %v2503_v61 = vld [vmem:[#allocation8 + $0x1f30] sm:$0xff] }
 0x51e   :  { %9343 = vmatpush1.bf16.msra.mxu1 %v11238_v5  ;;  %8920 = vmatprep.subr.bf16.mxu0 %v11245_v35  ;;  %v2500_v5 = vld [vmem:[#allocation8 + $0x1f18] sm:$0xff]  ;;  %v11301_v2 = vcombine.high %v2499_v26, %v2503_v61 }
 0x51f   :  { %9344 = vmatprep.subr.bf16.mxu1 %v11247_v19  ;;  %v2504_v35 = vld [vmem:[#allocation8 + $0x1f38] sm:$0xff]  ;;  %v11292_v19 = vcombine.low %v2491_v38, %v2495_v17  ;;  %v11791_v17 = vld [vmem:[#allocation11 + $0x58] sm:$0xff]  }
 0x520   :  { %v11303_v25 = vcombine.high %v2500_v5, %v2504_v35  ;;  %v11302_v14 = vcombine.low %v2500_v5, %v2504_v35  ;;  %v11790_v38 = vld [vmem:[#allocation11 + $0x90] sm:$0xff]  }
 0x521   :  { %8921 = vmatpush1.bf16.msra.mxu0 %v11244_v49  ;;  %v2511_v49 = vld [vmem:[#allocation8 + $0x1f70] sm:$0xff]  ;;  %v11805_v5 = vld [vmem:[#allocation11 + $0x30] sm:$0xff]  }
 0x522   :  { %9345 = vmatpush1.bf16.msra.mxu1 %v11246_v36  ;;  %8922 = vmatprep.subr.bf16.mxu0 %v11253_v20  ;;  %v2508_v36 = vld [vmem:[#allocation8 + $0x1f58] sm:$0xff]  ;;  %v11309_v53 = vcombine.high %v2507_v60, %v2511_v49 }
 0x523   :  { %9346 = vmatprep.subr.bf16.mxu1 %v11255_v63  ;;  %v2512_v20 = vld [vmem:[#allocation8 + $0x1f78] sm:$0xff]  ;;  %v11300_v63 = vcombine.low %v2499_v26, %v2503_v61 }
 0x524   :  { %v11311_v56 = vcombine.high %v2508_v36, %v2512_v20  ;;  %v11310_v42 = vcombine.low %v2508_v36, %v2512_v20  ;;  %v11803_v26 = vld [vmem:[#allocation11 + $0x70] sm:$0xff]   ;;  %v11813_v36 = vld [vmem:[#allocation11 + $0x100] sm:$0xff]  }
 0x525   :  { %8923 = vmatpush1.bf16.msra.mxu0 %v11252_v4  ;;  %v2519_v4 = vld [vmem:[#allocation8 + $0x1fb0] sm:$0xff]  ;;  %v11804_v61 = vld [vmem:[#allocation11 + $0xf0] sm:$0xff]   ;;  %v11814_v20 = vld [vmem:[#allocation11 + $0x180] sm:$0xff]  }
 0x526   :  { %9347 = vmatpush1.bf16.msra.mxu1 %v11254_v40  ;;  %8924 = vmatprep.subr.bf16.mxu0 %v11261_v9  ;;  %v2516_v40 = vld [vmem:[#allocation8 + $0x1f98] sm:$0xff]  ;;  %v11317_v34 = vcombine.high %v2515_v6, %v2519_v4 }
 0x527   :  { %9348 = vmatprep.subr.bf16.mxu1 %v11263_v18  ;;  %v2520_v9 = vld [vmem:[#allocation8 + $0x1fb8] sm:$0xff]  ;;  %v11308_v18 = vcombine.low %v2507_v60, %v2511_v49  ;;  %v11811_v60 = vld [vmem:[#allocation11 + $0x140] sm:$0xff]  }
 0x528   :  { %v11319_v51 = vcombine.high %v2516_v40, %v2520_v9  ;;  %v11318_v58 = vcombine.low %v2516_v40, %v2520_v9  ;;  %v11806_v35 = vld [vmem:[#allocation11 + $0xb0] sm:$0xff]   ;;  %v11812_v49 = vld [vmem:[#allocation11 + $0x1c0] sm:$0xff]   ;;  %v11823_v9 = vld [vmem:[#allocation11 + $0x158] sm:$0xff]  }
 0x529   :  { %8925 = vmatpush1.bf16.msra.mxu0 %v11260_v8  ;;  %v2527_v8 = vld [vmem:[#allocation8 + $0x1ff0] sm:$0xff]  ;;  %v11821_v40 = vld [vmem:[#allocation11 + $0x110] sm:$0xff]  }
 0x52a   :  { %9349 = vmatpush1.bf16.msra.mxu1 %v11262_v27  ;;  %8926 = vmatprep.subr.bf16.mxu0 %v11269_v11  ;;  %v2524_v27 = vld [vmem:[#allocation8 + $0x1fd8] sm:$0xff]  ;;  %v11325_v43 = vcombine.high %v2523_v24, %v2527_v8  ;;  %v11324_v52 = vcombine.low %v2523_v24, %v2527_v8  ;;  %v11831_v24 = vld [vmem:[#allocation11 + $0x168] sm:$0xff]  }
 0x52b   :  { %9350 = vmatprep.subr.bf16.mxu1 %v11271_v1  ;;  %v2528_v11 = vld [vmem:[#allocation8 + $0x1ff8] sm:$0xff]  ;;  %v11316_v1 = vcombine.low %v2515_v6, %v2519_v4  ;;  %v11834_v8 = vld [vmem:[#allocation11 + $0x1a8] sm:$0xff]  }
 0x52c   :  { %v11327_v15 = vcombine.high %v2524_v27, %v2528_v11  ;;  %v11819_v6 = vld [vmem:[#allocation11 + $0x150] sm:$0xff]  }
 0x52d   :  { %8927 = vmatpush1.bf16.msra.mxu0 %v11268_v47  ;;  %v11326_v47 = vcombine.low %v2524_v27, %v2528_v11  ;;  %v11820_v4 = vld [vmem:[#allocation11 + $0x1d0] sm:$0xff]  }
 0x52e   :  { %9351 = vmatpush1.bf16.msra.mxu1 %v11270_v0  ;;  %8928 = vmatprep.subr.bf16.mxu0 %v11277_v16  ;;  %v11779_v0 = vld [vmem:[#allocation11 + $0x40] sm:$0xff]   ;;  %v11835_v27 = vld [vmem:[#allocation11 + $0x170] sm:$0xff]  }
 0x52f   :  { %9352 = vmatprep.subr.bf16.mxu1 %v11279_v54  ;;  %v11780_v16 = vld [vmem:[#allocation11 + $0xc0] sm:$0xff]   ;;  %v11836_v11 = vld [vmem:[#allocation11 + $0x1f0] sm:$0xff]  }
 0x530   :  { %v11781_v54 = vld [vmem:[#allocation11] sm:$0xff]  }
 0x531   :  { %8929 = vmatpush1.bf16.msra.mxu0 %v11276_v13  ;;  %v11786_v13 = vld [vmem:[#allocation11 + $0x88] sm:$0xff]  }
 0x532   :  { %9353 = vmatpush1.bf16.msra.mxu1 %v11278_v23  ;;  %8930 = vmatprep.subr.bf16.mxu0 %v11285_v59  ;;  %v11787_v23 = vld [vmem:[#allocation11 + $0x50] sm:$0xff]  }
 0x533   :  { %9354 = vmatprep.subr.bf16.mxu1 %v11287_v22  ;;  %v11788_v59 = vld [vmem:[#allocation11 + $0xd0] sm:$0xff]  }
 0x534   :  { %v11789_v22 = vld [vmem:[#allocation11 + $0x10] sm:$0xff]  }
 0x535   :  { %8931 = vmatpush1.bf16.msra.mxu0 %v11284_v44  ;;  %v11796_v44 = vld [vmem:[#allocation11 + $0xe0] sm:$0xff]  }
 0x536   :  { %9355 = vmatpush1.bf16.msra.mxu1 %v11286_v45  ;;  %8932 = vmatprep.subr.bf16.mxu0 %v11293_v39  ;;  %v11797_v45 = vld [vmem:[#allocation11 + $0x20] sm:$0xff]  }
 0x537   :  { %9356 = vmatprep.subr.bf16.mxu1 %v11295_v31  ;;  %v11798_v39 = vld [vmem:[#allocation11 + $0xa0] sm:$0xff]   ;;  %v11799_v31 = vld [vmem:[#allocation11 + $0x68] sm:$0xff]  }
 0x539   :  { %8933 = vmatpush1.bf16.msra.mxu0 %v11292_v19  ;;  %v11807_v19 = vld [vmem:[#allocation11 + $0x78] sm:$0xff]  }
 0x53a   :  { %9357 = vmatpush1.bf16.msra.mxu1 %v11294_v41  ;;  %8934 = vmatprep.subr.bf16.mxu0 %v11301_v2  ;;  %v11808_v41 = vld [vmem:[#allocation11 + $0xf8] sm:$0xff]  }
 0x53b   :  { %9358 = vmatprep.subr.bf16.mxu1 %v11303_v25  ;;  %v11809_v2 = vld [vmem:[#allocation11 + $0x38] sm:$0xff]  }
 0x53c   :  { %v11810_v25 = vld [vmem:[#allocation11 + $0xb8] sm:$0xff]  }
 0x53d   :  { %8935 = vmatpush1.bf16.msra.mxu0 %v11300_v63  ;;  %v11815_v63 = vld [vmem:[#allocation11 + $0x148] sm:$0xff]  }
 0x53e   :  { %9359 = vmatpush1.bf16.msra.mxu1 %v11302_v14  ;;  %8936 = vmatprep.subr.bf16.mxu0 %v11309_v53  ;;  %v11816_v14 = vld [vmem:[#allocation11 + $0x1c8] sm:$0xff]  }
 0x53f   :  { %9360 = vmatprep.subr.bf16.mxu1 %v11311_v56  ;;  %v11817_v53 = vld [vmem:[#allocation11 + $0x108] sm:$0xff]  }
 0x540   :  { %v11818_v56 = vld [vmem:[#allocation11 + $0x188] sm:$0xff]  }
 0x541   :  { %8937 = vmatpush1.bf16.msra.mxu0 %v11308_v18  ;;  %v11827_v18 = vld [vmem:[#allocation11 + $0x160] sm:$0xff]  }
 0x542   :  { %9361 = vmatpush1.bf16.msra.mxu1 %v11310_v42  ;;  %8938 = vmatprep.subr.bf16.mxu0 %v11317_v34  ;;  %v11828_v42 = vld [vmem:[#allocation11 + $0x1e0] sm:$0xff]  }
 0x543   :  { %9362 = vmatprep.subr.bf16.mxu1 %v11319_v51  ;;  %v11829_v34 = vld [vmem:[#allocation11 + $0x120] sm:$0xff]  }
 0x544   :  { %v11830_v51 = vld [vmem:[#allocation11 + $0x1a0] sm:$0xff]  }
 0x545   :  { %8939 = vmatpush1.bf16.msra.mxu0 %v11316_v1  ;;  %v11837_v1 = vld [vmem:[#allocation11 + $0x130] sm:$0xff]  }
 0x546   :  { %9363 = vmatpush1.bf16.msra.mxu1 %v11318_v58  ;;  %8940 = vmatprep.subr.bf16.mxu0 %v11325_v43  ;;  %v11838_v58 = vld [vmem:[#allocation11 + $0x1b0] sm:$0xff]   ;;  %v11839_v43 = vld [vmem:[#allocation11 + $0x178] sm:$0xff]  }
 0x547   :  { %9364 = vmatprep.subr.bf16.mxu1 %v11327_v15  ;;  %v11840_v15 = vld [vmem:[#allocation11 + $0x1f8] sm:$0xff]  }
 0x549   :  { %8941 = vmatpush1.bf16.msra.mxu0 %v11324_v52  ;;  %v11841_v52 = vld [vmem:[#allocation11 + $0x138] sm:$0xff]  }
 0x54a   :  { %9365 = vmatpush1.bf16.msra.mxu1 %v11326_v47  ;;  %11393 = vmatprep.subr.bf16.mxu0 %v11779_v0  ;;  %v11842_v47 = vld [vmem:[#allocation11 + $0x1b8] sm:$0xff]  }
 0x54b   :  { %11421 = vmatprep.subr.bf16.mxu1 %v11780_v16  ;;  %v11843_v0 = vld [vmem:[#allocation10] sm:$0xff] }
 0x54c   :  { %8943 = vmatmul.mubr.bf16.vlgmr.msra.gmra.mrb[40].mxu0 %v12486_v30  ;;  %v12706_v16 = vld [vmem:[#allocation22_spill] sm:$0xff] }
 0x54d   :  { %9367 = vmatmul.mubr.bf16.vlgmr.msra.gmra.mrb[40].mxu1 %v12486_v30  ;;  %8952 = vmatprep.mubr.bf16.mxu0 %v12500_v10  ;;  %v11792_v30 = vld [vmem:[#allocation11 + $0xd8] sm:$0xff]  }
 0x54e   :  { %9376 = vmatprep.mubr.bf16.mxu1 %v12500_v10  ;;  %11394 = vmatpush3.bf16.msra.mxu0 %v11781_v54  ;;  %v11793_v10 = vld [vmem:[#allocation11 + $0x18] sm:$0xff]   ;;  %v2550_v54 = vrot.slane %v11843_v0, %v12706_v16 }
 0x54f   :  { %11422 = vmatpush3.bf16.msra.mxu1 %v11782_v21  ;;  %11395 = vmatprep.subr.bf16.mxu0 %v11783_v50  ;;  %v12707_v21 = vld [vmem:[#allocation24_spill] sm:$0xff] }
 0x550   :  { %11423 = vmatprep.subr.bf16.mxu1 %v11784_v46  ;;  %v2558_v50 = vrot.slane %v11843_v0, %v12707_v21  ;;  %v12708_v46 = vld [vmem:[#allocation23_spill] sm:$0xff] }
 0x551   :  { %v11328_v21 = vld [vmem:[#allocation13] ss:$0 sm:$0xff] }
 0x552   :  { %11396 = vmatpush3.bf16.msra.mxu0 %v11785_v62  ;;  %v2554_v62 = vrot.slane %v11843_v0, %v12708_v46 }
 0x553   :  { %11424 = vmatpush3.bf16.msra.mxu1 %v11786_v13  ;;  %11397 = vmatprep.subr.bf16.mxu0 %v11787_v23  ;;  %v12709_v13 = vld [vmem:[#allocation25_spill] sm:$0xff] }
 0x554   :  { %8953 = vmatmul.mubr.bf16.gmra.mrb[44].mxu0 %v12498_v57  ;;  %11425 = vmatprep.subr.bf16.mxu1 %v11788_v59  ;;  %v2562_v23 = vrot.slane %v11843_v0, %v12709_v13 }
 0x555   :  { %9377 = vmatmul.mubr.bf16.gmra.mrb[44].mxu1 %v12498_v57  ;;  %9986 = vmatprep.mubr.bf16.mxu0 %v12601_v48  ;;  %v11800_v57 = vld [vmem:[#allocation11 + $0xe8] sm:$0xff]  }
 0x556   :  { %11398 = vmatpush3.bf16.msra.mxu0 %v11789_v22  ;;  %10035 = vmatprep.mubr.bf16.mxu1 %v12603_v33  ;;  %v11801_v48 = vld [vmem:[#allocation11 + $0x28] sm:$0xff]  }
 0x557   :  { %11426 = vmatpush3.bf16.msra.mxu1 %v11790_v38  ;;  %11399 = vmatprep.subr.bf16.mxu0 %v11791_v17  ;;  %v11802_v33 = vld [vmem:[#allocation11 + $0xa8] sm:$0xff]  }
 0x558   :  { %11427 = vmatprep.subr.bf16.mxu1 %v11792_v30 }
 0x55a   :  { %11400 = vmatpush3.bf16.msra.mxu0 %v11793_v10 }
 0x55b   :  { %11428 = vmatpush3.bf16.msra.mxu1 %v11794_v3  ;;  %11401 = vmatprep.subr.bf16.mxu0 %v11795_v29 }
 0x55c   :  { %11429 = vmatprep.subr.bf16.mxu1 %v11796_v44 }
 0x55e   :  { %11402 = vmatpush3.bf16.msra.mxu0 %v11797_v45 }
 0x55f   :  { %11430 = vmatpush3.bf16.msra.mxu1 %v11798_v39  ;;  %11403 = vmatprep.subr.bf16.mxu0 %v11799_v31 }
 0x560   :  { %11431 = vmatprep.subr.bf16.mxu1 %v11800_v57 }
 0x562   :  { %11404 = vmatpush3.bf16.msra.mxu0 %v11801_v48 }
 0x563   :  { %11432 = vmatpush3.bf16.msra.mxu1 %v11802_v33  ;;  %11405 = vmatprep.subr.bf16.mxu0 %v11803_v26 }
 0x564   :  { %11433 = vmatprep.subr.bf16.mxu1 %v11804_v61 }
 0x566   :  { %11406 = vmatpush3.bf16.msra.mxu0 %v11805_v5 }
 0x567   :  { %11434 = vmatpush3.bf16.msra.mxu1 %v11806_v35  ;;  %11407 = vmatprep.subr.bf16.mxu0 %v11807_v19 }
 0x568   :  { %11435 = vmatprep.subr.bf16.mxu1 %v11808_v41 }
 0x56a   :  { %11408 = vmatpush3.bf16.msra.mxu0 %v11809_v2 }
 0x56b   :  { %11436 = vmatpush3.bf16.msra.mxu1 %v11810_v25  ;;  %11449 = vmatprep.subr.bf16.mxu0 %v11811_v60 }
 0x56c   :  { %11477 = vmatprep.subr.bf16.mxu1 %v11812_v49 }
 0x56d   :  { %9987 = vmatmul.mubr.bf16.vlgmr.msra.gmra.mrb[48].mxu0 %v12596_v7  ;;  %v11822_v7 = vld [vmem:[#allocation11 + $0x190] sm:$0xff]  }
 0x56e   :  { %10036 = vmatmul.mubr.bf16.vlgmr.msra.gmra.mrb[48].mxu1 %v12599_v28  ;;  %9994 = vmatprep.mubr.bf16.mxu0 %v12618_v12  ;;  %v11824_v28 = vld [vmem:[#allocation11 + $0x1d8] sm:$0xff]  }
 0x56f   :  { %10043 = vmatprep.mubr.bf16.mxu1 %v12620_v37  ;;  %11450 = vmatpush3.bf16.msra.mxu0 %v11813_v36  ;;  %v11825_v12 = vld [vmem:[#allocation11 + $0x118] sm:$0xff]  }
 0x570   :  { %11478 = vmatpush3.bf16.msra.mxu1 %v11814_v20  ;;  %11451 = vmatprep.subr.bf16.mxu0 %v11815_v63  ;;  %v11826_v37 = vld [vmem:[#allocation11 + $0x198] sm:$0xff]  }
 0x571   :  { %11479 = vmatprep.subr.bf16.mxu1 %v11816_v14 }
 0x573   :  { %11452 = vmatpush3.bf16.msra.mxu0 %v11817_v53 }
 0x574   :  { %11480 = vmatpush3.bf16.msra.mxu1 %v11818_v56  ;;  %11453 = vmatprep.subr.bf16.mxu0 %v11819_v6 }
 0x575   :  { %9995 = vmatmul.mubr.bf16.gmra.mrb[52].mxu0 %v12614_v32  ;;  %11481 = vmatprep.subr.bf16.mxu1 %v11820_v4  ;;  %v11832_v32 = vld [vmem:[#allocation11 + $0x1e8] sm:$0xff]  }
 0x576   :  { %10044 = vmatmul.mubr.bf16.gmra.mrb[52].mxu1 %v12616_v55  ;;  %v11833_v55 = vld [vmem:[#allocation11 + $0x128] sm:$0xff]  }
 0x577   :  { %11454 = vmatpush3.bf16.msra.mxu0 %v11821_v40 }
 0x578   :  { %11482 = vmatpush3.bf16.msra.mxu1 %v11822_v7  ;;  %11455 = vmatprep.subr.bf16.mxu0 %v11823_v9 }
 0x579   :  { %11483 = vmatprep.subr.bf16.mxu1 %v11824_v28 }
 0x57b   :  { %11456 = vmatpush3.bf16.msra.mxu0 %v11825_v12 }
 0x57c   :  { %11484 = vmatpush3.bf16.msra.mxu1 %v11826_v37  ;;  %11457 = vmatprep.subr.bf16.mxu0 %v11827_v18 }
 0x57d   :  { %11485 = vmatprep.subr.bf16.mxu1 %v11828_v42 }
 0x57f   :  { %11458 = vmatpush3.bf16.msra.mxu0 %v11829_v34 }
 0x580   :  { %11486 = vmatpush3.bf16.msra.mxu1 %v11830_v51  ;;  %11459 = vmatprep.subr.bf16.mxu0 %v11831_v24 }
 0x581   :  { %11487 = vmatprep.subr.bf16.mxu1 %v11832_v32 }
 0x583   :  { %11460 = vmatpush3.bf16.msra.mxu0 %v11833_v55 }
 0x584   :  { %11488 = vmatpush3.bf16.msra.mxu1 %v11834_v8  ;;  %11461 = vmatprep.subr.bf16.mxu0 %v11835_v27 }
 0x585   :  { %11489 = vmatprep.subr.bf16.mxu1 %v11836_v11 }
 0x587   :  { %11462 = vmatpush3.bf16.msra.mxu0 %v11837_v1 }
 0x588   :  { %11490 = vmatpush3.bf16.msra.mxu1 %v11838_v58  ;;  %11463 = vmatprep.subr.bf16.mxu0 %v11839_v43 }
 0x589   :  { %11491 = vmatprep.subr.bf16.mxu1 %v11840_v15 }
 0x58b   :  { %11464 = vmatpush3.bf16.msra.mxu0 %v11841_v52 }
 0x58c   :  { %11492 = vmatpush3.bf16.msra.mxu1 %v11842_v47 }
 0x61f   :  { %v8944_v59 = vpop.f32.mrb[40].mxu0 }
 0x620   :  { %v11521_v22 = vadd.f32 %v8944_v59, %v2550_v54  ;;  %v9368_v38 = vpop.f32.mrb[40].mxu1  ;;  %v8946_v17 = vpop.f32.mrb[41].mxu0 }
 0x621   :  { %v11529_v30 = vadd.f32 %v9368_v38, %v2558_v50  ;;  %v11522_v10 = vadd.f32 %v8946_v17, %v2554_v62  ;;  %v9370_v3 = vpop.f32.mrb[41].mxu1  ;;  %v8948_v29 = vpop.f32.mrb[42].mxu0 }
 0x622   :  { %v11530_v44 = vadd.f32 %v9370_v3, %v2562_v23  ;;  %v11523_v45 = vadd.f32 %v8948_v29, %v2550_v54  ;;  %v9372_v39 = vpop.f32.mrb[42].mxu1  ;;  %v8950_v31 = vpop.f32.mrb[43].mxu0  ;;  %v9391_v26 = vmax.f32 %v11521_v22, 0.0 }
 0x623   :  { %v11531_v57 = vadd.f32 %v9372_v39, %v2558_v50  ;;  %v11524_v48 = vadd.f32 %v8950_v31, %v2554_v62  ;;  %v9374_v33 = vpop.f32.mrb[43].mxu1  ;;  %v9393_v35 = vmax.f32 %v11529_v30, 0.0  ;;  %v9392_v19 = vmax.f32 %v11522_v10, 0.0 }
 0x624   :  { %v9399_v61 = vmax.f32 %v11523_v45, 0.0  ;;  %v11532_v5 = vadd.f32 %v9374_v33, %v2562_v23  ;;  %v9394_v25 = vmax.f32 %v11530_v44, 0.0 }
 0x625   :  { %v9401_v41 = vmax.f32 %v11531_v57, 0.0  ;;  %v9400_v2 = vmax.f32 %v11524_v48, 0.0 }
 0x626   :  { %v9423_v60 = vpack.c.bf16 %v9399_v61, %v9391_v26  ;;  %v9402_v49 = vmax.f32 %v11532_v5, 0.0 }
 0x627   :  { %v9425_v36 = vpack.c.bf16 %v9401_v41, %v9393_v35  ;;  %v9424_v20 = vpack.c.bf16 %v9400_v2, %v9392_v19  ;;  %v8954_v63 = vpop.f32.mrb[44].mxu0 }
 0x628   :  { %v9426_v14 = vpack.c.bf16 %v9402_v49, %v9394_v25  ;;  %v11525_v53 = vadd.f32 %v8954_v63, %v2550_v54  ;;  %v9378_v56 = vpop.f32.mrb[44].mxu1  ;;  %v8956_v6 = vpop.f32.mrb[45].mxu0 }
 0x629   :  { %v11533_v4 = vadd.f32 %v9378_v56, %v2558_v50  ;;  %v11526_v40 = vadd.f32 %v8956_v6, %v2554_v62  ;;  %v9380_v7 = vpop.f32.mrb[45].mxu1  ;;  %v8958_v9 = vpop.f32.mrb[46].mxu0  ;;  %10084 = vmatprep.mubr.bf16.mxu0 %v9424_v20 }
 0x62a   :  { %v11534_v28 = vadd.f32 %v9380_v7, %v2562_v23  ;;  %v11527_v12 = vadd.f32 %v8958_v9, %v2550_v54  ;;  %v9382_v37 = vpop.f32.mrb[46].mxu1  ;;  %10133 = vmatprep.mubr.bf16.mxu1 %v9426_v14  ;;  %v8960_v18 = vpop.f32.mrb[47].mxu0  ;;  %10085 = vmatmul.mubr.bf16.vlgmr.msra.gmra.mrb[56].mxu0 %v9423_v60  ;;  %v9407_v24 = vmax.f32 %v11525_v53, 0.0 }
 0x62b   :  { %v11535_v42 = vadd.f32 %v9382_v37, %v2558_v50  ;;  %v11528_v34 = vadd.f32 %v8960_v18, %v2554_v62  ;;  %v9384_v51 = vpop.f32.mrb[47].mxu1  ;;  %10134 = vmatmul.mubr.bf16.vlgmr.msra.gmra.mrb[56].mxu1 %v9425_v36  ;;  %v9409_v8 = vmax.f32 %v11533_v4, 0.0  ;;  %v9408_v27 = vmax.f32 %v11526_v40, 0.0 }
 0x62c   :  { %v9415_v32 = vmax.f32 %v11527_v12, 0.0  ;;  %v11536_v55 = vadd.f32 %v9384_v51, %v2562_v23  ;;  %v9410_v58 = vmax.f32 %v11534_v28, 0.0 }
 0x62d   :  { %v9417_v11 = vmax.f32 %v11535_v42, 0.0  ;;  %v9416_v1 = vmax.f32 %v11528_v34, 0.0 }
 0x62e   :  { %v9431_v43 = vpack.c.bf16 %v9415_v32, %v9407_v24  ;;  %v9418_v15 = vmax.f32 %v11536_v55, 0.0 }
 0x62f   :  { %v9433_v52 = vpack.c.bf16 %v9417_v11, %v9409_v8  ;;  %v9432_v47 = vpack.c.bf16 %v9416_v1, %v9408_v27 }
 0x630   :  { %v9434_v0 = vpack.c.bf16 %v9418_v15, %v9410_v58 }
 0x631   :  { %10092 = vmatprep.mubr.bf16.mxu0 %v9432_v47 }
 0x632   :  { %10141 = vmatprep.mubr.bf16.mxu1 %v9434_v0  ;;  %10093 = vmatmul.mubr.bf16.gmra.mrb[60].mxu0 %v9431_v43 }
 0x633   :  { %10142 = vmatmul.mubr.bf16.gmra.mrb[60].mxu1 %v9433_v52 }
 0x640   :  { %v11409_v16 = vpop.f32.mrb[48].mxu0 }
 0x641   :  { %v11437_v54 = vpop.f32.mrb[48].mxu1  ;;  %v11410_v50 = vpop.f32.mrb[49].mxu0 }
 0x642   :  { %v11411_v46 = vadd.f32 %v11410_v50, %v11409_v16  ;;  %v11438_v62 = vpop.f32.mrb[49].mxu1  ;;  %v11412_v13 = vpop.f32.mrb[50].mxu0 }
 0x643   :  { %v11439_v23 = vadd.f32 %v11438_v62, %v11437_v54  ;;  %v11440_v59 = vpop.f32.mrb[50].mxu1  ;;  %v11413_v22 = vpop.f32.mrb[51].mxu0 }
 0x644   :  { %v9989_v38 = vadd.f32 %v11411_v46, %v11328_v21  ;;  %v11414_v17 = vadd.f32 %v11413_v22, %v11412_v13  ;;  %v11441_v30 = vpop.f32.mrb[51].mxu1 }
 0x645   :  { %v11442_v10 = vadd.f32 %v11441_v30, %v11440_v59 }
 0x646   :  { %v10038_v3 = vadd.f32 %v11439_v23, %v9989_v38  ;;  %v9992_v29 = vadd.f32 %v11414_v17, %v11328_v21 }
 0x648   :  { %v10041_v44 = vadd.f32 %v11442_v10, %v9992_v29  ;;  %v11415_v45 = vpop.f32.mrb[52].mxu0 }
 0x649   :  { %v11443_v39 = vpop.f32.mrb[52].mxu1  ;;  %v11416_v31 = vpop.f32.mrb[53].mxu0 }
 0x64a   :  { %v11417_v57 = vadd.f32 %v11416_v31, %v11415_v45  ;;  %v11444_v48 = vpop.f32.mrb[53].mxu1  ;;  %v11418_v33 = vpop.f32.mrb[54].mxu0 }
 0x64b   :  { %v11445_v26 = vadd.f32 %v11444_v48, %v11443_v39  ;;  %v11446_v61 = vpop.f32.mrb[54].mxu1  ;;  %v11419_v5 = vpop.f32.mrb[55].mxu0 }
 0x64c   :  { %v9997_v35 = vadd.f32 %v11417_v57, %v11328_v21  ;;  %v11420_v19 = vadd.f32 %v11419_v5, %v11418_v33  ;;  %v11447_v41 = vpop.f32.mrb[55].mxu1 }
 0x64d   :  { %v11448_v2 = vadd.f32 %v11447_v41, %v11446_v61 }
 0x64e   :  { %v10046_v25 = vadd.f32 %v11445_v26, %v9997_v35  ;;  %v10000_v60 = vadd.f32 %v11420_v19, %v11328_v21 }
 0x650   :  { %v10049_v49 = vadd.f32 %v11448_v2, %v10000_v60 }
 0x6fd   :  { %v11465_v36 = vpop.f32.mrb[56].mxu0 }
 0x6fe   :  { %v11493_v20 = vpop.f32.mrb[56].mxu1  ;;  %v11466_v63 = vpop.f32.mrb[57].mxu0 }
 0x6ff   :  { %v11467_v14 = vadd.f32 %v11466_v63, %v11465_v36  ;;  %v11494_v53 = vpop.f32.mrb[57].mxu1  ;;  %v11468_v56 = vpop.f32.mrb[58].mxu0 }
 0x700   :  { %v11495_v6 = vadd.f32 %v11494_v53, %v11493_v20  ;;  %v11496_v4 = vpop.f32.mrb[58].mxu1  ;;  %v11469_v40 = vpop.f32.mrb[59].mxu0 }
 0x701   :  { %v10087_v7 = vadd.f32 %v11467_v14, %v10038_v3  ;;  %v11470_v9 = vadd.f32 %v11469_v40, %v11468_v56  ;;  %v11497_v28 = vpop.f32.mrb[59].mxu1 }
 0x702   :  { %v11498_v12 = vadd.f32 %v11497_v28, %v11496_v4 }
 0x703   :  { %v10136_v37 = vadd.f32 %v11495_v6, %v10087_v7  ;;  %v10090_v18 = vadd.f32 %v11470_v9, %v10041_v44 }
 0x705   :  { %10150 = vst [vmem:[#allocation14] sm:$0xff] %v10136_v37  ;;  %v10139_v42 = vadd.f32 %v11498_v12, %v10090_v18  ;;  %v11471_v34 = vpop.f32.mrb[60].mxu0 }
 0x706   :  { %v11499_v51 = vpop.f32.mrb[60].mxu1  ;;  %v11472_v24 = vpop.f32.mrb[61].mxu0 }
 0x707   :  { %10151 = vst [vmem:[#allocation14 + $0x8] sm:$0xff] %v10139_v42  ;;  %v11473_v32 = vadd.f32 %v11472_v24, %v11471_v34  ;;  %v11500_v55 = vpop.f32.mrb[61].mxu1  ;;  %v11474_v8 = vpop.f32.mrb[62].mxu0 }
 0x708   :  { %v11501_v27 = vadd.f32 %v11500_v55, %v11499_v51  ;;  %v11502_v11 = vpop.f32.mrb[62].mxu1  ;;  %v11475_v1 = vpop.f32.mrb[63].mxu0 }
 0x709   :  { %v10095_v58 = vadd.f32 %v11473_v32, %v10046_v25  ;;  %v11476_v43 = vadd.f32 %v11475_v1, %v11474_v8  ;;  %v11503_v15 = vpop.f32.mrb[63].mxu1 }
 0x70a   :  { %v11504_v52 = vadd.f32 %v11503_v15, %v11502_v11 }
 0x70b   :  { %v10144_v47 = vadd.f32 %v11501_v27, %v10095_v58  ;;  %v10098_v0 = vadd.f32 %v11476_v43, %v10049_v49 }
 0x70d   :  { %10152 = vst [vmem:[#allocation14 + $0x10] sm:$0xff] %v10144_v47  ;;  %v10147_v16 = vadd.f32 %v11504_v52, %v10098_v0 }
 0x70f   :  { %10153 = vst [vmem:[#allocation14 + $0x18] sm:$0xff] %v10147_v16 }
 0x710   :  { %12009 = shalt.err (!%p12006_p4)
}
 0x711   :  { %s12010_s12 = scalar_lea.hbm %s12691_s7, 512 }
 0x712   :  { %p12011_p5 = scmp.ne.s32.totalorder %s12691_s7, %s12010_s12  ;;  %p12014_p6 = scmp.lt.u32.totalorder %s12010_s12, %s12691_s7 }
 0x714   :  { %p12016_p7 = pnand %p12014_p6, %p12011_p5 }
 0x716   :  { %12019 = shalt.err (!%p12016_p7)
}
 0x717   :  { %s12044_s20 = smov 128   ;;  %s12045_s21 = smov 8  }
 0x718   :  { %10165 = dma.vmem_to_hbm [thread:$0]  %s10160_s15, 512, %s12691_s7, [#allocation4], %s12044_s20, %s12044_s20, %s12045_s21  }
 0x719   :  { %12028 = dma.done.wait [#allocation4], 512  }
 0x71a   :  { %12029 = vsyncadd [#allocation4], 4294966784 }
 0x71b   :  { %10169 = vsyncpa [#allocation3], 1 }
 0x71c   :  { %10170 = vsyncpa [#allocation6], 1 }
 0x71d   :  { %10171 = vsyncpa [#allocation9], 1 }
 0x71e   :  { %10172 = vsyncpa [#allocation12], 1 }
 0x71f   :  { %10173 = vsyncpa [#allocation4], 1 }

</bundles_post_ra>
